<compile_context>
chip_gen: v6e
topology: v6e:2x2x1
jax: 0.10.0
libtpu: 0.0.40
codegen_flags: <defaults>
</compile_context>

<pallas_src>
import functools
import math

import jax
import jax.numpy as jnp
from jax.experimental import pallas as pl
from jax.experimental.pallas import tpu as pltpu


# -----------------------------------------------------------------------------
# SamePad2d padding arithmetic (TF "SAME" for the given kernel/stride)
# -----------------------------------------------------------------------------
def same_pad_2d(h, w, kernel_size=3, stride=2):
    out_h = math.ceil(h / stride)
    out_w = math.ceil(w / stride)
    pad_h = max((out_h - 1) * stride + kernel_size - h, 0)
    pad_w = max((out_w - 1) * stride + kernel_size - w, 0)
    pad_top = pad_h // 2
    pad_bottom = pad_h - pad_top
    pad_left = pad_w // 2
    pad_right = pad_w - pad_left
    return pad_top, pad_bottom, pad_left, pad_right


def _round_up(x, m):
    return ((x + m - 1) // m) * m


# -----------------------------------------------------------------------------
# Pallas kernel: fused (1x1 conv + upsample-add) -> zero-pad -> 3x3 conv
# -----------------------------------------------------------------------------
def topdown_kernel(x_ref, y_ref, w1_ref, b1_ref, w2_ref, b2_ref, o_ref,
                   spad_ref, acc_ref, *,
                   H, W, Cout, pad_top, pad_left, Wpr, Ho, Wo, TR1, TR2):
    # x_ref   : (H*W, Cin)       input image, spatially flattened (row-major)
    # y_ref   : (H//2, W, Cout)  top-down features, width already 2x-repeated
    # w1_ref  : (Cin, Cout)      1x1 conv weight
    # b1_ref  : (1, Cout)
    # w2_ref  : (9, Cout, Cout)  3x3 conv weight, taps flattened row-major
    # b2_ref  : (1, Cout)
    # o_ref   : (Ho, Wo, Cout)   output
    # spad_ref: (R_spad, Cout)   flattened zero-padded sum, row stride Wpr
    # acc_ref : (TR2*Wpr, Cout)  conv2 accumulator (VMEM, bounds vreg pressure)
    f32 = jnp.float32
    R_spad = spad_ref.shape[0]

    # ---- zero only the pad border / tail (interior is overwritten below) ----
    n_top = pad_top * Wpr + pad_left
    if n_top > 0:
        spad_ref[pl.ds(0, n_top), :] = jnp.zeros((n_top, Cout), f32)
    bot0 = (pad_top + H) * Wpr
    n_bot = R_spad - bot0
    if n_bot > 0:
        spad_ref[pl.ds(bot0, n_bot), :] = jnp.zeros((n_bot, Cout), f32)

    w1 = w1_ref[...]
    b1 = b1_ref[...].astype(f32)                       # hoisted, (1, Cout)
    gap = Wpr - W                                      # right pad + align gap
    zgap = jnp.zeros((gap, Cout), f32) if gap > 0 else None   # hoisted zeros

    # ---- stage 1: 1x1 conv + bias + fused (height) 2x-upsample add ----------
    nb1 = H // TR1
    for t in range(nb1):                               # static unroll
        m0 = t * TR1 * W
        s = jnp.dot(x_ref[pl.ds(m0, TR1 * W), :], w1,
                    preferred_element_type=f32) + b1   # (TR1*W, Cout), M>=128
        for rp in range(TR1 // 2):
            y_row = y_ref[t * (TR1 // 2) + rp].astype(f32)   # (W, Cout)
            for a in range(2):                          # nearest 2x in height
                r = 2 * rp + a
                h = t * TR1 + r
                row = s[r * W:(r + 1) * W, :] + y_row   # (W, Cout)
                base = (pad_top + h) * Wpr + pad_left   # static, 8-aligned here
                spad_ref[pl.ds(base, W), :] = row
                if gap > 0:                             # right pad / gap zeros
                    spad_ref[pl.ds(base + W, gap), :] = zgap

    # ---- stage 2: 3x3 conv (VALID on the padded buffer) ----------------------
    # Output position (h, w) lives at flat row h*Wpr + w; a (di, dj) tap is a
    # constant flat-row offset, so each tap is one big (TR2*Wpr, Cout) matmul.
    b2 = b2_ref[...].astype(f32)                        # hoisted, (1, Cout)
    M2 = TR2 * Wpr
    nb2 = (Ho + TR2 - 1) // TR2
    for t in range(nb2):                                # static unroll
        p0 = t * TR2 * Wpr
        acc_ref[...] = jnp.dot(spad_ref[pl.ds(p0, M2), :], w2_ref[0],
                               preferred_element_type=f32) + b2
        for tap in range(1, 9):
            di, dj = tap // 3, tap % 3
            patch = spad_ref[pl.ds(p0 + di * Wpr + dj, M2), :]
            acc_ref[...] += jnp.dot(patch, w2_ref[tap],
                                    preferred_element_type=f32)
        nrows = min(TR2, Ho - t * TR2)
        for r in range(nrows):                          # extract valid columns
            h = t * TR2 + r
            o_ref[h] = acc_ref[pl.ds(r * Wpr, Wo), :].astype(o_ref.dtype)


# -----------------------------------------------------------------------------
# Wrapper: NCHW interface, layout glue, pallas_call setup
# -----------------------------------------------------------------------------
def topdown_forward(x_nchw, y_nchw, params):
    w1, b1, w2, b2 = params    # w1:(Cin,Cout) b1:(Cout,) w2:(3,3,Cout,Cout) b2:(Cout,)
    N, Cin, H, W = x_nchw.shape
    Cout = w1.shape[1]
    H2, W2 = y_nchw.shape[2], y_nchw.shape[3]
    assert H == 2 * H2 and W == 2 * W2, "x must be 2x the spatial size of y"
    assert H % 2 == 0 and W % 2 == 0

    # NCHW -> NHWC; x flattened spatially so conv1 is a plain 2D matmul.
    x = jnp.transpose(x_nchw, (0, 2, 3, 1)).reshape(N, H * W, Cin)
    y = jnp.transpose(y_nchw, (0, 2, 3, 1))             # (N, H2, W2, Cout)
    # Width-only nearest repeat (height repeat is fused inside the kernel).
    # TODO(synk): fuse the width repeat as an in-kernel sublane interleave.
    y = jnp.repeat(y, 2, axis=2)                        # (N, H2, W, Cout)

    pad_top, pad_bottom, pad_left, pad_right = same_pad_2d(H, W, 3, 2)
    Hp, Wp = H + pad_top + pad_bottom, W + pad_left + pad_right
    Ho, Wo = Hp - 2, Wp - 2
    Wpr = _round_up(Wp, 8)                              # sublane-aligned row stride

    TR1 = next(c for c in (8, 4, 2) if H % c == 0)      # conv1 row block (even)
    TR2 = max(1, min(Ho, 256 // Wpr))                   # conv2 output-row block
    nb2 = pl.cdiv(Ho, TR2)
    R_spad = _round_up(max(Hp * Wpr, nb2 * TR2 * Wpr + 2 * Wpr + 2), 8)

    w2_flat = w2.reshape(9, Cout, Cout)
    b1_r = b1.reshape(1, Cout)
    b2_r = b2.reshape(1, Cout)

    kernel = functools.partial(
        topdown_kernel, H=H, W=W, Cout=Cout, pad_top=pad_top,
        pad_left=pad_left, Wpr=Wpr, Ho=Ho, Wo=Wo, TR1=TR1, TR2=TR2)

    out_nhwc = pl.pallas_call(
        kernel,
        out_shape=jax.ShapeDtypeStruct((N, Ho, Wo, Cout), x_nchw.dtype),
        grid=(N,),
        in_specs=[
            pl.BlockSpec((None, H * W, Cin), lambda n: (n, 0, 0)),
            pl.BlockSpec((None, H2, W, Cout), lambda n: (n, 0, 0, 0)),
            pl.BlockSpec((Cin, Cout), lambda n: (0, 0)),
            pl.BlockSpec((1, Cout), lambda n: (0, 0)),
            pl.BlockSpec((9, Cout, Cout), lambda n: (0, 0, 0)),
            pl.BlockSpec((1, Cout), lambda n: (0, 0)),
        ],
        out_specs=pl.BlockSpec((None, Ho, Wo, Cout), lambda n: (n, 0, 0, 0)),
        scratch_shapes=[
            pltpu.VMEM((R_spad, Cout), jnp.float32),      # flattened padded sum
            pltpu.VMEM((TR2 * Wpr, Cout), jnp.float32),   # conv2 accumulator
        ],
        compiler_params=pltpu.CompilerParams(
            dimension_semantics=("parallel",),
            vmem_limit_bytes=64 * 1024 * 1024),
    )(x, y, w1, b1_r, w2_flat, b2_r)

    # NHWC -> NCHW
    return jnp.transpose(out_nhwc, (0, 3, 1, 2))


# -----------------------------------------------------------------------------
# Pure-JAX reference (for correctness check)
# -----------------------------------------------------------------------------
def topdown_reference(x_nchw, y_nchw, params):
    w1, b1, w2, b2 = params
    x = jnp.transpose(x_nchw, (0, 2, 3, 1))
    y = jnp.transpose(y_nchw, (0, 2, 3, 1))
    yup = jnp.repeat(jnp.repeat(y, 2, axis=1), 2, axis=2)

    s = jax.lax.conv_general_dilated(
        x, w1.reshape(1, 1, *w1.shape), (1, 1), "VALID",
        dimension_numbers=("NHWC", "HWIO", "NHWC")) + b1
    s = s + yup

    pt, pb, pleft, pr = same_pad_2d(x.shape[1], x.shape[2], 3, 2)
    sp = jnp.pad(s, ((0, 0), (pt, pb), (pleft, pr), (0, 0)))

    out = jax.lax.conv_general_dilated(
        sp, w2, (1, 1), "VALID",
        dimension_numbers=("NHWC", "HWIO", "NHWC")) + b2
    return jnp.transpose(out, (0, 3, 1, 2))


# -----------------------------------------------------------------------------
if __name__ == "__main__":
    N, Cin, Cout, H, W = 2, 4, 8, 16, 16

    key = jax.random.PRNGKey(0)
    k1, k2, k3, k4, k5, k6 = jax.random.split(key, 6)

    # Deterministic synthetic parameters (conv1: 1x1, conv2: 3x3 in HWIO layout)
    w1 = jax.random.normal(k1, (Cin, Cout), jnp.float32) / math.sqrt(Cin)
    b1 = jax.random.normal(k2, (Cout,), jnp.float32) * 0.1
    w2 = jax.random.normal(k3, (3, 3, Cout, Cout), jnp.float32) / math.sqrt(9 * Cout)
    b2 = jax.random.normal(k4, (Cout,), jnp.float32) * 0.1
    params = (w1, b1, w2, b2)

    # Inputs (PyTorch NCHW convention): x at full res, y at half res.
    x = jax.random.normal(k5, (N, Cin, H, W), jnp.float32)
    y = jax.random.normal(k6, (N, Cout, H // 2, W // 2), jnp.float32)

    out = topdown_forward(x, y, params)
    out = jax.block_until_ready(out)

    ref = topdown_reference(x, y, params)
    assert out.shape == ref.shape, (out.shape, ref.shape)
    assert jnp.allclose(out, ref, rtol=1e-2, atol=1e-2), float(jnp.max(jnp.abs(out - ref)))

    print("KERNEL_OK")
</pallas_src>

<mosaic_0001>
module attributes {stable_mosaic.version = 11 : i64} {
  func.func @topdown_kernel(%arg0: i32, %arg1: memref<1x256x4xf32, #tpu.memory_space<vmem>>, %arg2: memref<1x8x16x8xf32, #tpu.memory_space<vmem>>, %arg3: memref<4x8xf32, #tpu.memory_space<vmem>>, %arg4: memref<1x8xf32, #tpu.memory_space<vmem>>, %arg5: memref<9x8x8xf32, #tpu.memory_space<vmem>>, %arg6: memref<1x8xf32, #tpu.memory_space<vmem>>, %arg7: memref<1x15x15x8xf32, #tpu.memory_space<vmem>>, %arg8: memref<536x8xf32, #tpu.memory_space<vmem>>, %arg9: memref<240x8xf32, #tpu.memory_space<vmem>>) attributes {dimension_semantics = [#tpu.dimension_semantics<parallel>], iteration_bounds = array<i64: 2>, scalar_prefetch = 0 : i64, scratch_operands = 2 : i64, tpu.core_type = #tpu.core_type<tc>, window_params = [{transform_indices = @transform_0, window_bounds = array<i64: 1, 256, 4>}, {transform_indices = @transform_1, window_bounds = array<i64: 1, 8, 16, 8>}, {pipeline_mode = #tpu.pipeline_mode<synchronous>, transform_indices = @transform_2, window_bounds = array<i64: 4, 8>}, {pipeline_mode = #tpu.pipeline_mode<synchronous>, transform_indices = @transform_3, window_bounds = array<i64: 1, 8>}, {pipeline_mode = #tpu.pipeline_mode<synchronous>, transform_indices = @transform_4, window_bounds = array<i64: 9, 8, 8>}, {pipeline_mode = #tpu.pipeline_mode<synchronous>, transform_indices = @transform_5, window_bounds = array<i64: 1, 8>}, {transform_indices = @transform_6, window_bounds = array<i64: 1, 15, 15, 8>}]} {
    %cst = arith.constant 0.000000e+00 : f32
    %0 = vector.broadcast %cst : f32 to vector<152x8xf32>
    %c384 = arith.constant 384 : index
    %c0 = arith.constant 0 : index
    %1 = vector.load %arg8[%c384, %c0] : memref<536x8xf32, #tpu.memory_space<vmem>>, vector<152x8xf32>
    tpu.vector_store %arg8[%c384, %c0], %0 {strides = array<i32>} : memref<536x8xf32, #tpu.memory_space<vmem>>, vector<152x8xf32>,
    %c0_0 = arith.constant 0 : index
    %c0_1 = arith.constant 0 : index
    %2 = vector.load %arg3[%c0_0, %c0_1] : memref<4x8xf32, #tpu.memory_space<vmem>>, vector<4x8xf32>
    %c0_2 = arith.constant 0 : index
    %c0_3 = arith.constant 0 : index
    %3 = vector.load %arg4[%c0_2, %c0_3] : memref<1x8xf32, #tpu.memory_space<vmem>>, vector<1x8xf32>
    %cst_4 = arith.constant 0.000000e+00 : f32
    %4 = vector.broadcast %cst_4 : f32 to vector<8x8xf32>
    %c0_5 = arith.constant 0 : index
    %c0_6 = arith.constant 0 : index
    %c0_7 = arith.constant 0 : index
    %5 = vector.load %arg1[%c0_5, %c0_6, %c0_7] : memref<1x256x4xf32, #tpu.memory_space<vmem>>, vector<1x128x4xf32>
    %6 = vector.shape_cast %5 : vector<1x128x4xf32> to vector<128x4xf32>
    %cst_8 = arith.constant dense<0.000000e+00> : vector<128x8xf32>
    %7 = tpu.matmul %6, %2, %cst_8 {dimension_numbers = #tpu.dot_dimension_numbers<[1], [0], [0], [1], [0, 0, 1, 1], [], []>} : vector<128x4xf32>, vector<4x8xf32>, vector<128x8xf32> -> vector<128x8xf32>
    %8 = vector.broadcast %3 : vector<1x8xf32> to vector<128x8xf32>
    %9 = arith.addf %7, %8 : vector<128x8xf32>
    %c0_9 = arith.constant 0 : index
    %c0_10 = arith.constant 0 : index
    %c0_11 = arith.constant 0 : index
    %c0_12 = arith.constant 0 : index
    %10 = vector.load %arg2[%c0_9, %c0_10, %c0_11, %c0_12] : memref<1x8x16x8xf32, #tpu.memory_space<vmem>>, vector<1x1x16x8xf32>
    %11 = vector.shape_cast %10 : vector<1x1x16x8xf32> to vector<16x8xf32>
    %12 = vector.extract_strided_slice %9 {offsets = [0, 0], sizes = [16, 8], strides = [1, 1]} : vector<128x8xf32> to vector<16x8xf32>
    %13 = arith.addf %12, %11 : vector<16x8xf32>
    %c0_13 = arith.constant 0 : index
    %c0_14 = arith.constant 0 : index
    %14 = vector.load %arg8[%c0_13, %c0_14] : memref<536x8xf32, #tpu.memory_space<vmem>>, vector<16x8xf32>
    tpu.vector_store %arg8[%c0_13, %c0_14], %13 {strides = array<i32>} : memref<536x8xf32, #tpu.memory_space<vmem>>, vector<16x8xf32>,
    %c16 = arith.constant 16 : index
    %c0_15 = arith.constant 0 : index
    %15 = vector.load %arg8[%c16, %c0_15] : memref<536x8xf32, #tpu.memory_space<vmem>>, vector<8x8xf32>
    tpu.vector_store %arg8[%c16, %c0_15], %4 {strides = array<i32>} : memref<536x8xf32, #tpu.memory_space<vmem>>, vector<8x8xf32>,
    %16 = vector.extract_strided_slice %9 {offsets = [16, 0], sizes = [16, 8], strides = [1, 1]} : vector<128x8xf32> to vector<16x8xf32>
    %17 = arith.addf %16, %11 : vector<16x8xf32>
    %c24 = arith.constant 24 : index
    %c0_16 = arith.constant 0 : index
    %18 = vector.load %arg8[%c24, %c0_16] : memref<536x8xf32, #tpu.memory_space<vmem>>, vector<16x8xf32>
    tpu.vector_store %arg8[%c24, %c0_16], %17 {strides = array<i32>} : memref<536x8xf32, #tpu.memory_space<vmem>>, vector<16x8xf32>,
    %c40 = arith.constant 40 : index
    %c0_17 = arith.constant 0 : index
    %19 = vector.load %arg8[%c40, %c0_17] : memref<536x8xf32, #tpu.memory_space<vmem>>, vector<8x8xf32>
    tpu.vector_store %arg8[%c40, %c0_17], %4 {strides = array<i32>} : memref<536x8xf32, #tpu.memory_space<vmem>>, vector<8x8xf32>,
    %c0_18 = arith.constant 0 : index
    %c1 = arith.constant 1 : index
    %c0_19 = arith.constant 0 : index
    %c0_20 = arith.constant 0 : index
    %20 = vector.load %arg2[%c0_18, %c1, %c0_19, %c0_20] : memref<1x8x16x8xf32, #tpu.memory_space<vmem>>, vector<1x1x16x8xf32>
    %21 = vector.shape_cast %20 : vector<1x1x16x8xf32> to vector<16x8xf32>
    %22 = vector.extract_strided_slice %9 {offsets = [32, 0], sizes = [16, 8], strides = [1, 1]} : vector<128x8xf32> to vector<16x8xf32>
    %23 = arith.addf %22, %21 : vector<16x8xf32>
    %c48 = arith.constant 48 : index
    %c0_21 = arith.constant 0 : index
    %24 = vector.load %arg8[%c48, %c0_21] : memref<536x8xf32, #tpu.memory_space<vmem>>, vector<16x8xf32>
    tpu.vector_store %arg8[%c48, %c0_21], %23 {strides = array<i32>} : memref<536x8xf32, #tpu.memory_space<vmem>>, vector<16x8xf32>,
    %c64 = arith.constant 64 : index
    %c0_22 = arith.constant 0 : index
    %25 = vector.load %arg8[%c64, %c0_22] : memref<536x8xf32, #tpu.memory_space<vmem>>, vector<8x8xf32>
    tpu.vector_store %arg8[%c64, %c0_22], %4 {strides = array<i32>} : memref<536x8xf32, #tpu.memory_space<vmem>>, vector<8x8xf32>,
    %26 = vector.extract_strided_slice %9 {offsets = [48, 0], sizes = [16, 8], strides = [1, 1]} : vector<128x8xf32> to vector<16x8xf32>
    %27 = arith.addf %26, %21 : vector<16x8xf32>
    %c72 = arith.constant 72 : index
    %c0_23 = arith.constant 0 : index
    %28 = vector.load %arg8[%c72, %c0_23] : memref<536x8xf32, #tpu.memory_space<vmem>>, vector<16x8xf32>
    tpu.vector_store %arg8[%c72, %c0_23], %27 {strides = array<i32>} : memref<536x8xf32, #tpu.memory_space<vmem>>, vector<16x8xf32>,
    %c88 = arith.constant 88 : index
    %c0_24 = arith.constant 0 : index
    %29 = vector.load %arg8[%c88, %c0_24] : memref<536x8xf32, #tpu.memory_space<vmem>>, vector<8x8xf32>
    tpu.vector_store %arg8[%c88, %c0_24], %4 {strides = array<i32>} : memref<536x8xf32, #tpu.memory_space<vmem>>, vector<8x8xf32>,
    %c0_25 = arith.constant 0 : index
    %c2 = arith.constant 2 : index
    %c0_26 = arith.constant 0 : index
    %c0_27 = arith.constant 0 : index
    %30 = vector.load %arg2[%c0_25, %c2, %c0_26, %c0_27] : memref<1x8x16x8xf32, #tpu.memory_space<vmem>>, vector<1x1x16x8xf32>
    %31 = vector.shape_cast %30 : vector<1x1x16x8xf32> to vector<16x8xf32>
    %32 = vector.extract_strided_slice %9 {offsets = [64, 0], sizes = [16, 8], strides = [1, 1]} : vector<128x8xf32> to vector<16x8xf32>
    %33 = arith.addf %32, %31 : vector<16x8xf32>
    %c96 = arith.constant 96 : index
    %c0_28 = arith.constant 0 : index
    %34 = vector.load %arg8[%c96, %c0_28] : memref<536x8xf32, #tpu.memory_space<vmem>>, vector<16x8xf32>
    tpu.vector_store %arg8[%c96, %c0_28], %33 {strides = array<i32>} : memref<536x8xf32, #tpu.memory_space<vmem>>, vector<16x8xf32>,
    %c112 = arith.constant 112 : index
    %c0_29 = arith.constant 0 : index
    %35 = vector.load %arg8[%c112, %c0_29] : memref<536x8xf32, #tpu.memory_space<vmem>>, vector<8x8xf32>
    tpu.vector_store %arg8[%c112, %c0_29], %4 {strides = array<i32>} : memref<536x8xf32, #tpu.memory_space<vmem>>, vector<8x8xf32>,
    %36 = vector.extract_strided_slice %9 {offsets = [80, 0], sizes = [16, 8], strides = [1, 1]} : vector<128x8xf32> to vector<16x8xf32>
    %37 = arith.addf %36, %31 : vector<16x8xf32>
    %c120 = arith.constant 120 : index
    %c0_30 = arith.constant 0 : index
    %38 = vector.load %arg8[%c120, %c0_30] : memref<536x8xf32, #tpu.memory_space<vmem>>, vector<16x8xf32>
    tpu.vector_store %arg8[%c120, %c0_30], %37 {strides = array<i32>} : memref<536x8xf32, #tpu.memory_space<vmem>>, vector<16x8xf32>,
    %c136 = arith.constant 136 : index
    %c0_31 = arith.constant 0 : index
    %39 = vector.load %arg8[%c136, %c0_31] : memref<536x8xf32, #tpu.memory_space<vmem>>, vector<8x8xf32>
    tpu.vector_store %arg8[%c136, %c0_31], %4 {strides = array<i32>} : memref<536x8xf32, #tpu.memory_space<vmem>>, vector<8x8xf32>,
    %c0_32 = arith.constant 0 : index
    %c3 = arith.constant 3 : index
    %c0_33 = arith.constant 0 : index
    %c0_34 = arith.constant 0 : index
    %40 = vector.load %arg2[%c0_32, %c3, %c0_33, %c0_34] : memref<1x8x16x8xf32, #tpu.memory_space<vmem>>, vector<1x1x16x8xf32>
    %41 = vector.shape_cast %40 : vector<1x1x16x8xf32> to vector<16x8xf32>
    %42 = vector.extract_strided_slice %9 {offsets = [96, 0], sizes = [16, 8], strides = [1, 1]} : vector<128x8xf32> to vector<16x8xf32>
    %43 = arith.addf %42, %41 : vector<16x8xf32>
    %c144 = arith.constant 144 : index
    %c0_35 = arith.constant 0 : index
    %44 = vector.load %arg8[%c144, %c0_35] : memref<536x8xf32, #tpu.memory_space<vmem>>, vector<16x8xf32>
    tpu.vector_store %arg8[%c144, %c0_35], %43 {strides = array<i32>} : memref<536x8xf32, #tpu.memory_space<vmem>>, vector<16x8xf32>,
    %c160 = arith.constant 160 : index
    %c0_36 = arith.constant 0 : index
    %45 = vector.load %arg8[%c160, %c0_36] : memref<536x8xf32, #tpu.memory_space<vmem>>, vector<8x8xf32>
    tpu.vector_store %arg8[%c160, %c0_36], %4 {strides = array<i32>} : memref<536x8xf32, #tpu.memory_space<vmem>>, vector<8x8xf32>,
    %46 = vector.extract_strided_slice %9 {offsets = [112, 0], sizes = [16, 8], strides = [1, 1]} : vector<128x8xf32> to vector<16x8xf32>
    %47 = arith.addf %46, %41 : vector<16x8xf32>
    %c168 = arith.constant 168 : index
    %c0_37 = arith.constant 0 : index
    %48 = vector.load %arg8[%c168, %c0_37] : memref<536x8xf32, #tpu.memory_space<vmem>>, vector<16x8xf32>
    tpu.vector_store %arg8[%c168, %c0_37], %47 {strides = array<i32>} : memref<536x8xf32, #tpu.memory_space<vmem>>, vector<16x8xf32>,
    %c184 = arith.constant 184 : index
    %c0_38 = arith.constant 0 : index
    %49 = vector.load %arg8[%c184, %c0_38] : memref<536x8xf32, #tpu.memory_space<vmem>>, vector<8x8xf32>
    tpu.vector_store %arg8[%c184, %c0_38], %4 {strides = array<i32>} : memref<536x8xf32, #tpu.memory_space<vmem>>, vector<8x8xf32>,
    %c0_39 = arith.constant 0 : index
    %c128 = arith.constant 128 : index
    %c0_40 = arith.constant 0 : index
    %50 = vector.load %arg1[%c0_39, %c128, %c0_40] : memref<1x256x4xf32, #tpu.memory_space<vmem>>, vector<1x128x4xf32>
    %51 = vector.shape_cast %50 : vector<1x128x4xf32> to vector<128x4xf32>
    %cst_41 = arith.constant dense<0.000000e+00> : vector<128x8xf32>
    %52 = tpu.matmul %51, %2, %cst_41 {dimension_numbers = #tpu.dot_dimension_numbers<[1], [0], [0], [1], [0, 0, 1, 1], [], []>} : vector<128x4xf32>, vector<4x8xf32>, vector<128x8xf32> -> vector<128x8xf32>
    %53 = vector.broadcast %3 : vector<1x8xf32> to vector<128x8xf32>
    %54 = arith.addf %52, %53 : vector<128x8xf32>
    %c0_42 = arith.constant 0 : index
    %c4 = arith.constant 4 : index
    %c0_43 = arith.constant 0 : index
    %c0_44 = arith.constant 0 : index
    %55 = vector.load %arg2[%c0_42, %c4, %c0_43, %c0_44] : memref<1x8x16x8xf32, #tpu.memory_space<vmem>>, vector<1x1x16x8xf32>
    %56 = vector.shape_cast %55 : vector<1x1x16x8xf32> to vector<16x8xf32>
    %57 = vector.extract_strided_slice %54 {offsets = [0, 0], sizes = [16, 8], strides = [1, 1]} : vector<128x8xf32> to vector<16x8xf32>
    %58 = arith.addf %57, %56 : vector<16x8xf32>
    %c192 = arith.constant 192 : index
    %c0_45 = arith.constant 0 : index
    %59 = vector.load %arg8[%c192, %c0_45] : memref<536x8xf32, #tpu.memory_space<vmem>>, vector<16x8xf32>
    tpu.vector_store %arg8[%c192, %c0_45], %58 {strides = array<i32>} : memref<536x8xf32, #tpu.memory_space<vmem>>, vector<16x8xf32>,
    %c208 = arith.constant 208 : index
    %c0_46 = arith.constant 0 : index
    %60 = vector.load %arg8[%c208, %c0_46] : memref<536x8xf32, #tpu.memory_space<vmem>>, vector<8x8xf32>
    tpu.vector_store %arg8[%c208, %c0_46], %4 {strides = array<i32>} : memref<536x8xf32, #tpu.memory_space<vmem>>, vector<8x8xf32>,
    %61 = vector.extract_strided_slice %54 {offsets = [16, 0], sizes = [16, 8], strides = [1, 1]} : vector<128x8xf32> to vector<16x8xf32>
    %62 = arith.addf %61, %56 : vector<16x8xf32>
    %c216 = arith.constant 216 : index
    %c0_47 = arith.constant 0 : index
    %63 = vector.load %arg8[%c216, %c0_47] : memref<536x8xf32, #tpu.memory_space<vmem>>, vector<16x8xf32>
    tpu.vector_store %arg8[%c216, %c0_47], %62 {strides = array<i32>} : memref<536x8xf32, #tpu.memory_space<vmem>>, vector<16x8xf32>,
    %c232 = arith.constant 232 : index
    %c0_48 = arith.constant 0 : index
    %64 = vector.load %arg8[%c232, %c0_48] : memref<536x8xf32, #tpu.memory_space<vmem>>, vector<8x8xf32>
    tpu.vector_store %arg8[%c232, %c0_48], %4 {strides = array<i32>} : memref<536x8xf32, #tpu.memory_space<vmem>>, vector<8x8xf32>,
    %c0_49 = arith.constant 0 : index
    %c5 = arith.constant 5 : index
    %c0_50 = arith.constant 0 : index
    %c0_51 = arith.constant 0 : index
    %65 = vector.load %arg2[%c0_49, %c5, %c0_50, %c0_51] : memref<1x8x16x8xf32, #tpu.memory_space<vmem>>, vector<1x1x16x8xf32>
    %66 = vector.shape_cast %65 : vector<1x1x16x8xf32> to vector<16x8xf32>
    %67 = vector.extract_strided_slice %54 {offsets = [32, 0], sizes = [16, 8], strides = [1, 1]} : vector<128x8xf32> to vector<16x8xf32>
    %68 = arith.addf %67, %66 : vector<16x8xf32>
    %c240 = arith.constant 240 : index
    %c0_52 = arith.constant 0 : index
    %69 = vector.load %arg8[%c240, %c0_52] : memref<536x8xf32, #tpu.memory_space<vmem>>, vector<16x8xf32>
    tpu.vector_store %arg8[%c240, %c0_52], %68 {strides = array<i32>} : memref<536x8xf32, #tpu.memory_space<vmem>>, vector<16x8xf32>,
    %c256 = arith.constant 256 : index
    %c0_53 = arith.constant 0 : index
    %70 = vector.load %arg8[%c256, %c0_53] : memref<536x8xf32, #tpu.memory_space<vmem>>, vector<8x8xf32>
    tpu.vector_store %arg8[%c256, %c0_53], %4 {strides = array<i32>} : memref<536x8xf32, #tpu.memory_space<vmem>>, vector<8x8xf32>,
    %71 = vector.extract_strided_slice %54 {offsets = [48, 0], sizes = [16, 8], strides = [1, 1]} : vector<128x8xf32> to vector<16x8xf32>
    %72 = arith.addf %71, %66 : vector<16x8xf32>
    %c264 = arith.constant 264 : index
    %c0_54 = arith.constant 0 : index
    %73 = vector.load %arg8[%c264, %c0_54] : memref<536x8xf32, #tpu.memory_space<vmem>>, vector<16x8xf32>
    tpu.vector_store %arg8[%c264, %c0_54], %72 {strides = array<i32>} : memref<536x8xf32, #tpu.memory_space<vmem>>, vector<16x8xf32>,
    %c280 = arith.constant 280 : index
    %c0_55 = arith.constant 0 : index
    %74 = vector.load %arg8[%c280, %c0_55] : memref<536x8xf32, #tpu.memory_space<vmem>>, vector<8x8xf32>
    tpu.vector_store %arg8[%c280, %c0_55], %4 {strides = array<i32>} : memref<536x8xf32, #tpu.memory_space<vmem>>, vector<8x8xf32>,
    %c0_56 = arith.constant 0 : index
    %c6 = arith.constant 6 : index
    %c0_57 = arith.constant 0 : index
    %c0_58 = arith.constant 0 : index
    %75 = vector.load %arg2[%c0_56, %c6, %c0_57, %c0_58] : memref<1x8x16x8xf32, #tpu.memory_space<vmem>>, vector<1x1x16x8xf32>
    %76 = vector.shape_cast %75 : vector<1x1x16x8xf32> to vector<16x8xf32>
    %77 = vector.extract_strided_slice %54 {offsets = [64, 0], sizes = [16, 8], strides = [1, 1]} : vector<128x8xf32> to vector<16x8xf32>
    %78 = arith.addf %77, %76 : vector<16x8xf32>
    %c288 = arith.constant 288 : index
    %c0_59 = arith.constant 0 : index
    %79 = vector.load %arg8[%c288, %c0_59] : memref<536x8xf32, #tpu.memory_space<vmem>>, vector<16x8xf32>
    tpu.vector_store %arg8[%c288, %c0_59], %78 {strides = array<i32>} : memref<536x8xf32, #tpu.memory_space<vmem>>, vector<16x8xf32>,
    %c304 = arith.constant 304 : index
    %c0_60 = arith.constant 0 : index
    %80 = vector.load %arg8[%c304, %c0_60] : memref<536x8xf32, #tpu.memory_space<vmem>>, vector<8x8xf32>
    tpu.vector_store %arg8[%c304, %c0_60], %4 {strides = array<i32>} : memref<536x8xf32, #tpu.memory_space<vmem>>, vector<8x8xf32>,
    %81 = vector.extract_strided_slice %54 {offsets = [80, 0], sizes = [16, 8], strides = [1, 1]} : vector<128x8xf32> to vector<16x8xf32>
    %82 = arith.addf %81, %76 : vector<16x8xf32>
    %c312 = arith.constant 312 : index
    %c0_61 = arith.constant 0 : index
    %83 = vector.load %arg8[%c312, %c0_61] : memref<536x8xf32, #tpu.memory_space<vmem>>, vector<16x8xf32>
    tpu.vector_store %arg8[%c312, %c0_61], %82 {strides = array<i32>} : memref<536x8xf32, #tpu.memory_space<vmem>>, vector<16x8xf32>,
    %c328 = arith.constant 328 : index
    %c0_62 = arith.constant 0 : index
    %84 = vector.load %arg8[%c328, %c0_62] : memref<536x8xf32, #tpu.memory_space<vmem>>, vector<8x8xf32>
    tpu.vector_store %arg8[%c328, %c0_62], %4 {strides = array<i32>} : memref<536x8xf32, #tpu.memory_space<vmem>>, vector<8x8xf32>,
    %c0_63 = arith.constant 0 : index
    %c7 = arith.constant 7 : index
    %c0_64 = arith.constant 0 : index
    %c0_65 = arith.constant 0 : index
    %85 = vector.load %arg2[%c0_63, %c7, %c0_64, %c0_65] : memref<1x8x16x8xf32, #tpu.memory_space<vmem>>, vector<1x1x16x8xf32>
    %86 = vector.shape_cast %85 : vector<1x1x16x8xf32> to vector<16x8xf32>
    %87 = vector.extract_strided_slice %54 {offsets = [96, 0], sizes = [16, 8], strides = [1, 1]} : vector<128x8xf32> to vector<16x8xf32>
    %88 = arith.addf %87, %86 : vector<16x8xf32>
    %c336 = arith.constant 336 : index
    %c0_66 = arith.constant 0 : index
    %89 = vector.load %arg8[%c336, %c0_66] : memref<536x8xf32, #tpu.memory_space<vmem>>, vector<16x8xf32>
    tpu.vector_store %arg8[%c336, %c0_66], %88 {strides = array<i32>} : memref<536x8xf32, #tpu.memory_space<vmem>>, vector<16x8xf32>,
    %c352 = arith.constant 352 : index
    %c0_67 = arith.constant 0 : index
    %90 = vector.load %arg8[%c352, %c0_67] : memref<536x8xf32, #tpu.memory_space<vmem>>, vector<8x8xf32>
    tpu.vector_store %arg8[%c352, %c0_67], %4 {strides = array<i32>} : memref<536x8xf32, #tpu.memory_space<vmem>>, vector<8x8xf32>,
    %91 = vector.extract_strided_slice %54 {offsets = [112, 0], sizes = [16, 8], strides = [1, 1]} : vector<128x8xf32> to vector<16x8xf32>
    %92 = arith.addf %91, %86 : vector<16x8xf32>
    %c360 = arith.constant 360 : index
    %c0_68 = arith.constant 0 : index
    %93 = vector.load %arg8[%c360, %c0_68] : memref<536x8xf32, #tpu.memory_space<vmem>>, vector<16x8xf32>
    tpu.vector_store %arg8[%c360, %c0_68], %92 {strides = array<i32>} : memref<536x8xf32, #tpu.memory_space<vmem>>, vector<16x8xf32>,
    %c376 = arith.constant 376 : index
    %c0_69 = arith.constant 0 : index
    %94 = vector.load %arg8[%c376, %c0_69] : memref<536x8xf32, #tpu.memory_space<vmem>>, vector<8x8xf32>
    tpu.vector_store %arg8[%c376, %c0_69], %4 {strides = array<i32>} : memref<536x8xf32, #tpu.memory_space<vmem>>, vector<8x8xf32>,
    %c0_70 = arith.constant 0 : index
    %c0_71 = arith.constant 0 : index
    %95 = vector.load %arg6[%c0_70, %c0_71] : memref<1x8xf32, #tpu.memory_space<vmem>>, vector<1x8xf32>
    %c0_72 = arith.constant 0 : index
    %c0_73 = arith.constant 0 : index
    %96 = vector.load %arg8[%c0_72, %c0_73] : memref<536x8xf32, #tpu.memory_space<vmem>>, vector<240x8xf32>
    %c0_74 = arith.constant 0 : index
    %c0_75 = arith.constant 0 : index
    %c0_76 = arith.constant 0 : index
    %97 = vector.load %arg5[%c0_74, %c0_75, %c0_76] : memref<9x8x8xf32, #tpu.memory_space<vmem>>, vector<1x8x8xf32>
    %98 = vector.shape_cast %97 : vector<1x8x8xf32> to vector<8x8xf32>
    %cst_77 = arith.constant dense<0.000000e+00> : vector<240x8xf32>
    %99 = tpu.matmul %96, %98, %cst_77 {dimension_numbers = #tpu.dot_dimension_numbers<[1], [0], [0], [1], [0, 0, 1, 1], [], []>} : vector<240x8xf32>, vector<8x8xf32>, vector<240x8xf32> -> vector<240x8xf32>
    %100 = vector.broadcast %95 : vector<1x8xf32> to vector<240x8xf32>
    %101 = arith.addf %99, %100 : vector<240x8xf32>
    %c0_78 = arith.constant 0 : index
    %c0_79 = arith.constant 0 : index
    %102 = vector.load %arg9[%c0_78, %c0_79] : memref<240x8xf32, #tpu.memory_space<vmem>>, vector<240x8xf32>
    tpu.vector_store %arg9[%c0_78, %c0_79], %101 {strides = array<i32>} : memref<240x8xf32, #tpu.memory_space<vmem>>, vector<240x8xf32>,
    %c1_80 = arith.constant 1 : index
    %c0_81 = arith.constant 0 : index
    %103 = vector.load %arg8[%c1_80, %c0_81] : memref<536x8xf32, #tpu.memory_space<vmem>>, vector<240x8xf32>
    %c0_82 = arith.constant 0 : index
    %c0_83 = arith.constant 0 : index
    %104 = vector.load %arg9[%c0_82, %c0_83] : memref<240x8xf32, #tpu.memory_space<vmem>>, vector<240x8xf32>
    %c1_84 = arith.constant 1 : index
    %c0_85 = arith.constant 0 : index
    %c0_86 = arith.constant 0 : index
    %105 = vector.load %arg5[%c1_84, %c0_85, %c0_86] : memref<9x8x8xf32, #tpu.memory_space<vmem>>, vector<1x8x8xf32>
    %106 = vector.shape_cast %105 : vector<1x8x8xf32> to vector<8x8xf32>
    %cst_87 = arith.constant dense<0.000000e+00> : vector<240x8xf32>
    %107 = tpu.matmul %103, %106, %cst_87 {dimension_numbers = #tpu.dot_dimension_numbers<[1], [0], [0], [1], [0, 0, 1, 1], [], []>} : vector<240x8xf32>, vector<8x8xf32>, vector<240x8xf32> -> vector<240x8xf32>
    %108 = arith.addf %104, %107 : vector<240x8xf32>
    %c0_88 = arith.constant 0 : index
    %c0_89 = arith.constant 0 : index
    %109 = vector.load %arg9[%c0_88, %c0_89] : memref<240x8xf32, #tpu.memory_space<vmem>>, vector<240x8xf32>
    tpu.vector_store %arg9[%c0_88, %c0_89], %108 {strides = array<i32>} : memref<240x8xf32, #tpu.memory_space<vmem>>, vector<240x8xf32>,
    %c2_90 = arith.constant 2 : index
    %c0_91 = arith.constant 0 : index
    %110 = vector.load %arg8[%c2_90, %c0_91] : memref<536x8xf32, #tpu.memory_space<vmem>>, vector<240x8xf32>
    %c0_92 = arith.constant 0 : index
    %c0_93 = arith.constant 0 : index
    %111 = vector.load %arg9[%c0_92, %c0_93] : memref<240x8xf32, #tpu.memory_space<vmem>>, vector<240x8xf32>
    %c2_94 = arith.constant 2 : index
    %c0_95 = arith.constant 0 : index
    %c0_96 = arith.constant 0 : index
    %112 = vector.load %arg5[%c2_94, %c0_95, %c0_96] : memref<9x8x8xf32, #tpu.memory_space<vmem>>, vector<1x8x8xf32>
    %113 = vector.shape_cast %112 : vector<1x8x8xf32> to vector<8x8xf32>
    %cst_97 = arith.constant dense<0.000000e+00> : vector<240x8xf32>
    %114 = tpu.matmul %110, %113, %cst_97 {dimension_numbers = #tpu.dot_dimension_numbers<[1], [0], [0], [1], [0, 0, 1, 1], [], []>} : vector<240x8xf32>, vector<8x8xf32>, vector<240x8xf32> -> vector<240x8xf32>
    %115 = arith.addf %111, %114 : vector<240x8xf32>
    %c0_98 = arith.constant 0 : index
    %c0_99 = arith.constant 0 : index
    %116 = vector.load %arg9[%c0_98, %c0_99] : memref<240x8xf32, #tpu.memory_space<vmem>>, vector<240x8xf32>
    tpu.vector_store %arg9[%c0_98, %c0_99], %115 {strides = array<i32>} : memref<240x8xf32, #tpu.memory_space<vmem>>, vector<240x8xf32>,
    %c24_100 = arith.constant 24 : index
    %c0_101 = arith.constant 0 : index
    %117 = vector.load %arg8[%c24_100, %c0_101] : memref<536x8xf32, #tpu.memory_space<vmem>>, vector<240x8xf32>
    %c0_102 = arith.constant 0 : index
    %c0_103 = arith.constant 0 : index
    %118 = vector.load %arg9[%c0_102, %c0_103] : memref<240x8xf32, #tpu.memory_space<vmem>>, vector<240x8xf32>
    %c3_104 = arith.constant 3 : index
    %c0_105 = arith.constant 0 : index
    %c0_106 = arith.constant 0 : index
    %119 = vector.load %arg5[%c3_104, %c0_105, %c0_106] : memref<9x8x8xf32, #tpu.memory_space<vmem>>, vector<1x8x8xf32>
    %120 = vector.shape_cast %119 : vector<1x8x8xf32> to vector<8x8xf32>
    %cst_107 = arith.constant dense<0.000000e+00> : vector<240x8xf32>
    %121 = tpu.matmul %117, %120, %cst_107 {dimension_numbers = #tpu.dot_dimension_numbers<[1], [0], [0], [1], [0, 0, 1, 1], [], []>} : vector<240x8xf32>, vector<8x8xf32>, vector<240x8xf32> -> vector<240x8xf32>
    %122 = arith.addf %118, %121 : vector<240x8xf32>
    %c0_108 = arith.constant 0 : index
    %c0_109 = arith.constant 0 : index
    %123 = vector.load %arg9[%c0_108, %c0_109] : memref<240x8xf32, #tpu.memory_space<vmem>>, vector<240x8xf32>
    tpu.vector_store %arg9[%c0_108, %c0_109], %122 {strides = array<i32>} : memref<240x8xf32, #tpu.memory_space<vmem>>, vector<240x8xf32>,
    %c25 = arith.constant 25 : index
    %c0_110 = arith.constant 0 : index
    %124 = vector.load %arg8[%c25, %c0_110] : memref<536x8xf32, #tpu.memory_space<vmem>>, vector<240x8xf32>
    %c0_111 = arith.constant 0 : index
    %c0_112 = arith.constant 0 : index
    %125 = vector.load %arg9[%c0_111, %c0_112] : memref<240x8xf32, #tpu.memory_space<vmem>>, vector<240x8xf32>
    %c4_113 = arith.constant 4 : index
    %c0_114 = arith.constant 0 : index
    %c0_115 = arith.constant 0 : index
    %126 = vector.load %arg5[%c4_113, %c0_114, %c0_115] : memref<9x8x8xf32, #tpu.memory_space<vmem>>, vector<1x8x8xf32>
    %127 = vector.shape_cast %126 : vector<1x8x8xf32> to vector<8x8xf32>
    %cst_116 = arith.constant dense<0.000000e+00> : vector<240x8xf32>
    %128 = tpu.matmul %124, %127, %cst_116 {dimension_numbers = #tpu.dot_dimension_numbers<[1], [0], [0], [1], [0, 0, 1, 1], [], []>} : vector<240x8xf32>, vector<8x8xf32>, vector<240x8xf32> -> vector<240x8xf32>
    %129 = arith.addf %125, %128 : vector<240x8xf32>
    %c0_117 = arith.constant 0 : index
    %c0_118 = arith.constant 0 : index
    %130 = vector.load %arg9[%c0_117, %c0_118] : memref<240x8xf32, #tpu.memory_space<vmem>>, vector<240x8xf32>
    tpu.vector_store %arg9[%c0_117, %c0_118], %129 {strides = array<i32>} : memref<240x8xf32, #tpu.memory_space<vmem>>, vector<240x8xf32>,
    %c26 = arith.constant 26 : index
    %c0_119 = arith.constant 0 : index
    %131 = vector.load %arg8[%c26, %c0_119] : memref<536x8xf32, #tpu.memory_space<vmem>>, vector<240x8xf32>
    %c0_120 = arith.constant 0 : index
    %c0_121 = arith.constant 0 : index
    %132 = vector.load %arg9[%c0_120, %c0_121] : memref<240x8xf32, #tpu.memory_space<vmem>>, vector<240x8xf32>
    %c5_122 = arith.constant 5 : index
    %c0_123 = arith.constant 0 : index
    %c0_124 = arith.constant 0 : index
    %133 = vector.load %arg5[%c5_122, %c0_123, %c0_124] : memref<9x8x8xf32, #tpu.memory_space<vmem>>, vector<1x8x8xf32>
    %134 = vector.shape_cast %133 : vector<1x8x8xf32> to vector<8x8xf32>
    %cst_125 = arith.constant dense<0.000000e+00> : vector<240x8xf32>
    %135 = tpu.matmul %131, %134, %cst_125 {dimension_numbers = #tpu.dot_dimension_numbers<[1], [0], [0], [1], [0, 0, 1, 1], [], []>} : vector<240x8xf32>, vector<8x8xf32>, vector<240x8xf32> -> vector<240x8xf32>
    %136 = arith.addf %132, %135 : vector<240x8xf32>
    %c0_126 = arith.constant 0 : index
    %c0_127 = arith.constant 0 : index
    %137 = vector.load %arg9[%c0_126, %c0_127] : memref<240x8xf32, #tpu.memory_space<vmem>>, vector<240x8xf32>
    tpu.vector_store %arg9[%c0_126, %c0_127], %136 {strides = array<i32>} : memref<240x8xf32, #tpu.memory_space<vmem>>, vector<240x8xf32>,
    %c48_128 = arith.constant 48 : index
    %c0_129 = arith.constant 0 : index
    %138 = vector.load %arg8[%c48_128, %c0_129] : memref<536x8xf32, #tpu.memory_space<vmem>>, vector<240x8xf32>
    %c0_130 = arith.constant 0 : index
    %c0_131 = arith.constant 0 : index
    %139 = vector.load %arg9[%c0_130, %c0_131] : memref<240x8xf32, #tpu.memory_space<vmem>>, vector<240x8xf32>
    %c6_132 = arith.constant 6 : index
    %c0_133 = arith.constant 0 : index
    %c0_134 = arith.constant 0 : index
    %140 = vector.load %arg5[%c6_132, %c0_133, %c0_134] : memref<9x8x8xf32, #tpu.memory_space<vmem>>, vector<1x8x8xf32>
    %141 = vector.shape_cast %140 : vector<1x8x8xf32> to vector<8x8xf32>
    %cst_135 = arith.constant dense<0.000000e+00> : vector<240x8xf32>
    %142 = tpu.matmul %138, %141, %cst_135 {dimension_numbers = #tpu.dot_dimension_numbers<[1], [0], [0], [1], [0, 0, 1, 1], [], []>} : vector<240x8xf32>, vector<8x8xf32>, vector<240x8xf32> -> vector<240x8xf32>
    %143 = arith.addf %139, %142 : vector<240x8xf32>
    %c0_136 = arith.constant 0 : index
    %c0_137 = arith.constant 0 : index
    %144 = vector.load %arg9[%c0_136, %c0_137] : memref<240x8xf32, #tpu.memory_space<vmem>>, vector<240x8xf32>
    tpu.vector_store %arg9[%c0_136, %c0_137], %143 {strides = array<i32>} : memref<240x8xf32, #tpu.memory_space<vmem>>, vector<240x8xf32>,
    %c49 = arith.constant 49 : index
    %c0_138 = arith.constant 0 : index
    %145 = vector.load %arg8[%c49, %c0_138] : memref<536x8xf32, #tpu.memory_space<vmem>>, vector<240x8xf32>
    %c0_139 = arith.constant 0 : index
    %c0_140 = arith.constant 0 : index
    %146 = vector.load %arg9[%c0_139, %c0_140] : memref<240x8xf32, #tpu.memory_space<vmem>>, vector<240x8xf32>
    %c7_141 = arith.constant 7 : index
    %c0_142 = arith.constant 0 : index
    %c0_143 = arith.constant 0 : index
    %147 = vector.load %arg5[%c7_141, %c0_142, %c0_143] : memref<9x8x8xf32, #tpu.memory_space<vmem>>, vector<1x8x8xf32>
    %148 = vector.shape_cast %147 : vector<1x8x8xf32> to vector<8x8xf32>
    %cst_144 = arith.constant dense<0.000000e+00> : vector<240x8xf32>
    %149 = tpu.matmul %145, %148, %cst_144 {dimension_numbers = #tpu.dot_dimension_numbers<[1], [0], [0], [1], [0, 0, 1, 1], [], []>} : vector<240x8xf32>, vector<8x8xf32>, vector<240x8xf32> -> vector<240x8xf32>
    %150 = arith.addf %146, %149 : vector<240x8xf32>
    %c0_145 = arith.constant 0 : index
    %c0_146 = arith.constant 0 : index
    %151 = vector.load %arg9[%c0_145, %c0_146] : memref<240x8xf32, #tpu.memory_space<vmem>>, vector<240x8xf32>
    tpu.vector_store %arg9[%c0_145, %c0_146], %150 {strides = array<i32>} : memref<240x8xf32, #tpu.memory_space<vmem>>, vector<240x8xf32>,
    %c50 = arith.constant 50 : index
    %c0_147 = arith.constant 0 : index
    %152 = vector.load %arg8[%c50, %c0_147] : memref<536x8xf32, #tpu.memory_space<vmem>>, vector<240x8xf32>
    %c0_148 = arith.constant 0 : index
    %c0_149 = arith.constant 0 : index
    %153 = vector.load %arg9[%c0_148, %c0_149] : memref<240x8xf32, #tpu.memory_space<vmem>>, vector<240x8xf32>
    %c8 = arith.constant 8 : index
    %c0_150 = arith.constant 0 : index
    %c0_151 = arith.constant 0 : index
    %154 = vector.load %arg5[%c8, %c0_150, %c0_151] : memref<9x8x8xf32, #tpu.memory_space<vmem>>, vector<1x8x8xf32>
    %155 = vector.shape_cast %154 : vector<1x8x8xf32> to vector<8x8xf32>
    %cst_152 = arith.constant dense<0.000000e+00> : vector<240x8xf32>
    %156 = tpu.matmul %152, %155, %cst_152 {dimension_numbers = #tpu.dot_dimension_numbers<[1], [0], [0], [1], [0, 0, 1, 1], [], []>} : vector<240x8xf32>, vector<8x8xf32>, vector<240x8xf32> -> vector<240x8xf32>
    %157 = arith.addf %153, %156 : vector<240x8xf32>
    %c0_153 = arith.constant 0 : index
    %c0_154 = arith.constant 0 : index
    %158 = vector.load %arg9[%c0_153, %c0_154] : memref<240x8xf32, #tpu.memory_space<vmem>>, vector<240x8xf32>
    tpu.vector_store %arg9[%c0_153, %c0_154], %157 {strides = array<i32>} : memref<240x8xf32, #tpu.memory_space<vmem>>, vector<240x8xf32>,
    %c0_155 = arith.constant 0 : index
    %c0_156 = arith.constant 0 : index
    %159 = vector.load %arg9[%c0_155, %c0_156] : memref<240x8xf32, #tpu.memory_space<vmem>>, vector<15x8xf32>
    %c0_157 = arith.constant 0 : index
    %c0_158 = arith.constant 0 : index
    %c0_159 = arith.constant 0 : index
    %c0_160 = arith.constant 0 : index
    %160 = vector.load %arg7[%c0_157, %c0_158, %c0_159, %c0_160] : memref<1x15x15x8xf32, #tpu.memory_space<vmem>>, vector<1x1x15x8xf32>
    %161 = vector.shape_cast %160 : vector<1x1x15x8xf32> to vector<15x8xf32>
    %162 = vector.shape_cast %159 : vector<15x8xf32> to vector<1x1x15x8xf32>
    tpu.vector_store %arg7[%c0_157, %c0_158, %c0_159, %c0_160], %162 {strides = array<i32>} : memref<1x15x15x8xf32, #tpu.memory_space<vmem>>, vector<1x1x15x8xf32>,
    %c24_161 = arith.constant 24 : index
    %c0_162 = arith.constant 0 : index
    %163 = vector.load %arg9[%c24_161, %c0_162] : memref<240x8xf32, #tpu.memory_space<vmem>>, vector<15x8xf32>
    %c0_163 = arith.constant 0 : index
    %c1_164 = arith.constant 1 : index
    %c0_165 = arith.constant 0 : index
    %c0_166 = arith.constant 0 : index
    %164 = vector.load %arg7[%c0_163, %c1_164, %c0_165, %c0_166] : memref<1x15x15x8xf32, #tpu.memory_space<vmem>>, vector<1x1x15x8xf32>
    %165 = vector.shape_cast %164 : vector<1x1x15x8xf32> to vector<15x8xf32>
    %166 = vector.shape_cast %163 : vector<15x8xf32> to vector<1x1x15x8xf32>
    tpu.vector_store %arg7[%c0_163, %c1_164, %c0_165, %c0_166], %166 {strides = array<i32>} : memref<1x15x15x8xf32, #tpu.memory_space<vmem>>, vector<1x1x15x8xf32>,
    %c48_167 = arith.constant 48 : index
    %c0_168 = arith.constant 0 : index
    %167 = vector.load %arg9[%c48_167, %c0_168] : memref<240x8xf32, #tpu.memory_space<vmem>>, vector<15x8xf32>
    %c0_169 = arith.constant 0 : index
    %c2_170 = arith.constant 2 : index
    %c0_171 = arith.constant 0 : index
    %c0_172 = arith.constant 0 : index
    %168 = vector.load %arg7[%c0_169, %c2_170, %c0_171, %c0_172] : memref<1x15x15x8xf32, #tpu.memory_space<vmem>>, vector<1x1x15x8xf32>
    %169 = vector.shape_cast %168 : vector<1x1x15x8xf32> to vector<15x8xf32>
    %170 = vector.shape_cast %167 : vector<15x8xf32> to vector<1x1x15x8xf32>
    tpu.vector_store %arg7[%c0_169, %c2_170, %c0_171, %c0_172], %170 {strides = array<i32>} : memref<1x15x15x8xf32, #tpu.memory_space<vmem>>, vector<1x1x15x8xf32>,
    %c72_173 = arith.constant 72 : index
    %c0_174 = arith.constant 0 : index
    %171 = vector.load %arg9[%c72_173, %c0_174] : memref<240x8xf32, #tpu.memory_space<vmem>>, vector<15x8xf32>
    %c0_175 = arith.constant 0 : index
    %c3_176 = arith.constant 3 : index
    %c0_177 = arith.constant 0 : index
    %c0_178 = arith.constant 0 : index
    %172 = vector.load %arg7[%c0_175, %c3_176, %c0_177, %c0_178] : memref<1x15x15x8xf32, #tpu.memory_space<vmem>>, vector<1x1x15x8xf32>
    %173 = vector.shape_cast %172 : vector<1x1x15x8xf32> to vector<15x8xf32>
    %174 = vector.shape_cast %171 : vector<15x8xf32> to vector<1x1x15x8xf32>
    tpu.vector_store %arg7[%c0_175, %c3_176, %c0_177, %c0_178], %174 {strides = array<i32>} : memref<1x15x15x8xf32, #tpu.memory_space<vmem>>, vector<1x1x15x8xf32>,
    %c96_179 = arith.constant 96 : index
    %c0_180 = arith.constant 0 : index
    %175 = vector.load %arg9[%c96_179, %c0_180] : memref<240x8xf32, #tpu.memory_space<vmem>>, vector<15x8xf32>
    %c0_181 = arith.constant 0 : index
    %c4_182 = arith.constant 4 : index
    %c0_183 = arith.constant 0 : index
    %c0_184 = arith.constant 0 : index
    %176 = vector.load %arg7[%c0_181, %c4_182, %c0_183, %c0_184] : memref<1x15x15x8xf32, #tpu.memory_space<vmem>>, vector<1x1x15x8xf32>
    %177 = vector.shape_cast %176 : vector<1x1x15x8xf32> to vector<15x8xf32>
    %178 = vector.shape_cast %175 : vector<15x8xf32> to vector<1x1x15x8xf32>
    tpu.vector_store %arg7[%c0_181, %c4_182, %c0_183, %c0_184], %178 {strides = array<i32>} : memref<1x15x15x8xf32, #tpu.memory_space<vmem>>, vector<1x1x15x8xf32>,
    %c120_185 = arith.constant 120 : index
    %c0_186 = arith.constant 0 : index
    %179 = vector.load %arg9[%c120_185, %c0_186] : memref<240x8xf32, #tpu.memory_space<vmem>>, vector<15x8xf32>
    %c0_187 = arith.constant 0 : index
    %c5_188 = arith.constant 5 : index
    %c0_189 = arith.constant 0 : index
    %c0_190 = arith.constant 0 : index
    %180 = vector.load %arg7[%c0_187, %c5_188, %c0_189, %c0_190] : memref<1x15x15x8xf32, #tpu.memory_space<vmem>>, vector<1x1x15x8xf32>
    %181 = vector.shape_cast %180 : vector<1x1x15x8xf32> to vector<15x8xf32>
    %182 = vector.shape_cast %179 : vector<15x8xf32> to vector<1x1x15x8xf32>
    tpu.vector_store %arg7[%c0_187, %c5_188, %c0_189, %c0_190], %182 {strides = array<i32>} : memref<1x15x15x8xf32, #tpu.memory_space<vmem>>, vector<1x1x15x8xf32>,
    %c144_191 = arith.constant 144 : index
    %c0_192 = arith.constant 0 : index
    %183 = vector.load %arg9[%c144_191, %c0_192] : memref<240x8xf32, #tpu.memory_space<vmem>>, vector<15x8xf32>
    %c0_193 = arith.constant 0 : index
    %c6_194 = arith.constant 6 : index
    %c0_195 = arith.constant 0 : index
    %c0_196 = arith.constant 0 : index
    %184 = vector.load %arg7[%c0_193, %c6_194, %c0_195, %c0_196] : memref<1x15x15x8xf32, #tpu.memory_space<vmem>>, vector<1x1x15x8xf32>
    %185 = vector.shape_cast %184 : vector<1x1x15x8xf32> to vector<15x8xf32>
    %186 = vector.shape_cast %183 : vector<15x8xf32> to vector<1x1x15x8xf32>
    tpu.vector_store %arg7[%c0_193, %c6_194, %c0_195, %c0_196], %186 {strides = array<i32>} : memref<1x15x15x8xf32, #tpu.memory_space<vmem>>, vector<1x1x15x8xf32>,
    %c168_197 = arith.constant 168 : index
    %c0_198 = arith.constant 0 : index
    %187 = vector.load %arg9[%c168_197, %c0_198] : memref<240x8xf32, #tpu.memory_space<vmem>>, vector<15x8xf32>
    %c0_199 = arith.constant 0 : index
    %c7_200 = arith.constant 7 : index
    %c0_201 = arith.constant 0 : index
    %c0_202 = arith.constant 0 : index
    %188 = vector.load %arg7[%c0_199, %c7_200, %c0_201, %c0_202] : memref<1x15x15x8xf32, #tpu.memory_space<vmem>>, vector<1x1x15x8xf32>
    %189 = vector.shape_cast %188 : vector<1x1x15x8xf32> to vector<15x8xf32>
    %190 = vector.shape_cast %187 : vector<15x8xf32> to vector<1x1x15x8xf32>
    tpu.vector_store %arg7[%c0_199, %c7_200, %c0_201, %c0_202], %190 {strides = array<i32>} : memref<1x15x15x8xf32, #tpu.memory_space<vmem>>, vector<1x1x15x8xf32>,
    %c192_203 = arith.constant 192 : index
    %c0_204 = arith.constant 0 : index
    %191 = vector.load %arg9[%c192_203, %c0_204] : memref<240x8xf32, #tpu.memory_space<vmem>>, vector<15x8xf32>
    %c0_205 = arith.constant 0 : index
    %c8_206 = arith.constant 8 : index
    %c0_207 = arith.constant 0 : index
    %c0_208 = arith.constant 0 : index
    %192 = vector.load %arg7[%c0_205, %c8_206, %c0_207, %c0_208] : memref<1x15x15x8xf32, #tpu.memory_space<vmem>>, vector<1x1x15x8xf32>
    %193 = vector.shape_cast %192 : vector<1x1x15x8xf32> to vector<15x8xf32>
    %194 = vector.shape_cast %191 : vector<15x8xf32> to vector<1x1x15x8xf32>
    tpu.vector_store %arg7[%c0_205, %c8_206, %c0_207, %c0_208], %194 {strides = array<i32>} : memref<1x15x15x8xf32, #tpu.memory_space<vmem>>, vector<1x1x15x8xf32>,
    %c216_209 = arith.constant 216 : index
    %c0_210 = arith.constant 0 : index
    %195 = vector.load %arg9[%c216_209, %c0_210] : memref<240x8xf32, #tpu.memory_space<vmem>>, vector<15x8xf32>
    %c0_211 = arith.constant 0 : index
    %c9 = arith.constant 9 : index
    %c0_212 = arith.constant 0 : index
    %c0_213 = arith.constant 0 : index
    %196 = vector.load %arg7[%c0_211, %c9, %c0_212, %c0_213] : memref<1x15x15x8xf32, #tpu.memory_space<vmem>>, vector<1x1x15x8xf32>
    %197 = vector.shape_cast %196 : vector<1x1x15x8xf32> to vector<15x8xf32>
    %198 = vector.shape_cast %195 : vector<15x8xf32> to vector<1x1x15x8xf32>
    tpu.vector_store %arg7[%c0_211, %c9, %c0_212, %c0_213], %198 {strides = array<i32>} : memref<1x15x15x8xf32, #tpu.memory_space<vmem>>, vector<1x1x15x8xf32>,
    %c240_214 = arith.constant 240 : index
    %c0_215 = arith.constant 0 : index
    %199 = vector.load %arg8[%c240_214, %c0_215] : memref<536x8xf32, #tpu.memory_space<vmem>>, vector<240x8xf32>
    %c0_216 = arith.constant 0 : index
    %c0_217 = arith.constant 0 : index
    %c0_218 = arith.constant 0 : index
    %200 = vector.load %arg5[%c0_216, %c0_217, %c0_218] : memref<9x8x8xf32, #tpu.memory_space<vmem>>, vector<1x8x8xf32>
    %201 = vector.shape_cast %200 : vector<1x8x8xf32> to vector<8x8xf32>
    %cst_219 = arith.constant dense<0.000000e+00> : vector<240x8xf32>
    %202 = tpu.matmul %199, %201, %cst_219 {dimension_numbers = #tpu.dot_dimension_numbers<[1], [0], [0], [1], [0, 0, 1, 1], [], []>} : vector<240x8xf32>, vector<8x8xf32>, vector<240x8xf32> -> vector<240x8xf32>
    %203 = vector.broadcast %95 : vector<1x8xf32> to vector<240x8xf32>
    %204 = arith.addf %202, %203 : vector<240x8xf32>
    %c0_220 = arith.constant 0 : index
    %c0_221 = arith.constant 0 : index
    %205 = vector.load %arg9[%c0_220, %c0_221] : memref<240x8xf32, #tpu.memory_space<vmem>>, vector<240x8xf32>
    tpu.vector_store %arg9[%c0_220, %c0_221], %204 {strides = array<i32>} : memref<240x8xf32, #tpu.memory_space<vmem>>, vector<240x8xf32>,
    %c241 = arith.constant 241 : index
    %c0_222 = arith.constant 0 : index
    %206 = vector.load %arg8[%c241, %c0_222] : memref<536x8xf32, #tpu.memory_space<vmem>>, vector<240x8xf32>
    %c0_223 = arith.constant 0 : index
    %c0_224 = arith.constant 0 : index
    %207 = vector.load %arg9[%c0_223, %c0_224] : memref<240x8xf32, #tpu.memory_space<vmem>>, vector<240x8xf32>
    %c1_225 = arith.constant 1 : index
    %c0_226 = arith.constant 0 : index
    %c0_227 = arith.constant 0 : index
    %208 = vector.load %arg5[%c1_225, %c0_226, %c0_227] : memref<9x8x8xf32, #tpu.memory_space<vmem>>, vector<1x8x8xf32>
    %209 = vector.shape_cast %208 : vector<1x8x8xf32> to vector<8x8xf32>
    %cst_228 = arith.constant dense<0.000000e+00> : vector<240x8xf32>
    %210 = tpu.matmul %206, %209, %cst_228 {dimension_numbers = #tpu.dot_dimension_numbers<[1], [0], [0], [1], [0, 0, 1, 1], [], []>} : vector<240x8xf32>, vector<8x8xf32>, vector<240x8xf32> -> vector<240x8xf32>
    %211 = arith.addf %207, %210 : vector<240x8xf32>
    %c0_229 = arith.constant 0 : index
    %c0_230 = arith.constant 0 : index
    %212 = vector.load %arg9[%c0_229, %c0_230] : memref<240x8xf32, #tpu.memory_space<vmem>>, vector<240x8xf32>
    tpu.vector_store %arg9[%c0_229, %c0_230], %211 {strides = array<i32>} : memref<240x8xf32, #tpu.memory_space<vmem>>, vector<240x8xf32>,
    %c242 = arith.constant 242 : index
    %c0_231 = arith.constant 0 : index
    %213 = vector.load %arg8[%c242, %c0_231] : memref<536x8xf32, #tpu.memory_space<vmem>>, vector<240x8xf32>
    %c0_232 = arith.constant 0 : index
    %c0_233 = arith.constant 0 : index
    %214 = vector.load %arg9[%c0_232, %c0_233] : memref<240x8xf32, #tpu.memory_space<vmem>>, vector<240x8xf32>
    %c2_234 = arith.constant 2 : index
    %c0_235 = arith.constant 0 : index
    %c0_236 = arith.constant 0 : index
    %215 = vector.load %arg5[%c2_234, %c0_235, %c0_236] : memref<9x8x8xf32, #tpu.memory_space<vmem>>, vector<1x8x8xf32>
    %216 = vector.shape_cast %215 : vector<1x8x8xf32> to vector<8x8xf32>
    %cst_237 = arith.constant dense<0.000000e+00> : vector<240x8xf32>
    %217 = tpu.matmul %213, %216, %cst_237 {dimension_numbers = #tpu.dot_dimension_numbers<[1], [0], [0], [1], [0, 0, 1, 1], [], []>} : vector<240x8xf32>, vector<8x8xf32>, vector<240x8xf32> -> vector<240x8xf32>
    %218 = arith.addf %214, %217 : vector<240x8xf32>
    %c0_238 = arith.constant 0 : index
    %c0_239 = arith.constant 0 : index
    %219 = vector.load %arg9[%c0_238, %c0_239] : memref<240x8xf32, #tpu.memory_space<vmem>>, vector<240x8xf32>
    tpu.vector_store %arg9[%c0_238, %c0_239], %218 {strides = array<i32>} : memref<240x8xf32, #tpu.memory_space<vmem>>, vector<240x8xf32>,
    %c264_240 = arith.constant 264 : index
    %c0_241 = arith.constant 0 : index
    %220 = vector.load %arg8[%c264_240, %c0_241] : memref<536x8xf32, #tpu.memory_space<vmem>>, vector<240x8xf32>
    %c0_242 = arith.constant 0 : index
    %c0_243 = arith.constant 0 : index
    %221 = vector.load %arg9[%c0_242, %c0_243] : memref<240x8xf32, #tpu.memory_space<vmem>>, vector<240x8xf32>
    %c3_244 = arith.constant 3 : index
    %c0_245 = arith.constant 0 : index
    %c0_246 = arith.constant 0 : index
    %222 = vector.load %arg5[%c3_244, %c0_245, %c0_246] : memref<9x8x8xf32, #tpu.memory_space<vmem>>, vector<1x8x8xf32>
    %223 = vector.shape_cast %222 : vector<1x8x8xf32> to vector<8x8xf32>
    %cst_247 = arith.constant dense<0.000000e+00> : vector<240x8xf32>
    %224 = tpu.matmul %220, %223, %cst_247 {dimension_numbers = #tpu.dot_dimension_numbers<[1], [0], [0], [1], [0, 0, 1, 1], [], []>} : vector<240x8xf32>, vector<8x8xf32>, vector<240x8xf32> -> vector<240x8xf32>
    %225 = arith.addf %221, %224 : vector<240x8xf32>
    %c0_248 = arith.constant 0 : index
    %c0_249 = arith.constant 0 : index
    %226 = vector.load %arg9[%c0_248, %c0_249] : memref<240x8xf32, #tpu.memory_space<vmem>>, vector<240x8xf32>
    tpu.vector_store %arg9[%c0_248, %c0_249], %225 {strides = array<i32>} : memref<240x8xf32, #tpu.memory_space<vmem>>, vector<240x8xf32>,
    %c265 = arith.constant 265 : index
    %c0_250 = arith.constant 0 : index
    %227 = vector.load %arg8[%c265, %c0_250] : memref<536x8xf32, #tpu.memory_space<vmem>>, vector<240x8xf32>
    %c0_251 = arith.constant 0 : index
    %c0_252 = arith.constant 0 : index
    %228 = vector.load %arg9[%c0_251, %c0_252] : memref<240x8xf32, #tpu.memory_space<vmem>>, vector<240x8xf32>
    %c4_253 = arith.constant 4 : index
    %c0_254 = arith.constant 0 : index
    %c0_255 = arith.constant 0 : index
    %229 = vector.load %arg5[%c4_253, %c0_254, %c0_255] : memref<9x8x8xf32, #tpu.memory_space<vmem>>, vector<1x8x8xf32>
    %230 = vector.shape_cast %229 : vector<1x8x8xf32> to vector<8x8xf32>
    %cst_256 = arith.constant dense<0.000000e+00> : vector<240x8xf32>
    %231 = tpu.matmul %227, %230, %cst_256 {dimension_numbers = #tpu.dot_dimension_numbers<[1], [0], [0], [1], [0, 0, 1, 1], [], []>} : vector<240x8xf32>, vector<8x8xf32>, vector<240x8xf32> -> vector<240x8xf32>
    %232 = arith.addf %228, %231 : vector<240x8xf32>
    %c0_257 = arith.constant 0 : index
    %c0_258 = arith.constant 0 : index
    %233 = vector.load %arg9[%c0_257, %c0_258] : memref<240x8xf32, #tpu.memory_space<vmem>>, vector<240x8xf32>
    tpu.vector_store %arg9[%c0_257, %c0_258], %232 {strides = array<i32>} : memref<240x8xf32, #tpu.memory_space<vmem>>, vector<240x8xf32>,
    %c266 = arith.constant 266 : index
    %c0_259 = arith.constant 0 : index
    %234 = vector.load %arg8[%c266, %c0_259] : memref<536x8xf32, #tpu.memory_space<vmem>>, vector<240x8xf32>
    %c0_260 = arith.constant 0 : index
    %c0_261 = arith.constant 0 : index
    %235 = vector.load %arg9[%c0_260, %c0_261] : memref<240x8xf32, #tpu.memory_space<vmem>>, vector<240x8xf32>
    %c5_262 = arith.constant 5 : index
    %c0_263 = arith.constant 0 : index
    %c0_264 = arith.constant 0 : index
    %236 = vector.load %arg5[%c5_262, %c0_263, %c0_264] : memref<9x8x8xf32, #tpu.memory_space<vmem>>, vector<1x8x8xf32>
    %237 = vector.shape_cast %236 : vector<1x8x8xf32> to vector<8x8xf32>
    %cst_265 = arith.constant dense<0.000000e+00> : vector<240x8xf32>
    %238 = tpu.matmul %234, %237, %cst_265 {dimension_numbers = #tpu.dot_dimension_numbers<[1], [0], [0], [1], [0, 0, 1, 1], [], []>} : vector<240x8xf32>, vector<8x8xf32>, vector<240x8xf32> -> vector<240x8xf32>
    %239 = arith.addf %235, %238 : vector<240x8xf32>
    %c0_266 = arith.constant 0 : index
    %c0_267 = arith.constant 0 : index
    %240 = vector.load %arg9[%c0_266, %c0_267] : memref<240x8xf32, #tpu.memory_space<vmem>>, vector<240x8xf32>
    tpu.vector_store %arg9[%c0_266, %c0_267], %239 {strides = array<i32>} : memref<240x8xf32, #tpu.memory_space<vmem>>, vector<240x8xf32>,
    %c288_268 = arith.constant 288 : index
    %c0_269 = arith.constant 0 : index
    %241 = vector.load %arg8[%c288_268, %c0_269] : memref<536x8xf32, #tpu.memory_space<vmem>>, vector<240x8xf32>
    %c0_270 = arith.constant 0 : index
    %c0_271 = arith.constant 0 : index
    %242 = vector.load %arg9[%c0_270, %c0_271] : memref<240x8xf32, #tpu.memory_space<vmem>>, vector<240x8xf32>
    %c6_272 = arith.constant 6 : index
    %c0_273 = arith.constant 0 : index
    %c0_274 = arith.constant 0 : index
    %243 = vector.load %arg5[%c6_272, %c0_273, %c0_274] : memref<9x8x8xf32, #tpu.memory_space<vmem>>, vector<1x8x8xf32>
    %244 = vector.shape_cast %243 : vector<1x8x8xf32> to vector<8x8xf32>
    %cst_275 = arith.constant dense<0.000000e+00> : vector<240x8xf32>
    %245 = tpu.matmul %241, %244, %cst_275 {dimension_numbers = #tpu.dot_dimension_numbers<[1], [0], [0], [1], [0, 0, 1, 1], [], []>} : vector<240x8xf32>, vector<8x8xf32>, vector<240x8xf32> -> vector<240x8xf32>
    %246 = arith.addf %242, %245 : vector<240x8xf32>
    %c0_276 = arith.constant 0 : index
    %c0_277 = arith.constant 0 : index
    %247 = vector.load %arg9[%c0_276, %c0_277] : memref<240x8xf32, #tpu.memory_space<vmem>>, vector<240x8xf32>
    tpu.vector_store %arg9[%c0_276, %c0_277], %246 {strides = array<i32>} : memref<240x8xf32, #tpu.memory_space<vmem>>, vector<240x8xf32>,
    %c289 = arith.constant 289 : index
    %c0_278 = arith.constant 0 : index
    %248 = vector.load %arg8[%c289, %c0_278] : memref<536x8xf32, #tpu.memory_space<vmem>>, vector<240x8xf32>
    %c0_279 = arith.constant 0 : index
    %c0_280 = arith.constant 0 : index
    %249 = vector.load %arg9[%c0_279, %c0_280] : memref<240x8xf32, #tpu.memory_space<vmem>>, vector<240x8xf32>
    %c7_281 = arith.constant 7 : index
    %c0_282 = arith.constant 0 : index
    %c0_283 = arith.constant 0 : index
    %250 = vector.load %arg5[%c7_281, %c0_282, %c0_283] : memref<9x8x8xf32, #tpu.memory_space<vmem>>, vector<1x8x8xf32>
    %251 = vector.shape_cast %250 : vector<1x8x8xf32> to vector<8x8xf32>
    %cst_284 = arith.constant dense<0.000000e+00> : vector<240x8xf32>
    %252 = tpu.matmul %248, %251, %cst_284 {dimension_numbers = #tpu.dot_dimension_numbers<[1], [0], [0], [1], [0, 0, 1, 1], [], []>} : vector<240x8xf32>, vector<8x8xf32>, vector<240x8xf32> -> vector<240x8xf32>
    %253 = arith.addf %249, %252 : vector<240x8xf32>
    %c0_285 = arith.constant 0 : index
    %c0_286 = arith.constant 0 : index
    %254 = vector.load %arg9[%c0_285, %c0_286] : memref<240x8xf32, #tpu.memory_space<vmem>>, vector<240x8xf32>
    tpu.vector_store %arg9[%c0_285, %c0_286], %253 {strides = array<i32>} : memref<240x8xf32, #tpu.memory_space<vmem>>, vector<240x8xf32>,
    %c290 = arith.constant 290 : index
    %c0_287 = arith.constant 0 : index
    %255 = vector.load %arg8[%c290, %c0_287] : memref<536x8xf32, #tpu.memory_space<vmem>>, vector<240x8xf32>
    %c0_288 = arith.constant 0 : index
    %c0_289 = arith.constant 0 : index
    %256 = vector.load %arg9[%c0_288, %c0_289] : memref<240x8xf32, #tpu.memory_space<vmem>>, vector<240x8xf32>
    %c8_290 = arith.constant 8 : index
    %c0_291 = arith.constant 0 : index
    %c0_292 = arith.constant 0 : index
    %257 = vector.load %arg5[%c8_290, %c0_291, %c0_292] : memref<9x8x8xf32, #tpu.memory_space<vmem>>, vector<1x8x8xf32>
    %258 = vector.shape_cast %257 : vector<1x8x8xf32> to vector<8x8xf32>
    %cst_293 = arith.constant dense<0.000000e+00> : vector<240x8xf32>
    %259 = tpu.matmul %255, %258, %cst_293 {dimension_numbers = #tpu.dot_dimension_numbers<[1], [0], [0], [1], [0, 0, 1, 1], [], []>} : vector<240x8xf32>, vector<8x8xf32>, vector<240x8xf32> -> vector<240x8xf32>
    %260 = arith.addf %256, %259 : vector<240x8xf32>
    %c0_294 = arith.constant 0 : index
    %c0_295 = arith.constant 0 : index
    %261 = vector.load %arg9[%c0_294, %c0_295] : memref<240x8xf32, #tpu.memory_space<vmem>>, vector<240x8xf32>
    tpu.vector_store %arg9[%c0_294, %c0_295], %260 {strides = array<i32>} : memref<240x8xf32, #tpu.memory_space<vmem>>, vector<240x8xf32>,
    %c0_296 = arith.constant 0 : index
    %c0_297 = arith.constant 0 : index
    %262 = vector.load %arg9[%c0_296, %c0_297] : memref<240x8xf32, #tpu.memory_space<vmem>>, vector<15x8xf32>
    %c0_298 = arith.constant 0 : index
    %c10 = arith.constant 10 : index
    %c0_299 = arith.constant 0 : index
    %c0_300 = arith.constant 0 : index
    %263 = vector.load %arg7[%c0_298, %c10, %c0_299, %c0_300] : memref<1x15x15x8xf32, #tpu.memory_space<vmem>>, vector<1x1x15x8xf32>
    %264 = vector.shape_cast %263 : vector<1x1x15x8xf32> to vector<15x8xf32>
    %265 = vector.shape_cast %262 : vector<15x8xf32> to vector<1x1x15x8xf32>
    tpu.vector_store %arg7[%c0_298, %c10, %c0_299, %c0_300], %265 {strides = array<i32>} : memref<1x15x15x8xf32, #tpu.memory_space<vmem>>, vector<1x1x15x8xf32>,
    %c24_301 = arith.constant 24 : index
    %c0_302 = arith.constant 0 : index
    %266 = vector.load %arg9[%c24_301, %c0_302] : memref<240x8xf32, #tpu.memory_space<vmem>>, vector<15x8xf32>
    %c0_303 = arith.constant 0 : index
    %c11 = arith.constant 11 : index
    %c0_304 = arith.constant 0 : index
    %c0_305 = arith.constant 0 : index
    %267 = vector.load %arg7[%c0_303, %c11, %c0_304, %c0_305] : memref<1x15x15x8xf32, #tpu.memory_space<vmem>>, vector<1x1x15x8xf32>
    %268 = vector.shape_cast %267 : vector<1x1x15x8xf32> to vector<15x8xf32>
    %269 = vector.shape_cast %266 : vector<15x8xf32> to vector<1x1x15x8xf32>
    tpu.vector_store %arg7[%c0_303, %c11, %c0_304, %c0_305], %269 {strides = array<i32>} : memref<1x15x15x8xf32, #tpu.memory_space<vmem>>, vector<1x1x15x8xf32>,
    %c48_306 = arith.constant 48 : index
    %c0_307 = arith.constant 0 : index
    %270 = vector.load %arg9[%c48_306, %c0_307] : memref<240x8xf32, #tpu.memory_space<vmem>>, vector<15x8xf32>
    %c0_308 = arith.constant 0 : index
    %c12 = arith.constant 12 : index
    %c0_309 = arith.constant 0 : index
    %c0_310 = arith.constant 0 : index
    %271 = vector.load %arg7[%c0_308, %c12, %c0_309, %c0_310] : memref<1x15x15x8xf32, #tpu.memory_space<vmem>>, vector<1x1x15x8xf32>
    %272 = vector.shape_cast %271 : vector<1x1x15x8xf32> to vector<15x8xf32>
    %273 = vector.shape_cast %270 : vector<15x8xf32> to vector<1x1x15x8xf32>
    tpu.vector_store %arg7[%c0_308, %c12, %c0_309, %c0_310], %273 {strides = array<i32>} : memref<1x15x15x8xf32, #tpu.memory_space<vmem>>, vector<1x1x15x8xf32>,
    %c72_311 = arith.constant 72 : index
    %c0_312 = arith.constant 0 : index
    %274 = vector.load %arg9[%c72_311, %c0_312] : memref<240x8xf32, #tpu.memory_space<vmem>>, vector<15x8xf32>
    %c0_313 = arith.constant 0 : index
    %c13 = arith.constant 13 : index
    %c0_314 = arith.constant 0 : index
    %c0_315 = arith.constant 0 : index
    %275 = vector.load %arg7[%c0_313, %c13, %c0_314, %c0_315] : memref<1x15x15x8xf32, #tpu.memory_space<vmem>>, vector<1x1x15x8xf32>
    %276 = vector.shape_cast %275 : vector<1x1x15x8xf32> to vector<15x8xf32>
    %277 = vector.shape_cast %274 : vector<15x8xf32> to vector<1x1x15x8xf32>
    tpu.vector_store %arg7[%c0_313, %c13, %c0_314, %c0_315], %277 {strides = array<i32>} : memref<1x15x15x8xf32, #tpu.memory_space<vmem>>, vector<1x1x15x8xf32>,
    %c96_316 = arith.constant 96 : index
    %c0_317 = arith.constant 0 : index
    %278 = vector.load %arg9[%c96_316, %c0_317] : memref<240x8xf32, #tpu.memory_space<vmem>>, vector<15x8xf32>
    %c0_318 = arith.constant 0 : index
    %c14 = arith.constant 14 : index
    %c0_319 = arith.constant 0 : index
    %c0_320 = arith.constant 0 : index
    %279 = vector.load %arg7[%c0_318, %c14, %c0_319, %c0_320] : memref<1x15x15x8xf32, #tpu.memory_space<vmem>>, vector<1x1x15x8xf32>
    %280 = vector.shape_cast %279 : vector<1x1x15x8xf32> to vector<15x8xf32>
    %281 = vector.shape_cast %278 : vector<15x8xf32> to vector<1x1x15x8xf32>
    tpu.vector_store %arg7[%c0_318, %c14, %c0_319, %c0_320], %281 {strides = array<i32>} : memref<1x15x15x8xf32, #tpu.memory_space<vmem>>, vector<1x1x15x8xf32>,
    return
  }
  func.func @transform_0(%arg0: i32) -> (i32, i32, i32) {
    %c0_i32 = arith.constant 0 : i32
    %c0_i32_0 = arith.constant 0 : i32
    %c0_i32_1 = arith.constant 0 : i32
    return %arg0, %c0_i32, %c0_i32_0 : i32, i32, i32
  }
  func.func @transform_1(%arg0: i32) -> (i32, i32, i32, i32) {
    %c0_i32 = arith.constant 0 : i32
    %c0_i32_0 = arith.constant 0 : i32
    %c0_i32_1 = arith.constant 0 : i32
    %c0_i32_2 = arith.constant 0 : i32
    return %arg0, %c0_i32, %c0_i32_0, %c0_i32_1 : i32, i32, i32, i32
  }
  func.func @transform_2(%arg0: i32) -> (i32, i32) {
    %c0_i32 = arith.constant 0 : i32
    %c0_i32_0 = arith.constant 0 : i32
    %c0_i32_1 = arith.constant 0 : i32
    return %c0_i32, %c0_i32_0 : i32, i32
  }
  func.func @transform_3(%arg0: i32) -> (i32, i32) {
    %c0_i32 = arith.constant 0 : i32
    %c0_i32_0 = arith.constant 0 : i32
    %c0_i32_1 = arith.constant 0 : i32
    return %c0_i32, %c0_i32_0 : i32, i32
  }
  func.func @transform_4(%arg0: i32) -> (i32, i32, i32) {
    %c0_i32 = arith.constant 0 : i32
    %c0_i32_0 = arith.constant 0 : i32
    %c0_i32_1 = arith.constant 0 : i32
    %c0_i32_2 = arith.constant 0 : i32
    return %c0_i32, %c0_i32_0, %c0_i32_1 : i32, i32, i32
  }
  func.func @transform_5(%arg0: i32) -> (i32, i32) {
    %c0_i32 = arith.constant 0 : i32
    %c0_i32_0 = arith.constant 0 : i32
    %c0_i32_1 = arith.constant 0 : i32
    return %c0_i32, %c0_i32_0 : i32, i32
  }
  func.func @transform_6(%arg0: i32) -> (i32, i32, i32, i32) {
    %c0_i32 = arith.constant 0 : i32
    %c0_i32_0 = arith.constant 0 : i32
    %c0_i32_1 = arith.constant 0 : i32
    %c0_i32_2 = arith.constant 0 : i32
    return %arg0, %c0_i32, %c0_i32_0, %c0_i32_1 : i32, i32, i32, i32
  }
}

</mosaic_0001>

<bundles_post_ra>
// kernel: tpu_custom_call.1
= control target key start
LH: loop header
LB: loop body
LE: loop exit
PB: predicated region body
PF: predicated region fallthrough
CT: control target
= control target key end

     0   :  { %s10724_s21 = smov 0   ;;  %s13163_s0 = inlined_call_operand.vmem [shape: f32[2,256,4], index: 0, kind: input, shape index: {}]   ;;  %s13164_s1 = inlined_call_operand.vmem [shape: f32[2,8,16,8], index: 1, kind: input, shape index: {}]   ;;  %s13165_s2 = inlined_call_operand.vmem [shape: f32[4,8], index: 2, kind: input, shape index: {}]   ;;  %s13166_s3 = inlined_call_operand.vmem [shape: f32[1,8], index: 3, kind: input, shape index: {}]   ;;  %s13167_s4 = inlined_call_operand.vmem [shape: f32[9,8,8], index: 4, kind: input, shape index: {}]   ;;  %s13168_s5 = inlined_call_operand.vmem [shape: f32[1,8], index: 5, kind: input, shape index: {}]   ;;  %s13169_s6 = inlined_call_operand.vmem [shape: f32[2,15,15,8], index: 6, kind: output, shape index: {}]  }
   0x1 LB: > { %s8531_s22 = sadd.s32 4294967295, %s10686_s21   ;;  %p8535_p0 = scmp.ge.s32.totalorder %s10686_s21, 1  ;;  %s10686_s21 = sphi %s10724_s21, %s16_s21  }
   0x2   : > { %p222_p1 = scmp.lt.s32.totalorder %s10686_s21, 3 }
   0x4   : > { %p223_p2 = pnand %p8535_p0, %p222_p1 }
   0x6   : > { %226 = sbr.rel (%p223_p2) target bundleno = 970 (0x3ca), region = 44 }
   0xb   : > { %v292_v0 = vld [vmem:[%s13165_s2] sm:$0xf]  ;;  %vm365_vm0 = vcmask 1043456   ;;  %p257_p3 = scmp.lt.s32.totalorder %s8531_s22, 1  ;;  %v8621_v2 = vld [vmem:[%s13167_s4 + $0x8] sm:$0xff]  ;;  %vm316_vm1 = vcmask 31744  }
   0xc   : > { %v857_v1 = vld [vmem:[%s13167_s4] sm:$0xff]  ;;  %9771 = vmatprep.subr.msk.mxu0 %vm365_vm0, %v292_v0  ;;  %9797 = vmatprep.subr.msk.mxu1 %vm365_vm0, %v292_v0  ;;  %vm272_vm2 = vcmask 64512   ;;  %v10688_v31 = vmov 0.0   ;;  %v10851_v36 = vld [vmem:[%s13167_s4 + $0x10] sm:$0xff]  ;;  %v10857_v37 = vld [vmem:[%s13167_s4 + $0x18] sm:$0xff]  ;;  %vm4618_vm3 = vcmask 63488  }
   0xd   : > { %9772 = vmatpush3.msk.msra.mxu0 %vm365_vm0, %v292_v0  ;;  %s13239_s22 = smov (!%p257_p3, %s8531_s22), 1  ;;  %9798 = vmatpush3.msk.msra.mxu1 %vm365_vm0, %v292_v0  ;;  %520 = vst.msk [vmem:[#allocation2 + $0x10] sm:$0xff] %vm272_vm2, %v10688_v31  ;;  %273 = vst.msk [vmem:[#allocation2 + $0x180] sm:$0xff] %vm272_vm2, %v10688_v31  ;;  %v10869_v38 = vld [vmem:[%s13166_s3] ss:$0 sm:$0xff] }
   0xe   : > { %9823 = vmatprep.subr.mxu0 %v857_v1  ;;  %9870 = vmatprep.subr.mxu1 %v8621_v2  ;;  %s9177_s29 = sshll.u32 %s13239_s22, 8  ;;  %274 = vst.msk [vmem:[#allocation2 + $0x188] sm:$0xff] %vm272_vm2, %v10688_v31  ;;  %275 = vst.msk [vmem:[#allocation2 + $0x190] sm:$0xff] %vm272_vm2, %v10688_v31  ;;  %s9178_s13 = sshll.u32 %s13239_s22, 7 }
   0xf   : > { %s10747_s8 = scalar_lea.vmem %s13163_s0, %s9177_s29  ;;  %276 = vst.msk [vmem:[#allocation2 + $0x198] sm:$0xff] %vm272_vm2, %v10688_v31  ;;  %277 = vst.msk [vmem:[#allocation2 + $0x1a0] sm:$0xff] %vm272_vm2, %v10688_v31  ;;  %s10864_s16 = scalar_lea.vmem %s13164_s1, %s9178_s13 }
  0x10   : > { %v294_v3 = vld [vmem:[%s10747_s8] sm:$0xff]  ;;  %v295_v4 = vld [vmem:[%s10747_s8 + $0x8] sm:$0xff]  ;;  %v296_v5 = vld [vmem:[%s10747_s8 + $0x10] sm:$0xff]  ;;  %278 = vst.msk [vmem:[#allocation2 + $0x1a8] sm:$0xff] %vm272_vm2, %v10688_v31  ;;  %s10669_s29 = smul.u32 240, %s13239_s22 }
  0x11   : > { %9773 = vmatprep.mubr.msk.f32.mxu0 %vm316_vm1, %v294_v3  ;;  %v297_v6 = vld [vmem:[%s10747_s8 + $0x18] sm:$0xff]  ;;  %v298_v7 = vld [vmem:[%s10747_s8 + $0x20] sm:$0xff]  ;;  %v566_v9 = vld [vmem:[%s10747_s8 + $0x88] sm:$0xff]  ;;  %279 = vst.msk [vmem:[#allocation2 + $0x1b0] sm:$0xff] %vm272_vm2, %v10688_v31 }
  0x12   : > { %9774 = vmatmul.mubr.msk.f32.vlgmr.msra.gmra.mxu0 %vm316_vm1, %v295_v4  ;;  %v565_v8 = vld [vmem:[%s10747_s8 + $0x80] sm:$0xff]  ;;  %v567_v10 = vld [vmem:[%s10747_s8 + $0x90] sm:$0xff]  ;;  %v299_v11 = vld [vmem:[%s10747_s8 + $0x28] sm:$0xff]  ;;  %280 = vst.msk [vmem:[#allocation2 + $0x1b8] sm:$0xff] %vm272_vm2, %v10688_v31  ;;  %s12573_s9 = scalar_lea.vmem %s13169_s6, %s10669_s29 }
  0x13   : > { %9776 = vmatprep.mubr.msk.f32.mxu0 %vm316_vm1, %v296_v5  ;;  %9824 = vmatpush3.msra.mxu0 %v857_v1  ;;  %v300_v12 = vld [vmem:[%s10747_s8 + $0x30] sm:$0xff]  ;;  %v568_v13 = vld [vmem:[%s10747_s8 + $0x98] sm:$0xff]  ;;  %v569_v14 = vld [vmem:[%s10747_s8 + $0xa0] sm:$0xff]  ;;  %281 = vst.msk [vmem:[#allocation2 + $0x1c0] sm:$0xff] %vm272_vm2, %v10688_v31 }
  0x14   : > { %9799 = vmatprep.mubr.msk.f32.mxu1 %vm316_vm1, %v565_v8  ;;  %v301_v15 = vld [vmem:[%s10747_s8 + $0x38] sm:$0xff]  ;;  %v302_v16 = vld [vmem:[%s10747_s8 + $0x40] sm:$0xff]  ;;  %v570_v17 = vld [vmem:[%s10747_s8 + $0xa8] sm:$0xff]  ;;  %282 = vst.msk [vmem:[#allocation2 + $0x1c8] sm:$0xff] %vm272_vm2, %v10688_v31  ;;  %9917 = vmatprep.subr.mxu0 %v10851_v36 }
  0x15   : > { %9800 = vmatmul.mubr.msk.f32.vlgmr.msra.gmra.mxu1 %vm316_vm1, %v566_v9  ;;  %v571_v18 = vld [vmem:[%s10747_s8 + $0xb0] sm:$0xff]  ;;  %v303_v19 = vld [vmem:[%s10747_s8 + $0x48] sm:$0xff]  ;;  %v572_v21 = vld [vmem:[%s10747_s8 + $0xb8] sm:$0xff]  ;;  %283 = vst.msk [vmem:[#allocation2 + $0x1d0] sm:$0xff] %vm272_vm2, %v10688_v31 }
  0x16   : > { %9777 = vmatmul.mubr.msk.f32.gmra.mxu0 %vm316_vm1, %v297_v6  ;;  %9802 = vmatprep.mubr.msk.f32.mxu1 %vm316_vm1, %v567_v10  ;;  %v304_v20 = vld [vmem:[%s10747_s8 + $0x50] sm:$0xff]  ;;  %v573_v22 = vld [vmem:[%s10747_s8 + $0xc0] sm:$0xff]  ;;  %v305_v23 = vld [vmem:[%s10747_s8 + $0x58] sm:$0xff]  ;;  %284 = vst.msk [vmem:[#allocation2 + $0x1d8] sm:$0xff] %vm272_vm2, %v10688_v31 }
  0x17   : > { %9779 = vmatprep.mubr.msk.f32.mxu0 %vm316_vm1, %v298_v7  ;;  %9871 = vmatpush3.msra.mxu1 %v8621_v2  ;;  %v306_v24 = vld [vmem:[%s10747_s8 + $0x60] sm:$0xff]  ;;  %v307_v25 = vld [vmem:[%s10747_s8 + $0x68] sm:$0xff]  ;;  %v308_v26 = vld [vmem:[%s10747_s8 + $0x70] sm:$0xff]  ;;  %285 = vst.msk [vmem:[#allocation2 + $0x1e0] sm:$0xff] %vm272_vm2, %v10688_v31 }
  0x18   : > { %v309_v27 = vld [vmem:[%s10747_s8 + $0x78] sm:$0xff]  ;;  %v574_v28 = vld [vmem:[%s10747_s8 + $0xc8] sm:$0xff]  ;;  %v575_v29 = vld [vmem:[%s10747_s8 + $0xd0] sm:$0xff]  ;;  %286 = vst.msk [vmem:[#allocation2 + $0x1e8] sm:$0xff] %vm272_vm2, %v10688_v31  ;;  %9964 = vmatprep.subr.mxu1 %v10857_v37 }
  0x19   : > { %9803 = vmatmul.mubr.msk.f32.gmra.mxu1 %vm316_vm1, %v568_v13  ;;  %v576_v30 = vld [vmem:[%s10747_s8 + $0xd8] sm:$0xff]  ;;  %287 = vst.msk [vmem:[#allocation2 + $0x1f0] sm:$0xff] %vm272_vm2, %v10688_v31  ;;  %288 = vst.msk [vmem:[#allocation2 + $0x1f8] sm:$0xff] %vm272_vm2, %v10688_v31  ;;  %v577_v32 = vld [vmem:[%s10747_s8 + $0xe0] sm:$0xff] }
  0x1a   : > { %9780 = vmatmul.mubr.msk.f32.gmra.mxu0 %vm316_vm1, %v299_v11  ;;  %9805 = vmatprep.mubr.msk.f32.mxu1 %vm316_vm1, %v569_v14  ;;  %289 = vst.msk [vmem:[#allocation2 + $0x200] sm:$0xff] %vm272_vm2, %v10688_v31  ;;  %290 = vst.msk [vmem:[#allocation2 + $0x208] sm:$0xff] %vm272_vm2, %v10688_v31  ;;  %v578_v33 = vld [vmem:[%s10747_s8 + $0xe8] sm:$0xff]  ;;  %v579_v34 = vld [vmem:[%s10747_s8 + $0xf0] sm:$0xff] }
  0x1b   : > { %9782 = vmatprep.mubr.msk.f32.mxu0 %vm316_vm1, %v300_v12  ;;  %291 = vst.msk [vmem:[#allocation2 + $0x210] sm:$0xff] %vm272_vm2, %v10688_v31  ;;  %525 = vst.msk [vmem:[#allocation2 + $0x28] sm:$0xff] %vm272_vm2, %v10688_v31  ;;  %v580_v35 = vld [vmem:[%s10747_s8 + $0xf8] sm:$0xff]  ;;  %v515_v40 = vld [vmem:[%s10864_s16 + $0x8] sm:$0xff] }
  0x1c   : > { %533 = vst.msk [vmem:[#allocation2 + $0x40] sm:$0xff] %vm272_vm2, %v10688_v31  ;;  %538 = vst.msk [vmem:[#allocation2 + $0x58] sm:$0xff] %vm272_vm2, %v10688_v31  ;;  %v514_v43 = vld [vmem:[%s10864_s16] sm:$0xff]  ;;  %v8583_v50 = vld [vmem:[%s10864_s16 + $0x48] sm:$0xff] }
  0x1d   : > { %9806 = vmatmul.mubr.msk.f32.gmra.mxu1 %vm316_vm1, %v570_v17  ;;  %546 = vst.msk [vmem:[#allocation2 + $0x70] sm:$0xff] %vm272_vm2, %v10688_v31  ;;  %551 = vst.msk [vmem:[#allocation2 + $0x88] sm:$0xff] %vm272_vm2, %v10688_v31  ;;  %v8582_v56 = vld [vmem:[%s10864_s16 + $0x40] sm:$0xff]  ;;  %v8560_v58 = vld [vmem:[%s10864_s16 + $0x18] sm:$0xff] }
  0x1e   : > { %9783 = vmatmul.mubr.msk.f32.gmra.mxu0 %vm316_vm1, %v301_v15  ;;  %9808 = vmatprep.mubr.msk.f32.mxu1 %vm316_vm1, %v571_v18  ;;  %559 = vst.msk [vmem:[#allocation2 + $0xa0] sm:$0xff] %vm272_vm2, %v10688_v31  ;;  %564 = vst.msk [vmem:[#allocation2 + $0xb8] sm:$0xff] %vm272_vm2, %v10688_v31  ;;  %v8559_v1 = vld [vmem:[%s10864_s16 + $0x10] sm:$0xff]  ;;  %v10896_v14 = vld [vmem:[%s10864_s16 + $0x58] sm:$0xff] }
  0x1f   : > { %9785 = vmatprep.mubr.msk.f32.mxu0 %vm316_vm1, %v302_v16  ;;  %781 = vst.msk [vmem:[#allocation2 + $0xd0] sm:$0xff] %vm272_vm2, %v10688_v31  ;;  %786 = vst.msk [vmem:[#allocation2 + $0xe8] sm:$0xff] %vm272_vm2, %v10688_v31  ;;  %v829_v12 = vld [vmem:[#allocation2 + $0x10] sm:$0xff] }
  0x20   : > { %794 = vst.msk [vmem:[#allocation2 + $0x100] sm:$0xff] %vm272_vm2, %v10688_v31  ;;  %799 = vst.msk [vmem:[#allocation2 + $0x118] sm:$0xff] %vm272_vm2, %v10688_v31 }
  0x21   : > { %9809 = vmatmul.mubr.msk.f32.gmra.mxu1 %vm316_vm1, %v572_v21  ;;  %807 = vst.msk [vmem:[#allocation2 + $0x130] sm:$0xff] %vm272_vm2, %v10688_v31  ;;  %812 = vst.msk [vmem:[#allocation2 + $0x148] sm:$0xff] %vm272_vm2, %v10688_v31 }
  0x22   : > { %9786 = vmatmul.mubr.msk.f32.gmra.mxu0 %vm316_vm1, %v303_v19  ;;  %9811 = vmatprep.mubr.msk.f32.mxu1 %vm316_vm1, %v573_v22  ;;  %820 = vst.msk [vmem:[#allocation2 + $0x160] sm:$0xff] %vm272_vm2, %v10688_v31  ;;  %825 = vst.msk [vmem:[#allocation2 + $0x178] sm:$0xff] %vm272_vm2, %v10688_v31  ;;  %v10921_v31 = vld [vmem:[%s13167_s4 + $0x28] sm:$0xff] }
  0x23   : > { %9788 = vmatprep.mubr.msk.f32.mxu0 %vm316_vm1, %v304_v20  ;;  %v10901_v20 = vld [vmem:[%s10864_s16 + $0x50] sm:$0xff] }
  0x25   : > { %9812 = vmatmul.mubr.msk.f32.gmra.mxu1 %vm316_vm1, %v574_v28  ;;  %v8562_v28 = vld [vmem:[%s10864_s16 + $0x28] sm:$0xff] }
  0x26   : > { %9789 = vmatmul.mubr.msk.f32.gmra.mxu0 %vm316_vm1, %v305_v23  ;;  %9814 = vmatprep.mubr.msk.f32.mxu1 %vm316_vm1, %v575_v29 }
  0x27   : > { %9791 = vmatprep.mubr.msk.f32.mxu0 %vm316_vm1, %v306_v24 }
  0x29   : > { %9815 = vmatmul.mubr.msk.f32.gmra.mxu1 %vm316_vm1, %v576_v30 }
  0x2a   : > { %9792 = vmatmul.mubr.msk.f32.gmra.mxu0 %vm316_vm1, %v307_v25  ;;  %9817 = vmatprep.mubr.msk.f32.mxu1 %vm316_vm1, %v577_v32 }
  0x2b   : > { %9794 = vmatprep.mubr.msk.f32.mxu0 %vm316_vm1, %v308_v26  ;;  %v10910_v26 = vld [vmem:[%s13167_s4 + $0x20] sm:$0xff] }
  0x2d   : > { %9818 = vmatmul.mubr.msk.f32.gmra.mxu1 %vm316_vm1, %v578_v33 }
  0x2e   : > { %9795 = vmatmul.mubr.msk.f32.gmra.mxu0 %vm316_vm1, %v309_v27  ;;  %9820 = vmatprep.mubr.msk.f32.mxu1 %vm316_vm1, %v579_v34  ;;  %v8561_v34 = vld [vmem:[%s10864_s16 + $0x20] sm:$0xff] }
  0x31   : > { %9821 = vmatmul.mubr.msk.f32.gmra.mxu1 %vm316_vm1, %v580_v35 }
  0xd2   : > { %v9775_v39 = vpop.f32.mrf.mxu0 }
  0xd3   : > { %v441_v41 = vadd.f32 %v9775_v39, %v10869_v38 }
  0xd4   : > { %v435_v42 = vpop.f32.mrf.mxu0 }
  0xd5   : > { %v517_v44 = vadd.f32 %v515_v40, %v441_v41  ;;  %v436_v45 = vadd.f32 %v10869_v38, %v435_v42  ;;  %v9801_v49 = vpop.f32.mrf.mxu1 }
  0xd6   : > { %v9778_v46 = vpop.f32.mrf.mxu0  ;;  %v701_v52 = vadd.f32 %v9801_v49, %v10869_v38 }
  0xd7   : > { %519 = vst.msk [vmem:[#allocation2 + $0x8] sm:$0xff] %vm272_vm2, %v517_v44  ;;  %v516_v47 = vadd.f32 %v514_v43, %v436_v45  ;;  %v451_v48 = vadd.f32 %v9778_v46, %v10869_v38  ;;  %v695_v55 = vpop.f32.mrf.mxu1 }
  0xd8   : > { %v445_v51 = vpop.f32.mrf.mxu0  ;;  %v778_v59 = vadd.f32 %v8583_v50, %v701_v52  ;;  %v696_v60 = vadd.f32 %v10869_v38, %v695_v55 }
  0xd9   : > { %518 = vst.msk [vmem:[#allocation2] sm:$0xff] %vm272_vm2, %v516_v47  ;;  %v522_v53 = vadd.f32 %v515_v40, %v451_v48  ;;  %v446_v54 = vadd.f32 %v10869_v38, %v445_v51  ;;  %v9804_v63 = vpop.f32.mrf.mxu1  ;;  %v10954_v47 = vld [vmem:[#allocation2 + $0x28] sm:$0xff] }
  0xda   : > { %v9781_v57 = vpop.f32.mrf.mxu0  ;;  %780 = vst.msk [vmem:[#allocation2 + $0xc8] sm:$0xff] %vm272_vm2, %v778_v59  ;;  %v777_v2 = vadd.f32 %v8582_v56, %v696_v60  ;;  %v711_v3 = vadd.f32 %v9804_v63, %v10869_v38  ;;  %v10978_v60 = vld [vmem:[#allocation2 + $0x40] sm:$0xff] }
  0xdb   : > { %524 = vst.msk [vmem:[#allocation2 + $0x20] sm:$0xff] %vm272_vm2, %v522_v53  ;;  %v521_v61 = vadd.f32 %v514_v43, %v446_v54  ;;  %v461_v62 = vadd.f32 %v9781_v57, %v10869_v38  ;;  %v705_v6 = vpop.f32.mrf.mxu1 }
  0xdc   : > { %v455_v0 = vpop.f32.mrf.mxu0  ;;  %779 = vst.msk [vmem:[#allocation2 + $0xc0] sm:$0xff] %vm272_vm2, %v777_v2  ;;  %v783_v8 = vadd.f32 %v8583_v50, %v711_v3  ;;  %v706_v9 = vadd.f32 %v10869_v38, %v705_v6 }
  0xdd   : > { %523 = vst.msk [vmem:[#allocation2 + $0x18] sm:$0xff] %vm272_vm2, %v521_v61  ;;  %v530_v4 = vadd.f32 %v8560_v58, %v461_v62  ;;  %v456_v5 = vadd.f32 %v10869_v38, %v455_v0  ;;  %v9807_v13 = vpop.f32.mrf.mxu1  ;;  %v8563_v62 = vld [vmem:[%s10864_s16 + $0x30] sm:$0xff] }
  0xde   : > { %v9784_v7 = vpop.f32.mrf.mxu0  ;;  %785 = vst.msk [vmem:[#allocation2 + $0xe0] sm:$0xff] %vm272_vm2, %v783_v8  ;;  %v782_v18 = vadd.f32 %v8582_v56, %v706_v9  ;;  %v721_v19 = vadd.f32 %v9807_v13, %v10869_v38  ;;  %v828_v22 = vld [vmem:[#allocation2 + $0x8] sm:$0xff]  ;;  %v8564_v56 = vld [vmem:[%s10864_s16 + $0x38] sm:$0xff] }
  0xdf   : > { %532 = vst.msk [vmem:[#allocation2 + $0x38] sm:$0xff] %vm272_vm2, %v530_v4  ;;  %v529_v10 = vadd.f32 %v8559_v1, %v456_v5  ;;  %v471_v11 = vadd.f32 %v9784_v7, %v10869_v38  ;;  %v1200_v23 = vld [vmem:[#allocation2 + $0x9] sm:$0xff]  ;;  %v715_v25 = vpop.f32.mrf.mxu1  ;;  %v11015_v13 = vld [vmem:[#allocation2 + $0x58] sm:$0xff] }
  0xe0   : > { %v827_v15 = vld [vmem:[#allocation2] sm:$0xff]  ;;  %v465_v17 = vpop.f32.mrf.mxu0  ;;  %784 = vst.msk [vmem:[#allocation2 + $0xd8] sm:$0xff] %vm272_vm2, %v782_v18  ;;  %v791_v29 = vadd.f32 %v10896_v14, %v721_v19  ;;  %v716_v30 = vadd.f32 %v10869_v38, %v715_v25 }
  0xe1   : > { %v1199_v16 = vld [vmem:[#allocation2 + $0x1] sm:$0xff]  ;;  %531 = vst.msk [vmem:[#allocation2 + $0x30] sm:$0xff] %vm272_vm2, %v529_v10  ;;  %v535_v21 = vadd.f32 %v8560_v58, %v471_v11  ;;  %9825 = vmatprep.mubr.msk.f32.mxu0 %vm272_vm2, %v827_v15  ;;  %v466_v24 = vadd.f32 %v10869_v38, %v465_v17 }
  0xe2   : > { %9872 = vmatprep.mubr.msk.f32.mxu1 %vm272_vm2, %v1199_v16  ;;  %9826 = vmatmul.mubr.msk.f32.vlgmr.msra.gmra.mxu0 %vm272_vm2, %v828_v22  ;;  %v9787_v27 = vpop.f32.mrf.mxu0  ;;  %793 = vst.msk [vmem:[#allocation2 + $0xf8] sm:$0xff] %vm272_vm2, %v791_v29  ;;  %v790_v42 = vadd.f32 %v10901_v20, %v716_v30  ;;  %v10946_v44 = vld [vmem:[#allocation2 + $0x21] sm:$0xff] }
  0xe3   : > { %9873 = vmatmul.mubr.msk.f32.vlgmr.msra.gmra.mxu1 %vm272_vm2, %v1200_v23  ;;  %537 = vst.msk [vmem:[#allocation2 + $0x50] sm:$0xff] %vm272_vm2, %v535_v21  ;;  %9918 = vmatpush3.msra.mxu0 %v10851_v36  ;;  %v534_v32 = vadd.f32 %v8559_v1, %v466_v24  ;;  %v481_v33 = vadd.f32 %v9787_v27, %v10869_v38  ;;  %v11035_v21 = vld [vmem:[#allocation2 + $0x70] sm:$0xff]  ;;  %v11065_v29 = vld [vmem:[#allocation2 + $0x88] sm:$0xff] }
  0xe4   : > { %9828 = vmatprep.mubr.msk.f32.mxu0 %vm272_vm2, %v829_v12  ;;  %v1201_v35 = vld [vmem:[#allocation2 + $0x11] sm:$0xff]  ;;  %v10930_v40 = vld [vmem:[#allocation2 + $0x19] sm:$0xff]  ;;  %v475_v41 = vpop.f32.mrf.mxu0  ;;  %9965 = vmatpush3.msra.mxu1 %v10857_v37  ;;  %792 = vst.msk [vmem:[#allocation2 + $0xf0] sm:$0xff] %vm272_vm2, %v790_v42  ;;  %13198 = vst [vmem:[#allocation4_spill] sm:$0xff] %v11065_v29 }
  0xe5   : > { %v10928_v39 = vld [vmem:[#allocation2 + $0x18] sm:$0xff]  ;;  %10011 = vmatprep.subr.mxu0 %v10910_v26  ;;  %536 = vst.msk [vmem:[#allocation2 + $0x48] sm:$0xff] %vm272_vm2, %v534_v32  ;;  %9875 = vmatprep.mubr.msk.f32.mxu1 %vm272_vm2, %v1201_v35  ;;  %v543_v36 = vadd.f32 %v8562_v28, %v481_v33  ;;  %v476_v43 = vadd.f32 %v10869_v38, %v475_v41  ;;  %v10944_v37 = vld [vmem:[#allocation2 + $0x20] sm:$0xff]  ;;  %v9810_v32 = vpop.f32.mrf.mxu1 }
  0xe6   : > { %10058 = vmatprep.subr.mxu1 %v10921_v31  ;;  %9829 = vmatmul.mubr.msk.f32.gmra.mxu0 %vm272_vm2, %v10928_v39  ;;  %v9790_v45 = vpop.f32.mrf.mxu0  ;;  %v10981_v63 = vld [vmem:[#allocation2 + $0x38] sm:$0xff]  ;;  %v731_v35 = vadd.f32 %v9810_v32, %v10869_v38 }
  0xe7   : > { %9876 = vmatmul.mubr.msk.f32.gmra.mxu1 %vm272_vm2, %v10930_v40  ;;  %545 = vst.msk [vmem:[#allocation2 + $0x68] sm:$0xff] %vm272_vm2, %v543_v36  ;;  %9831 = vmatprep.mubr.msk.f32.mxu0 %vm272_vm2, %v10944_v37  ;;  %v542_v46 = vadd.f32 %v8561_v34, %v476_v43  ;;  %v491_v48 = vadd.f32 %v9790_v45, %v10869_v38  ;;  %v10983_v0 = vld [vmem:[#allocation2 + $0x39] sm:$0xff]  ;;  %v725_v42 = vpop.f32.mrf.mxu1 }
  0xe8   : > { %9878 = vmatprep.mubr.msk.f32.mxu1 %vm272_vm2, %v10946_v44  ;;  %v10957_v49 = vld [vmem:[#allocation2 + $0x29] sm:$0xff]  ;;  %v10961_v51 = vld [vmem:[#allocation2 + $0x31] sm:$0xff]  ;;  %v485_v52 = vpop.f32.mrf.mxu0  ;;  %v796_v41 = vadd.f32 %v10896_v14, %v731_v35  ;;  %v726_v36 = vadd.f32 %v10869_v38, %v725_v42  ;;  %v11086_v45 = vld [vmem:[#allocation2 + $0xa0] sm:$0xff] }
  0xe9   : > { %v10959_v50 = vld [vmem:[#allocation2 + $0x30] sm:$0xff]  ;;  %544 = vst.msk [vmem:[#allocation2 + $0x60] sm:$0xff] %vm272_vm2, %v542_v46  ;;  %v548_v53 = vadd.f32 %v8562_v28, %v491_v48  ;;  %v486_v54 = vadd.f32 %v10869_v38, %v485_v52  ;;  %13200 = vst [vmem:[#allocation6_spill] sm:$0xff] %v11086_v45  ;;  %v11165_v42 = vld [vmem:[#allocation2 + $0xe1] sm:$0xff] }
  0xea   : > { %9832 = vmatmul.mubr.msk.f32.gmra.mxu0 %vm272_vm2, %v10954_v47  ;;  %v9793_v55 = vpop.f32.mrf.mxu0  ;;  %v11007_v11 = vld [vmem:[#allocation2 + $0x50] sm:$0xff]  ;;  %798 = vst.msk [vmem:[#allocation2 + $0x110] sm:$0xff] %vm272_vm2, %v796_v41  ;;  %v795_v14 = vadd.f32 %v10901_v20, %v726_v36  ;;  %v11163_v41 = vld [vmem:[#allocation2 + $0xe0] sm:$0xff]  ;;  %13215 = vst [vmem:[#allocation21_spill] sm:$0xff] %v11165_v42 }
  0xeb   : > { %9879 = vmatmul.mubr.msk.f32.gmra.mxu1 %vm272_vm2, %v10957_v49  ;;  %9834 = vmatprep.mubr.msk.f32.mxu0 %vm272_vm2, %v10959_v50  ;;  %550 = vst.msk [vmem:[#allocation2 + $0x80] sm:$0xff] %vm272_vm2, %v548_v53  ;;  %v547_v57 = vadd.f32 %v8561_v34, %v486_v54  ;;  %v501_v58 = vadd.f32 %v9793_v55, %v10869_v38  ;;  %v11009_v12 = vld [vmem:[#allocation2 + $0x51] sm:$0xff]  ;;  %13214 = vst [vmem:[#allocation20_spill] sm:$0xff] %v11163_v41 }
  0xec   : > { %9881 = vmatprep.mubr.msk.f32.mxu1 %vm272_vm2, %v10961_v51  ;;  %v10976_v59 = vld [vmem:[#allocation2 + $0x41] sm:$0xff]  ;;  %v495_v61 = vpop.f32.mrf.mxu0  ;;  %v10999_v8 = vld [vmem:[#allocation2 + $0x49] sm:$0xff]  ;;  %797 = vst.msk [vmem:[#allocation2 + $0x108] sm:$0xff] %vm272_vm2, %v795_v14  ;;  %v11119_v55 = vld [vmem:[#allocation2 + $0xb8] sm:$0xff] }
  0xed   : > { %549 = vst.msk [vmem:[#allocation2 + $0x78] sm:$0xff] %vm272_vm2, %v547_v57  ;;  %v556_v1 = vadd.f32 %v8564_v56, %v501_v58  ;;  %v496_v2 = vadd.f32 %v10869_v38, %v495_v61  ;;  %v10997_v7 = vld [vmem:[#allocation2 + $0x48] sm:$0xff]  ;;  %13204 = vst [vmem:[#allocation10_spill] sm:$0xff] %v11119_v55  ;;  %v11123_v57 = vld [vmem:[#allocation2 + $0xc0] sm:$0xff] }
  0xee   : > { %9835 = vmatmul.mubr.msk.f32.gmra.mxu0 %vm272_vm2, %v10981_v63  ;;  %v9796_v3 = vpop.f32.mrf.mxu0  ;;  %v11037_v22 = vld [vmem:[#allocation2 + $0x68] sm:$0xff]  ;;  %13206 = vst [vmem:[#allocation12_spill] sm:$0xff] %v11123_v57  ;;  %v11135_v61 = vld [vmem:[#allocation2 + $0xd1] sm:$0xff] }
  0xef   : > { %9882 = vmatmul.mubr.msk.f32.gmra.mxu1 %vm272_vm2, %v10983_v0  ;;  %9837 = vmatprep.mubr.msk.f32.mxu0 %vm272_vm2, %v10978_v60  ;;  %558 = vst.msk [vmem:[#allocation2 + $0x98] sm:$0xff] %vm272_vm2, %v556_v1  ;;  %v555_v4 = vadd.f32 %v8563_v62, %v496_v2  ;;  %v511_v5 = vadd.f32 %v9796_v3, %v10869_v38  ;;  %v11039_v23 = vld [vmem:[#allocation2 + $0x69] sm:$0xff]  ;;  %v11125_v58 = vld [vmem:[#allocation2 + $0xc1] sm:$0xff]  ;;  %13208 = vst [vmem:[#allocation14_spill] sm:$0xff] %v11135_v61  ;;  %v9813_v3 = vpop.f32.mrf.mxu1 }
  0xf0   : > { %9884 = vmatprep.mubr.msk.f32.mxu1 %vm272_vm2, %v10976_v59  ;;  %v505_v6 = vpop.f32.mrf.mxu0  ;;  %v11017_v15 = vld [vmem:[#allocation2 + $0x59] sm:$0xff]  ;;  %v11022_v18 = vld [vmem:[#allocation2 + $0x61] sm:$0xff]  ;;  %13207 = vst [vmem:[#allocation13_spill] sm:$0xff] %v11125_v58  ;;  %v11141_v2 = vld [vmem:[#allocation2 + $0xc9] sm:$0xff] }
  0xf1   : > { %557 = vst.msk [vmem:[#allocation2 + $0x90] sm:$0xff] %vm272_vm2, %v555_v4  ;;  %v561_v9 = vadd.f32 %v8564_v56, %v511_v5  ;;  %v506_v10 = vadd.f32 %v10869_v38, %v505_v6  ;;  %v11020_v17 = vld [vmem:[#allocation2 + $0x60] sm:$0xff]  ;;  %v11139_v1 = vld [vmem:[#allocation2 + $0xc8] sm:$0xff]  ;;  %13211 = vst [vmem:[#allocation17_spill] sm:$0xff] %v11141_v2  ;;  %v741_v5 = vadd.f32 %v9813_v3, %v10869_v38  ;;  %v735_v6 = vpop.f32.mrf.mxu1 }
  0xf2   : > { %9838 = vmatmul.mubr.msk.f32.gmra.mxu0 %vm272_vm2, %v10997_v7  ;;  %v11057_v27 = vld [vmem:[#allocation2 + $0x80] sm:$0xff]  ;;  %13210 = vst [vmem:[#allocation16_spill] sm:$0xff] %v11139_v1  ;;  %v8587_v4 = vld [vmem:[%s10864_s16 + $0x68] sm:$0xff]  ;;  %v736_v35 = vadd.f32 %v10869_v38, %v735_v6 }
  0xf3   : > { %9885 = vmatmul.mubr.msk.f32.gmra.mxu1 %vm272_vm2, %v10999_v8  ;;  %9840 = vmatprep.mubr.msk.f32.mxu0 %vm272_vm2, %v11007_v11  ;;  %563 = vst.msk [vmem:[#allocation2 + $0xb0] sm:$0xff] %vm272_vm2, %v561_v9  ;;  %v560_v16 = vadd.f32 %v8563_v62, %v506_v10  ;;  %v11059_v28 = vld [vmem:[#allocation2 + $0x81] sm:$0xff]  ;;  %v11121_v56 = vld [vmem:[#allocation2 + $0xb9] sm:$0xff]  ;;  %v11137_v62 = vld [vmem:[#allocation2 + $0xd0] sm:$0xff]  ;;  %v804_v32 = vadd.f32 %v8587_v4, %v741_v5  ;;  %v9816_v36 = vpop.f32.mrf.mxu1 }
  0xf4   : > { %9887 = vmatprep.mubr.msk.f32.mxu1 %vm272_vm2, %v11009_v12  ;;  %v11033_v19 = vld [vmem:[#allocation2 + $0x71] sm:$0xff]  ;;  %v11051_v25 = vld [vmem:[#allocation2 + $0x79] sm:$0xff]  ;;  %13205 = vst [vmem:[#allocation11_spill] sm:$0xff] %v11121_v56  ;;  %13209 = vst [vmem:[#allocation15_spill] sm:$0xff] %v11137_v62  ;;  %v751_v6 = vadd.f32 %v9816_v36, %v10869_v38 }
  0xf5   : > { %562 = vst.msk [vmem:[#allocation2 + $0xa8] sm:$0xff] %vm272_vm2, %v560_v16  ;;  %v11049_v24 = vld [vmem:[#allocation2 + $0x78] sm:$0xff]  ;;  %v8586_v9 = vld [vmem:[%s10864_s16 + $0x60] sm:$0xff]  ;;  %v11171_v14 = vld [vmem:[#allocation2 + $0xe8] sm:$0xff] }
  0xf6   : > { %9841 = vmatmul.mubr.msk.f32.gmra.mxu0 %vm272_vm2, %v11015_v13  ;;  %v11089_v46 = vld [vmem:[#allocation2 + $0x98] sm:$0xff]  ;;  %v11173_v3 = vld [vmem:[#allocation2 + $0xe9] sm:$0xff]  ;;  %806 = vst.msk [vmem:[#allocation2 + $0x128] sm:$0xff] %vm272_vm2, %v804_v32  ;;  %v803_v5 = vadd.f32 %v8586_v9, %v736_v35 }
  0xf7   : > { %9888 = vmatmul.mubr.msk.f32.gmra.mxu1 %vm272_vm2, %v11017_v15  ;;  %9843 = vmatprep.mubr.msk.f32.mxu0 %vm272_vm2, %v11020_v17  ;;  %13201 = vst [vmem:[#allocation7_spill] sm:$0xff] %v11089_v46  ;;  %v11091_v48 = vld [vmem:[#allocation2 + $0x99] sm:$0xff]  ;;  %v8588_v35 = vld [vmem:[%s10864_s16 + $0x70] sm:$0xff] }
  0xf8   : > { %9890 = vmatprep.mubr.msk.f32.mxu1 %vm272_vm2, %v11022_v18  ;;  %v11067_v30 = vld [vmem:[#allocation2 + $0x89] sm:$0xff]  ;;  %v11071_v34 = vld [vmem:[#allocation2 + $0x91] sm:$0xff]  ;;  %v11156_v16 = vld [vmem:[#allocation2 + $0xd9] sm:$0xff]  ;;  %805 = vst.msk [vmem:[#allocation2 + $0x120] sm:$0xff] %vm272_vm2, %v803_v5 }
  0xf9   : > { %v11069_v33 = vld [vmem:[#allocation2 + $0x90] sm:$0xff]  ;;  %v11154_v10 = vld [vmem:[#allocation2 + $0xd8] sm:$0xff]  ;;  %13213 = vst [vmem:[#allocation19_spill] sm:$0xff] %v11156_v16 }
  0xfa   : > { %9844 = vmatmul.mubr.msk.f32.gmra.mxu0 %vm272_vm2, %v11037_v22  ;;  %13199 = vst [vmem:[#allocation5_spill] sm:$0xff] %v11069_v33  ;;  %v11111_v20 = vld [vmem:[#allocation2 + $0xb0] sm:$0xff]  ;;  %13212 = vst [vmem:[#allocation18_spill] sm:$0xff] %v11154_v10 }
  0xfb   : > { %9891 = vmatmul.mubr.msk.f32.gmra.mxu1 %vm272_vm2, %v11039_v23  ;;  %9846 = vmatprep.mubr.msk.f32.mxu0 %vm272_vm2, %v11035_v21  ;;  %13203 = vst [vmem:[#allocation9_spill] sm:$0xff] %v11111_v20  ;;  %v11113_v54 = vld [vmem:[#allocation2 + $0xb1] sm:$0xff] }
  0xfc   : > { %9893 = vmatprep.mubr.msk.f32.mxu1 %vm272_vm2, %v11033_v19  ;;  %v11084_v43 = vld [vmem:[#allocation2 + $0xa1] sm:$0xff]  ;;  %v11105_v53 = vld [vmem:[#allocation2 + $0xa9] sm:$0xff] }
  0xfd   : > { %v11103_v52 = vld [vmem:[#allocation2 + $0xa8] sm:$0xff] }
  0xfe   : > { %9847 = vmatmul.mubr.msk.f32.gmra.mxu0 %vm272_vm2, %v11049_v24  ;;  %13202 = vst [vmem:[#allocation8_spill] sm:$0xff] %v11103_v52  ;;  %v1627_v36 = vld [vmem:[#allocation2 + $0xa] sm:$0xff] }
  0xff   : > { %9894 = vmatmul.mubr.msk.f32.gmra.mxu1 %vm272_vm2, %v11051_v25  ;;  %9849 = vmatprep.mubr.msk.f32.mxu0 %vm272_vm2, %v11057_v27 }
 0x100   : > { %9896 = vmatprep.mubr.msk.f32.mxu1 %vm272_vm2, %v11059_v28 }
 0x102   : > { %9850 = vmatmul.mubr.msk.f32.gmra.mxu0 %vm272_vm2, %v11065_v29 }
 0x103   : > { %9897 = vmatmul.mubr.msk.f32.gmra.mxu1 %vm272_vm2, %v11067_v30  ;;  %9852 = vmatprep.mubr.msk.f32.mxu0 %vm272_vm2, %v11069_v33 }
 0x104   : > { %9899 = vmatprep.mubr.msk.f32.mxu1 %vm272_vm2, %v11071_v34 }
 0x106   : > { %9853 = vmatmul.mubr.msk.f32.gmra.mxu0 %vm272_vm2, %v11089_v46 }
 0x107   : > { %9900 = vmatmul.mubr.msk.f32.gmra.mxu1 %vm272_vm2, %v11091_v48  ;;  %9855 = vmatprep.mubr.msk.f32.mxu0 %vm272_vm2, %v11086_v45 }
 0x108   : > { %9902 = vmatprep.mubr.msk.f32.mxu1 %vm272_vm2, %v11084_v43 }
 0x10a   : > { %9856 = vmatmul.mubr.msk.f32.gmra.mxu0 %vm272_vm2, %v11103_v52 }
 0x10b   : > { %9903 = vmatmul.mubr.msk.f32.gmra.mxu1 %vm272_vm2, %v11105_v53  ;;  %9858 = vmatprep.mubr.msk.f32.mxu0 %vm272_vm2, %v11111_v20 }
 0x10c   : > { %9905 = vmatprep.mubr.msk.f32.mxu1 %vm272_vm2, %v11113_v54 }
 0x10e   : > { %9859 = vmatmul.mubr.msk.f32.gmra.mxu0 %vm272_vm2, %v11119_v55 }
 0x10f   : > { %9906 = vmatmul.mubr.msk.f32.gmra.mxu1 %vm272_vm2, %v11121_v56  ;;  %9861 = vmatprep.mubr.msk.f32.mxu0 %vm272_vm2, %v11123_v57  ;;  %v8589_v56 = vld [vmem:[%s10864_s16 + $0x78] sm:$0xff] }
 0x110   : > { %9908 = vmatprep.mubr.msk.f32.mxu1 %vm272_vm2, %v11125_v58 }
 0x112   : > { %9862 = vmatmul.mubr.msk.f32.gmra.mxu0 %vm272_vm2, %v11139_v1 }
 0x113   : > { %9909 = vmatmul.mubr.msk.f32.gmra.mxu1 %vm272_vm2, %v11141_v2  ;;  %9864 = vmatprep.mubr.msk.f32.mxu0 %vm272_vm2, %v11137_v62 }
 0x114   : > { %9911 = vmatprep.mubr.msk.f32.mxu1 %vm272_vm2, %v11135_v61  ;;  %v809_v61 = vadd.f32 %v8587_v4, %v751_v6 }
 0x116   : > { %9865 = vmatmul.mubr.msk.f32.gmra.mxu0 %vm272_vm2, %v11154_v10  ;;  %811 = vst.msk [vmem:[#allocation2 + $0x140] sm:$0xff] %vm272_vm2, %v809_v61 }
 0x117   : > { %9912 = vmatmul.mubr.msk.f32.gmra.mxu1 %vm272_vm2, %v11156_v16  ;;  %9867 = vmatprep.mubr.msk.f32.mxu0 %vm272_vm2, %v11163_v41  ;;  %v745_v16 = vpop.f32.mrf.mxu1 }
 0x118   : > { %9914 = vmatprep.mubr.msk.f32.mxu1 %vm272_vm2, %v11165_v42  ;;  %v746_v2 = vadd.f32 %v10869_v38, %v745_v16  ;;  %v1626_v42 = vld [vmem:[#allocation2 + $0x2] sm:$0xff] }
 0x119   : > { %v9819_v58 = vpop.f32.mrf.mxu1 }
 0x11a   : > { %9868 = vmatmul.mubr.msk.f32.gmra.mxu0 %vm272_vm2, %v11171_v14  ;;  %v808_v32 = vadd.f32 %v8586_v9, %v746_v2  ;;  %v761_v4 = vadd.f32 %v9819_v58, %v10869_v38  ;;  %v11203_v58 = vld [vmem:[%s13167_s4 + $0x38] sm:$0xff] }
 0x11b   : > { %9915 = vmatmul.mubr.msk.f32.gmra.mxu1 %vm272_vm2, %v11173_v3  ;;  %9919 = vmatprep.mubr.msk.f32.mxu0 %vm272_vm2, %v1626_v42  ;;  %v755_v16 = vpop.f32.mrf.mxu1  ;;  %v1628_v42 = vld [vmem:[#allocation2 + $0x12] sm:$0xff] }
 0x11c   : > { %9966 = vmatprep.mubr.msk.f32.mxu1 %vm272_vm2, %v10928_v39  ;;  %810 = vst.msk [vmem:[#allocation2 + $0x138] sm:$0xff] %vm272_vm2, %v808_v32  ;;  %v817_v5 = vadd.f32 %v8589_v56, %v761_v4  ;;  %v756_v6 = vadd.f32 %v10869_v38, %v755_v16  ;;  %v11198_v39 = vld [vmem:[%s13167_s4 + $0x30] sm:$0xff]  ;;  %v11212_v32 = vld [vmem:[#allocation2 + $0x1a] sm:$0xff] }
 0x11d   : > { %v9822_v61 = vpop.f32.mrf.mxu1  ;;  %v11242_v16 = vld [vmem:[#allocation2 + $0x3a] sm:$0xff] }
 0x11e   : > { %9920 = vmatmul.mubr.msk.f32.vlgmr.msra.gmra.mxu0 %vm272_vm2, %v1627_v36  ;;  %819 = vst.msk [vmem:[#allocation2 + $0x158] sm:$0xff] %vm272_vm2, %v817_v5  ;;  %v816_v2 = vadd.f32 %v8588_v35, %v756_v6  ;;  %v11254_v36 = vld [vmem:[#allocation2 + $0x4a] sm:$0xff]  ;;  %v11260_v5 = vld [vmem:[#allocation2 + $0x52] sm:$0xff]  ;;  %v11266_v6 = vld [vmem:[#allocation2 + $0x5a] sm:$0xff] }
 0x11f   : > { %9967 = vmatmul.mubr.msk.f32.vlgmr.msra.gmra.mxu1 %vm272_vm2, %v10944_v37  ;;  %10012 = vmatpush3.msra.mxu0 %v10910_v26  ;;  %v771_v37 = vadd.f32 %v9822_v61, %v10869_v38  ;;  %v765_v9 = vpop.f32.mrf.mxu1  ;;  %v11278_v61 = vld [vmem:[#allocation2 + $0x6a] sm:$0xff] }
 0x120   : > { %9922 = vmatprep.mubr.msk.f32.mxu0 %vm272_vm2, %v1628_v42  ;;  %9969 = vmatprep.mubr.msk.f32.mxu1 %vm272_vm2, %v10954_v47  ;;  %818 = vst.msk [vmem:[#allocation2 + $0x150] sm:$0xff] %vm272_vm2, %v816_v2  ;;  %v766_v4 = vadd.f32 %v10869_v38, %v765_v9  ;;  %v11222_v47 = vld [vmem:[#allocation2 + $0x22] sm:$0xff]  ;;  %v11236_v38 = vld [vmem:[#allocation2 + $0x32] sm:$0xff] }
 0x121   : > { %10059 = vmatpush3.msra.mxu1 %v10921_v31  ;;  %10105 = vmatprep.subr.mxu0 %v11198_v39  ;;  %v822_v26 = vadd.f32 %v8589_v56, %v771_v37  ;;  %v11229_v56 = vld [vmem:[#allocation2 + $0x2a] sm:$0xff]  ;;  %v11272_v42 = vld [vmem:[#allocation2 + $0x62] sm:$0xff]  ;;  %v11284_v2 = vld [vmem:[#allocation2 + $0x72] sm:$0xff] }
 0x122   : > { %10152 = vmatprep.subr.mxu1 %v11203_v58  ;;  %9923 = vmatmul.mubr.msk.f32.gmra.mxu0 %vm272_vm2, %v11212_v32  ;;  %v821_v31 = vadd.f32 %v8588_v35, %v766_v4  ;;  %v11248_v35 = vld [vmem:[#allocation2 + $0x42] sm:$0xff]  ;;  %v11290_v37 = vld [vmem:[#allocation2 + $0x7a] sm:$0xff]  ;;  %v11308_v4 = vld [vmem:[#allocation2 + $0x92] sm:$0xff] }
 0x123   : > { %9970 = vmatmul.mubr.msk.f32.gmra.mxu1 %vm272_vm2, %v10959_v50  ;;  %9925 = vmatprep.mubr.msk.f32.mxu0 %vm272_vm2, %v11222_v47  ;;  %824 = vst.msk [vmem:[#allocation2 + $0x170] sm:$0xff] %vm272_vm2, %v822_v26  ;;  %v11296_v9 = vld [vmem:[#allocation2 + $0x82] sm:$0xff]  ;;  %v11302_v26 = vld [vmem:[#allocation2 + $0x8a] sm:$0xff] }
 0x124   : > { %9972 = vmatprep.mubr.msk.f32.mxu1 %vm272_vm2, %v10981_v63  ;;  %823 = vst.msk [vmem:[#allocation2 + $0x168] sm:$0xff] %vm272_vm2, %v821_v31  ;;  %v11314_v31 = vld [vmem:[#allocation2 + $0x9a] sm:$0xff] }
 0x126   : > { %9926 = vmatmul.mubr.msk.f32.gmra.mxu0 %vm272_vm2, %v11229_v56 }
 0x127   : > { %9973 = vmatmul.mubr.msk.f32.gmra.mxu1 %vm272_vm2, %v10978_v60  ;;  %9928 = vmatprep.mubr.msk.f32.mxu0 %vm272_vm2, %v11236_v38 }
 0x128   : > { %9975 = vmatprep.mubr.msk.f32.mxu1 %vm272_vm2, %v10997_v7 }
 0x12a   : > { %9929 = vmatmul.mubr.msk.f32.gmra.mxu0 %vm272_vm2, %v11242_v16 }
 0x12b   : > { %9976 = vmatmul.mubr.msk.f32.gmra.mxu1 %vm272_vm2, %v11007_v11  ;;  %9931 = vmatprep.mubr.msk.f32.mxu0 %vm272_vm2, %v11248_v35 }
 0x12c   : > { %9978 = vmatprep.mubr.msk.f32.mxu1 %vm272_vm2, %v11015_v13 }
 0x12e   : > { %9932 = vmatmul.mubr.msk.f32.gmra.mxu0 %vm272_vm2, %v11254_v36 }
 0x12f   : > { %9979 = vmatmul.mubr.msk.f32.gmra.mxu1 %vm272_vm2, %v11020_v17  ;;  %9934 = vmatprep.mubr.msk.f32.mxu0 %vm272_vm2, %v11260_v5 }
 0x130   : > { %9981 = vmatprep.mubr.msk.f32.mxu1 %vm272_vm2, %v11037_v22 }
 0x132   : > { %9935 = vmatmul.mubr.msk.f32.gmra.mxu0 %vm272_vm2, %v11266_v6 }
 0x133   : > { %9982 = vmatmul.mubr.msk.f32.gmra.mxu1 %vm272_vm2, %v11035_v21  ;;  %9937 = vmatprep.mubr.msk.f32.mxu0 %vm272_vm2, %v11272_v42 }
 0x134   : > { %9984 = vmatprep.mubr.msk.f32.mxu1 %vm272_vm2, %v11049_v24 }
 0x136   : > { %9938 = vmatmul.mubr.msk.f32.gmra.mxu0 %vm272_vm2, %v11278_v61 }
 0x137   : > { %9985 = vmatmul.mubr.msk.f32.gmra.mxu1 %vm272_vm2, %v11057_v27  ;;  %9940 = vmatprep.mubr.msk.f32.mxu0 %vm272_vm2, %v11284_v2 }
 0x138   : > { %9987 = vmatprep.mubr.msk.f32.mxu1 %vm272_vm2, %v11065_v29  ;;  %v1655_v29 = vld [vmem:[#allocation2 + $0xea] sm:$0xff] }
 0x13a   : > { %9941 = vmatmul.mubr.msk.f32.gmra.mxu0 %vm272_vm2, %v11290_v37 }
 0x13b   : > { %9988 = vmatmul.mubr.msk.f32.gmra.mxu1 %vm272_vm2, %v11069_v33  ;;  %9943 = vmatprep.mubr.msk.f32.mxu0 %vm272_vm2, %v11296_v9  ;;  %v11364_v33 = vld [vmem:[#allocation2 + $0xf0] sm:$0xff] }
 0x13c   : > { %9990 = vmatprep.mubr.msk.f32.mxu1 %vm272_vm2, %v11089_v46  ;;  %v11320_v46 = vld [vmem:[#allocation2 + $0xa2] sm:$0xff] }
 0x13e   : > { %9944 = vmatmul.mubr.msk.f32.gmra.mxu0 %vm272_vm2, %v11302_v26 }
 0x13f   : > { %9991 = vmatmul.mubr.msk.f32.gmra.mxu1 %vm272_vm2, %v11086_v45  ;;  %9946 = vmatprep.mubr.msk.f32.mxu0 %vm272_vm2, %v11308_v4  ;;  %v11326_v45 = vld [vmem:[#allocation2 + $0xaa] sm:$0xff] }
 0x140   : > { %9993 = vmatprep.mubr.msk.f32.mxu1 %vm272_vm2, %v11103_v52  ;;  %v11332_v52 = vld [vmem:[#allocation2 + $0xb2] sm:$0xff] }
 0x142   : > { %9947 = vmatmul.mubr.msk.f32.gmra.mxu0 %vm272_vm2, %v11314_v31 }
 0x143   : > { %9994 = vmatmul.mubr.msk.f32.gmra.mxu1 %vm272_vm2, %v11111_v20  ;;  %9949 = vmatprep.mubr.msk.f32.mxu0 %vm272_vm2, %v11320_v46  ;;  %v11338_v20 = vld [vmem:[#allocation2 + $0xba] sm:$0xff] }
 0x144   : > { %9996 = vmatprep.mubr.msk.f32.mxu1 %vm272_vm2, %v11119_v55  ;;  %v11344_v55 = vld [vmem:[#allocation2 + $0xc2] sm:$0xff] }
 0x146   : > { %9950 = vmatmul.mubr.msk.f32.gmra.mxu0 %vm272_vm2, %v11326_v45 }
 0x147   : > { %9997 = vmatmul.mubr.msk.f32.gmra.mxu1 %vm272_vm2, %v11123_v57  ;;  %9952 = vmatprep.mubr.msk.f32.mxu0 %vm272_vm2, %v11332_v52  ;;  %v11350_v57 = vld [vmem:[#allocation2 + $0xca] sm:$0xff] }
 0x148   : > { %9999 = vmatprep.mubr.msk.f32.mxu1 %vm272_vm2, %v11139_v1  ;;  %v11356_v1 = vld [vmem:[#allocation2 + $0xd2] sm:$0xff] }
 0x14a   : > { %9953 = vmatmul.mubr.msk.f32.gmra.mxu0 %vm272_vm2, %v11338_v20 }
 0x14b   : > { %10000 = vmatmul.mubr.msk.f32.gmra.mxu1 %vm272_vm2, %v11137_v62  ;;  %9955 = vmatprep.mubr.msk.f32.mxu0 %vm272_vm2, %v11344_v55  ;;  %v11362_v62 = vld [vmem:[#allocation2 + $0xda] sm:$0xff] }
 0x14c   : > { %10002 = vmatprep.mubr.msk.f32.mxu1 %vm272_vm2, %v11154_v10  ;;  %v11370_v10 = vld [vmem:[#allocation2 + $0xe2] sm:$0xff] }
 0x14e   : > { %9956 = vmatmul.mubr.msk.f32.gmra.mxu0 %vm272_vm2, %v11350_v57 }
 0x14f   : > { %10003 = vmatmul.mubr.msk.f32.gmra.mxu1 %vm272_vm2, %v11163_v41  ;;  %9958 = vmatprep.mubr.msk.f32.mxu0 %vm272_vm2, %v11356_v1  ;;  %v11372_v41 = vld [vmem:[#allocation2 + $0xf8] sm:$0xff] }
 0x150   : > { %10005 = vmatprep.mubr.msk.f32.mxu1 %vm272_vm2, %v11171_v14  ;;  %13216 = vst [vmem:[#allocation22_spill] sm:$0xff] %v11372_v41  ;;  %v11378_v14 = vld [vmem:[#allocation2 + $0x100] sm:$0xff] }
 0x151   : > { %13217 = vst [vmem:[#allocation23_spill] sm:$0xff] %v11378_v14 }
 0x152   : > { %9959 = vmatmul.mubr.msk.f32.gmra.mxu0 %vm272_vm2, %v11362_v62 }
 0x153   : > { %10006 = vmatmul.mubr.msk.f32.gmra.mxu1 %vm272_vm2, %v11364_v33  ;;  %9961 = vmatprep.mubr.msk.f32.mxu0 %vm272_vm2, %v11370_v10 }
 0x154   : > { %10008 = vmatprep.mubr.msk.f32.mxu1 %vm272_vm2, %v11372_v41  ;;  %v11394_v41 = vld [vmem:[%s13167_s4 + $0x40] sm:$0xff] }
 0x156   : > { %9962 = vmatmul.mubr.msk.f32.gmra.mxu0 %vm272_vm2, %v1655_v29 }
 0x157   : > { %10009 = vmatmul.mubr.msk.f32.gmra.mxu1 %vm272_vm2, %v11378_v14  ;;  %10013 = vmatprep.mubr.msk.f32.mxu0 %vm272_vm2, %v10930_v40  ;;  %v11399_v14 = vld [vmem:[%s13167_s4] sm:$0xff] }
 0x158   : > { %10060 = vmatprep.mubr.msk.f32.mxu1 %vm272_vm2, %v11212_v32  ;;  %v13218_v40 = vld [vmem:[#allocation11_spill] sm:$0xff] }
 0x159   : > { %v13226_v32 = vld [vmem:[#allocation7_spill] sm:$0xff] }
 0x15a   : > { %10014 = vmatmul.mubr.msk.f32.vlgmr.msra.gmra.mxu0 %vm272_vm2, %v10946_v44  ;;  %v13219_v44 = vld [vmem:[#allocation13_spill] sm:$0xff] }
 0x15b   : > { %10061 = vmatmul.mubr.msk.f32.vlgmr.msra.gmra.mxu1 %vm272_vm2, %v11222_v47  ;;  %10106 = vmatpush3.msra.mxu0 %v11198_v39 }
 0x15c   : > { %10016 = vmatprep.mubr.msk.f32.mxu0 %vm272_vm2, %v10957_v49  ;;  %10063 = vmatprep.mubr.msk.f32.mxu1 %vm272_vm2, %v11229_v56  ;;  %v13220_v49 = vld [vmem:[#allocation17_spill] sm:$0xff]  ;;  %v13227_v56 = vld [vmem:[#allocation6_spill] sm:$0xff] }
 0x15d   : > { %10153 = vmatpush3.msra.mxu1 %v11203_v58  ;;  %10199 = vmatprep.subr.mxu0 %v11394_v41 }
 0x15e   : > { %10246 = vmatprep.subr.mxu1 %v11399_v14  ;;  %10017 = vmatmul.mubr.msk.f32.gmra.mxu0 %vm272_vm2, %v10961_v51 }
 0x15f   : > { %10064 = vmatmul.mubr.msk.f32.gmra.mxu1 %vm272_vm2, %v11236_v38  ;;  %10019 = vmatprep.mubr.msk.f32.mxu0 %vm272_vm2, %v10983_v0 }
 0x160   : > { %10066 = vmatprep.mubr.msk.f32.mxu1 %vm272_vm2, %v11242_v16 }
 0x162   : > { %10020 = vmatmul.mubr.msk.f32.gmra.mxu0 %vm272_vm2, %v10976_v59 }
 0x163   : > { %10067 = vmatmul.mubr.msk.f32.gmra.mxu1 %vm272_vm2, %v11248_v35  ;;  %10022 = vmatprep.mubr.msk.f32.mxu0 %vm272_vm2, %v10999_v8 }
 0x164   : > { %10069 = vmatprep.mubr.msk.f32.mxu1 %vm272_vm2, %v11254_v36 }
 0x166   : > { %10023 = vmatmul.mubr.msk.f32.gmra.mxu0 %vm272_vm2, %v11009_v12 }
 0x167   : > { %10070 = vmatmul.mubr.msk.f32.gmra.mxu1 %vm272_vm2, %v11260_v5  ;;  %10025 = vmatprep.mubr.msk.f32.mxu0 %vm272_vm2, %v11017_v15 }
 0x168   : > { %10072 = vmatprep.mubr.msk.f32.mxu1 %vm272_vm2, %v11266_v6 }
 0x16a   : > { %10026 = vmatmul.mubr.msk.f32.gmra.mxu0 %vm272_vm2, %v11022_v18 }
 0x16b   : > { %10073 = vmatmul.mubr.msk.f32.gmra.mxu1 %vm272_vm2, %v11272_v42  ;;  %10028 = vmatprep.mubr.msk.f32.mxu0 %vm272_vm2, %v11039_v23 }
 0x16c   : > { %10075 = vmatprep.mubr.msk.f32.mxu1 %vm272_vm2, %v11278_v61  ;;  %v13228_v61 = vld [vmem:[#allocation8_spill] sm:$0xff] }
 0x16e   : > { %10029 = vmatmul.mubr.msk.f32.gmra.mxu0 %vm272_vm2, %v11033_v19 }
 0x16f   : > { %10076 = vmatmul.mubr.msk.f32.gmra.mxu1 %vm272_vm2, %v11284_v2  ;;  %10031 = vmatprep.mubr.msk.f32.mxu0 %vm272_vm2, %v11051_v25 }
 0x170   : > { %10078 = vmatprep.mubr.msk.f32.mxu1 %vm272_vm2, %v11290_v37  ;;  %v13229_v37 = vld [vmem:[#allocation9_spill] sm:$0xff] }
 0x172   : > { %10032 = vmatmul.mubr.msk.f32.gmra.mxu0 %vm272_vm2, %v11059_v28 }
 0x173   : > { %10079 = vmatmul.mubr.msk.f32.gmra.mxu1 %vm272_vm2, %v11296_v9  ;;  %10034 = vmatprep.mubr.msk.f32.mxu0 %vm272_vm2, %v11067_v30 }
 0x174   : > { %10081 = vmatprep.mubr.msk.f32.mxu1 %vm272_vm2, %v11302_v26 }
 0x176   : > { %10035 = vmatmul.mubr.msk.f32.gmra.mxu0 %vm272_vm2, %v11071_v34 }
 0x177   : > { %10082 = vmatmul.mubr.msk.f32.gmra.mxu1 %vm272_vm2, %v11308_v4  ;;  %10037 = vmatprep.mubr.msk.f32.mxu0 %vm272_vm2, %v11091_v48 }
 0x178   : > { %10084 = vmatprep.mubr.msk.f32.mxu1 %vm272_vm2, %v11314_v31 }
 0x17a   : > { %10038 = vmatmul.mubr.msk.f32.gmra.mxu0 %vm272_vm2, %v11084_v43 }
 0x17b   : > { %10085 = vmatmul.mubr.msk.f32.gmra.mxu1 %vm272_vm2, %v11320_v46  ;;  %10040 = vmatprep.mubr.msk.f32.mxu0 %vm272_vm2, %v11105_v53  ;;  %v13222_v46 = vld [vmem:[#allocation19_spill] sm:$0xff] }
 0x17c   : > { %10087 = vmatprep.mubr.msk.f32.mxu1 %vm272_vm2, %v11326_v45  ;;  %v13221_v45 = vld [vmem:[#allocation14_spill] sm:$0xff] }
 0x17e   : > { %10041 = vmatmul.mubr.msk.f32.gmra.mxu0 %vm272_vm2, %v11113_v54 }
 0x17f   : > { %10088 = vmatmul.mubr.msk.f32.gmra.mxu1 %vm272_vm2, %v11332_v52  ;;  %10043 = vmatprep.mubr.msk.f32.mxu0 %vm272_vm2, %v13218_v40  ;;  %v13223_v52 = vld [vmem:[#allocation21_spill] sm:$0xff] }
 0x180   : > { %10090 = vmatprep.mubr.msk.f32.mxu1 %vm272_vm2, %v11338_v20  ;;  %v11504_v20 = vld [vmem:[#allocation2 + $0xf1] sm:$0xff] }
 0x182   : > { %10044 = vmatmul.mubr.msk.f32.gmra.mxu0 %vm272_vm2, %v13219_v44 }
 0x183   : > { %10091 = vmatmul.mubr.msk.f32.gmra.mxu1 %vm272_vm2, %v11344_v55  ;;  %10046 = vmatprep.mubr.msk.f32.mxu0 %vm272_vm2, %v13220_v49  ;;  %v2934_v55 = vld [vmem:[#allocation2 + $0xf2] sm:$0xff] }
 0x184   : > { %10093 = vmatprep.mubr.msk.f32.mxu1 %vm272_vm2, %v11350_v57  ;;  %v11509_v57 = vld [vmem:[#allocation2 + $0xf9] sm:$0xff] }
 0x186   : > { %10047 = vmatmul.mubr.msk.f32.gmra.mxu0 %vm272_vm2, %v13221_v45 }
 0x187   : > { %10094 = vmatmul.mubr.msk.f32.gmra.mxu1 %vm272_vm2, %v11356_v1  ;;  %10049 = vmatprep.mubr.msk.f32.mxu0 %vm272_vm2, %v13222_v46  ;;  %v11514_v1 = vld [vmem:[#allocation2 + $0x101] sm:$0xff] }
 0x188   : > { %10096 = vmatprep.mubr.msk.f32.mxu1 %vm272_vm2, %v11362_v62  ;;  %v2935_v62 = vld [vmem:[#allocation2 + $0xfa] sm:$0xff] }
 0x18a   : > { %10050 = vmatmul.mubr.msk.f32.gmra.mxu0 %vm272_vm2, %v13223_v52 }
 0x18b   : > { %10097 = vmatmul.mubr.msk.f32.gmra.mxu1 %vm272_vm2, %v11370_v10  ;;  %10052 = vmatprep.mubr.msk.f32.mxu0 %vm272_vm2, %v11173_v3  ;;  %v2936_v10 = vld [vmem:[#allocation2 + $0x102] sm:$0xff]  ;;  %v11535_v3 = vld [vmem:[%s13167_s4 + $0x10] sm:$0xff] }
 0x18c   : > { %10099 = vmatprep.mubr.msk.f32.mxu1 %vm272_vm2, %v1655_v29  ;;  %v11530_v29 = vld [vmem:[%s13167_s4 + $0x8] sm:$0xff] }
 0x18e   : > { %10053 = vmatmul.mubr.msk.f32.gmra.mxu0 %vm272_vm2, %v11504_v20 }
 0x18f   : > { %10100 = vmatmul.mubr.msk.f32.gmra.mxu1 %vm272_vm2, %v2934_v55  ;;  %10055 = vmatprep.mubr.msk.f32.mxu0 %vm272_vm2, %v11509_v57 }
 0x190   : > { %10102 = vmatprep.mubr.msk.f32.mxu1 %vm272_vm2, %v2935_v62 }
 0x192   : > { %10056 = vmatmul.mubr.msk.f32.gmra.mxu0 %vm272_vm2, %v11514_v1 }
 0x193   : > { %10103 = vmatmul.mubr.msk.f32.gmra.mxu1 %vm272_vm2, %v2936_v10  ;;  %10107 = vmatprep.mubr.msk.f32.mxu0 %vm272_vm2, %v10959_v50  ;;  %v11564_v50 = vld [vmem:[%s13168_s5] ss:$0 sm:$0xff]  ;;  %v13230_v10 = vld [vmem:[#allocation10_spill] sm:$0xff] }
 0x194   : > { %10154 = vmatprep.mubr.msk.f32.mxu1 %vm272_vm2, %v10961_v51 }
 0x196   : > { %10108 = vmatmul.mubr.msk.f32.vlgmr.msra.gmra.mxu0 %vm272_vm2, %v10981_v63 }
 0x197   : > { %10155 = vmatmul.mubr.msk.f32.vlgmr.msra.gmra.mxu1 %vm272_vm2, %v10983_v0  ;;  %10200 = vmatpush3.msra.mxu0 %v11394_v41 }
 0x198   : > { %10157 = vmatprep.mubr.msk.f32.mxu1 %vm272_vm2, %v10976_v59  ;;  %10110 = vmatprep.mubr.msk.f32.mxu0 %vm272_vm2, %v10978_v60 }
 0x199   : > { %10247 = vmatpush3.msra.mxu1 %v11399_v14  ;;  %10293 = vmatprep.subr.mxu0 %v11530_v29 }
 0x19a   : > { %10340 = vmatprep.subr.mxu1 %v11535_v3  ;;  %10111 = vmatmul.mubr.msk.f32.gmra.mxu0 %vm272_vm2, %v10997_v7 }
 0x19b   : > { %10158 = vmatmul.mubr.msk.f32.gmra.mxu1 %vm272_vm2, %v10999_v8  ;;  %10113 = vmatprep.mubr.msk.f32.mxu0 %vm272_vm2, %v11007_v11 }
 0x19c   : > { %10160 = vmatprep.mubr.msk.f32.mxu1 %vm272_vm2, %v11009_v12 }
 0x19e   : > { %10114 = vmatmul.mubr.msk.f32.gmra.mxu0 %vm272_vm2, %v11015_v13 }
 0x19f   : > { %10161 = vmatmul.mubr.msk.f32.gmra.mxu1 %vm272_vm2, %v11017_v15  ;;  %10116 = vmatprep.mubr.msk.f32.mxu0 %vm272_vm2, %v11020_v17 }
 0x1a0   : > { %10163 = vmatprep.mubr.msk.f32.mxu1 %vm272_vm2, %v11022_v18 }
 0x1a2   : > { %v9827_v51 = vpop.f32.mrf.mxu0  ;;  %10117 = vmatmul.mubr.msk.f32.gmra.mxu0 %vm272_vm2, %v11037_v22 }
 0x1a3   : > { %v9874_v59 = vpop.f32.mrf.mxu1  ;;  %10164 = vmatmul.mubr.msk.f32.gmra.mxu1 %vm272_vm2, %v11039_v23  ;;  %v1026_v60 = vadd.f32 %v9827_v51, %v11564_v50  ;;  %10119 = vmatprep.mubr.msk.f32.mxu0 %vm272_vm2, %v11035_v21  ;;  %v13224_v21 = vld [vmem:[#allocation4_spill] sm:$0xff]  ;;  %v13225_v23 = vld [vmem:[#allocation5_spill] sm:$0xff] }
 0x1a4   : > { %10166 = vmatprep.mubr.msk.f32.mxu1 %vm272_vm2, %v11033_v19  ;;  %v1020_v63 = vpop.f32.mrf.mxu0 }
 0x1a5   : > { %v1417_v0 = vpop.f32.mrf.mxu1  ;;  %1170 = vst.msk [vmem:[#allocation3 + $0x8] sm:$0xff] %vm272_vm2, %v1026_v60  ;;  %v1021_v7 = vadd.f32 %v11564_v50, %v1020_v63 }
 0x1a6   : > { %v9830_v8 = vpop.f32.mrf.mxu0  ;;  %10120 = vmatmul.mubr.msk.f32.gmra.mxu0 %vm272_vm2, %v11049_v24 }
 0x1a7   : > { %v9877_v11 = vpop.f32.mrf.mxu1  ;;  %10167 = vmatmul.mubr.msk.f32.gmra.mxu1 %vm272_vm2, %v11051_v25  ;;  %1169 = vst.msk [vmem:[#allocation3] sm:$0xff] %vm272_vm2, %v1021_v7  ;;  %v1036_v12 = vadd.f32 %v9830_v8, %v11564_v50  ;;  %10122 = vmatprep.mubr.msk.f32.mxu0 %vm272_vm2, %v11057_v27 }
 0x1a8   : > { %10169 = vmatprep.mubr.msk.f32.mxu1 %vm272_vm2, %v11059_v28  ;;  %v1030_v13 = vpop.f32.mrf.mxu0 }
 0x1a9   : > { %v1427_v15 = vpop.f32.mrf.mxu1  ;;  %1172 = vst.msk [vmem:[#allocation3 + $0x18] sm:$0xff] %vm272_vm2, %v1036_v12  ;;  %v1031_v17 = vadd.f32 %v11564_v50, %v1030_v13  ;;  %v13232_v13 = vld [vmem:[#allocation16_spill] sm:$0xff] }
 0x1aa   : > { %v9833_v18 = vpop.f32.mrf.mxu0  ;;  %10123 = vmatmul.mubr.msk.f32.gmra.mxu0 %vm272_vm2, %v13224_v21 }
 0x1ab   : > { %v9880_v19 = vpop.f32.mrf.mxu1  ;;  %10170 = vmatmul.mubr.msk.f32.gmra.mxu1 %vm272_vm2, %v11067_v30  ;;  %1171 = vst.msk [vmem:[#allocation3 + $0x10] sm:$0xff] %vm272_vm2, %v1031_v17  ;;  %v1046_v22 = vadd.f32 %v9833_v18, %v11564_v50  ;;  %10125 = vmatprep.mubr.msk.f32.mxu0 %vm272_vm2, %v13225_v23  ;;  %v13233_v17 = vld [vmem:[#allocation15_spill] sm:$0xff] }
 0x1ac   : > { %10172 = vmatprep.mubr.msk.f32.mxu1 %vm272_vm2, %v11071_v34  ;;  %v1230_v24 = vld [vmem:[#allocation3 + $0x8] sm:$0xff]  ;;  %v1040_v25 = vpop.f32.mrf.mxu0 }
 0x1ad   : > { %v1437_v27 = vpop.f32.mrf.mxu1  ;;  %v1567_v28 = vadd.f32 %v9874_v59, %v1230_v24  ;;  %1174 = vst.msk [vmem:[#allocation3 + $0x28] sm:$0xff] %vm272_vm2, %v1046_v22  ;;  %v1041_v41 = vadd.f32 %v11564_v50, %v1040_v25  ;;  %v13231_v59 = vld [vmem:[#allocation12_spill] sm:$0xff] }
 0x1ae   : > { %v1229_v39 = vld [vmem:[#allocation3] sm:$0xff]  ;;  %v9836_v30 = vpop.f32.mrf.mxu0  ;;  %10126 = vmatmul.mubr.msk.f32.gmra.mxu0 %vm272_vm2, %v13226_v32 }
 0x1af   : > { %v9883_v58 = vpop.f32.mrf.mxu1  ;;  %10173 = vmatmul.mubr.msk.f32.gmra.mxu1 %vm272_vm2, %v11091_v48  ;;  %1597 = vst.msk [vmem:[#allocation3 + $0x8] sm:$0xff] %vm272_vm2, %v1567_v28  ;;  %v1566_v34 = vadd.f32 %v1417_v0, %v1229_v39  ;;  %1173 = vst.msk [vmem:[#allocation3 + $0x20] sm:$0xff] %vm272_vm2, %v1041_v41  ;;  %v1056_v47 = vadd.f32 %v9836_v30, %v11564_v50  ;;  %10128 = vmatprep.mubr.msk.f32.mxu0 %vm272_vm2, %v13227_v56  ;;  %v13235_v41 = vld [vmem:[#allocation20_spill] sm:$0xff] }
 0x1b0   : > { %10175 = vmatprep.mubr.msk.f32.mxu1 %vm272_vm2, %v11084_v43  ;;  %v1232_v38 = vld [vmem:[#allocation3 + $0x18] sm:$0xff]  ;;  %v1050_v16 = vpop.f32.mrf.mxu0  ;;  %v3357_v39 = vld [vmem:[#allocation2 + $0xe8] sm:$0xff] }
 0x1b1   : > { %v1447_v35 = vpop.f32.mrf.mxu1  ;;  %1596 = vst.msk [vmem:[#allocation3] sm:$0xff] %vm272_vm2, %v1566_v34  ;;  %v1569_v36 = vadd.f32 %v9877_v11, %v1232_v38  ;;  %1176 = vst.msk [vmem:[#allocation3 + $0x38] sm:$0xff] %vm272_vm2, %v1056_v47  ;;  %v1051_v48 = vadd.f32 %v11564_v50, %v1050_v16  ;;  %v3784_v47 = vld [vmem:[#allocation2 + $0xe9] sm:$0xff] }
 0x1b2   : > { %v1231_v5 = vld [vmem:[#allocation3 + $0x10] sm:$0xff]  ;;  %v9839_v6 = vpop.f32.mrf.mxu0  ;;  %10129 = vmatmul.mubr.msk.f32.gmra.mxu0 %vm272_vm2, %v13228_v61 }
 0x1b3   : > { %v9886_v42 = vpop.f32.mrf.mxu1  ;;  %10176 = vmatmul.mubr.msk.f32.gmra.mxu1 %vm272_vm2, %v11105_v53  ;;  %1599 = vst.msk [vmem:[#allocation3 + $0x18] sm:$0xff] %vm272_vm2, %v1569_v36  ;;  %v1568_v43 = vadd.f32 %v1427_v15, %v1231_v5  ;;  %1175 = vst.msk [vmem:[#allocation3 + $0x30] sm:$0xff] %vm272_vm2, %v1051_v48  ;;  %v1066_v2 = vadd.f32 %v9839_v6, %v11564_v50  ;;  %10131 = vmatprep.mubr.msk.f32.mxu0 %vm272_vm2, %v13229_v37  ;;  %v13236_v37 = vld [vmem:[#allocation22_spill] sm:$0xff] }
 0x1b4   : > { %10178 = vmatprep.mubr.msk.f32.mxu1 %vm272_vm2, %v11113_v54  ;;  %v1234_v9 = vld [vmem:[#allocation3 + $0x28] sm:$0xff]  ;;  %v1060_v26 = vpop.f32.mrf.mxu0 }
 0x1b5   : > { %v1457_v4 = vpop.f32.mrf.mxu1  ;;  %1598 = vst.msk [vmem:[#allocation3 + $0x10] sm:$0xff] %vm272_vm2, %v1568_v43  ;;  %v1571_v31 = vadd.f32 %v9880_v19, %v1234_v9  ;;  %1178 = vst.msk [vmem:[#allocation3 + $0x48] sm:$0xff] %vm272_vm2, %v1066_v2  ;;  %v1061_v53 = vadd.f32 %v11564_v50, %v1060_v26  ;;  %v13237_v26 = vld [vmem:[#allocation23_spill] sm:$0xff] }
 0x1b6   : > { %v1233_v14 = vld [vmem:[#allocation3 + $0x20] sm:$0xff]  ;;  %v9842_v55 = vpop.f32.mrf.mxu0  ;;  %10132 = vmatmul.mubr.msk.f32.gmra.mxu0 %vm272_vm2, %v13230_v10 }
 0x1b7   : > { %v9889_v62 = vpop.f32.mrf.mxu1  ;;  %10179 = vmatmul.mubr.msk.f32.gmra.mxu1 %vm272_vm2, %v13218_v40  ;;  %1601 = vst.msk [vmem:[#allocation3 + $0x28] sm:$0xff] %vm272_vm2, %v1571_v31  ;;  %v1570_v54 = vadd.f32 %v1437_v27, %v1233_v14  ;;  %1177 = vst.msk [vmem:[#allocation3 + $0x40] sm:$0xff] %vm272_vm2, %v1061_v53  ;;  %v1076_v51 = vadd.f32 %v9842_v55, %v11564_v50  ;;  %10134 = vmatprep.mubr.msk.f32.mxu0 %vm272_vm2, %v13231_v59  ;;  %v13234_v27 = vld [vmem:[#allocation18_spill] sm:$0xff]  ;;  %v11697_v55 = vld [vmem:[#allocation2 + $0x108] sm:$0xff] }
 0x1b8   : > { %10181 = vmatprep.mubr.msk.f32.mxu1 %vm272_vm2, %v13219_v44  ;;  %v1236_v60 = vld [vmem:[#allocation3 + $0x38] sm:$0xff]  ;;  %v1070_v63 = vpop.f32.mrf.mxu0 }
 0x1b9   : > { %v1467_v0 = vpop.f32.mrf.mxu1  ;;  %1600 = vst.msk [vmem:[#allocation3 + $0x20] sm:$0xff] %vm272_vm2, %v1570_v54  ;;  %v1573_v7 = vadd.f32 %v9883_v58, %v1236_v60  ;;  %1180 = vst.msk [vmem:[#allocation3 + $0x58] sm:$0xff] %vm272_vm2, %v1076_v51  ;;  %v1071_v40 = vadd.f32 %v11564_v50, %v1070_v63  ;;  %v11705_v51 = vld [vmem:[#allocation2 + $0x110] sm:$0xff] }
 0x1ba   : > { %v1235_v8 = vld [vmem:[#allocation3 + $0x30] sm:$0xff]  ;;  %v9845_v11 = vpop.f32.mrf.mxu0  ;;  %10135 = vmatmul.mubr.msk.f32.gmra.mxu0 %vm272_vm2, %v13232_v13  ;;  %v11707_v59 = vld [vmem:[#allocation2 + $0x111] sm:$0xff]  ;;  %v11721_v13 = vld [vmem:[#allocation2 + $0x119] sm:$0xff] }
 0x1bb   : > { %v9892_v12 = vpop.f32.mrf.mxu1  ;;  %10182 = vmatmul.mubr.msk.f32.gmra.mxu1 %vm272_vm2, %v13220_v49  ;;  %1603 = vst.msk [vmem:[#allocation3 + $0x38] sm:$0xff] %vm272_vm2, %v1573_v7  ;;  %v1572_v44 = vadd.f32 %v1447_v35, %v1235_v8  ;;  %1179 = vst.msk [vmem:[#allocation3 + $0x50] sm:$0xff] %vm272_vm2, %v1071_v40  ;;  %v1086_v15 = vadd.f32 %v9845_v11, %v11564_v50  ;;  %10137 = vmatprep.mubr.msk.f32.mxu0 %vm272_vm2, %v13233_v17 }
 0x1bc   : > { %10184 = vmatprep.mubr.msk.f32.mxu1 %vm272_vm2, %v13221_v45  ;;  %v1238_v18 = vld [vmem:[#allocation3 + $0x48] sm:$0xff]  ;;  %v1080_v19 = vpop.f32.mrf.mxu0 }
 0x1bd   : > { %v1477_v21 = vpop.f32.mrf.mxu1  ;;  %1602 = vst.msk [vmem:[#allocation3 + $0x30] sm:$0xff] %vm272_vm2, %v1572_v44  ;;  %v1575_v22 = vadd.f32 %v9886_v42, %v1238_v18  ;;  %1182 = vst.msk [vmem:[#allocation3 + $0x68] sm:$0xff] %vm272_vm2, %v1086_v15  ;;  %v1081_v49 = vadd.f32 %v11564_v50, %v1080_v19  ;;  %v4188_v18 = vld [vmem:[#allocation2 + $0x32] sm:$0xff] }
 0x1be   : > { %v1237_v23 = vld [vmem:[#allocation3 + $0x40] sm:$0xff]  ;;  %v9848_v24 = vpop.f32.mrf.mxu0  ;;  %10138 = vmatmul.mubr.msk.f32.gmra.mxu0 %vm272_vm2, %v13234_v27 }
 0x1bf   : > { %v9895_v25 = vpop.f32.mrf.mxu1  ;;  %10185 = vmatmul.mubr.msk.f32.gmra.mxu1 %vm272_vm2, %v13222_v46  ;;  %1605 = vst.msk [vmem:[#allocation3 + $0x48] sm:$0xff] %vm272_vm2, %v1575_v22  ;;  %v1574_v45 = vadd.f32 %v1457_v4, %v1237_v23  ;;  %1181 = vst.msk [vmem:[#allocation3 + $0x60] sm:$0xff] %vm272_vm2, %v1081_v49  ;;  %v1096_v28 = vadd.f32 %v9848_v24, %v11564_v50  ;;  %10140 = vmatprep.mubr.msk.f32.mxu0 %vm272_vm2, %v13235_v41  ;;  %v4189_v27 = vld [vmem:[#allocation2 + $0x3a] sm:$0xff] }
 0x1c0   : > { %10187 = vmatprep.mubr.msk.f32.mxu1 %vm272_vm2, %v13223_v52  ;;  %v1240_v30 = vld [vmem:[#allocation3 + $0x58] sm:$0xff]  ;;  %v1090_v58 = vpop.f32.mrf.mxu0 }
 0x1c1   : > { %v1487_v32 = vpop.f32.mrf.mxu1  ;;  %1604 = vst.msk [vmem:[#allocation3 + $0x40] sm:$0xff] %vm272_vm2, %v1574_v45  ;;  %v1577_v46 = vadd.f32 %v9889_v62, %v1240_v30  ;;  %1184 = vst.msk [vmem:[#allocation3 + $0x78] sm:$0xff] %vm272_vm2, %v1096_v28  ;;  %v1091_v34 = vadd.f32 %v11564_v50, %v1090_v58  ;;  %v11699_v62 = vld [vmem:[#allocation2 + $0x109] sm:$0xff]  ;;  %v11747_v30 = vld [vmem:[%s13167_s4 + $0x20] sm:$0xff] }
 0x1c2   : > { %v1239_v56 = vld [vmem:[#allocation3 + $0x50] sm:$0xff]  ;;  %v9851_v38 = vpop.f32.mrf.mxu0  ;;  %10141 = vmatmul.mubr.msk.f32.gmra.mxu0 %vm272_vm2, %v3357_v39 }
 0x1c3   : > { %v9898_v16 = vpop.f32.mrf.mxu1  ;;  %10188 = vmatmul.mubr.msk.f32.gmra.mxu1 %vm272_vm2, %v3784_v47  ;;  %1607 = vst.msk [vmem:[#allocation3 + $0x58] sm:$0xff] %vm272_vm2, %v1577_v46  ;;  %v1576_v52 = vadd.f32 %v1467_v0, %v1239_v56  ;;  %1183 = vst.msk [vmem:[#allocation3 + $0x70] sm:$0xff] %vm272_vm2, %v1091_v34  ;;  %v1106_v35 = vadd.f32 %v9851_v38, %v11564_v50  ;;  %10143 = vmatprep.mubr.msk.f32.mxu0 %vm272_vm2, %v11364_v33  ;;  %v11716_v0 = vld [vmem:[#allocation2 + $0x118] sm:$0xff]  ;;  %v4190_v45 = vld [vmem:[#allocation2 + $0x42] sm:$0xff] }
 0x1c4   : > { %10190 = vmatprep.mubr.msk.f32.mxu1 %vm272_vm2, %v11504_v20  ;;  %v1242_v36 = vld [vmem:[#allocation3 + $0x68] sm:$0xff]  ;;  %v1100_v48 = vpop.f32.mrf.mxu0 }
 0x1c5   : > { %v1497_v5 = vpop.f32.mrf.mxu1  ;;  %1606 = vst.msk [vmem:[#allocation3 + $0x50] sm:$0xff] %vm272_vm2, %v1576_v52  ;;  %v1579_v6 = vadd.f32 %v9892_v12, %v1242_v36  ;;  %1186 = vst.msk [vmem:[#allocation3 + $0x88] sm:$0xff] %vm272_vm2, %v1106_v35  ;;  %v1101_v42 = vadd.f32 %v11564_v50, %v1100_v48 }
 0x1c6   : > { %v1241_v61 = vld [vmem:[#allocation3 + $0x60] sm:$0xff]  ;;  %v9854_v43 = vpop.f32.mrf.mxu0  ;;  %10144 = vmatmul.mubr.msk.f32.gmra.mxu0 %vm272_vm2, %v13236_v37 }
 0x1c7   : > { %v9901_v2 = vpop.f32.mrf.mxu1  ;;  %10191 = vmatmul.mubr.msk.f32.gmra.mxu1 %vm272_vm2, %v11509_v57  ;;  %1609 = vst.msk [vmem:[#allocation3 + $0x68] sm:$0xff] %vm272_vm2, %v1579_v6  ;;  %v1578_v20 = vadd.f32 %v1477_v21, %v1241_v61  ;;  %1185 = vst.msk [vmem:[#allocation3 + $0x80] sm:$0xff] %vm272_vm2, %v1101_v42  ;;  %v1116_v9 = vadd.f32 %v9854_v43, %v11564_v50  ;;  %10146 = vmatprep.mubr.msk.f32.mxu0 %vm272_vm2, %v13237_v26 }
 0x1c8   : > { %10193 = vmatprep.mubr.msk.f32.mxu1 %vm272_vm2, %v11514_v1  ;;  %v1244_v4 = vld [vmem:[#allocation3 + $0x78] sm:$0xff]  ;;  %v1110_v31 = vpop.f32.mrf.mxu0 }
 0x1c9   : > { %v1507_v53 = vpop.f32.mrf.mxu1  ;;  %1608 = vst.msk [vmem:[#allocation3 + $0x60] sm:$0xff] %vm272_vm2, %v1578_v20  ;;  %v1581_v14 = vadd.f32 %v9895_v25, %v1244_v4  ;;  %1188 = vst.msk [vmem:[#allocation3 + $0x98] sm:$0xff] %vm272_vm2, %v1116_v9  ;;  %v1111_v57 = vadd.f32 %v11564_v50, %v1110_v31  ;;  %v4671_v4 = vld [vmem:[#allocation2 + $0x120] sm:$0xff] }
 0x1ca   : > { %v1243_v10 = vld [vmem:[#allocation3 + $0x70] sm:$0xff]  ;;  %v9857_v54 = vpop.f32.mrf.mxu0  ;;  %10147 = vmatmul.mubr.msk.f32.gmra.mxu0 %vm272_vm2, %v11697_v55 }
 0x1cb   : > { %v9904_v1 = vpop.f32.mrf.mxu1  ;;  %10194 = vmatmul.mubr.msk.f32.gmra.mxu1 %vm272_vm2, %v11699_v62  ;;  %1611 = vst.msk [vmem:[#allocation3 + $0x78] sm:$0xff] %vm272_vm2, %v1581_v14  ;;  %v1580_v60 = vadd.f32 %v1487_v32, %v1243_v10  ;;  %1187 = vst.msk [vmem:[#allocation3 + $0x90] sm:$0xff] %vm272_vm2, %v1111_v57  ;;  %v1126_v63 = vadd.f32 %v9857_v54, %v11564_v50  ;;  %10149 = vmatprep.mubr.msk.f32.mxu0 %vm272_vm2, %v11705_v51  ;;  %v4673_v10 = vld [vmem:[#allocation2 + $0x130] sm:$0xff] }
 0x1cc   : > { %10196 = vmatprep.mubr.msk.f32.mxu1 %vm272_vm2, %v11707_v59  ;;  %v1246_v7 = vld [vmem:[#allocation3 + $0x88] sm:$0xff]  ;;  %v1120_v40 = vpop.f32.mrf.mxu0 }
 0x1cd   : > { %v1517_v8 = vpop.f32.mrf.mxu1  ;;  %1610 = vst.msk [vmem:[#allocation3 + $0x70] sm:$0xff] %vm272_vm2, %v1580_v60  ;;  %v1583_v11 = vadd.f32 %v9898_v16, %v1246_v7  ;;  %1190 = vst.msk [vmem:[#allocation3 + $0xa8] sm:$0xff] %vm272_vm2, %v1126_v63  ;;  %v1121_v12 = vadd.f32 %v11564_v50, %v1120_v40  ;;  %v4191_v16 = vld [vmem:[#allocation2 + $0x4a] sm:$0xff] }
 0x1ce   : > { %v1245_v44 = vld [vmem:[#allocation3 + $0x80] sm:$0xff]  ;;  %v9860_v15 = vpop.f32.mrf.mxu0  ;;  %10150 = vmatmul.mubr.msk.f32.gmra.mxu0 %vm272_vm2, %v11716_v0  ;;  %v4672_v60 = vld [vmem:[#allocation2 + $0x128] sm:$0xff] }
 0x1cf   : > { %v9907_v17 = vpop.f32.mrf.mxu1  ;;  %10197 = vmatmul.mubr.msk.f32.gmra.mxu1 %vm272_vm2, %v11721_v13  ;;  %1613 = vst.msk [vmem:[#allocation3 + $0x88] sm:$0xff] %vm272_vm2, %v1583_v11  ;;  %v1582_v19 = vadd.f32 %v1497_v5, %v1245_v44  ;;  %1189 = vst.msk [vmem:[#allocation3 + $0xa0] sm:$0xff] %vm272_vm2, %v1121_v12  ;;  %v1136_v21 = vadd.f32 %v9860_v15, %v11564_v50  ;;  %10201 = vmatprep.mubr.msk.f32.mxu0 %vm272_vm2, %v4188_v18  ;;  %v1656_v44 = vld [vmem:[#allocation3] sm:$0xff] }
 0x1d0   : > { %10248 = vmatprep.mubr.msk.f32.mxu1 %vm272_vm2, %v11364_v33  ;;  %v1248_v22 = vld [vmem:[#allocation3 + $0x98] sm:$0xff]  ;;  %v1130_v49 = vpop.f32.mrf.mxu0  ;;  %v11742_v33 = vld [vmem:[%s13167_s4 + $0x18] sm:$0xff] }
 0x1d1   : > { %v1527_v23 = vpop.f32.mrf.mxu1  ;;  %1612 = vst.msk [vmem:[#allocation3 + $0x80] sm:$0xff] %vm272_vm2, %v1582_v19  ;;  %v1585_v24 = vadd.f32 %v9901_v2, %v1248_v22  ;;  %1192 = vst.msk [vmem:[#allocation3 + $0xb8] sm:$0xff] %vm272_vm2, %v1136_v21  ;;  %v1131_v25 = vadd.f32 %v11564_v50, %v1130_v49  ;;  %v4193_v2 = vld [vmem:[#allocation2 + $0x5a] sm:$0xff]  ;;  %v4198_v49 = vld [vmem:[#allocation2 + $0x82] sm:$0xff] }
 0x1d2   : > { %v1247_v28 = vld [vmem:[#allocation3 + $0x90] sm:$0xff]  ;;  %v9863_v41 = vpop.f32.mrf.mxu0  ;;  %10202 = vmatmul.mubr.msk.f32.vlgmr.msra.gmra.mxu0 %vm272_vm2, %v4189_v27  ;;  %v4197_v21 = vld [vmem:[#allocation2 + $0x7a] sm:$0xff] }
 0x1d3   : > { %v9910_v39 = vpop.f32.mrf.mxu1  ;;  %10249 = vmatmul.mubr.msk.f32.vlgmr.msra.gmra.mxu1 %vm272_vm2, %v13236_v37  ;;  %1615 = vst.msk [vmem:[#allocation3 + $0x98] sm:$0xff] %vm272_vm2, %v1585_v24  ;;  %v1584_v58 = vadd.f32 %v1507_v53, %v1247_v28  ;;  %1191 = vst.msk [vmem:[#allocation3 + $0xb0] sm:$0xff] %vm272_vm2, %v1131_v25  ;;  %v1146_v32 = vadd.f32 %v9863_v41, %v11564_v50  ;;  %10294 = vmatpush3.msra.mxu0 %v11530_v29  ;;  %v4674_v22 = vld [vmem:[#allocation2 + $0x138] sm:$0xff]  ;;  %v1659_v24 = vld [vmem:[#allocation3 + $0x18] sm:$0xff] }
 0x1d4   : > { %10204 = vmatprep.mubr.msk.f32.mxu0 %vm272_vm2, %v4190_v45  ;;  %v1250_v46 = vld [vmem:[#allocation3 + $0xa8] sm:$0xff]  ;;  %v1140_v34 = vpop.f32.mrf.mxu0  ;;  %10251 = vmatprep.mubr.msk.f32.mxu1 %vm272_vm2, %v13237_v26 }
 0x1d5   : > { %v1537_v47 = vpop.f32.mrf.mxu1  ;;  %10341 = vmatpush3.msra.mxu1 %v11535_v3  ;;  %1614 = vst.msk [vmem:[#allocation3 + $0x90] sm:$0xff] %vm272_vm2, %v1584_v58  ;;  %v1587_v56 = vadd.f32 %v9904_v1, %v1250_v46  ;;  %1194 = vst.msk [vmem:[#allocation3 + $0xc8] sm:$0xff] %vm272_vm2, %v1146_v32  ;;  %v1141_v38 = vadd.f32 %v11564_v50, %v1140_v34  ;;  %10387 = vmatprep.subr.mxu0 %v11742_v33  ;;  %v4192_v3 = vld [vmem:[#allocation2 + $0x52] sm:$0xff]  ;;  %v4194_v26 = vld [vmem:[#allocation2 + $0x62] sm:$0xff] }
 0x1d6   : > { %10434 = vmatprep.subr.mxu1 %v11747_v30  ;;  %v1249_v29 = vld [vmem:[#allocation3 + $0xa0] sm:$0xff]  ;;  %v9866_v52 = vpop.f32.mrf.mxu0  ;;  %10205 = vmatmul.mubr.msk.f32.gmra.mxu0 %vm272_vm2, %v4191_v16  ;;  %v4675_v45 = vld [vmem:[#allocation2 + $0x140] sm:$0xff]  ;;  %v1658_v32 = vld [vmem:[#allocation3 + $0x10] sm:$0xff] }
 0x1d7   : > { %v9913_v35 = vpop.f32.mrf.mxu1  ;;  %10252 = vmatmul.mubr.msk.f32.gmra.mxu1 %vm272_vm2, %v11697_v55  ;;  %1617 = vst.msk [vmem:[#allocation3 + $0xa8] sm:$0xff] %vm272_vm2, %v1587_v56  ;;  %v1586_v36 = vadd.f32 %v1517_v8, %v1249_v29  ;;  %1193 = vst.msk [vmem:[#allocation3 + $0xc0] sm:$0xff] %vm272_vm2, %v1141_v38  ;;  %v1156_v48 = vadd.f32 %v9866_v52, %v11564_v50  ;;  %10207 = vmatprep.mubr.msk.f32.mxu0 %vm272_vm2, %v4192_v3  ;;  %v4196_v8 = vld [vmem:[#allocation2 + $0x72] sm:$0xff]  ;;  %v4199_v38 = vld [vmem:[#allocation2 + $0x8a] sm:$0xff] }
 0x1d8   : > { %10254 = vmatprep.mubr.msk.f32.mxu1 %vm272_vm2, %v11705_v51  ;;  %v1252_v5 = vld [vmem:[#allocation3 + $0xb8] sm:$0xff]  ;;  %v1150_v6 = vpop.f32.mrf.mxu0  ;;  %v1661_v52 = vld [vmem:[#allocation3 + $0x28] sm:$0xff] }
 0x1d9   : > { %v1547_v42 = vpop.f32.mrf.mxu1  ;;  %1616 = vst.msk [vmem:[#allocation3 + $0xa0] sm:$0xff] %vm272_vm2, %v1586_v36  ;;  %v1589_v61 = vadd.f32 %v9907_v17, %v1252_v5  ;;  %1196 = vst.msk [vmem:[#allocation3 + $0xd8] sm:$0xff] %vm272_vm2, %v1156_v48  ;;  %v1151_v43 = vadd.f32 %v11564_v50, %v1150_v6  ;;  %v4195_v51 = vld [vmem:[#allocation2 + $0x6a] sm:$0xff]  ;;  %v4200_v16 = vld [vmem:[#allocation2 + $0x92] sm:$0xff] }
 0x1da   : > { %v1251_v37 = vld [vmem:[#allocation3 + $0xb0] sm:$0xff]  ;;  %v9869_v20 = vpop.f32.mrf.mxu0  ;;  %10208 = vmatmul.mubr.msk.f32.gmra.mxu0 %vm272_vm2, %v4193_v2  ;;  %v4677_v36 = vld [vmem:[#allocation2 + $0x150] sm:$0xff]  ;;  %v4679_v2 = vld [vmem:[#allocation2 + $0x160] sm:$0xff] }
 0x1db   : > { %v11774_v9 = vpop.f32.mrf.mxu1  ;;  %10255 = vmatmul.mubr.msk.f32.gmra.mxu1 %vm272_vm2, %v11716_v0  ;;  %1619 = vst.msk [vmem:[#allocation3 + $0xb8] sm:$0xff] %vm272_vm2, %v1589_v61  ;;  %v1588_v31 = vadd.f32 %v1527_v23, %v1251_v37  ;;  %1195 = vst.msk [vmem:[#allocation3 + $0xd0] sm:$0xff] %vm272_vm2, %v1151_v43  ;;  %v1166_v53 = vadd.f32 %v9869_v20, %v11564_v50  ;;  %10210 = vmatprep.mubr.msk.f32.mxu0 %vm272_vm2, %v4194_v26  ;;  %v1657_v0 = vld [vmem:[#allocation3 + $0x8] sm:$0xff]  ;;  %v4678_v26 = vld [vmem:[#allocation2 + $0x158] sm:$0xff] }
 0x1dc   : > { %10257 = vmatprep.mubr.msk.f32.mxu1 %vm272_vm2, %v4671_v4  ;;  %v1254_v14 = vld [vmem:[#allocation3 + $0xc8] sm:$0xff]  ;;  %v1160_v57 = vpop.f32.mrf.mxu0 }
 0x1dd   : > { %v11784_v55 = vpop.f32.mrf.mxu1  ;;  %1618 = vst.msk [vmem:[#allocation3 + $0xb0] sm:$0xff] %vm272_vm2, %v1588_v31  ;;  %v1591_v54 = vadd.f32 %v9910_v39, %v1254_v14  ;;  %1198 = vst.msk [vmem:[#allocation3 + $0xe8] sm:$0xff] %vm272_vm2, %v1166_v53  ;;  %v1161_v1 = vadd.f32 %v11564_v50, %v1160_v57  ;;  %v4676_v39 = vld [vmem:[#allocation2 + $0x148] sm:$0xff]  ;;  %v1663_v31 = vld [vmem:[#allocation3 + $0x38] sm:$0xff] }
 0x1de   : > { %v1253_v63 = vld [vmem:[#allocation3 + $0xc0] sm:$0xff]  ;;  %v9921_v7 = vpop.f32.mrf.mxu0  ;;  %10211 = vmatmul.mubr.msk.f32.gmra.mxu0 %vm272_vm2, %v4195_v51  ;;  %v4202_v57 = vld [vmem:[#allocation2 + $0xa2] sm:$0xff] }
 0x1df   : > { %v11789_v40 = vpop.f32.mrf.mxu1  ;;  %10258 = vmatmul.mubr.msk.f32.gmra.mxu1 %vm272_vm2, %v4672_v60  ;;  %1621 = vst.msk [vmem:[#allocation3 + $0xc8] sm:$0xff] %vm272_vm2, %v1591_v54  ;;  %v1590_v11 = vadd.f32 %v1537_v47, %v1253_v63  ;;  %1197 = vst.msk [vmem:[#allocation3 + $0xe0] sm:$0xff] %vm272_vm2, %v1161_v1  ;;  %v1994_v12 = vadd.f32 %v9921_v7, %v1657_v0  ;;  %10213 = vmatprep.mubr.msk.f32.mxu0 %vm272_vm2, %v4196_v8  ;;  %v1662_v1 = vld [vmem:[#allocation3 + $0x30] sm:$0xff]  ;;  %v4204_v8 = vld [vmem:[#allocation2 + $0xb2] sm:$0xff] }
 0x1e0   : > { %10260 = vmatprep.mubr.msk.f32.mxu1 %vm272_vm2, %v4673_v10  ;;  %v1256_v50 = vld [vmem:[#allocation3 + $0xd8] sm:$0xff]  ;;  %v1844_v15 = vpop.f32.mrf.mxu0 }
 0x1e1   : > { %v11797_v17 = vpop.f32.mrf.mxu1  ;;  %1620 = vst.msk [vmem:[#allocation3 + $0xc0] sm:$0xff] %vm272_vm2, %v1590_v11  ;;  %v1593_v18 = vadd.f32 %v9913_v35, %v1256_v50  ;;  %2024 = vst.msk [vmem:[#allocation3 + $0x8] sm:$0xff] %vm272_vm2, %v1994_v12  ;;  %v1993_v19 = vadd.f32 %v1844_v15, %v1656_v44  ;;  %v4203_v7 = vld [vmem:[#allocation2 + $0xaa] sm:$0xff]  ;;  %v1665_v12 = vld [vmem:[#allocation3 + $0x48] sm:$0xff] }
 0x1e2   : > { %v1255_v23 = vld [vmem:[#allocation3 + $0xd0] sm:$0xff]  ;;  %v9924_v25 = vpop.f32.mrf.mxu0  ;;  %10214 = vmatmul.mubr.msk.f32.gmra.mxu0 %vm272_vm2, %v4197_v21  ;;  %v4681_v15 = vld [vmem:[#allocation2 + $0x170] sm:$0xff] }
 0x1e3   : > { %v11801_v27 = vpop.f32.mrf.mxu1  ;;  %10261 = vmatmul.mubr.msk.f32.gmra.mxu1 %vm272_vm2, %v4674_v22  ;;  %1623 = vst.msk [vmem:[#allocation3 + $0xd8] sm:$0xff] %vm272_vm2, %v1593_v18  ;;  %v1592_v28 = vadd.f32 %v1547_v42, %v1255_v23  ;;  %2023 = vst.msk [vmem:[#allocation3] sm:$0xff] %vm272_vm2, %v1993_v19  ;;  %v1996_v41 = vadd.f32 %v9924_v25, %v1659_v24  ;;  %10216 = vmatprep.mubr.msk.f32.mxu0 %vm272_vm2, %v4198_v49  ;;  %v1660_v42 = vld [vmem:[#allocation3 + $0x20] sm:$0xff]  ;;  %v4683_v24 = vld [vmem:[#allocation2 + $0x180] sm:$0xff] }
 0x1e4   : > { %10263 = vmatprep.mubr.msk.f32.mxu1 %vm272_vm2, %v4675_v45  ;;  %v1258_v58 = vld [vmem:[#allocation3 + $0xe8] sm:$0xff]  ;;  %v1854_v46 = vpop.f32.mrf.mxu0  ;;  %v4682_v19 = vld [vmem:[#allocation2 + $0x178] sm:$0xff] }
 0x1e5   : > { %v11809_v34 = vpop.f32.mrf.mxu1  ;;  %1622 = vst.msk [vmem:[#allocation3 + $0xd0] sm:$0xff] %vm272_vm2, %v1592_v28  ;;  %v1595_v47 = vadd.f32 %v11774_v9, %v1258_v58  ;;  %2026 = vst.msk [vmem:[#allocation3 + $0x18] sm:$0xff] %vm272_vm2, %v1996_v41  ;;  %v1995_v56 = vadd.f32 %v1854_v46, %v1658_v32  ;;  %v4201_v9 = vld [vmem:[#allocation2 + $0x9a] sm:$0xff]  ;;  %v1667_v41 = vld [vmem:[#allocation3 + $0x58] sm:$0xff] }
 0x1e6   : > { %v1257_v29 = vld [vmem:[#allocation3 + $0xe0] sm:$0xff]  ;;  %v9927_v35 = vpop.f32.mrf.mxu0  ;;  %10217 = vmatmul.mubr.msk.f32.gmra.mxu0 %vm272_vm2, %v4199_v38  ;;  %v4206_v32 = vld [vmem:[#allocation2 + $0xc2] sm:$0xff] }
 0x1e7   : > { %v11814_v3 = vpop.f32.mrf.mxu1  ;;  %10264 = vmatmul.mubr.msk.f32.gmra.mxu1 %vm272_vm2, %v4676_v39  ;;  %1625 = vst.msk [vmem:[#allocation3 + $0xe8] sm:$0xff] %vm272_vm2, %v1595_v47  ;;  %v1594_v48 = vadd.f32 %v11784_v55, %v1257_v29  ;;  %2025 = vst.msk [vmem:[#allocation3 + $0x10] sm:$0xff] %vm272_vm2, %v1995_v56  ;;  %v1998_v5 = vadd.f32 %v9927_v35, %v1661_v52  ;;  %10219 = vmatprep.mubr.msk.f32.mxu0 %vm272_vm2, %v4200_v16  ;;  %v1664_v22 = vld [vmem:[#allocation3 + $0x40] sm:$0xff]  ;;  %v4684_v47 = vld [vmem:[#allocation2 + $0x188] sm:$0xff] }
 0x1e8   : > { %10266 = vmatprep.mubr.msk.f32.mxu1 %vm272_vm2, %v4677_v36  ;;  %v2084_v6 = vld [vmem:[#allocation3 + $0x8] sm:$0xff]  ;;  %v1864_v61 = vpop.f32.mrf.mxu0  ;;  %v1666_v38 = vld [vmem:[#allocation3 + $0x50] sm:$0xff]  ;;  %v4685_v52 = vld [vmem:[#allocation2 + $0x190] sm:$0xff] }
 0x1e9   : > { %v11823_v43 = vpop.f32.mrf.mxu1  ;;  %1624 = vst.msk [vmem:[#allocation3 + $0xe0] sm:$0xff] %vm272_vm2, %v1594_v48  ;;  %v2421_v37 = vadd.f32 %v11789_v40, %v2084_v6  ;;  %2028 = vst.msk [vmem:[#allocation3 + $0x28] sm:$0xff] %vm272_vm2, %v1998_v5  ;;  %v1997_v20 = vadd.f32 %v1864_v61, %v1660_v42  ;;  %v4680_v40 = vld [vmem:[#allocation2 + $0x168] sm:$0xff]  ;;  %v4205_v45 = vld [vmem:[#allocation2 + $0xba] sm:$0xff] }
 0x1ea   : > { %v2083_v4 = vld [vmem:[#allocation3] sm:$0xff]  ;;  %v9930_v53 = vpop.f32.mrf.mxu0  ;;  %10220 = vmatmul.mubr.msk.f32.gmra.mxu0 %vm272_vm2, %v4201_v9  ;;  %v4207_v36 = vld [vmem:[#allocation2 + $0xca] sm:$0xff]  ;;  %v1669_v5 = vld [vmem:[#allocation3 + $0x68] sm:$0xff] }
 0x1eb   : > { %v11828_v14 = vpop.f32.mrf.mxu1  ;;  %10267 = vmatmul.mubr.msk.f32.gmra.mxu1 %vm272_vm2, %v4678_v26  ;;  %2451 = vst.msk [vmem:[#allocation3 + $0x8] sm:$0xff] %vm272_vm2, %v2421_v37  ;;  %v2420_v55 = vadd.f32 %v11797_v17, %v2083_v4  ;;  %2027 = vst.msk [vmem:[#allocation3 + $0x20] sm:$0xff] %vm272_vm2, %v1997_v20  ;;  %v2000_v10 = vadd.f32 %v9930_v53, %v1663_v31  ;;  %10222 = vmatprep.mubr.msk.f32.mxu0 %vm272_vm2, %v4202_v57  ;;  %v4208_v61 = vld [vmem:[#allocation2 + $0xd2] sm:$0xff]  ;;  %v4687_v31 = vld [vmem:[#allocation2 + $0x1a0] sm:$0xff] }
 0x1ec   : > { %10269 = vmatprep.mubr.msk.f32.mxu1 %vm272_vm2, %v4679_v2  ;;  %v2086_v54 = vld [vmem:[#allocation3 + $0x18] sm:$0xff]  ;;  %v1874_v51 = vpop.f32.mrf.mxu0  ;;  %v4686_v37 = vld [vmem:[#allocation2 + $0x198] sm:$0xff] }
 0x1ed   : > { %v11837_v60 = vpop.f32.mrf.mxu1  ;;  %2450 = vst.msk [vmem:[#allocation3] sm:$0xff] %vm272_vm2, %v2420_v55  ;;  %v2423_v63 = vadd.f32 %v11801_v27, %v2086_v54  ;;  %2030 = vst.msk [vmem:[#allocation3 + $0x38] sm:$0xff] %vm272_vm2, %v2000_v10  ;;  %v1999_v0 = vadd.f32 %v1874_v51, %v1662_v1  ;;  %v1668_v9 = vld [vmem:[#allocation3 + $0x60] sm:$0xff]  ;;  %v1671_v10 = vld [vmem:[#allocation3 + $0x78] sm:$0xff] }
 0x1ee   : > { %v2085_v11 = vld [vmem:[#allocation3 + $0x10] sm:$0xff]  ;;  %v9933_v50 = vpop.f32.mrf.mxu0  ;;  %10223 = vmatmul.mubr.msk.f32.gmra.mxu0 %vm272_vm2, %v4203_v7  ;;  %v4209_v57 = vld [vmem:[#allocation2 + $0xda] sm:$0xff] }
 0x1ef   : > { %v11842_v44 = vpop.f32.mrf.mxu1  ;;  %10270 = vmatmul.mubr.msk.f32.gmra.mxu1 %vm272_vm2, %v4680_v40  ;;  %2453 = vst.msk [vmem:[#allocation3 + $0x18] sm:$0xff] %vm272_vm2, %v2423_v63  ;;  %v2422_v17 = vadd.f32 %v11809_v34, %v2085_v11  ;;  %2029 = vst.msk [vmem:[#allocation3 + $0x30] sm:$0xff] %vm272_vm2, %v1999_v0  ;;  %v2002_v18 = vadd.f32 %v9933_v50, %v1665_v12  ;;  %10225 = vmatprep.mubr.msk.f32.mxu0 %vm272_vm2, %v4204_v8  ;;  %v4210_v51 = vld [vmem:[#allocation2 + $0xe2] sm:$0xff]  ;;  %v4689_v12 = vld [vmem:[#allocation2 + $0x1b0] sm:$0xff] }
 0x1f0   : > { %10272 = vmatprep.mubr.msk.f32.mxu1 %vm272_vm2, %v4681_v15  ;;  %v2088_v21 = vld [vmem:[#allocation3 + $0x28] sm:$0xff]  ;;  %v1884_v49 = vpop.f32.mrf.mxu0  ;;  %v4688_v0 = vld [vmem:[#allocation2 + $0x1a8] sm:$0xff] }
 0x1f1   : > { %v11851_v23 = vpop.f32.mrf.mxu1  ;;  %2452 = vst.msk [vmem:[#allocation3 + $0x10] sm:$0xff] %vm272_vm2, %v2422_v17  ;;  %v2425_v25 = vadd.f32 %v11814_v3, %v2088_v21  ;;  %2032 = vst.msk [vmem:[#allocation3 + $0x48] sm:$0xff] %vm272_vm2, %v2002_v18  ;;  %v2001_v27 = vadd.f32 %v1884_v49, %v1664_v22  ;;  %v1670_v40 = vld [vmem:[#allocation3 + $0x70] sm:$0xff]  ;;  %v1673_v18 = vld [vmem:[#allocation3 + $0x88] sm:$0xff] }
 0x1f2   : > { %v2087_v28 = vld [vmem:[#allocation3 + $0x20] sm:$0xff]  ;;  %v9936_v39 = vpop.f32.mrf.mxu0  ;;  %10226 = vmatmul.mubr.msk.f32.gmra.mxu0 %vm272_vm2, %v4205_v45  ;;  %v4211_v15 = vld [vmem:[#allocation2 + $0xea] sm:$0xff] }
 0x1f3   : > { %v11856_v58 = vpop.f32.mrf.mxu1  ;;  %10273 = vmatmul.mubr.msk.f32.gmra.mxu1 %vm272_vm2, %v4682_v19  ;;  %2455 = vst.msk [vmem:[#allocation3 + $0x28] sm:$0xff] %vm272_vm2, %v2425_v25  ;;  %v2424_v46 = vadd.f32 %v11823_v43, %v2087_v28  ;;  %2031 = vst.msk [vmem:[#allocation3 + $0x40] sm:$0xff] %vm272_vm2, %v2001_v27  ;;  %v2004_v34 = vadd.f32 %v9936_v39, %v1667_v41  ;;  %10228 = vmatprep.mubr.msk.f32.mxu0 %vm272_vm2, %v4206_v32  ;;  %v11902_v22 = vld [vmem:[#allocation2 + $0xf2] sm:$0xff]  ;;  %v4691_v41 = vld [vmem:[#allocation2 + $0x1c0] sm:$0xff] }
 0x1f4   : > { %10275 = vmatprep.mubr.msk.f32.mxu1 %vm272_vm2, %v4683_v24  ;;  %v2090_v56 = vld [vmem:[#allocation3 + $0x38] sm:$0xff]  ;;  %v1894_v16 = vpop.f32.mrf.mxu0  ;;  %v4690_v24 = vld [vmem:[#allocation2 + $0x1b8] sm:$0xff] }
 0x1f5   : > { %v11865_v29 = vpop.f32.mrf.mxu1  ;;  %2454 = vst.msk [vmem:[#allocation3 + $0x20] sm:$0xff] %vm272_vm2, %v2424_v46  ;;  %v2427_v35 = vadd.f32 %v11828_v14, %v2090_v56  ;;  %2034 = vst.msk [vmem:[#allocation3 + $0x58] sm:$0xff] %vm272_vm2, %v2004_v34  ;;  %v2003_v3 = vadd.f32 %v1894_v16, %v1666_v38  ;;  %v1672_v27 = vld [vmem:[#allocation3 + $0x80] sm:$0xff]  ;;  %v1675_v34 = vld [vmem:[#allocation3 + $0x98] sm:$0xff] }
 0x1f6   : > { %v2089_v48 = vld [vmem:[#allocation3 + $0x30] sm:$0xff]  ;;  %v9939_v6 = vpop.f32.mrf.mxu0  ;;  %10229 = vmatmul.mubr.msk.f32.gmra.mxu0 %vm272_vm2, %v4207_v36  ;;  %v11913_v32 = vld [vmem:[#allocation2 + $0xfa] sm:$0xff] }
 0x1f7   : > { %v11870_v42 = vpop.f32.mrf.mxu1  ;;  %10276 = vmatmul.mubr.msk.f32.gmra.mxu1 %vm272_vm2, %v4684_v47  ;;  %2457 = vst.msk [vmem:[#allocation3 + $0x38] sm:$0xff] %vm272_vm2, %v2427_v35  ;;  %v2426_v43 = vadd.f32 %v11837_v60, %v2089_v48  ;;  %2033 = vst.msk [vmem:[#allocation3 + $0x50] sm:$0xff] %vm272_vm2, %v2003_v3  ;;  %v2006_v2 = vadd.f32 %v9939_v6, %v1669_v5  ;;  %10231 = vmatprep.mubr.msk.f32.mxu0 %vm272_vm2, %v4208_v61  ;;  %v11918_v38 = vld [vmem:[#allocation2 + $0x102] sm:$0xff]  ;;  %v4693_v5 = vld [vmem:[#allocation2 + $0x1d0] sm:$0xff] }
 0x1f8   : > { %10278 = vmatprep.mubr.msk.f32.mxu1 %vm272_vm2, %v4685_v52  ;;  %v2092_v20 = vld [vmem:[#allocation3 + $0x48] sm:$0xff]  ;;  %v1904_v26 = vpop.f32.mrf.mxu0  ;;  %v4692_v52 = vld [vmem:[#allocation2 + $0x1c8] sm:$0xff] }
 0x1f9   : > { %v11879_v4 = vpop.f32.mrf.mxu1  ;;  %2456 = vst.msk [vmem:[#allocation3 + $0x30] sm:$0xff] %vm272_vm2, %v2426_v43  ;;  %v2429_v53 = vadd.f32 %v11842_v44, %v2092_v20  ;;  %2036 = vst.msk [vmem:[#allocation3 + $0x68] sm:$0xff] %vm272_vm2, %v2006_v2  ;;  %v2005_v14 = vadd.f32 %v1904_v26, %v1668_v9  ;;  %v1674_v3 = vld [vmem:[#allocation3 + $0x90] sm:$0xff]  ;;  %v1677_v2 = vld [vmem:[#allocation3 + $0xa8] sm:$0xff] }
 0x1fa   : > { %v2091_v55 = vld [vmem:[#allocation3 + $0x40] sm:$0xff]  ;;  %v9942_v54 = vpop.f32.mrf.mxu0  ;;  %10232 = vmatmul.mubr.msk.f32.gmra.mxu0 %vm272_vm2, %v4209_v57  ;;  %v11929_v61 = vld [vmem:[#allocation2 + $0x10a] sm:$0xff] }
 0x1fb   : > { %v11884_v1 = vpop.f32.mrf.mxu1  ;;  %10279 = vmatmul.mubr.msk.f32.gmra.mxu1 %vm272_vm2, %v4686_v37  ;;  %2459 = vst.msk [vmem:[#allocation3 + $0x48] sm:$0xff] %vm272_vm2, %v2429_v53  ;;  %v2428_v60 = vadd.f32 %v11851_v23, %v2091_v55  ;;  %2035 = vst.msk [vmem:[#allocation3 + $0x60] sm:$0xff] %vm272_vm2, %v2005_v14  ;;  %v2008_v63 = vadd.f32 %v9942_v54, %v1671_v10  ;;  %10234 = vmatprep.mubr.msk.f32.mxu0 %vm272_vm2, %v4210_v51  ;;  %v11936_v9 = vld [vmem:[#allocation2 + $0x112] sm:$0xff] }
 0x1fc   : > { %10281 = vmatprep.mubr.msk.f32.mxu1 %vm272_vm2, %v4687_v31  ;;  %v2094_v7 = vld [vmem:[#allocation3 + $0x58] sm:$0xff]  ;;  %v1914_v8 = vpop.f32.mrf.mxu0  ;;  %v4694_v31 = vld [vmem:[#allocation2 + $0x1d8] sm:$0xff] }
 0x1fd   : > { %v11893_v11 = vpop.f32.mrf.mxu1  ;;  %2458 = vst.msk [vmem:[#allocation3 + $0x40] sm:$0xff] %vm272_vm2, %v2428_v60  ;;  %v2431_v50 = vadd.f32 %v11856_v58, %v2094_v7  ;;  %2038 = vst.msk [vmem:[#allocation3 + $0x78] sm:$0xff] %vm272_vm2, %v2008_v63  ;;  %v2007_v44 = vadd.f32 %v1914_v8, %v1670_v40  ;;  %v1676_v14 = vld [vmem:[#allocation3 + $0xa0] sm:$0xff]  ;;  %v1679_v60 = vld [vmem:[#allocation3 + $0xb8] sm:$0xff] }
 0x1fe   : > { %v2093_v17 = vld [vmem:[#allocation3 + $0x50] sm:$0xff]  ;;  %v9945_v19 = vpop.f32.mrf.mxu0  ;;  %10235 = vmatmul.mubr.msk.f32.gmra.mxu0 %vm272_vm2, %v4211_v15  ;;  %v5031_v7 = vld [vmem:[#allocation2 + $0xf1] sm:$0xff] }
 0x1ff   : > { %v11898_v21 = vpop.f32.mrf.mxu1  ;;  %10282 = vmatmul.mubr.msk.f32.gmra.mxu1 %vm272_vm2, %v4688_v0  ;;  %2461 = vst.msk [vmem:[#allocation3 + $0x58] sm:$0xff] %vm272_vm2, %v2431_v50  ;;  %v2430_v49 = vadd.f32 %v11865_v29, %v2093_v17  ;;  %2037 = vst.msk [vmem:[#allocation3 + $0x70] sm:$0xff] %vm272_vm2, %v2007_v44  ;;  %v2010_v23 = vadd.f32 %v9945_v19, %v1673_v18  ;;  %10237 = vmatprep.mubr.msk.f32.mxu0 %vm272_vm2, %v11902_v22  ;;  %v5032_v18 = vld [vmem:[#allocation2 + $0xf9] sm:$0xff]  ;;  %v5033_v19 = vld [vmem:[#allocation2 + $0x101] sm:$0xff] }
 0x200   : > { %10284 = vmatprep.mubr.msk.f32.mxu1 %vm272_vm2, %v4689_v12  ;;  %v2096_v25 = vld [vmem:[#allocation3 + $0x68] sm:$0xff]  ;;  %v1924_v45 = vpop.f32.mrf.mxu0  ;;  %v1678_v12 = vld [vmem:[#allocation3 + $0xb0] sm:$0xff] }
 0x201   : > { %v2351_v28 = vpop.f32.mrf.mxu1  ;;  %2460 = vst.msk [vmem:[#allocation3 + $0x50] sm:$0xff] %vm272_vm2, %v2430_v49  ;;  %v2433_v39 = vadd.f32 %v11870_v42, %v2096_v25  ;;  %2040 = vst.msk [vmem:[#allocation3 + $0x88] sm:$0xff] %vm272_vm2, %v2010_v23  ;;  %v2009_v58 = vadd.f32 %v1924_v45, %v1672_v27  ;;  %v1681_v23 = vld [vmem:[#allocation3 + $0xc8] sm:$0xff]  ;;  %v11972_v25 = vld [vmem:[%s13167_s4 + $0x30] sm:$0xff] }
 0x202   : > { %v2095_v46 = vld [vmem:[#allocation3 + $0x60] sm:$0xff]  ;;  %v9948_v47 = vpop.f32.mrf.mxu0  ;;  %10238 = vmatmul.mubr.msk.f32.gmra.mxu0 %vm272_vm2, %v11913_v32 }
 0x203   : > { %v9995_v56 = vpop.f32.mrf.mxu1  ;;  %10285 = vmatmul.mubr.msk.f32.gmra.mxu1 %vm272_vm2, %v4690_v24  ;;  %2463 = vst.msk [vmem:[#allocation3 + $0x68] sm:$0xff] %vm272_vm2, %v2433_v39  ;;  %v2432_v16 = vadd.f32 %v11879_v4, %v2095_v46  ;;  %2039 = vst.msk [vmem:[#allocation3 + $0x80] sm:$0xff] %vm272_vm2, %v2009_v58  ;;  %v2012_v29 = vadd.f32 %v9948_v47, %v1675_v34  ;;  %10240 = vmatprep.mubr.msk.f32.mxu0 %vm272_vm2, %v11918_v38  ;;  %v1683_v34 = vld [vmem:[#allocation3 + $0xd8] sm:$0xff] }
 0x204   : > { %10287 = vmatprep.mubr.msk.f32.mxu1 %vm272_vm2, %v4691_v41  ;;  %v2098_v35 = vld [vmem:[#allocation3 + $0x78] sm:$0xff]  ;;  %v1934_v36 = vpop.f32.mrf.mxu0  ;;  %v1680_v41 = vld [vmem:[#allocation3 + $0xc0] sm:$0xff] }
 0x205   : > { %v2361_v48 = vpop.f32.mrf.mxu1  ;;  %2462 = vst.msk [vmem:[#allocation3 + $0x60] sm:$0xff] %vm272_vm2, %v2432_v16  ;;  %v2435_v6 = vadd.f32 %v11884_v1, %v2098_v35  ;;  %2042 = vst.msk [vmem:[#allocation3 + $0x98] sm:$0xff] %vm272_vm2, %v2012_v29  ;;  %v2011_v42 = vadd.f32 %v1934_v36, %v1674_v3  ;;  %v11947_v1 = vld [vmem:[#allocation2 + $0x11a] sm:$0xff]  ;;  %v1682_v29 = vld [vmem:[#allocation3 + $0xd0] sm:$0xff] }
 0x206   : > { %v2097_v43 = vld [vmem:[#allocation3 + $0x70] sm:$0xff]  ;;  %v9951_v37 = vpop.f32.mrf.mxu0  ;;  %10241 = vmatmul.mubr.msk.f32.gmra.mxu0 %vm272_vm2, %v11929_v61 }
 0x207   : > { %v11931_v20 = vpop.f32.mrf.mxu1  ;;  %10288 = vmatmul.mubr.msk.f32.gmra.mxu1 %vm272_vm2, %v4692_v52  ;;  %2465 = vst.msk [vmem:[#allocation3 + $0x78] sm:$0xff] %vm272_vm2, %v2435_v6  ;;  %v2434_v26 = vadd.f32 %v11893_v11, %v2097_v43  ;;  %2041 = vst.msk [vmem:[#allocation3 + $0x90] sm:$0xff] %vm272_vm2, %v2011_v42  ;;  %v2014_v4 = vadd.f32 %v9951_v37, %v1677_v2  ;;  %10243 = vmatprep.mubr.msk.f32.mxu0 %vm272_vm2, %v11936_v9  ;;  %v11999_v36 = vld [vmem:[#allocation2 + $0x121] sm:$0xff]  ;;  %v1684_v37 = vld [vmem:[#allocation3 + $0xe0] sm:$0xff] }
 0x208   : > { %10290 = vmatprep.mubr.msk.f32.mxu1 %vm272_vm2, %v4693_v5  ;;  %v2100_v53 = vld [vmem:[#allocation3 + $0x88] sm:$0xff]  ;;  %v1944_v57 = vpop.f32.mrf.mxu0 }
 0x209   : > { %v2371_v55 = vpop.f32.mrf.mxu1  ;;  %2464 = vst.msk [vmem:[#allocation3 + $0x70] sm:$0xff] %vm272_vm2, %v2434_v26  ;;  %v2437_v10 = vadd.f32 %v11898_v21, %v2100_v53  ;;  %2044 = vst.msk [vmem:[#allocation3 + $0xa8] sm:$0xff] %vm272_vm2, %v2014_v4  ;;  %v2013_v54 = vadd.f32 %v1944_v57, %v1676_v14  ;;  %v11964_v21 = vld [vmem:[%s13167_s4 + $0x28] sm:$0xff]  ;;  %v1685_v5 = vld [vmem:[#allocation3 + $0xe8] sm:$0xff] }
 0x20a   : > { %v2099_v51 = vld [vmem:[#allocation3 + $0x80] sm:$0xff]  ;;  %v9954_v63 = vpop.f32.mrf.mxu0  ;;  %10244 = vmatmul.mubr.msk.f32.gmra.mxu0 %vm272_vm2, %v11947_v1  ;;  %v5463_v42 = vld [vmem:[#allocation2 + $0x122] sm:$0xff] }
 0x20b   : > { %v11949_v0 = vpop.f32.mrf.mxu1  ;;  %10291 = vmatmul.mubr.msk.f32.gmra.mxu1 %vm272_vm2, %v4694_v31  ;;  %2467 = vst.msk [vmem:[#allocation3 + $0x88] sm:$0xff] %vm272_vm2, %v2437_v10  ;;  %v2436_v40 = vadd.f32 %v2351_v28, %v2099_v51  ;;  %2043 = vst.msk [vmem:[#allocation3 + $0xa0] sm:$0xff] %vm272_vm2, %v2013_v54  ;;  %v2016_v8 = vadd.f32 %v9954_v63, %v1679_v60  ;;  %10295 = vmatprep.mubr.msk.f32.mxu0 %vm272_vm2, %v5031_v7  ;;  %v12016_v4 = vld [vmem:[#allocation2 + $0x129] sm:$0xff]  ;;  %v12018_v53 = vld [vmem:[#allocation2 + $0x131] sm:$0xff] }
 0x20c   : > { %10342 = vmatprep.mubr.msk.f32.mxu1 %vm272_vm2, %v11902_v22  ;;  %v2102_v11 = vld [vmem:[#allocation3 + $0x98] sm:$0xff]  ;;  %v1954_v50 = vpop.f32.mrf.mxu0  ;;  %v2511_v57 = vld [vmem:[#allocation3 + $0x8] sm:$0xff]  ;;  %v2510_v63 = vld [vmem:[#allocation3] sm:$0xff] }
 0x20d   : > { %v2381_v44 = vpop.f32.mrf.mxu1  ;;  %2466 = vst.msk [vmem:[#allocation3 + $0x80] sm:$0xff] %vm272_vm2, %v2436_v40  ;;  %v2439_v15 = vadd.f32 %v9995_v56, %v2102_v11  ;;  %2046 = vst.msk [vmem:[#allocation3 + $0xb8] sm:$0xff] %vm272_vm2, %v2016_v8  ;;  %v2015_v17 = vadd.f32 %v1954_v50, %v1678_v12  ;;  %v5464_v31 = vld [vmem:[#allocation2 + $0x12a] sm:$0xff]  ;;  %v5465_v54 = vld [vmem:[#allocation2 + $0x132] sm:$0xff] }
 0x20e   : > { %v2101_v49 = vld [vmem:[#allocation3 + $0x90] sm:$0xff]  ;;  %v9957_v22 = vpop.f32.mrf.mxu0  ;;  %10296 = vmatmul.mubr.msk.f32.vlgmr.msra.gmra.mxu0 %vm272_vm2, %v5032_v18  ;;  %v12034_v11 = vld [vmem:[#allocation2 + $0x139] sm:$0xff] }
 0x20f   : > { %v10004_v24 = vpop.f32.mrf.mxu1  ;;  %10343 = vmatmul.mubr.msk.f32.vlgmr.msra.gmra.mxu1 %vm272_vm2, %v11913_v32  ;;  %2469 = vst.msk [vmem:[#allocation3 + $0x98] sm:$0xff] %vm272_vm2, %v2439_v15  ;;  %v2438_v27 = vadd.f32 %v2361_v48, %v2101_v49  ;;  %2045 = vst.msk [vmem:[#allocation3 + $0xb0] sm:$0xff] %vm272_vm2, %v2015_v17  ;;  %v2018_v45 = vadd.f32 %v9957_v22, %v1681_v23  ;;  %10388 = vmatpush3.msra.mxu0 %v11742_v33  ;;  %v5466_v12 = vld [vmem:[#allocation2 + $0x13a] sm:$0xff]  ;;  %v2513_v15 = vld [vmem:[#allocation3 + $0x18] sm:$0xff] }
 0x210   : > { %10298 = vmatprep.mubr.msk.f32.mxu0 %vm272_vm2, %v5033_v19  ;;  %v2104_v28 = vld [vmem:[#allocation3 + $0xa8] sm:$0xff]  ;;  %10345 = vmatprep.mubr.msk.f32.mxu1 %vm272_vm2, %v11918_v38  ;;  %v1964_v39 = vpop.f32.mrf.mxu0 }
 0x211   : > { %v2391_v58 = vpop.f32.mrf.mxu1  ;;  %10435 = vmatpush3.msra.mxu1 %v11747_v30  ;;  %2468 = vst.msk [vmem:[#allocation3 + $0x90] sm:$0xff] %vm272_vm2, %v2438_v27  ;;  %v2441_v32 = vadd.f32 %v11931_v20, %v2104_v28  ;;  %2048 = vst.msk [vmem:[#allocation3 + $0xc8] sm:$0xff] %vm272_vm2, %v2018_v45  ;;  %v2017_v46 = vadd.f32 %v1964_v39, %v1680_v41  ;;  %10481 = vmatprep.subr.mxu0 %v11964_v21  ;;  %v12036_v50 = vld [vmem:[#allocation2 + $0x141] sm:$0xff]  ;;  %v12053_v39 = vld [vmem:[#allocation2 + $0x149] sm:$0xff] }
 0x212   : > { %10528 = vmatprep.subr.mxu1 %v11972_v25  ;;  %v2103_v33 = vld [vmem:[#allocation3 + $0xa0] sm:$0xff]  ;;  %v9960_v47 = vpop.f32.mrf.mxu0  ;;  %10299 = vmatmul.mubr.msk.f32.gmra.mxu0 %vm272_vm2, %v11699_v62  ;;  %v5467_v19 = vld [vmem:[#allocation2 + $0x142] sm:$0xff] }
 0x213   : > { %v10007_v56 = vpop.f32.mrf.mxu1  ;;  %10346 = vmatmul.mubr.msk.f32.gmra.mxu1 %vm272_vm2, %v11929_v61  ;;  %2471 = vst.msk [vmem:[#allocation3 + $0xa8] sm:$0xff] %vm272_vm2, %v2441_v32  ;;  %v2440_v30 = vadd.f32 %v2371_v55, %v2103_v33  ;;  %2047 = vst.msk [vmem:[#allocation3 + $0xc0] sm:$0xff] %vm272_vm2, %v2017_v46  ;;  %v2020_v38 = vadd.f32 %v9960_v47, %v1683_v34  ;;  %10301 = vmatprep.mubr.msk.f32.mxu0 %vm272_vm2, %v11707_v59  ;;  %v12055_v32 = vld [vmem:[#allocation2 + $0x151] sm:$0xff]  ;;  %v2515_v33 = vld [vmem:[#allocation3 + $0x28] sm:$0xff] }
 0x214   : > { %10348 = vmatprep.mubr.msk.f32.mxu1 %vm272_vm2, %v11936_v9  ;;  %v2106_v16 = vld [vmem:[#allocation3 + $0xb8] sm:$0xff]  ;;  %v1974_v52 = vpop.f32.mrf.mxu0 }
 0x215   : > { %v2401_v35 = vpop.f32.mrf.mxu1  ;;  %2470 = vst.msk [vmem:[#allocation3 + $0xa0] sm:$0xff] %vm272_vm2, %v2440_v30  ;;  %v2443_v62 = vadd.f32 %v11949_v0, %v2106_v16  ;;  %2050 = vst.msk [vmem:[#allocation3 + $0xd8] sm:$0xff] %vm272_vm2, %v2020_v38  ;;  %v2019_v3 = vadd.f32 %v1974_v52, %v1682_v29  ;;  %v2514_v29 = vld [vmem:[#allocation3 + $0x20] sm:$0xff] }
 0x216   : > { %v2105_v48 = vld [vmem:[#allocation3 + $0xb0] sm:$0xff]  ;;  %v9963_v6 = vpop.f32.mrf.mxu0  ;;  %10302 = vmatmul.mubr.msk.f32.gmra.mxu0 %vm272_vm2, %v11721_v13 }
 0x217   : > { %v12001_v59 = vpop.f32.mrf.mxu1  ;;  %10349 = vmatmul.mubr.msk.f32.gmra.mxu1 %vm272_vm2, %v11947_v1  ;;  %2473 = vst.msk [vmem:[#allocation3 + $0xb8] sm:$0xff] %vm272_vm2, %v2443_v62  ;;  %v2442_v61 = vadd.f32 %v2381_v44, %v2105_v48  ;;  %2049 = vst.msk [vmem:[#allocation3 + $0xd0] sm:$0xff] %vm272_vm2, %v2019_v3  ;;  %v2022_v43 = vadd.f32 %v9963_v6, %v1685_v5  ;;  %10304 = vmatprep.mubr.msk.f32.mxu0 %vm272_vm2, %v11999_v36  ;;  %v12073_v48 = vld [vmem:[#allocation2 + $0x159] sm:$0xff]  ;;  %v12075_v6 = vld [vmem:[#allocation2 + $0x161] sm:$0xff] }
 0x218   : > { %10351 = vmatprep.mubr.msk.f32.mxu1 %vm272_vm2, %v5463_v42  ;;  %v2108_v2 = vld [vmem:[#allocation3 + $0xc8] sm:$0xff]  ;;  %v1984_v20 = vpop.f32.mrf.mxu0  ;;  %v2517_v42 = vld [vmem:[#allocation3 + $0x38] sm:$0xff] }
 0x219   : > { %v12012_v9 = vpop.f32.mrf.mxu1  ;;  %2472 = vst.msk [vmem:[#allocation3 + $0xb0] sm:$0xff] %vm272_vm2, %v2442_v61  ;;  %v2445_v13 = vadd.f32 %v10004_v24, %v2108_v2  ;;  %2052 = vst.msk [vmem:[#allocation3 + $0xe8] sm:$0xff] %vm272_vm2, %v2022_v43  ;;  %v2021_v26 = vadd.f32 %v1984_v20, %v1684_v37  ;;  %v2512_v24 = vld [vmem:[#allocation3 + $0x10] sm:$0xff]  ;;  %v5470_v5 = vld [vmem:[#allocation2 + $0x15a] sm:$0xff] }
 0x21a   : > { %v2107_v14 = vld [vmem:[#allocation3 + $0xc0] sm:$0xff]  ;;  %v10015_v55 = vpop.f32.mrf.mxu0  ;;  %10305 = vmatmul.mubr.msk.f32.gmra.mxu0 %vm272_vm2, %v12016_v4  ;;  %v5471_v2 = vld [vmem:[#allocation2 + $0x162] sm:$0xff] }
 0x21b   : > { %v12020_v10 = vpop.f32.mrf.mxu1  ;;  %10352 = vmatmul.mubr.msk.f32.gmra.mxu1 %vm272_vm2, %v5464_v31  ;;  %2475 = vst.msk [vmem:[#allocation3 + $0xc8] sm:$0xff] %vm272_vm2, %v2445_v13  ;;  %v2444_v1 = vadd.f32 %v2391_v58, %v2107_v14  ;;  %2051 = vst.msk [vmem:[#allocation3 + $0xe0] sm:$0xff] %vm272_vm2, %v2021_v26  ;;  %v2848_v51 = vadd.f32 %v10015_v55, %v2511_v57  ;;  %10307 = vmatprep.mubr.msk.f32.mxu0 %vm272_vm2, %v12018_v53  ;;  %v5468_v58 = vld [vmem:[#allocation2 + $0x14a] sm:$0xff] }
 0x21c   : > { %10354 = vmatprep.mubr.msk.f32.mxu1 %vm272_vm2, %v5465_v54  ;;  %v2110_v60 = vld [vmem:[#allocation3 + $0xd8] sm:$0xff]  ;;  %v2698_v0 = vpop.f32.mrf.mxu0  ;;  %v2516_v13 = vld [vmem:[#allocation3 + $0x30] sm:$0xff] }
 0x21d   : > { %v12030_v7 = vpop.f32.mrf.mxu1  ;;  %2474 = vst.msk [vmem:[#allocation3 + $0xc0] sm:$0xff] %vm272_vm2, %v2444_v1  ;;  %v2447_v40 = vadd.f32 %v10007_v56, %v2110_v60  ;;  %2878 = vst.msk [vmem:[#allocation3 + $0x8] sm:$0xff] %vm272_vm2, %v2848_v51  ;;  %v2847_v8 = vadd.f32 %v2698_v0, %v2510_v63  ;;  %v5469_v56 = vld [vmem:[#allocation2 + $0x152] sm:$0xff]  ;;  %v12093_v55 = vld [vmem:[#allocation2 + $0x169] sm:$0xff] }
 0x21e   : > { %v2109_v44 = vld [vmem:[#allocation3 + $0xd0] sm:$0xff]  ;;  %v10018_v17 = vpop.f32.mrf.mxu0  ;;  %10308 = vmatmul.mubr.msk.f32.gmra.mxu0 %vm272_vm2, %v12034_v11  ;;  %v12095_v54 = vld [vmem:[#allocation2 + $0x171] sm:$0xff]  ;;  %v2519_v51 = vld [vmem:[#allocation3 + $0x48] sm:$0xff] }
 0x21f   : > { %v12038_v18 = vpop.f32.mrf.mxu1  ;;  %10355 = vmatmul.mubr.msk.f32.gmra.mxu1 %vm272_vm2, %v5466_v12  ;;  %2477 = vst.msk [vmem:[#allocation3 + $0xd8] sm:$0xff] %vm272_vm2, %v2447_v40  ;;  %v2446_v49 = vadd.f32 %v2401_v35, %v2109_v44  ;;  %2877 = vst.msk [vmem:[#allocation3] sm:$0xff] %vm272_vm2, %v2847_v8  ;;  %v2850_v23 = vadd.f32 %v10018_v17, %v2513_v15  ;;  %10310 = vmatprep.mubr.msk.f32.mxu0 %vm272_vm2, %v12036_v50  ;;  %v5473_v0 = vld [vmem:[#allocation2 + $0x172] sm:$0xff]  ;;  %v5474_v12 = vld [vmem:[#allocation2 + $0x17a] sm:$0xff] }
 0x220   : > { %10357 = vmatprep.mubr.msk.f32.mxu1 %vm272_vm2, %v5467_v19  ;;  %v2112_v22 = vld [vmem:[#allocation3 + $0xe8] sm:$0xff]  ;;  %v2708_v27 = vpop.f32.mrf.mxu0  ;;  %v2518_v17 = vld [vmem:[#allocation3 + $0x40] sm:$0xff] }
 0x221   : > { %v12048_v45 = vpop.f32.mrf.mxu1  ;;  %2476 = vst.msk [vmem:[#allocation3 + $0xd0] sm:$0xff] %vm272_vm2, %v2446_v49  ;;  %v2449_v28 = vadd.f32 %v12001_v59, %v2112_v22  ;;  %2880 = vst.msk [vmem:[#allocation3 + $0x18] sm:$0xff] %vm272_vm2, %v2850_v23  ;;  %v2849_v41 = vadd.f32 %v2708_v27, %v2512_v24  ;;  %v12108_v8 = vld [vmem:[#allocation2 + $0x179] sm:$0xff]  ;;  %v12110_v44 = vld [vmem:[#allocation2 + $0x181] sm:$0xff] }
 0x222   : > { %v2111_v46 = vld [vmem:[#allocation3 + $0xe0] sm:$0xff]  ;;  %v10021_v34 = vpop.f32.mrf.mxu0  ;;  %10311 = vmatmul.mubr.msk.f32.gmra.mxu0 %vm272_vm2, %v12053_v39  ;;  %v5475_v49 = vld [vmem:[#allocation2 + $0x182] sm:$0xff]  ;;  %v2521_v27 = vld [vmem:[#allocation3 + $0x58] sm:$0xff] }
 0x223   : > { %v12057_v47 = vpop.f32.mrf.mxu1  ;;  %10358 = vmatmul.mubr.msk.f32.gmra.mxu1 %vm272_vm2, %v5468_v58  ;;  %2479 = vst.msk [vmem:[#allocation3 + $0xe8] sm:$0xff] %vm272_vm2, %v2449_v28  ;;  %v2448_v30 = vadd.f32 %v12012_v9, %v2111_v46  ;;  %2879 = vst.msk [vmem:[#allocation3 + $0x10] sm:$0xff] %vm272_vm2, %v2849_v41  ;;  %v2852_v38 = vadd.f32 %v10021_v34, %v2515_v33  ;;  %10313 = vmatprep.mubr.msk.f32.mxu0 %vm272_vm2, %v12055_v32  ;;  %v12126_v46 = vld [vmem:[#allocation2 + $0x189] sm:$0xff]  ;;  %v12128_v34 = vld [vmem:[#allocation2 + $0x191] sm:$0xff] }
 0x224   : > { %10360 = vmatprep.mubr.msk.f32.mxu1 %vm272_vm2, %v5469_v56  ;;  %v2938_v16 = vld [vmem:[#allocation3 + $0x8] sm:$0xff]  ;;  %v2718_v52 = vpop.f32.mrf.mxu0  ;;  %v5476_v33 = vld [vmem:[#allocation2 + $0x18a] sm:$0xff] }
 0x225   : > { %v12068_v35 = vpop.f32.mrf.mxu1  ;;  %2478 = vst.msk [vmem:[#allocation3 + $0xe0] sm:$0xff] %vm272_vm2, %v2448_v30  ;;  %v3275_v62 = vadd.f32 %v12020_v10, %v2938_v16  ;;  %2882 = vst.msk [vmem:[#allocation3 + $0x28] sm:$0xff] %vm272_vm2, %v2852_v38  ;;  %v2851_v3 = vadd.f32 %v2718_v52, %v2514_v29  ;;  %v5472_v10 = vld [vmem:[#allocation2 + $0x16a] sm:$0xff]  ;;  %v5477_v16 = vld [vmem:[#allocation2 + $0x192] sm:$0xff] }
 0x226   : > { %v2937_v59 = vld [vmem:[#allocation3] sm:$0xff]  ;;  %v10024_v61 = vpop.f32.mrf.mxu0  ;;  %10314 = vmatmul.mubr.msk.f32.gmra.mxu0 %vm272_vm2, %v12073_v48  ;;  %v2520_v56 = vld [vmem:[#allocation3 + $0x50] sm:$0xff] }
 0x227   : > { %v12077_v43 = vpop.f32.mrf.mxu1  ;;  %10361 = vmatmul.mubr.msk.f32.gmra.mxu1 %vm272_vm2, %v5470_v5  ;;  %3305 = vst.msk [vmem:[#allocation3 + $0x8] sm:$0xff] %vm272_vm2, %v3275_v62  ;;  %v3274_v37 = vadd.f32 %v12030_v7, %v2937_v59  ;;  %2881 = vst.msk [vmem:[#allocation3 + $0x20] sm:$0xff] %vm272_vm2, %v2851_v3  ;;  %v2854_v20 = vadd.f32 %v10024_v61, %v2517_v42  ;;  %10316 = vmatprep.mubr.msk.f32.mxu0 %vm272_vm2, %v12075_v6  ;;  %v2523_v62 = vld [vmem:[#allocation3 + $0x68] sm:$0xff] }
 0x228   : > { %10363 = vmatprep.mubr.msk.f32.mxu1 %vm272_vm2, %v5471_v2  ;;  %v2940_v9 = vld [vmem:[#allocation3 + $0x18] sm:$0xff]  ;;  %v2728_v26 = vpop.f32.mrf.mxu0  ;;  %v12144_v61 = vld [vmem:[#allocation2 + $0x199] sm:$0xff]  ;;  %v12146_v2 = vld [vmem:[#allocation2 + $0x1a1] sm:$0xff] }
 0x229   : > { %v12088_v31 = vpop.f32.mrf.mxu1  ;;  %3304 = vst.msk [vmem:[#allocation3] sm:$0xff] %vm272_vm2, %v3274_v37  ;;  %v3277_v14 = vadd.f32 %v12038_v18, %v2940_v9  ;;  %2884 = vst.msk [vmem:[#allocation3 + $0x38] sm:$0xff] %vm272_vm2, %v2854_v20  ;;  %v2853_v57 = vadd.f32 %v2728_v26, %v2516_v13  ;;  %v2522_v20 = vld [vmem:[#allocation3 + $0x60] sm:$0xff]  ;;  %v5479_v26 = vld [vmem:[#allocation2 + $0x1a2] sm:$0xff] }
 0x22a   : > { %v2939_v1 = vld [vmem:[#allocation3 + $0x10] sm:$0xff]  ;;  %v10027_v60 = vpop.f32.mrf.mxu0  ;;  %10317 = vmatmul.mubr.msk.f32.gmra.mxu0 %vm272_vm2, %v12093_v55 }
 0x22b   : > { %v12097_v63 = vpop.f32.mrf.mxu1  ;;  %10364 = vmatmul.mubr.msk.f32.gmra.mxu1 %vm272_vm2, %v5472_v10  ;;  %3307 = vst.msk [vmem:[#allocation3 + $0x18] sm:$0xff] %vm272_vm2, %v3277_v14  ;;  %v3276_v7 = vadd.f32 %v12048_v45, %v2939_v1  ;;  %2883 = vst.msk [vmem:[#allocation3 + $0x30] sm:$0xff] %vm272_vm2, %v2853_v57  ;;  %v2856_v40 = vadd.f32 %v10027_v60, %v2519_v51  ;;  %10319 = vmatprep.mubr.msk.f32.mxu0 %vm272_vm2, %v12095_v54  ;;  %v2525_v10 = vld [vmem:[#allocation3 + $0x78] sm:$0xff] }
 0x22c   : > { %10366 = vmatprep.mubr.msk.f32.mxu1 %vm272_vm2, %v5473_v0  ;;  %v2942_v15 = vld [vmem:[#allocation3 + $0x28] sm:$0xff]  ;;  %v2738_v18 = vpop.f32.mrf.mxu0 }
 0x22d   : > { %v3165_v19 = vpop.f32.mrf.mxu1  ;;  %3306 = vst.msk [vmem:[#allocation3 + $0x10] sm:$0xff] %vm272_vm2, %v3276_v7  ;;  %v3279_v23 = vadd.f32 %v12057_v47, %v2942_v15  ;;  %2886 = vst.msk [vmem:[#allocation3 + $0x48] sm:$0xff] %vm272_vm2, %v2856_v40  ;;  %v2855_v22 = vadd.f32 %v2738_v18, %v2518_v17  ;;  %v5480_v7 = vld [vmem:[#allocation2 + $0x1aa] sm:$0xff] }
 0x22e   : > { %v2941_v24 = vld [vmem:[#allocation3 + $0x20] sm:$0xff]  ;;  %v10030_v45 = vpop.f32.mrf.mxu0  ;;  %10320 = vmatmul.mubr.msk.f32.gmra.mxu0 %vm272_vm2, %v12108_v8  ;;  %v2524_v15 = vld [vmem:[#allocation3 + $0x70] sm:$0xff] }
 0x22f   : > { %v12115_v28 = vpop.f32.mrf.mxu1  ;;  %10367 = vmatmul.mubr.msk.f32.gmra.mxu1 %vm272_vm2, %v5474_v12  ;;  %3309 = vst.msk [vmem:[#allocation3 + $0x28] sm:$0xff] %vm272_vm2, %v3279_v23  ;;  %v3278_v41 = vadd.f32 %v12068_v35, %v2941_v24  ;;  %2885 = vst.msk [vmem:[#allocation3 + $0x40] sm:$0xff] %vm272_vm2, %v2855_v22  ;;  %v2858_v58 = vadd.f32 %v10030_v45, %v2521_v27  ;;  %10322 = vmatprep.mubr.msk.f32.mxu0 %vm272_vm2, %v12110_v44  ;;  %v12163_v40 = vld [vmem:[#allocation2 + $0x1b1] sm:$0xff]  ;;  %v2527_v24 = vld [vmem:[#allocation3 + $0x88] sm:$0xff] }
 0x230   : > { %10369 = vmatprep.mubr.msk.f32.mxu1 %vm272_vm2, %v5475_v49  ;;  %v2944_v47 = vld [vmem:[#allocation3 + $0x38] sm:$0xff]  ;;  %v2748_v30 = vpop.f32.mrf.mxu0 }
 0x231   : > { %v3175_v38 = vpop.f32.mrf.mxu1  ;;  %3308 = vst.msk [vmem:[#allocation3 + $0x20] sm:$0xff] %vm272_vm2, %v3278_v41  ;;  %v3281_v29 = vadd.f32 %v12077_v43, %v2944_v47  ;;  %2888 = vst.msk [vmem:[#allocation3 + $0x58] sm:$0xff] %vm272_vm2, %v2858_v58  ;;  %v2857_v52 = vadd.f32 %v2748_v30, %v2520_v56  ;;  %v5478_v43 = vld [vmem:[#allocation2 + $0x19a] sm:$0xff]  ;;  %v5481_v49 = vld [vmem:[#allocation2 + $0x1b2] sm:$0xff] }
 0x232   : > { %v2943_v35 = vld [vmem:[#allocation3 + $0x30] sm:$0xff]  ;;  %v10033_v3 = vpop.f32.mrf.mxu0  ;;  %10323 = vmatmul.mubr.msk.f32.gmra.mxu0 %vm272_vm2, %v12126_v46  ;;  %v2526_v30 = vld [vmem:[#allocation3 + $0x80] sm:$0xff] }
 0x233   : > { %v12133_v5 = vpop.f32.mrf.mxu1  ;;  %10370 = vmatmul.mubr.msk.f32.gmra.mxu1 %vm272_vm2, %v5476_v33  ;;  %3311 = vst.msk [vmem:[#allocation3 + $0x38] sm:$0xff] %vm272_vm2, %v3281_v29  ;;  %v3280_v59 = vadd.f32 %v12088_v31, %v2943_v35  ;;  %2887 = vst.msk [vmem:[#allocation3 + $0x50] sm:$0xff] %vm272_vm2, %v2857_v52  ;;  %v2860_v42 = vadd.f32 %v10033_v3, %v2523_v62  ;;  %10325 = vmatprep.mubr.msk.f32.mxu0 %vm272_vm2, %v12128_v34  ;;  %v5482_v33 = vld [vmem:[#allocation2 + $0x1ba] sm:$0xff]  ;;  %v5483_v52 = vld [vmem:[#allocation2 + $0x1c2] sm:$0xff] }
 0x234   : > { %10372 = vmatprep.mubr.msk.f32.mxu1 %vm272_vm2, %v5477_v16  ;;  %v2946_v37 = vld [vmem:[#allocation3 + $0x48] sm:$0xff]  ;;  %v2758_v9 = vpop.f32.mrf.mxu0  ;;  %v2529_v3 = vld [vmem:[#allocation3 + $0x98] sm:$0xff] }
 0x235   : > { %v3185_v13 = vpop.f32.mrf.mxu1  ;;  %3310 = vst.msk [vmem:[#allocation3 + $0x30] sm:$0xff] %vm272_vm2, %v3280_v59  ;;  %v3283_v31 = vadd.f32 %v12097_v63, %v2946_v37  ;;  %2890 = vst.msk [vmem:[#allocation3 + $0x68] sm:$0xff] %vm272_vm2, %v2860_v42  ;;  %v2859_v14 = vadd.f32 %v2758_v9, %v2522_v20  ;;  %v12161_v63 = vld [vmem:[#allocation2 + $0x1a9] sm:$0xff]  ;;  %v12180_v47 = vld [vmem:[#allocation2 + $0x1c1] sm:$0xff] }
 0x236   : > { %v2945_v57 = vld [vmem:[#allocation3 + $0x40] sm:$0xff]  ;;  %v10036_v1 = vpop.f32.mrf.mxu0  ;;  %10326 = vmatmul.mubr.msk.f32.gmra.mxu0 %vm272_vm2, %v12144_v61  ;;  %v5484_v20 = vld [vmem:[#allocation2 + $0x1ca] sm:$0xff] }
 0x237   : > { %v12151_v51 = vpop.f32.mrf.mxu1  ;;  %10373 = vmatmul.mubr.msk.f32.gmra.mxu1 %vm272_vm2, %v5478_v43  ;;  %3313 = vst.msk [vmem:[#allocation3 + $0x48] sm:$0xff] %vm272_vm2, %v3283_v31  ;;  %v3282_v60 = vadd.f32 %v3165_v19, %v2945_v57  ;;  %2889 = vst.msk [vmem:[#allocation3 + $0x60] sm:$0xff] %vm272_vm2, %v2859_v14  ;;  %v2862_v0 = vadd.f32 %v10036_v1, %v2525_v10  ;;  %10328 = vmatprep.mubr.msk.f32.mxu0 %vm272_vm2, %v12146_v2  ;;  %v12197_v9 = vld [vmem:[#allocation2 + $0x1d1] sm:$0xff]  ;;  %v2528_v31 = vld [vmem:[#allocation3 + $0x90] sm:$0xff] }
 0x238   : > { %10375 = vmatprep.mubr.msk.f32.mxu1 %vm272_vm2, %v5479_v26  ;;  %v2948_v12 = vld [vmem:[#allocation3 + $0x58] sm:$0xff]  ;;  %v2768_v17 = vpop.f32.mrf.mxu0 }
 0x239   : > { %v3195_v18 = vpop.f32.mrf.mxu1  ;;  %3312 = vst.msk [vmem:[#allocation3 + $0x40] sm:$0xff] %vm272_vm2, %v3282_v60  ;;  %v3285_v19 = vadd.f32 %v12115_v28, %v2948_v12  ;;  %2892 = vst.msk [vmem:[#allocation3 + $0x78] sm:$0xff] %vm272_vm2, %v2862_v0  ;;  %v2861_v23 = vadd.f32 %v2768_v17, %v2524_v15  ;;  %v12178_v28 = vld [vmem:[#allocation2 + $0x1b9] sm:$0xff] }
 0x23a   : > { %v2947_v22 = vld [vmem:[#allocation3 + $0x50] sm:$0xff]  ;;  %v10039_v27 = vpop.f32.mrf.mxu0  ;;  %10329 = vmatmul.mubr.msk.f32.gmra.mxu0 %vm272_vm2, %v12161_v63  ;;  %v5485_v10 = vld [vmem:[#allocation2 + $0x1d2] sm:$0xff]  ;;  %v2531_v0 = vld [vmem:[#allocation3 + $0xa8] sm:$0xff] }
 0x23b   : > { %v12168_v45 = vpop.f32.mrf.mxu1  ;;  %10376 = vmatmul.mubr.msk.f32.gmra.mxu1 %vm272_vm2, %v5480_v7  ;;  %3315 = vst.msk [vmem:[#allocation3 + $0x58] sm:$0xff] %vm272_vm2, %v3285_v19  ;;  %v3284_v41 = vadd.f32 %v3175_v38, %v2947_v22  ;;  %2891 = vst.msk [vmem:[#allocation3 + $0x70] sm:$0xff] %vm272_vm2, %v2861_v23  ;;  %v2864_v58 = vadd.f32 %v10039_v27, %v2527_v24  ;;  %10331 = vmatprep.mubr.msk.f32.mxu0 %vm272_vm2, %v12163_v40  ;;  %v2530_v23 = vld [vmem:[#allocation3 + $0xa0] sm:$0xff] }
 0x23c   : > { %10378 = vmatprep.mubr.msk.f32.mxu1 %vm272_vm2, %v5481_v49  ;;  %v2950_v56 = vld [vmem:[#allocation3 + $0x68] sm:$0xff]  ;;  %v2778_v16 = vpop.f32.mrf.mxu0 }
 0x23d   : > { %v3205_v29 = vpop.f32.mrf.mxu1  ;;  %3314 = vst.msk [vmem:[#allocation3 + $0x50] sm:$0xff] %vm272_vm2, %v3284_v41  ;;  %v3287_v38 = vadd.f32 %v12133_v5, %v2950_v56  ;;  %2894 = vst.msk [vmem:[#allocation3 + $0x88] sm:$0xff] %vm272_vm2, %v2864_v58  ;;  %v2863_v35 = vadd.f32 %v2778_v16, %v2526_v30  ;;  %v12195_v5 = vld [vmem:[#allocation2 + $0x1c9] sm:$0xff]  ;;  %v5486_v49 = vld [vmem:[#allocation2 + $0x1da] sm:$0xff] }
 0x23e   : > { %v2949_v62 = vld [vmem:[#allocation3 + $0x60] sm:$0xff]  ;;  %v10042_v59 = vpop.f32.mrf.mxu0  ;;  %10332 = vmatmul.mubr.msk.f32.gmra.mxu0 %vm272_vm2, %v12178_v28  ;;  %v5883_v41 = vld [vmem:[#allocation2 + $0x108] sm:$0xff] }
 0x23f   : > { %v12185_v42 = vpop.f32.mrf.mxu1  ;;  %10379 = vmatmul.mubr.msk.f32.gmra.mxu1 %vm272_vm2, %v5482_v33  ;;  %3317 = vst.msk [vmem:[#allocation3 + $0x68] sm:$0xff] %vm272_vm2, %v3287_v38  ;;  %v3286_v43 = vadd.f32 %v3185_v13, %v2949_v62  ;;  %2893 = vst.msk [vmem:[#allocation3 + $0x80] sm:$0xff] %vm272_vm2, %v2863_v35  ;;  %v2866_v37 = vadd.f32 %v10042_v59, %v2529_v3  ;;  %10334 = vmatprep.mubr.msk.f32.mxu0 %vm272_vm2, %v12180_v47  ;;  %v2533_v33 = vld [vmem:[#allocation3 + $0xb8] sm:$0xff]  ;;  %v2532_v62 = vld [vmem:[#allocation3 + $0xb0] sm:$0xff] }
 0x240   : > { %10381 = vmatprep.mubr.msk.f32.mxu1 %vm272_vm2, %v5483_v52  ;;  %v2952_v26 = vld [vmem:[#allocation3 + $0x78] sm:$0xff]  ;;  %v2788_v14 = vpop.f32.mrf.mxu0 }
 0x241   : > { %v12199_v57 = vpop.f32.mrf.mxu1  ;;  %3316 = vst.msk [vmem:[#allocation3 + $0x60] sm:$0xff] %vm272_vm2, %v3286_v43  ;;  %v3289_v13 = vadd.f32 %v12151_v51, %v2952_v26  ;;  %2896 = vst.msk [vmem:[#allocation3 + $0x98] sm:$0xff] %vm272_vm2, %v2866_v37  ;;  %v2865_v1 = vadd.f32 %v2788_v14, %v2528_v31  ;;  %v12214_v51 = vld [vmem:[#allocation2 + $0x1d9] sm:$0xff]  ;;  %v6309_v16 = vld [vmem:[#allocation2 + $0x109] sm:$0xff] }
 0x242   : > { %v2951_v60 = vld [vmem:[#allocation3 + $0x70] sm:$0xff]  ;;  %v10045_v7 = vpop.f32.mrf.mxu0  ;;  %10335 = vmatmul.mubr.msk.f32.gmra.mxu0 %vm272_vm2, %v12195_v5  ;;  %v5884_v38 = vld [vmem:[#allocation2 + $0x110] sm:$0xff]  ;;  %v5885_v26 = vld [vmem:[#allocation2 + $0x118] sm:$0xff] }
 0x243   : > { %v12204_v12 = vpop.f32.mrf.mxu1  ;;  %10382 = vmatmul.mubr.msk.f32.gmra.mxu1 %vm272_vm2, %v5484_v20  ;;  %3319 = vst.msk [vmem:[#allocation3 + $0x78] sm:$0xff] %vm272_vm2, %v3289_v13  ;;  %v3288_v15 = vadd.f32 %v3195_v18, %v2951_v60  ;;  %2895 = vst.msk [vmem:[#allocation3 + $0x90] sm:$0xff] %vm272_vm2, %v2865_v1  ;;  %v2868_v17 = vadd.f32 %v10045_v7, %v2531_v0  ;;  %10337 = vmatprep.mubr.msk.f32.mxu0 %vm272_vm2, %v12197_v9  ;;  %v6310_v43 = vld [vmem:[#allocation2 + $0x111] sm:$0xff]  ;;  %v6311_v20 = vld [vmem:[#allocation2 + $0x119] sm:$0xff] }
 0x244   : > { %10384 = vmatprep.mubr.msk.f32.mxu1 %vm272_vm2, %v5485_v10  ;;  %v2954_v19 = vld [vmem:[#allocation3 + $0x88] sm:$0xff]  ;;  %v2798_v22 = vpop.f32.mrf.mxu0  ;;  %v12238_v31 = vld [vmem:[%s13167_s4 + $0x38] sm:$0xff] }
 0x245   : > { %v12216_v24 = vpop.f32.mrf.mxu1  ;;  %3318 = vst.msk [vmem:[#allocation3 + $0x70] sm:$0xff] %vm272_vm2, %v3288_v15  ;;  %v3291_v18 = vadd.f32 %v12168_v45, %v2954_v19  ;;  %2898 = vst.msk [vmem:[#allocation3 + $0xa8] sm:$0xff] %vm272_vm2, %v2868_v17  ;;  %v2867_v27 = vadd.f32 %v2798_v22, %v2530_v23  ;;  %v2535_v10 = vld [vmem:[#allocation3 + $0xc8] sm:$0xff]  ;;  %v2534_v15 = vld [vmem:[#allocation3 + $0xc0] sm:$0xff] }
 0x246   : > { %v2953_v58 = vld [vmem:[#allocation3 + $0x80] sm:$0xff]  ;;  %v10048_v56 = vpop.f32.mrf.mxu0  ;;  %10338 = vmatmul.mubr.msk.f32.gmra.mxu0 %vm272_vm2, %v12214_v51  ;;  %v12259_v23 = vld [vmem:[#allocation2 + $0x120] sm:$0xff]  ;;  %v2537_v22 = vld [vmem:[#allocation3 + $0xd8] sm:$0xff] }
 0x247   : > { %v12221_v30 = vpop.f32.mrf.mxu1  ;;  %10385 = vmatmul.mubr.msk.f32.gmra.mxu1 %vm272_vm2, %v5486_v49  ;;  %3321 = vst.msk [vmem:[#allocation3 + $0x88] sm:$0xff] %vm272_vm2, %v3291_v18  ;;  %v3290_v52 = vadd.f32 %v3205_v29, %v2953_v58  ;;  %2897 = vst.msk [vmem:[#allocation3 + $0xa0] sm:$0xff] %vm272_vm2, %v2867_v27  ;;  %v2870_v45 = vadd.f32 %v10048_v56, %v2533_v33  ;;  %10389 = vmatprep.mubr.msk.f32.mxu0 %vm272_vm2, %v5883_v41  ;;  %v12276_v58 = vld [vmem:[#allocation2 + $0x130] sm:$0xff]  ;;  %v2536_v56 = vld [vmem:[#allocation3 + $0xd0] sm:$0xff] }
 0x248   : > { %10436 = vmatprep.mubr.msk.f32.mxu1 %vm272_vm2, %v6309_v16  ;;  %v2956_v35 = vld [vmem:[#allocation3 + $0x98] sm:$0xff]  ;;  %v2808_v3 = vpop.f32.mrf.mxu0 }
 0x249   : > { %v12230_v59 = vpop.f32.mrf.mxu1  ;;  %3320 = vst.msk [vmem:[#allocation3 + $0x80] sm:$0xff] %vm272_vm2, %v3290_v52  ;;  %v3293_v37 = vadd.f32 %v12185_v42, %v2956_v35  ;;  %2900 = vst.msk [vmem:[#allocation3 + $0xb8] sm:$0xff] %vm272_vm2, %v2870_v45  ;;  %v2869_v29 = vadd.f32 %v2808_v3, %v2532_v62  ;;  %v12247_v42 = vld [vmem:[%s13167_s4 + $0x40] sm:$0xff] }
 0x24a   : > { %v2955_v14 = vld [vmem:[#allocation3 + $0x90] sm:$0xff]  ;;  %v10051_v13 = vpop.f32.mrf.mxu0  ;;  %10390 = vmatmul.mubr.msk.f32.vlgmr.msra.gmra.mxu0 %vm272_vm2, %v5884_v38  ;;  %v2539_v38 = vld [vmem:[#allocation3 + $0xe8] sm:$0xff] }
 0x24b   : > { %v12240_v1 = vpop.f32.mrf.mxu1  ;;  %10437 = vmatmul.mubr.msk.f32.vlgmr.msra.gmra.mxu1 %vm272_vm2, %v6310_v43  ;;  %3323 = vst.msk [vmem:[#allocation3 + $0x98] sm:$0xff] %vm272_vm2, %v3293_v37  ;;  %v3292_v60 = vadd.f32 %v12199_v57, %v2955_v14  ;;  %2899 = vst.msk [vmem:[#allocation3 + $0xb0] sm:$0xff] %vm272_vm2, %v2869_v29  ;;  %v2872_v0 = vadd.f32 %v10051_v13, %v2535_v10  ;;  %10482 = vmatpush3.msra.mxu0 %v11964_v21  ;;  %v2538_v37 = vld [vmem:[#allocation3 + $0xe0] sm:$0xff]  ;;  %v12299_v14 = vld [vmem:[#allocation2 + $0x140] sm:$0xff] }
 0x24c   : > { %10439 = vmatprep.mubr.msk.f32.mxu1 %vm272_vm2, %v6311_v20  ;;  %v2958_v7 = vld [vmem:[#allocation3 + $0xa8] sm:$0xff]  ;;  %v2818_v17 = vpop.f32.mrf.mxu0  ;;  %10392 = vmatprep.mubr.msk.f32.mxu0 %vm272_vm2, %v5885_v26 }
 0x24d   : > { %v3245_v49 = vpop.f32.mrf.mxu1  ;;  %10529 = vmatpush3.msra.mxu1 %v11972_v25  ;;  %3322 = vst.msk [vmem:[#allocation3 + $0x90] sm:$0xff] %vm272_vm2, %v3292_v60  ;;  %v3295_v19 = vadd.f32 %v12204_v12, %v2958_v7  ;;  %2902 = vst.msk [vmem:[#allocation3 + $0xc8] sm:$0xff] %vm272_vm2, %v2872_v0  ;;  %v2871_v57 = vadd.f32 %v2818_v17, %v2534_v15  ;;  %10575 = vmatprep.subr.mxu0 %v12238_v31  ;;  %v12267_v25 = vld [vmem:[#allocation2 + $0x128] sm:$0xff]  ;;  %v3365_v13 = vld [vmem:[#allocation3 + $0x8] sm:$0xff] }
 0x24e   : > { %10622 = vmatprep.subr.mxu1 %v12247_v42  ;;  %v2957_v21 = vld [vmem:[#allocation3 + $0xa0] sm:$0xff]  ;;  %v10054_v18 = vpop.f32.mrf.mxu0  ;;  %10393 = vmatmul.mubr.msk.f32.gmra.mxu0 %vm272_vm2, %v12259_v23 }
 0x24f   : > { %v10101_v27 = vpop.f32.mrf.mxu1  ;;  %10440 = vmatmul.mubr.msk.f32.gmra.mxu1 %vm272_vm2, %v11999_v36  ;;  %3325 = vst.msk [vmem:[#allocation3 + $0xa8] sm:$0xff] %vm272_vm2, %v3295_v19  ;;  %v3294_v12 = vadd.f32 %v12216_v24, %v2957_v21  ;;  %2901 = vst.msk [vmem:[#allocation3 + $0xc0] sm:$0xff] %vm272_vm2, %v2871_v57  ;;  %v2874_v41 = vadd.f32 %v10054_v18, %v2537_v22  ;;  %10395 = vmatprep.mubr.msk.f32.mxu0 %vm272_vm2, %v12267_v25  ;;  %v3364_v15 = vld [vmem:[#allocation3] sm:$0xff]  ;;  %v3367_v22 = vld [vmem:[#allocation3 + $0x18] sm:$0xff] }
 0x250   : > { %10442 = vmatprep.mubr.msk.f32.mxu1 %vm272_vm2, %v12016_v4  ;;  %v2960_v33 = vld [vmem:[#allocation3 + $0xb8] sm:$0xff]  ;;  %v2828_v36 = vpop.f32.mrf.mxu0  ;;  %v12285_v4 = vld [vmem:[#allocation2 + $0x138] sm:$0xff] }
 0x251   : > { %v3255_v16 = vpop.f32.mrf.mxu1  ;;  %3324 = vst.msk [vmem:[#allocation3 + $0xa0] sm:$0xff] %vm272_vm2, %v3294_v12  ;;  %v3297_v52 = vadd.f32 %v12221_v30, %v2960_v33  ;;  %2904 = vst.msk [vmem:[#allocation3 + $0xd8] sm:$0xff] %vm272_vm2, %v2874_v41  ;;  %v2873_v24 = vadd.f32 %v2828_v36, %v2536_v56  ;;  %v12327_v33 = vld [vmem:[#allocation2 + $0x160] sm:$0xff]  ;;  %v3366_v36 = vld [vmem:[#allocation3 + $0x10] sm:$0xff] }
 0x252   : > { %v2959_v45 = vld [vmem:[#allocation3 + $0xb0] sm:$0xff]  ;;  %v10057_v35 = vpop.f32.mrf.mxu0  ;;  %10396 = vmatmul.mubr.msk.f32.gmra.mxu0 %vm272_vm2, %v12276_v58 }
 0x253   : > { %v10104_v62 = vpop.f32.mrf.mxu1  ;;  %10443 = vmatmul.mubr.msk.f32.gmra.mxu1 %vm272_vm2, %v12018_v53  ;;  %3327 = vst.msk [vmem:[#allocation3 + $0xb8] sm:$0xff] %vm272_vm2, %v3297_v52  ;;  %v3296_v3 = vadd.f32 %v12230_v59, %v2959_v45  ;;  %2903 = vst.msk [vmem:[#allocation3 + $0xd0] sm:$0xff] %vm272_vm2, %v2873_v24  ;;  %v2876_v30 = vadd.f32 %v10057_v35, %v2539_v38  ;;  %10398 = vmatprep.mubr.msk.f32.mxu0 %vm272_vm2, %v12285_v4  ;;  %v12294_v53 = vld [vmem:[#allocation2 + $0x148] sm:$0xff]  ;;  %v3369_v38 = vld [vmem:[#allocation3 + $0x28] sm:$0xff] }
 0x254   : > { %10445 = vmatprep.mubr.msk.f32.mxu1 %vm272_vm2, %v12034_v11  ;;  %v2962_v43 = vld [vmem:[#allocation3 + $0xc8] sm:$0xff]  ;;  %v2838_v29 = vpop.f32.mrf.mxu0 }
 0x255   : > { %v3265_v20 = vpop.f32.mrf.mxu1  ;;  %3326 = vst.msk [vmem:[#allocation3 + $0xb0] sm:$0xff] %vm272_vm2, %v3296_v3  ;;  %v3299_v26 = vadd.f32 %v12240_v1, %v2962_v43  ;;  %2906 = vst.msk [vmem:[#allocation3 + $0xe8] sm:$0xff] %vm272_vm2, %v2876_v30  ;;  %v2875_v59 = vadd.f32 %v2838_v29, %v2538_v37  ;;  %v3368_v37 = vld [vmem:[#allocation3 + $0x20] sm:$0xff] }
 0x256   : > { %v2961_v10 = vld [vmem:[#allocation3 + $0xc0] sm:$0xff]  ;;  %v10109_v60 = vpop.f32.mrf.mxu0  ;;  %10399 = vmatmul.mubr.msk.f32.gmra.mxu0 %vm272_vm2, %v12299_v14 }
 0x257   : > { %v10156_v0 = vpop.f32.mrf.mxu1  ;;  %10446 = vmatmul.mubr.msk.f32.gmra.mxu1 %vm272_vm2, %v12036_v50  ;;  %3329 = vst.msk [vmem:[#allocation3 + $0xc8] sm:$0xff] %vm272_vm2, %v3299_v26  ;;  %v3298_v11 = vadd.f32 %v3245_v49, %v2961_v10  ;;  %2905 = vst.msk [vmem:[#allocation3 + $0xe0] sm:$0xff] %vm272_vm2, %v2875_v59  ;;  %v3702_v1 = vadd.f32 %v10109_v60, %v3365_v13  ;;  %10401 = vmatprep.mubr.msk.f32.mxu0 %vm272_vm2, %v12294_v53  ;;  %v12313_v49 = vld [vmem:[#allocation2 + $0x150] sm:$0xff]  ;;  %v12343_v59 = vld [vmem:[#allocation2 + $0x178] sm:$0xff] }
 0x258   : > { %10448 = vmatprep.mubr.msk.f32.mxu1 %vm272_vm2, %v12053_v39  ;;  %v2964_v7 = vld [vmem:[#allocation3 + $0xd8] sm:$0xff]  ;;  %v3552_v17 = vpop.f32.mrf.mxu0  ;;  %v12319_v39 = vld [vmem:[#allocation2 + $0x158] sm:$0xff] }
 0x259   : > { %v3979_v19 = vpop.f32.mrf.mxu1  ;;  %3328 = vst.msk [vmem:[#allocation3 + $0xc0] sm:$0xff] %vm272_vm2, %v3298_v11  ;;  %v3301_v57 = vadd.f32 %v10101_v27, %v2964_v7  ;;  %3732 = vst.msk [vmem:[#allocation3 + $0x8] sm:$0xff] %vm272_vm2, %v3702_v1  ;;  %v3701_v50 = vadd.f32 %v3552_v17, %v3364_v15  ;;  %v12347_v10 = vld [vmem:[#allocation2 + $0x170] sm:$0xff]  ;;  %v12359_v7 = vld [vmem:[#allocation2 + $0x180] sm:$0xff] }
 0x25a   : > { %v2963_v21 = vld [vmem:[#allocation3 + $0xd0] sm:$0xff]  ;;  %v10112_v18 = vpop.f32.mrf.mxu0  ;;  %10402 = vmatmul.mubr.msk.f32.gmra.mxu0 %vm272_vm2, %v12313_v49  ;;  %v3371_v60 = vld [vmem:[#allocation3 + $0x38] sm:$0xff] }
 0x25b   : > { %v10159_v12 = vpop.f32.mrf.mxu1  ;;  %10449 = vmatmul.mubr.msk.f32.gmra.mxu1 %vm272_vm2, %v12055_v32  ;;  %3331 = vst.msk [vmem:[#allocation3 + $0xd8] sm:$0xff] %vm272_vm2, %v3301_v57  ;;  %v3300_v27 = vadd.f32 %v3255_v16, %v2963_v21  ;;  %3731 = vst.msk [vmem:[#allocation3] sm:$0xff] %vm272_vm2, %v3701_v50  ;;  %v3704_v41 = vadd.f32 %v10112_v18, %v3367_v22  ;;  %10404 = vmatprep.mubr.msk.f32.mxu0 %vm272_vm2, %v12319_v39  ;;  %v3370_v17 = vld [vmem:[#allocation3 + $0x30] sm:$0xff]  ;;  %v3373_v18 = vld [vmem:[#allocation3 + $0x48] sm:$0xff] }
 0x25c   : > { %10451 = vmatprep.mubr.msk.f32.mxu1 %vm272_vm2, %v12073_v48  ;;  %v2966_v56 = vld [vmem:[#allocation3 + $0xe8] sm:$0xff]  ;;  %v3562_v52 = vpop.f32.mrf.mxu0  ;;  %v12335_v48 = vld [vmem:[#allocation2 + $0x168] sm:$0xff] }
 0x25d   : > { %v3989_v32 = vpop.f32.mrf.mxu1  ;;  %3330 = vst.msk [vmem:[#allocation3 + $0xd0] sm:$0xff] %vm272_vm2, %v3300_v27  ;;  %v3303_v24 = vadd.f32 %v10104_v62, %v2966_v56  ;;  %3734 = vst.msk [vmem:[#allocation3 + $0x18] sm:$0xff] %vm272_vm2, %v3704_v41  ;;  %v3703_v16 = vadd.f32 %v3562_v52, %v3366_v36  ;;  %v12361_v21 = vld [vmem:[#allocation2 + $0x188] sm:$0xff]  ;;  %v3372_v52 = vld [vmem:[#allocation3 + $0x40] sm:$0xff] }
 0x25e   : > { %v2965_v45 = vld [vmem:[#allocation3 + $0xe0] sm:$0xff]  ;;  %v10115_v35 = vpop.f32.mrf.mxu0  ;;  %10405 = vmatmul.mubr.msk.f32.gmra.mxu0 %vm272_vm2, %v12327_v33 }
 0x25f   : > { %v10162_v3 = vpop.f32.mrf.mxu1  ;;  %10452 = vmatmul.mubr.msk.f32.gmra.mxu1 %vm272_vm2, %v12075_v6  ;;  %3333 = vst.msk [vmem:[#allocation3 + $0xe8] sm:$0xff] %vm272_vm2, %v3303_v24  ;;  %v3302_v30 = vadd.f32 %v3265_v20, %v2965_v45  ;;  %3733 = vst.msk [vmem:[#allocation3 + $0x10] sm:$0xff] %vm272_vm2, %v3703_v16  ;;  %v3706_v62 = vadd.f32 %v10115_v35, %v3369_v38  ;;  %10407 = vmatprep.mubr.msk.f32.mxu0 %vm272_vm2, %v12335_v48  ;;  %v12377_v45 = vld [vmem:[#allocation2 + $0x198] sm:$0xff]  ;;  %v3375_v35 = vld [vmem:[#allocation3 + $0x58] sm:$0xff] }
 0x260   : > { %10454 = vmatprep.mubr.msk.f32.mxu1 %vm272_vm2, %v12093_v55  ;;  %v3792_v43 = vld [vmem:[#allocation3 + $0x8] sm:$0xff]  ;;  %v3572_v29 = vpop.f32.mrf.mxu0 }
 0x261   : > { %v3999_v26 = vpop.f32.mrf.mxu1  ;;  %3332 = vst.msk [vmem:[#allocation3 + $0xe0] sm:$0xff] %vm272_vm2, %v3302_v30  ;;  %v4129_v6 = vadd.f32 %v10156_v0, %v3792_v43  ;;  %3736 = vst.msk [vmem:[#allocation3 + $0x28] sm:$0xff] %vm272_vm2, %v3706_v62  ;;  %v3705_v20 = vadd.f32 %v3572_v29, %v3368_v37  ;;  %v3374_v29 = vld [vmem:[#allocation3 + $0x50] sm:$0xff] }
 0x262   : > { %v3791_v13 = vld [vmem:[#allocation3] sm:$0xff]  ;;  %v10118_v11 = vpop.f32.mrf.mxu0  ;;  %10408 = vmatmul.mubr.msk.f32.gmra.mxu0 %vm272_vm2, %v12347_v10 }
 0x263   : > { %v10165_v1 = vpop.f32.mrf.mxu1  ;;  %10455 = vmatmul.mubr.msk.f32.gmra.mxu1 %vm272_vm2, %v12095_v54  ;;  %4159 = vst.msk [vmem:[#allocation3 + $0x8] sm:$0xff] %vm272_vm2, %v4129_v6  ;;  %v4128_v55 = vadd.f32 %v3979_v19, %v3791_v13  ;;  %3735 = vst.msk [vmem:[#allocation3 + $0x20] sm:$0xff] %vm272_vm2, %v3705_v20  ;;  %v3708_v0 = vadd.f32 %v10118_v11, %v3371_v60  ;;  %10410 = vmatprep.mubr.msk.f32.mxu0 %vm272_vm2, %v12343_v59  ;;  %v12393_v13 = vld [vmem:[#allocation2 + $0x1a8] sm:$0xff]  ;;  %v3377_v11 = vld [vmem:[#allocation3 + $0x68] sm:$0xff] }
 0x264   : > { %10457 = vmatprep.mubr.msk.f32.mxu1 %vm272_vm2, %v12108_v8  ;;  %v3794_v15 = vld [vmem:[#allocation3 + $0x18] sm:$0xff]  ;;  %v3582_v57 = vpop.f32.mrf.mxu0 }
 0x265   : > { %v4009_v50 = vpop.f32.mrf.mxu1  ;;  %4158 = vst.msk [vmem:[#allocation3] sm:$0xff] %vm272_vm2, %v4128_v55  ;;  %v4131_v54 = vadd.f32 %v10159_v12, %v3794_v15  ;;  %3738 = vst.msk [vmem:[#allocation3 + $0x38] sm:$0xff] %vm272_vm2, %v3708_v0  ;;  %v3707_v19 = vadd.f32 %v3582_v57, %v3370_v17  ;;  %v12375_v12 = vld [vmem:[#allocation2 + $0x190] sm:$0xff]  ;;  %v3376_v57 = vld [vmem:[#allocation3 + $0x60] sm:$0xff] }
 0x266   : > { %v3793_v22 = vld [vmem:[#allocation3 + $0x10] sm:$0xff]  ;;  %v10121_v27 = vpop.f32.mrf.mxu0  ;;  %10411 = vmatmul.mubr.msk.f32.gmra.mxu0 %vm272_vm2, %v12359_v7 }
 0x267   : > { %v10168_v41 = vpop.f32.mrf.mxu1  ;;  %10458 = vmatmul.mubr.msk.f32.gmra.mxu1 %vm272_vm2, %v12110_v44  ;;  %4161 = vst.msk [vmem:[#allocation3 + $0x18] sm:$0xff] %vm272_vm2, %v4131_v54  ;;  %v4130_v8 = vadd.f32 %v3989_v32, %v3793_v22  ;;  %3737 = vst.msk [vmem:[#allocation3 + $0x30] sm:$0xff] %vm272_vm2, %v3707_v19  ;;  %v3710_v56 = vadd.f32 %v10121_v27, %v3373_v18  ;;  %10413 = vmatprep.mubr.msk.f32.mxu0 %vm272_vm2, %v12361_v21  ;;  %v12409_v22 = vld [vmem:[#allocation2 + $0x1b8] sm:$0xff]  ;;  %v3379_v27 = vld [vmem:[#allocation3 + $0x78] sm:$0xff] }
 0x268   : > { %10460 = vmatprep.mubr.msk.f32.mxu1 %vm272_vm2, %v12126_v46  ;;  %v3796_v36 = vld [vmem:[#allocation3 + $0x28] sm:$0xff]  ;;  %v3592_v24 = vpop.f32.mrf.mxu0 }
 0x269   : > { %v4019_v16 = vpop.f32.mrf.mxu1  ;;  %4160 = vst.msk [vmem:[#allocation3 + $0x10] sm:$0xff] %vm272_vm2, %v4130_v8  ;;  %v4133_v44 = vadd.f32 %v10162_v3, %v3796_v36  ;;  %3740 = vst.msk [vmem:[#allocation3 + $0x48] sm:$0xff] %vm272_vm2, %v3710_v56  ;;  %v3709_v32 = vadd.f32 %v3592_v24, %v3372_v52  ;;  %v12391_v3 = vld [vmem:[#allocation2 + $0x1a0] sm:$0xff]  ;;  %v3378_v24 = vld [vmem:[#allocation3 + $0x70] sm:$0xff] }
 0x26a   : > { %v3795_v38 = vld [vmem:[#allocation3 + $0x20] sm:$0xff]  ;;  %v10124_v30 = vpop.f32.mrf.mxu0  ;;  %10414 = vmatmul.mubr.msk.f32.gmra.mxu0 %vm272_vm2, %v12375_v12 }
 0x26b   : > { %v10171_v62 = vpop.f32.mrf.mxu1  ;;  %10461 = vmatmul.mubr.msk.f32.gmra.mxu1 %vm272_vm2, %v12128_v34  ;;  %4163 = vst.msk [vmem:[#allocation3 + $0x28] sm:$0xff] %vm272_vm2, %v4133_v44  ;;  %v4132_v46 = vadd.f32 %v3999_v26, %v3795_v38  ;;  %3739 = vst.msk [vmem:[#allocation3 + $0x40] sm:$0xff] %vm272_vm2, %v3709_v32  ;;  %v3712_v43 = vadd.f32 %v10124_v30, %v3375_v35  ;;  %10416 = vmatprep.mubr.msk.f32.mxu0 %vm272_vm2, %v12377_v45  ;;  %v12425_v38 = vld [vmem:[#allocation2 + $0x1c8] sm:$0xff]  ;;  %v3381_v30 = vld [vmem:[#allocation3 + $0x88] sm:$0xff] }
 0x26c   : > { %10463 = vmatprep.mubr.msk.f32.mxu1 %vm272_vm2, %v12144_v61  ;;  %v3798_v37 = vld [vmem:[#allocation3 + $0x38] sm:$0xff]  ;;  %v3602_v6 = vpop.f32.mrf.mxu0 }
 0x26d   : > { %v4029_v20 = vpop.f32.mrf.mxu1  ;;  %4162 = vst.msk [vmem:[#allocation3 + $0x20] sm:$0xff] %vm272_vm2, %v4132_v46  ;;  %v4135_v34 = vadd.f32 %v10165_v1, %v3798_v37  ;;  %3742 = vst.msk [vmem:[#allocation3 + $0x58] sm:$0xff] %vm272_vm2, %v3712_v43  ;;  %v3711_v26 = vadd.f32 %v3602_v6, %v3374_v29  ;;  %v12407_v1 = vld [vmem:[#allocation2 + $0x1b0] sm:$0xff]  ;;  %v3380_v6 = vld [vmem:[#allocation3 + $0x80] sm:$0xff] }
 0x26e   : > { %v3797_v60 = vld [vmem:[#allocation3 + $0x30] sm:$0xff]  ;;  %v10127_v55 = vpop.f32.mrf.mxu0  ;;  %10417 = vmatmul.mubr.msk.f32.gmra.mxu0 %vm272_vm2, %v12391_v3 }
 0x26f   : > { %v10174_v0 = vpop.f32.mrf.mxu1  ;;  %10464 = vmatmul.mubr.msk.f32.gmra.mxu1 %vm272_vm2, %v12146_v2  ;;  %4165 = vst.msk [vmem:[#allocation3 + $0x38] sm:$0xff] %vm272_vm2, %v4135_v34  ;;  %v4134_v61 = vadd.f32 %v4009_v50, %v3797_v60  ;;  %3741 = vst.msk [vmem:[#allocation3 + $0x50] sm:$0xff] %vm272_vm2, %v3711_v26  ;;  %v3714_v15 = vadd.f32 %v10127_v55, %v3377_v11  ;;  %10419 = vmatprep.mubr.msk.f32.mxu0 %vm272_vm2, %v12393_v13  ;;  %v12441_v60 = vld [vmem:[#allocation2 + $0x1d8] sm:$0xff]  ;;  %v3383_v55 = vld [vmem:[#allocation3 + $0x98] sm:$0xff] }
 0x270   : > { %10466 = vmatprep.mubr.msk.f32.mxu1 %vm272_vm2, %v12161_v63  ;;  %v3800_v17 = vld [vmem:[#allocation3 + $0x48] sm:$0xff]  ;;  %v3612_v54 = vpop.f32.mrf.mxu0 }
 0x271   : > { %v4039_v19 = vpop.f32.mrf.mxu1  ;;  %4164 = vst.msk [vmem:[#allocation3 + $0x30] sm:$0xff] %vm272_vm2, %v4134_v61  ;;  %v4137_v2 = vadd.f32 %v10168_v41, %v3800_v17  ;;  %3744 = vst.msk [vmem:[#allocation3 + $0x68] sm:$0xff] %vm272_vm2, %v3714_v15  ;;  %v3713_v50 = vadd.f32 %v3612_v54, %v3376_v57  ;;  %v12423_v41 = vld [vmem:[#allocation2 + $0x1c0] sm:$0xff]  ;;  %v12457_v54 = vld [vmem:[#allocation2 + $0x1e8] sm:$0xff] }
 0x272   : > { %v3799_v18 = vld [vmem:[#allocation3 + $0x40] sm:$0xff]  ;;  %v10130_v8 = vpop.f32.mrf.mxu0  ;;  %10420 = vmatmul.mubr.msk.f32.gmra.mxu0 %vm272_vm2, %v12407_v1  ;;  %v6336_v57 = vld [vmem:[#allocation2 + $0x1e1] sm:$0xff] }
 0x273   : > { %v10177_v56 = vpop.f32.mrf.mxu1  ;;  %10467 = vmatmul.mubr.msk.f32.gmra.mxu1 %vm272_vm2, %v12163_v40  ;;  %4167 = vst.msk [vmem:[#allocation3 + $0x48] sm:$0xff] %vm272_vm2, %v4137_v2  ;;  %v4136_v63 = vadd.f32 %v4019_v16, %v3799_v18  ;;  %3743 = vst.msk [vmem:[#allocation3 + $0x60] sm:$0xff] %vm272_vm2, %v3713_v50  ;;  %v3716_v36 = vadd.f32 %v10130_v8, %v3379_v27  ;;  %10422 = vmatprep.mubr.msk.f32.mxu0 %vm272_vm2, %v12409_v22  ;;  %v3382_v50 = vld [vmem:[#allocation3 + $0x90] sm:$0xff] }
 0x274   : > { %10469 = vmatprep.mubr.msk.f32.mxu1 %vm272_vm2, %v12178_v28  ;;  %v3802_v52 = vld [vmem:[#allocation3 + $0x58] sm:$0xff]  ;;  %v3622_v44 = vpop.f32.mrf.mxu0 }
 0x275   : > { %v4049_v32 = vpop.f32.mrf.mxu1  ;;  %4166 = vst.msk [vmem:[#allocation3 + $0x40] sm:$0xff] %vm272_vm2, %v4136_v63  ;;  %v4139_v40 = vadd.f32 %v10171_v62, %v3802_v52  ;;  %3746 = vst.msk [vmem:[#allocation3 + $0x78] sm:$0xff] %vm272_vm2, %v3716_v36  ;;  %v3715_v16 = vadd.f32 %v3622_v44, %v3378_v24  ;;  %v12439_v62 = vld [vmem:[#allocation2 + $0x1d0] sm:$0xff]  ;;  %v3385_v36 = vld [vmem:[#allocation3 + $0xa8] sm:$0xff] }
 0x276   : > { %v3801_v35 = vld [vmem:[#allocation3 + $0x50] sm:$0xff]  ;;  %v10133_v46 = vpop.f32.mrf.mxu0  ;;  %10423 = vmatmul.mubr.msk.f32.gmra.mxu0 %vm272_vm2, %v12423_v41 }
 0x277   : > { %v10180_v43 = vpop.f32.mrf.mxu1  ;;  %10470 = vmatmul.mubr.msk.f32.gmra.mxu1 %vm272_vm2, %v12180_v47  ;;  %4169 = vst.msk [vmem:[#allocation3 + $0x58] sm:$0xff] %vm272_vm2, %v4139_v40  ;;  %v4138_v28 = vadd.f32 %v4029_v20, %v3801_v35  ;;  %3745 = vst.msk [vmem:[#allocation3 + $0x70] sm:$0xff] %vm272_vm2, %v3715_v16  ;;  %v3718_v37 = vadd.f32 %v10133_v46, %v3381_v30  ;;  %10425 = vmatprep.mubr.msk.f32.mxu0 %vm272_vm2, %v12425_v38  ;;  %v6337_v27 = vld [vmem:[#allocation2 + $0x1e9] sm:$0xff]  ;;  %v6338_v40 = vld [vmem:[#allocation2 + $0x1f1] sm:$0xff] }
 0x278   : > { %10472 = vmatprep.mubr.msk.f32.mxu1 %vm272_vm2, %v12195_v5  ;;  %v3804_v29 = vld [vmem:[#allocation3 + $0x68] sm:$0xff]  ;;  %v3632_v34 = vpop.f32.mrf.mxu0  ;;  %v3384_v35 = vld [vmem:[#allocation3 + $0xa0] sm:$0xff] }
 0x279   : > { %v4059_v26 = vpop.f32.mrf.mxu1  ;;  %4168 = vst.msk [vmem:[#allocation3 + $0x50] sm:$0xff] %vm272_vm2, %v4138_v28  ;;  %v4141_v47 = vadd.f32 %v10174_v0, %v3804_v29  ;;  %3748 = vst.msk [vmem:[#allocation3 + $0x88] sm:$0xff] %vm272_vm2, %v3718_v37  ;;  %v3717_v20 = vadd.f32 %v3632_v34, %v3380_v6  ;;  %v12455_v0 = vld [vmem:[#allocation2 + $0x1e0] sm:$0xff]  ;;  %v3387_v29 = vld [vmem:[#allocation3 + $0xb8] sm:$0xff] }
 0x27a   : > { %v3803_v11 = vld [vmem:[#allocation3 + $0x60] sm:$0xff]  ;;  %v10136_v61 = vpop.f32.mrf.mxu0  ;;  %10426 = vmatmul.mubr.msk.f32.gmra.mxu0 %vm272_vm2, %v12439_v62 }
 0x27b   : > { %v10183_v15 = vpop.f32.mrf.mxu1  ;;  %10473 = vmatmul.mubr.msk.f32.gmra.mxu1 %vm272_vm2, %v12197_v9  ;;  %4171 = vst.msk [vmem:[#allocation3 + $0x68] sm:$0xff] %vm272_vm2, %v4141_v47  ;;  %v4140_v5 = vadd.f32 %v4039_v19, %v3803_v11  ;;  %3747 = vst.msk [vmem:[#allocation3 + $0x80] sm:$0xff] %vm272_vm2, %v3717_v20  ;;  %v3720_v17 = vadd.f32 %v10136_v61, %v3383_v55  ;;  %10428 = vmatprep.mubr.msk.f32.mxu0 %vm272_vm2, %v12441_v60  ;;  %v6735_v47 = vld [vmem:[#allocation2 + $0x10a] sm:$0xff] }
 0x27c   : > { %10475 = vmatprep.mubr.msk.f32.mxu1 %vm272_vm2, %v12214_v51  ;;  %v3806_v2 = vld [vmem:[#allocation3 + $0x78] sm:$0xff]  ;;  %v3642_v9 = vpop.f32.mrf.mxu0  ;;  %v3386_v55 = vld [vmem:[#allocation3 + $0xb0] sm:$0xff] }
 0x27d   : > { %v4069_v18 = vpop.f32.mrf.mxu1  ;;  %4170 = vst.msk [vmem:[#allocation3 + $0x60] sm:$0xff] %vm272_vm2, %v4140_v5  ;;  %v4143_v19 = vadd.f32 %v10177_v56, %v3806_v2  ;;  %3750 = vst.msk [vmem:[#allocation3 + $0x98] sm:$0xff] %vm272_vm2, %v3720_v17  ;;  %v3719_v8 = vadd.f32 %v3642_v9, %v3382_v50  ;;  %v12469_v56 = vld [vmem:[#allocation2 + $0x1f0] sm:$0xff]  ;;  %v3389_v50 = vld [vmem:[#allocation3 + $0xc8] sm:$0xff] }
 0x27e   : > { %v3805_v63 = vld [vmem:[#allocation3 + $0x70] sm:$0xff]  ;;  %v10139_v52 = vpop.f32.mrf.mxu0  ;;  %10429 = vmatmul.mubr.msk.f32.gmra.mxu0 %vm272_vm2, %v12455_v0  ;;  %v6736_v2 = vld [vmem:[#allocation2 + $0x112] sm:$0xff] }
 0x27f   : > { %v10186_v51 = vpop.f32.mrf.mxu1  ;;  %10476 = vmatmul.mubr.msk.f32.gmra.mxu1 %vm272_vm2, %v6336_v57  ;;  %4173 = vst.msk [vmem:[#allocation3 + $0x78] sm:$0xff] %vm272_vm2, %v4143_v19  ;;  %v4142_v24 = vadd.f32 %v4049_v32, %v3805_v63  ;;  %3749 = vst.msk [vmem:[#allocation3 + $0x90] sm:$0xff] %vm272_vm2, %v3719_v8  ;;  %v3722_v44 = vadd.f32 %v10139_v52, %v3385_v36  ;;  %10431 = vmatprep.mubr.msk.f32.mxu0 %vm272_vm2, %v12457_v54  ;;  %v3388_v63 = vld [vmem:[#allocation3 + $0xc0] sm:$0xff] }
 0x280   : > { %10478 = vmatprep.mubr.msk.f32.mxu1 %vm272_vm2, %v6337_v27  ;;  %v3808_v16 = vld [vmem:[#allocation3 + $0x88] sm:$0xff]  ;;  %v3652_v30 = vpop.f32.mrf.mxu0 }
 0x281   : > { %v4079_v46 = vpop.f32.mrf.mxu1  ;;  %4172 = vst.msk [vmem:[#allocation3 + $0x70] sm:$0xff] %vm272_vm2, %v4142_v24  ;;  %v4145_v28 = vadd.f32 %v10180_v43, %v3808_v16  ;;  %3752 = vst.msk [vmem:[#allocation3 + $0xa8] sm:$0xff] %vm272_vm2, %v3722_v44  ;;  %v3721_v32 = vadd.f32 %v3652_v30, %v3384_v35  ;;  %v12495_v24 = vld [vmem:[#allocation2 + $0x122] sm:$0xff]  ;;  %v3391_v44 = vld [vmem:[#allocation3 + $0xd8] sm:$0xff] }
 0x282   : > { %v3807_v37 = vld [vmem:[#allocation3 + $0x80] sm:$0xff]  ;;  %v10142_v6 = vpop.f32.mrf.mxu0  ;;  %10432 = vmatmul.mubr.msk.f32.gmra.mxu0 %vm272_vm2, %v12469_v56  ;;  %v3390_v30 = vld [vmem:[#allocation3 + $0xd0] sm:$0xff] }
 0x283   : > { %v10189_v34 = vpop.f32.mrf.mxu1  ;;  %10479 = vmatmul.mubr.msk.f32.gmra.mxu1 %vm272_vm2, %v6338_v40  ;;  %4175 = vst.msk [vmem:[#allocation3 + $0x88] sm:$0xff] %vm272_vm2, %v4145_v28  ;;  %v4144_v20 = vadd.f32 %v4059_v26, %v3807_v37  ;;  %3751 = vst.msk [vmem:[#allocation3 + $0xa0] sm:$0xff] %vm272_vm2, %v3721_v32  ;;  %v3724_v11 = vadd.f32 %v10142_v6, %v3387_v29  ;;  %10483 = vmatprep.mubr.msk.f32.mxu0 %vm272_vm2, %v6735_v47  ;;  %v3393_v6 = vld [vmem:[#allocation3 + $0xe8] sm:$0xff] }
 0x284   : > { %10530 = vmatprep.mubr.msk.f32.mxu1 %vm272_vm2, %v12259_v23  ;;  %v3810_v43 = vld [vmem:[#allocation3 + $0x98] sm:$0xff]  ;;  %v3662_v61 = vpop.f32.mrf.mxu0  ;;  %v6737_v23 = vld [vmem:[#allocation2 + $0x11a] sm:$0xff] }
 0x285   : > { %v4089_v5 = vpop.f32.mrf.mxu1  ;;  %4174 = vst.msk [vmem:[#allocation3 + $0x80] sm:$0xff] %vm272_vm2, %v4144_v20  ;;  %v4147_v17 = vadd.f32 %v10183_v15, %v3810_v43  ;;  %3754 = vst.msk [vmem:[#allocation3 + $0xb8] sm:$0xff] %vm272_vm2, %v3724_v11  ;;  %v3723_v57 = vadd.f32 %v3662_v61, %v3386_v55  ;;  %v3392_v55 = vld [vmem:[#allocation3 + $0xe0] sm:$0xff] }
 0x286   : > { %v3809_v26 = vld [vmem:[#allocation3 + $0x90] sm:$0xff]  ;;  %v10145_v9 = vpop.f32.mrf.mxu0  ;;  %10484 = vmatmul.mubr.msk.f32.vlgmr.msra.gmra.mxu0 %vm272_vm2, %v6736_v2 }
 0x287   : > { %v10192_v27 = vpop.f32.mrf.mxu1  ;;  %10531 = vmatmul.mubr.msk.f32.vlgmr.msra.gmra.mxu1 %vm272_vm2, %v12267_v25  ;;  %4177 = vst.msk [vmem:[#allocation3 + $0x98] sm:$0xff] %vm272_vm2, %v4147_v17  ;;  %v4146_v19 = vadd.f32 %v4069_v18, %v3809_v26  ;;  %3753 = vst.msk [vmem:[#allocation3 + $0xb0] sm:$0xff] %vm272_vm2, %v3723_v57  ;;  %v3726_v15 = vadd.f32 %v10145_v9, %v3389_v50  ;;  %10576 = vmatpush3.msra.mxu0 %v12238_v31  ;;  %v12529_v57 = vld [vmem:[#allocation2 + $0x142] sm:$0xff] }
 0x288   : > { %10486 = vmatprep.mubr.msk.f32.mxu0 %vm272_vm2, %v6737_v23  ;;  %v3812_v8 = vld [vmem:[#allocation3 + $0xa8] sm:$0xff]  ;;  %v3672_v36 = vpop.f32.mrf.mxu0  ;;  %10533 = vmatprep.mubr.msk.f32.mxu1 %vm272_vm2, %v12276_v58  ;;  %v12501_v58 = vld [vmem:[#allocation2 + $0x12a] sm:$0xff] }
 0x289   : > { %v4099_v52 = vpop.f32.mrf.mxu1  ;;  %10623 = vmatpush3.msra.mxu1 %v12247_v42  ;;  %4176 = vst.msk [vmem:[#allocation3 + $0x90] sm:$0xff] %vm272_vm2, %v4146_v19  ;;  %v4149_v25 = vadd.f32 %v10186_v51, %v3812_v8  ;;  %3756 = vst.msk [vmem:[#allocation3 + $0xc8] sm:$0xff] %vm272_vm2, %v3726_v15  ;;  %v3725_v18 = vadd.f32 %v3672_v36, %v3388_v63  ;;  %v4219_v26 = vld [vmem:[#allocation3 + $0x8] sm:$0xff]  ;;  %v4218_v15 = vld [vmem:[#allocation3] sm:$0xff] }
 0x28a   : > { %v3811_v31 = vld [vmem:[#allocation3 + $0xa0] sm:$0xff]  ;;  %v10148_v40 = vpop.f32.mrf.mxu0  ;;  %10487 = vmatmul.mubr.msk.f32.gmra.mxu0 %vm272_vm2, %v12495_v24 }
 0x28b   : > { %v10195_v16 = vpop.f32.mrf.mxu1  ;;  %10534 = vmatmul.mubr.msk.f32.gmra.mxu1 %vm272_vm2, %v12285_v4  ;;  %4179 = vst.msk [vmem:[#allocation3 + $0xa8] sm:$0xff] %vm272_vm2, %v4149_v25  ;;  %v4148_v42 = vadd.f32 %v4079_v46, %v3811_v31  ;;  %3755 = vst.msk [vmem:[#allocation3 + $0xc0] sm:$0xff] %vm272_vm2, %v3725_v18  ;;  %v3728_v51 = vadd.f32 %v10148_v40, %v3391_v44  ;;  %10489 = vmatprep.mubr.msk.f32.mxu0 %vm272_vm2, %v12501_v58  ;;  %v12511_v46 = vld [vmem:[#allocation2 + $0x132] sm:$0xff] }
 0x28c   : > { %10536 = vmatprep.mubr.msk.f32.mxu1 %vm272_vm2, %v12299_v14  ;;  %v3814_v35 = vld [vmem:[#allocation3 + $0xb8] sm:$0xff]  ;;  %v3682_v28 = vpop.f32.mrf.mxu0  ;;  %v12517_v14 = vld [vmem:[#allocation2 + $0x13a] sm:$0xff] }
 0x28d   : > { %v4109_v32 = vpop.f32.mrf.mxu1  ;;  %4178 = vst.msk [vmem:[#allocation3 + $0xa0] sm:$0xff] %vm272_vm2, %v4148_v42  ;;  %v4151_v4 = vadd.f32 %v10189_v34, %v3814_v35  ;;  %3758 = vst.msk [vmem:[#allocation3 + $0xd8] sm:$0xff] %vm272_vm2, %v3728_v51  ;;  %v3727_v37 = vadd.f32 %v3682_v28, %v3390_v30  ;;  %v4221_v18 = vld [vmem:[#allocation3 + $0x18] sm:$0xff]  ;;  %v4220_v51 = vld [vmem:[#allocation3 + $0x10] sm:$0xff] }
 0x28e   : > { %v3813_v29 = vld [vmem:[#allocation3 + $0xb0] sm:$0xff]  ;;  %v10151_v47 = vpop.f32.mrf.mxu0  ;;  %10490 = vmatmul.mubr.msk.f32.gmra.mxu0 %vm272_vm2, %v12511_v46 }
 0x28f   : > { %v10198_v20 = vpop.f32.mrf.mxu1  ;;  %10537 = vmatmul.mubr.msk.f32.gmra.mxu1 %vm272_vm2, %v12294_v53  ;;  %4181 = vst.msk [vmem:[#allocation3 + $0xb8] sm:$0xff] %vm272_vm2, %v4151_v4  ;;  %v4150_v34 = vadd.f32 %v4089_v5, %v3813_v29  ;;  %3757 = vst.msk [vmem:[#allocation3 + $0xd0] sm:$0xff] %vm272_vm2, %v3727_v37  ;;  %v3730_v11 = vadd.f32 %v10151_v47, %v3393_v6  ;;  %10492 = vmatprep.mubr.msk.f32.mxu0 %vm272_vm2, %v12517_v14  ;;  %v12568_v37 = vld [vmem:[#allocation2 + $0x162] sm:$0xff] }
 0x290   : > { %10539 = vmatprep.mubr.msk.f32.mxu1 %vm272_vm2, %v12313_v49  ;;  %v3816_v43 = vld [vmem:[#allocation3 + $0xc8] sm:$0xff]  ;;  %v3692_v61 = vpop.f32.mrf.mxu0  ;;  %v12535_v49 = vld [vmem:[#allocation2 + $0x14a] sm:$0xff] }
 0x291   : > { %v12525_v17 = vpop.f32.mrf.mxu1  ;;  %4180 = vst.msk [vmem:[#allocation3 + $0xb0] sm:$0xff] %vm272_vm2, %v4150_v34  ;;  %v4153_v53 = vadd.f32 %v10192_v27, %v3816_v43  ;;  %3760 = vst.msk [vmem:[#allocation3 + $0xe8] sm:$0xff] %vm272_vm2, %v3730_v11  ;;  %v3729_v5 = vadd.f32 %v3692_v61, %v3392_v55  ;;  %v4223_v6 = vld [vmem:[#allocation3 + $0x28] sm:$0xff]  ;;  %v12580_v34 = vld [vmem:[#allocation2 + $0x16a] sm:$0xff] }
 0x292   : > { %v3815_v2 = vld [vmem:[#allocation3 + $0xc0] sm:$0xff]  ;;  %v10203_v50 = vpop.f32.mrf.mxu0  ;;  %10493 = vmatmul.mubr.msk.f32.gmra.mxu0 %vm272_vm2, %v12529_v57 }
 0x293   : > { %v10250_v9 = vpop.f32.mrf.mxu1  ;;  %10540 = vmatmul.mubr.msk.f32.gmra.mxu1 %vm272_vm2, %v12319_v39  ;;  %4183 = vst.msk [vmem:[#allocation3 + $0xc8] sm:$0xff] %vm272_vm2, %v4153_v53  ;;  %v4152_v27 = vadd.f32 %v4099_v52, %v3815_v2  ;;  %3759 = vst.msk [vmem:[#allocation3 + $0xe0] sm:$0xff] %vm272_vm2, %v3729_v5  ;;  %v4556_v23 = vadd.f32 %v10203_v50, %v4219_v26  ;;  %10495 = vmatprep.mubr.msk.f32.mxu0 %vm272_vm2, %v12535_v49  ;;  %v12545_v52 = vld [vmem:[#allocation2 + $0x152] sm:$0xff]  ;;  %v12591_v2 = vld [vmem:[#allocation2 + $0x17a] sm:$0xff] }
 0x294   : > { %10542 = vmatprep.mubr.msk.f32.mxu1 %vm272_vm2, %v12327_v33  ;;  %v3818_v19 = vld [vmem:[#allocation3 + $0xd8] sm:$0xff]  ;;  %v4406_v8 = vpop.f32.mrf.mxu0  ;;  %v12552_v33 = vld [vmem:[#allocation2 + $0x15a] sm:$0xff] }
 0x295   : > { %v4852_v63 = vpop.f32.mrf.mxu1  ;;  %4182 = vst.msk [vmem:[#allocation3 + $0xc0] sm:$0xff] %vm272_vm2, %v4152_v27  ;;  %v4155_v39 = vadd.f32 %v10195_v16, %v3818_v19  ;;  %4586 = vst.msk [vmem:[#allocation3 + $0x8] sm:$0xff] %vm272_vm2, %v4556_v23  ;;  %v4555_v36 = vadd.f32 %v4406_v8, %v4218_v15  ;;  %v12599_v26 = vld [vmem:[#allocation2 + $0x172] sm:$0xff]  ;;  %v12615_v8 = vld [vmem:[#allocation2 + $0x182] sm:$0xff] }
 0x296   : > { %v3817_v25 = vld [vmem:[#allocation3 + $0xd0] sm:$0xff]  ;;  %v10206_v31 = vpop.f32.mrf.mxu0  ;;  %10496 = vmatmul.mubr.msk.f32.gmra.mxu0 %vm272_vm2, %v12545_v52 }
 0x297   : > { %v10253_v44 = vpop.f32.mrf.mxu1  ;;  %10543 = vmatmul.mubr.msk.f32.gmra.mxu1 %vm272_vm2, %v12335_v48  ;;  %4185 = vst.msk [vmem:[#allocation3 + $0xd8] sm:$0xff] %vm272_vm2, %v4155_v39  ;;  %v4154_v40 = vadd.f32 %v4109_v32, %v3817_v25  ;;  %4585 = vst.msk [vmem:[#allocation3] sm:$0xff] %vm272_vm2, %v4555_v36  ;;  %v4558_v16 = vadd.f32 %v10206_v31, %v4221_v18  ;;  %10498 = vmatprep.mubr.msk.f32.mxu0 %vm272_vm2, %v12552_v33  ;;  %v12565_v32 = vld [vmem:[%s13168_s5] ss:$0 sm:$0xff]  ;;  %v4224_v39 = vld [vmem:[#allocation3 + $0x30] sm:$0xff] }
 0x298   : > { %10545 = vmatprep.mubr.msk.f32.mxu1 %vm272_vm2, %v12347_v10  ;;  %v3820_v42 = vld [vmem:[#allocation3 + $0xe8] sm:$0xff]  ;;  %v4416_v35 = vpop.f32.mrf.mxu0  ;;  %v4858_v29 = vadd.f32 %v12565_v32, %v10250_v9  ;;  %v4225_v9 = vld [vmem:[#allocation3 + $0x38] sm:$0xff]  ;;  %v4868_v19 = vadd.f32 %v12565_v32, %v10253_v44 }
 0x299   : > { %v4862_v30 = vpop.f32.mrf.mxu1  ;;  %4184 = vst.msk [vmem:[#allocation3 + $0xd0] sm:$0xff] %vm272_vm2, %v4154_v40  ;;  %v4157_v48 = vadd.f32 %v10198_v20, %v3820_v42  ;;  %4588 = vst.msk [vmem:[#allocation3 + $0x18] sm:$0xff] %vm272_vm2, %v4558_v16  ;;  %v4557_v28 = vadd.f32 %v4416_v35, %v4220_v51  ;;  %v12617_v25 = vld [vmem:[#allocation2 + $0x18a] sm:$0xff]  ;;  %v4227_v31 = vld [vmem:[#allocation3 + $0x48] sm:$0xff] }
 0x29a   : > { %v4863_v4 = vadd.f32 %v12565_v32, %v4862_v30  ;;  %v3819_v10 = vld [vmem:[#allocation3 + $0xe0] sm:$0xff]  ;;  %v10209_v47 = vpop.f32.mrf.mxu0  ;;  %10499 = vmatmul.mubr.msk.f32.gmra.mxu0 %vm272_vm2, %v12568_v37 }
 0x29b   : > { %v10256_v20 = vpop.f32.mrf.mxu1  ;;  %10546 = vmatmul.mubr.msk.f32.gmra.mxu1 %vm272_vm2, %v12343_v59  ;;  %4187 = vst.msk [vmem:[#allocation3 + $0xe8] sm:$0xff] %vm272_vm2, %v4157_v48  ;;  %v4156_v11 = vadd.f32 %v12525_v17, %v3819_v10  ;;  %4587 = vst.msk [vmem:[#allocation3 + $0x10] sm:$0xff] %vm272_vm2, %v4557_v28  ;;  %v4560_v43 = vadd.f32 %v10209_v47, %v4223_v6  ;;  %10501 = vmatprep.mubr.msk.f32.mxu0 %vm272_vm2, %v12580_v34  ;;  %v4222_v59 = vld [vmem:[#allocation3 + $0x20] sm:$0xff]  ;;  %v4229_v10 = vld [vmem:[#allocation3 + $0x58] sm:$0xff] }
 0x29c   : > { %v4878_v55 = vadd.f32 %v12565_v32, %v10256_v20  ;;  %10548 = vmatprep.mubr.msk.f32.mxu1 %vm272_vm2, %v12359_v7  ;;  %v4616_v61 = vld [vmem:[#allocation3 + $0x8] sm:$0x7f]  ;;  %5003 = vst.msk [vmem:[#allocation3 + $0x10] sm:$0xff] %vm272_vm2, %v4863_v4  ;;  %v4426_v53 = vpop.f32.mrf.mxu0  ;;  %v4853_v17 = vadd.f32 %v12565_v32, %v4852_v63  ;;  %v12633_v42 = vld [vmem:[#allocation2 + $0x192] sm:$0xff] }
 0x29d   : > { %v4872_v5 = vpop.f32.mrf.mxu1  ;;  %4186 = vst.msk [vmem:[#allocation3 + $0xe0] sm:$0xff] %vm272_vm2, %v4156_v11  ;;  %5002 = vst.msk [vmem:[#allocation3 + $0x8] sm:$0xff] %vm272_vm2, %v4858_v29  ;;  %v4559_v7 = vadd.f32 %v4426_v53, %v4222_v59  ;;  %v4226_v51 = vld [vmem:[#allocation3 + $0x40] sm:$0xff]  ;;  %v12653_v11 = vld [vmem:[#allocation2 + $0x1a2] sm:$0xff] }
 0x29e   : > { %4619 = vst.msk [vmem:[%s12573_s9 + $0x8] sm:$0x7f] %vm4618_vm3, %v4616_v61  ;;  %v4615_v50 = vld [vmem:[#allocation3] sm:$0xff]  ;;  %v10212_v27 = vpop.f32.mrf.mxu0  ;;  %10502 = vmatmul.mubr.msk.f32.gmra.mxu0 %vm272_vm2, %v12599_v26  ;;  %v12656_v59 = vld [vmem:[#allocation2 + $0x1aa] sm:$0xff] }
 0x29f   : > { %4590 = vst.msk [vmem:[#allocation3 + $0x28] sm:$0xff] %vm272_vm2, %v4560_v43  ;;  %v10259_v23 = vpop.f32.mrf.mxu1  ;;  %10549 = vmatmul.mubr.msk.f32.gmra.mxu1 %vm272_vm2, %v12361_v21  ;;  %4617 = vst.msk [vmem:[%s12573_s9] sm:$0xff] %vm272_vm2, %v4615_v50  ;;  %v4562_v15 = vadd.f32 %v10212_v27, %v4225_v9  ;;  %10504 = vmatprep.mubr.msk.f32.mxu0 %vm272_vm2, %v12591_v2  ;;  %v12635_v48 = vld [vmem:[#allocation2 + $0x19a] sm:$0xff]  ;;  %v4228_v43 = vld [vmem:[#allocation3 + $0x50] sm:$0xff] }
 0x2a0   : > { %5006 = vst.msk [vmem:[#allocation3 + $0x28] sm:$0xff] %vm272_vm2, %v4878_v55  ;;  %5001 = vst.msk [vmem:[#allocation3] sm:$0xff] %vm272_vm2, %v4853_v17  ;;  %10551 = vmatprep.mubr.msk.f32.mxu1 %vm272_vm2, %v12375_v12  ;;  %v4620_v63 = vld [vmem:[#allocation3 + $0x18] sm:$0xff]  ;;  %v4436_v21 = vpop.f32.mrf.mxu0  ;;  %v4873_v12 = vadd.f32 %v12565_v32, %v4872_v5  ;;  %v4231_v17 = vld [vmem:[#allocation3 + $0x68] sm:$0xff] }
 0x2a1   : > { %4589 = vst.msk [vmem:[#allocation3 + $0x20] sm:$0xff] %vm272_vm2, %v4559_v7  ;;  %v4882_v36 = vpop.f32.mrf.mxu1  ;;  %8869 = vst.msk [vmem:[%s12573_s9 + $0x10] sm:$0xff] %vm272_vm2, %v4620_v63  ;;  %v4561_v18 = vadd.f32 %v4436_v21, %v4224_v39  ;;  %v12679_v39 = vld [vmem:[#allocation2 + $0x1ba] sm:$0xff] }
 0x2a2   : > { %5004 = vst.msk [vmem:[#allocation3 + $0x18] sm:$0xff] %vm272_vm2, %v4868_v19  ;;  %4592 = vst.msk [vmem:[#allocation3 + $0x38] sm:$0xff] %vm272_vm2, %v4562_v15  ;;  %v10215_v44 = vpop.f32.mrf.mxu0  ;;  %10505 = vmatmul.mubr.msk.f32.gmra.mxu0 %vm272_vm2, %v12615_v8  ;;  %v4883_v53 = vadd.f32 %v12565_v32, %v4882_v36  ;;  %v4230_v15 = vld [vmem:[#allocation3 + $0x60] sm:$0xff]  ;;  %v4233_v36 = vld [vmem:[#allocation3 + $0x78] sm:$0xff] }
 0x2a3   : > { %v10262_v40 = vpop.f32.mrf.mxu1  ;;  %10552 = vmatmul.mubr.msk.f32.gmra.mxu1 %vm272_vm2, %v12377_v45  ;;  %4591 = vst.msk [vmem:[#allocation3 + $0x30] sm:$0xff] %vm272_vm2, %v4561_v18  ;;  %v4564_v16 = vadd.f32 %v10215_v44, %v4227_v31  ;;  %10507 = vmatprep.mubr.msk.f32.mxu0 %vm272_vm2, %v12617_v25 }
 0x2a4   : > { %10554 = vmatprep.mubr.msk.f32.mxu1 %vm272_vm2, %v12391_v3  ;;  %v4446_v35 = vpop.f32.mrf.mxu0  ;;  %v4888_v3 = vadd.f32 %v12565_v32, %v10259_v23  ;;  %v4898_v9 = vadd.f32 %v12565_v32, %v10262_v40  ;;  %v12677_v23 = vld [vmem:[#allocation2 + $0x1b2] sm:$0xff]  ;;  %v12695_v40 = vld [vmem:[#allocation2 + $0x1c2] sm:$0xff] }
 0x2a5   : > { %v4892_v30 = vpop.f32.mrf.mxu1  ;;  %4594 = vst.msk [vmem:[#allocation3 + $0x48] sm:$0xff] %vm272_vm2, %v4564_v16  ;;  %v4563_v45 = vadd.f32 %v4446_v35, %v4226_v51  ;;  %v12697_v35 = vld [vmem:[#allocation2 + $0x1ca] sm:$0xff] }
 0x2a6   : > { %v4893_v28 = vadd.f32 %v12565_v32, %v4892_v30  ;;  %v10218_v29 = vpop.f32.mrf.mxu0  ;;  %10508 = vmatmul.mubr.msk.f32.gmra.mxu0 %vm272_vm2, %v12633_v42 }
 0x2a7   : > { %v10265_v6 = vpop.f32.mrf.mxu1  ;;  %10555 = vmatmul.mubr.msk.f32.gmra.mxu1 %vm272_vm2, %v12393_v13  ;;  %4593 = vst.msk [vmem:[#allocation3 + $0x40] sm:$0xff] %vm272_vm2, %v4563_v45  ;;  %v4566_v47 = vadd.f32 %v10218_v29, %v4229_v10  ;;  %10510 = vmatprep.mubr.msk.f32.mxu0 %vm272_vm2, %v12635_v48  ;;  %v4235_v45 = vld [vmem:[#allocation3 + $0x88] sm:$0xff] }
 0x2a8   : > { %v4621_v4 = vld [vmem:[#allocation3 + $0x20] sm:$0x7f]  ;;  %v4908_v20 = vadd.f32 %v12565_v32, %v10265_v6  ;;  %10557 = vmatprep.mubr.msk.f32.mxu1 %vm272_vm2, %v12407_v1  ;;  %5009 = vst.msk [vmem:[#allocation3 + $0x40] sm:$0xff] %vm272_vm2, %v4893_v28  ;;  %v4456_v55 = vpop.f32.mrf.mxu0 }
 0x2a9   : > { %8870 = vst.msk [vmem:[%s12573_s9 + $0x18] sm:$0x7f] %vm4618_vm3, %v4621_v4  ;;  %v4626_v13 = vld [vmem:[#allocation3 + $0x38] sm:$0x7f]  ;;  %v4902_v61 = vpop.f32.mrf.mxu1  ;;  %v4565_v1 = vadd.f32 %v4456_v55, %v4228_v43  ;;  %v12718_v43 = vld [vmem:[#allocation2 + $0x1da] sm:$0xff] }
 0x2aa   : > { %5005 = vst.msk [vmem:[#allocation3 + $0x20] sm:$0xff] %vm272_vm2, %v4873_v12  ;;  %5008 = vst.msk [vmem:[#allocation3 + $0x38] sm:$0xff] %vm272_vm2, %v4888_v3  ;;  %v4625_v5 = vld [vmem:[#allocation3 + $0x30] sm:$0xff]  ;;  %v10221_v7 = vpop.f32.mrf.mxu0  ;;  %10511 = vmatmul.mubr.msk.f32.gmra.mxu0 %vm272_vm2, %v12653_v11  ;;  %v12712_v3 = vld [vmem:[#allocation2 + $0x1d2] sm:$0xff] }
 0x2ab   : > { %8872 = vst.msk [vmem:[%s12573_s9 + $0x28] sm:$0x7f] %vm4618_vm3, %v4626_v13  ;;  %v10268_v50 = vpop.f32.mrf.mxu1  ;;  %10558 = vmatmul.mubr.msk.f32.gmra.mxu1 %vm272_vm2, %v12409_v22  ;;  %v4568_v27 = vadd.f32 %v10221_v7, %v4231_v17  ;;  %10513 = vmatprep.mubr.msk.f32.mxu0 %vm272_vm2, %v12656_v59  ;;  %v4232_v12 = vld [vmem:[#allocation3 + $0x70] sm:$0xff] }
 0x2ac   : > { %4596 = vst.msk [vmem:[#allocation3 + $0x58] sm:$0xff] %vm272_vm2, %v4566_v47  ;;  %8871 = vst.msk [vmem:[%s12573_s9 + $0x20] sm:$0xff] %vm272_vm2, %v4625_v5  ;;  %10560 = vmatprep.mubr.msk.f32.mxu1 %vm272_vm2, %v12423_v41  ;;  %v4630_v19 = vld [vmem:[#allocation3 + $0x48] sm:$0xff]  ;;  %v4466_v22 = vpop.f32.mrf.mxu0  ;;  %v4903_v41 = vadd.f32 %v12565_v32, %v4902_v61  ;;  %v4918_v10 = vadd.f32 %v12565_v32, %v10268_v50  ;;  %v4234_v47 = vld [vmem:[#allocation3 + $0x80] sm:$0xff] }
 0x2ad   : > { %5012 = vst.msk [vmem:[#allocation3 + $0x58] sm:$0xff] %vm272_vm2, %v4908_v20  ;;  %5007 = vst.msk [vmem:[#allocation3 + $0x30] sm:$0xff] %vm272_vm2, %v4883_v53  ;;  %v4912_v63 = vpop.f32.mrf.mxu1  ;;  %v4567_v21 = vadd.f32 %v4466_v22, %v4230_v15  ;;  %v4237_v61 = vld [vmem:[#allocation3 + $0x98] sm:$0xff]  ;;  %v12736_v50 = vld [vmem:[#allocation2 + $0x1e2] sm:$0xff] }
 0x2ae   : > { %4595 = vst.msk [vmem:[#allocation3 + $0x50] sm:$0xff] %vm272_vm2, %v4565_v1  ;;  %8873 = vst.msk [vmem:[%s12573_s9 + $0x30] sm:$0xff] %vm272_vm2, %v4630_v19  ;;  %v10224_v18 = vpop.f32.mrf.mxu0  ;;  %10514 = vmatmul.mubr.msk.f32.gmra.mxu0 %vm272_vm2, %v12677_v23  ;;  %v4236_v19 = vld [vmem:[#allocation3 + $0x90] sm:$0xff] }
 0x2af   : > { %5010 = vst.msk [vmem:[#allocation3 + $0x48] sm:$0xff] %vm272_vm2, %v4898_v9  ;;  %4598 = vst.msk [vmem:[#allocation3 + $0x68] sm:$0xff] %vm272_vm2, %v4568_v27  ;;  %v10271_v31 = vpop.f32.mrf.mxu1  ;;  %10561 = vmatmul.mubr.msk.f32.gmra.mxu1 %vm272_vm2, %v12425_v38  ;;  %v4570_v44 = vadd.f32 %v10224_v18, %v4233_v36  ;;  %10516 = vmatprep.mubr.msk.f32.mxu0 %vm272_vm2, %v12679_v39  ;;  %v7188_v9 = vld [vmem:[#allocation2 + $0x1f8] sm:$0xff]  ;;  %v12738_v27 = vld [vmem:[#allocation2 + $0x1ea] sm:$0xff] }
 0x2b0   : > { %4597 = vst.msk [vmem:[#allocation3 + $0x60] sm:$0xff] %vm272_vm2, %v4567_v21  ;;  %10563 = vmatprep.mubr.msk.f32.mxu1 %vm272_vm2, %v12439_v62  ;;  %v4476_v16 = vpop.f32.mrf.mxu0  ;;  %v4928_v17 = vadd.f32 %v12565_v32, %v10271_v31  ;;  %v4239_v21 = vld [vmem:[#allocation3 + $0xa8] sm:$0xff] }
 0x2b1   : > { %v4922_v51 = vpop.f32.mrf.mxu1  ;;  %4600 = vst.msk [vmem:[#allocation3 + $0x78] sm:$0xff] %vm272_vm2, %v4570_v44  ;;  %v4569_v38 = vadd.f32 %v4476_v16, %v4232_v12  ;;  %v12755_v44 = vld [vmem:[#allocation2 + $0x1f2] sm:$0xff]  ;;  %v7190_v12 = vld [vmem:[#allocation2 + $0x208] sm:$0xff] }
 0x2b2   : > { %v4923_v30 = vadd.f32 %v12565_v32, %v4922_v51  ;;  %v10227_v28 = vpop.f32.mrf.mxu0  ;;  %10517 = vmatmul.mubr.msk.f32.gmra.mxu0 %vm272_vm2, %v12695_v40  ;;  %v4238_v16 = vld [vmem:[#allocation3 + $0xa0] sm:$0xff] }
 0x2b3   : > { %v10274_v4 = vpop.f32.mrf.mxu1  ;;  %10564 = vmatmul.mubr.msk.f32.gmra.mxu1 %vm272_vm2, %v12441_v60  ;;  %4599 = vst.msk [vmem:[#allocation3 + $0x70] sm:$0xff] %vm272_vm2, %v4569_v38  ;;  %v4572_v29 = vadd.f32 %v10227_v28, %v4235_v45  ;;  %10519 = vmatprep.mubr.msk.f32.mxu0 %vm272_vm2, %v12697_v35 }
 0x2b4   : > { %v4938_v6 = vadd.f32 %v12565_v32, %v10274_v4  ;;  %10566 = vmatprep.mubr.msk.f32.mxu1 %vm272_vm2, %v12455_v0  ;;  %5015 = vst.msk [vmem:[#allocation3 + $0x70] sm:$0xff] %vm272_vm2, %v4923_v30  ;;  %v4486_v20 = vpop.f32.mrf.mxu0  ;;  %v4913_v0 = vadd.f32 %v12565_v32, %v4912_v63  ;;  %v7189_v63 = vld [vmem:[#allocation2 + $0x200] sm:$0xff]  ;;  %v4241_v4 = vld [vmem:[#allocation3 + $0xb8] sm:$0xff] }
 0x2b5   : > { %v4631_v62 = vld [vmem:[#allocation3 + $0x50] sm:$0x7f]  ;;  %v4932_v13 = vpop.f32.mrf.mxu1  ;;  %4602 = vst.msk [vmem:[#allocation3 + $0x88] sm:$0xff] %vm272_vm2, %v4572_v29  ;;  %v4571_v55 = vadd.f32 %v4486_v20, %v4234_v47 }
 0x2b6   : > { %8874 = vst.msk [vmem:[%s12573_s9 + $0x38] sm:$0x7f] %vm4618_vm3, %v4631_v62  ;;  %v4636_v60 = vld [vmem:[#allocation3 + $0x68] sm:$0x7f]  ;;  %v10230_v53 = vpop.f32.mrf.mxu0  ;;  %10520 = vmatmul.mubr.msk.f32.gmra.mxu0 %vm272_vm2, %v12712_v3  ;;  %v4933_v31 = vadd.f32 %v12565_v32, %v4932_v13 }
 0x2b7   : > { %5011 = vst.msk [vmem:[#allocation3 + $0x50] sm:$0xff] %vm272_vm2, %v4903_v41  ;;  %5014 = vst.msk [vmem:[#allocation3 + $0x68] sm:$0xff] %vm272_vm2, %v4918_v10  ;;  %v10277_v1 = vpop.f32.mrf.mxu1  ;;  %10567 = vmatmul.mubr.msk.f32.gmra.mxu1 %vm272_vm2, %v12457_v54  ;;  %v4635_v5 = vld [vmem:[#allocation3 + $0x60] sm:$0xff]  ;;  %v4574_v7 = vadd.f32 %v10230_v53, %v4237_v61  ;;  %10522 = vmatprep.mubr.msk.f32.mxu0 %vm272_vm2, %v12718_v43  ;;  %v7587_v29 = vld [vmem:[#allocation2 + $0x121] sm:$0xff] }
 0x2b8   : > { %8876 = vst.msk [vmem:[%s12573_s9 + $0x48] sm:$0x7f] %vm4618_vm3, %v4636_v60  ;;  %10569 = vmatprep.mubr.msk.f32.mxu1 %vm272_vm2, %v12469_v56  ;;  %v4640_v54 = vld [vmem:[#allocation3 + $0x78] sm:$0xff]  ;;  %v4496_v15 = vpop.f32.mrf.mxu0  ;;  %v4948_v30 = vadd.f32 %v12565_v32, %v10277_v1 }
 0x2b9   : > { %5018 = vst.msk [vmem:[#allocation3 + $0x88] sm:$0xff] %vm272_vm2, %v4938_v6  ;;  %4601 = vst.msk [vmem:[#allocation3 + $0x80] sm:$0xff] %vm272_vm2, %v4571_v55  ;;  %v4942_v22 = vpop.f32.mrf.mxu1  ;;  %v4573_v56 = vadd.f32 %v4496_v15, %v4236_v19  ;;  %v7588_v1 = vld [vmem:[#allocation2 + $0x129] sm:$0xff] }
 0x2ba   : > { %8875 = vst.msk [vmem:[%s12573_s9 + $0x40] sm:$0xff] %vm272_vm2, %v4635_v5  ;;  %5013 = vst.msk [vmem:[#allocation3 + $0x60] sm:$0xff] %vm272_vm2, %v4913_v0  ;;  %v10233_v36 = vpop.f32.mrf.mxu0  ;;  %10523 = vmatmul.mubr.msk.f32.gmra.mxu0 %vm272_vm2, %v12736_v50  ;;  %v4943_v60 = vadd.f32 %v12565_v32, %v4942_v22  ;;  %v4240_v0 = vld [vmem:[#allocation3 + $0xb0] sm:$0xff]  ;;  %v4243_v5 = vld [vmem:[#allocation3 + $0xc8] sm:$0xff] }
 0x2bb   : > { %8877 = vst.msk [vmem:[%s12573_s9 + $0x50] sm:$0xff] %vm272_vm2, %v4640_v54  ;;  %5016 = vst.msk [vmem:[#allocation3 + $0x78] sm:$0xff] %vm272_vm2, %v4928_v17  ;;  %v10280_v18 = vpop.f32.mrf.mxu1  ;;  %10570 = vmatmul.mubr.msk.f32.gmra.mxu1 %vm272_vm2, %v7188_v9  ;;  %v4576_v41 = vadd.f32 %v10233_v36, %v4239_v21  ;;  %10525 = vmatprep.mubr.msk.f32.mxu0 %vm272_vm2, %v12738_v27  ;;  %v7589_v9 = vld [vmem:[#allocation2 + $0x131] sm:$0xff]  ;;  %v7590_v21 = vld [vmem:[#allocation2 + $0x139] sm:$0xff] }
 0x2bc   : > { %4604 = vst.msk [vmem:[#allocation3 + $0x98] sm:$0xff] %vm272_vm2, %v4574_v7  ;;  %4603 = vst.msk [vmem:[#allocation3 + $0x90] sm:$0xff] %vm272_vm2, %v4573_v56  ;;  %10572 = vmatprep.mubr.msk.f32.mxu1 %vm272_vm2, %v7189_v63  ;;  %v4506_v51 = vpop.f32.mrf.mxu0  ;;  %v4958_v53 = vadd.f32 %v12565_v32, %v10280_v18  ;;  %v4242_v22 = vld [vmem:[#allocation3 + $0xc0] sm:$0xff]  ;;  %v4245_v36 = vld [vmem:[#allocation3 + $0xd8] sm:$0xff] }
 0x2bd   : > { %v4952_v38 = vpop.f32.mrf.mxu1  ;;  %4606 = vst.msk [vmem:[#allocation3 + $0xa8] sm:$0xff] %vm272_vm2, %v4576_v41  ;;  %v4575_v45 = vadd.f32 %v4506_v51, %v4238_v16  ;;  %v4244_v16 = vld [vmem:[#allocation3 + $0xd0] sm:$0xff] }
 0x2be   : > { %v4953_v28 = vadd.f32 %v12565_v32, %v4952_v38  ;;  %v10236_v62 = vpop.f32.mrf.mxu0  ;;  %10526 = vmatmul.mubr.msk.f32.gmra.mxu0 %vm272_vm2, %v12755_v44 }
 0x2bf   : > { %v10283_v10 = vpop.f32.mrf.mxu1  ;;  %10573 = vmatmul.mubr.msk.f32.gmra.mxu1 %vm272_vm2, %v7190_v12  ;;  %4605 = vst.msk [vmem:[#allocation3 + $0xa0] sm:$0xff] %vm272_vm2, %v4575_v45  ;;  %v4578_v47 = vadd.f32 %v10236_v62, %v4241_v4  ;;  %10577 = vmatprep.mubr.msk.f32.mxu0 %vm272_vm2, %v7587_v29  ;;  %v4247_v4 = vld [vmem:[#allocation3 + $0xe8] sm:$0xff] }
 0x2c0   : > { %v4641_v6 = vld [vmem:[#allocation3 + $0x80] sm:$0x7f]  ;;  %v4968_v20 = vadd.f32 %v12565_v32, %v10283_v10  ;;  %10624 = vmatprep.mubr.msk.f32.mxu1 %vm272_vm2, %v12495_v24  ;;  %5021 = vst.msk [vmem:[#allocation3 + $0xa0] sm:$0xff] %vm272_vm2, %v4953_v28  ;;  %v4516_v55 = vpop.f32.mrf.mxu0  ;;  %v7592_v28 = vld [vmem:[#allocation2 + $0x149] sm:$0xff] }
 0x2c1   : > { %8878 = vst.msk [vmem:[%s12573_s9 + $0x58] sm:$0x7f] %vm4618_vm3, %v4641_v6  ;;  %v4962_v61 = vpop.f32.mrf.mxu1  ;;  %v4577_v24 = vadd.f32 %v4516_v55, %v4240_v0 }
 0x2c2   : > { %5017 = vst.msk [vmem:[#allocation3 + $0x80] sm:$0xff] %vm272_vm2, %v4933_v31  ;;  %4608 = vst.msk [vmem:[#allocation3 + $0xb8] sm:$0xff] %vm272_vm2, %v4578_v47  ;;  %v10239_v17 = vpop.f32.mrf.mxu0  ;;  %10578 = vmatmul.mubr.msk.f32.vlgmr.msra.gmra.mxu0 %vm272_vm2, %v7588_v1  ;;  %v4963_v41 = vadd.f32 %v12565_v32, %v4962_v61  ;;  %v7594_v61 = vld [vmem:[#allocation2 + $0x159] sm:$0xff] }
 0x2c3   : > { %v4646_v13 = vld [vmem:[#allocation3 + $0x98] sm:$0x7f]  ;;  %5024 = vst.msk [vmem:[#allocation3 + $0xb8] sm:$0xff] %vm272_vm2, %v4968_v20  ;;  %v10286_v7 = vpop.f32.mrf.mxu1  ;;  %10625 = vmatmul.mubr.msk.f32.vlgmr.msra.gmra.mxu1 %vm272_vm2, %v12501_v58  ;;  %v4645_v54 = vld [vmem:[#allocation3 + $0x90] sm:$0xff]  ;;  %4607 = vst.msk [vmem:[#allocation3 + $0xb0] sm:$0xff] %vm272_vm2, %v4577_v24  ;;  %v4580_v19 = vadd.f32 %v10239_v17, %v4243_v5  ;;  %10580 = vmatprep.mubr.msk.f32.mxu0 %vm272_vm2, %v7589_v9 }
 0x2c4   : > { %8880 = vst.msk [vmem:[%s12573_s9 + $0x68] sm:$0x7f] %vm4618_vm3, %v4646_v13  ;;  %10627 = vmatprep.mubr.msk.f32.mxu1 %vm272_vm2, %v12511_v46  ;;  %v4650_v15 = vld [vmem:[#allocation3 + $0xa8] sm:$0xff]  ;;  %v4526_v63 = vpop.f32.mrf.mxu0  ;;  %v4246_v20 = vld [vmem:[#allocation3 + $0xe0] sm:$0xff] }
 0x2c5   : > { %5020 = vst.msk [vmem:[#allocation3 + $0x98] sm:$0xff] %vm272_vm2, %v4948_v30  ;;  %8879 = vst.msk [vmem:[%s12573_s9 + $0x60] sm:$0xff] %vm272_vm2, %v4645_v54  ;;  %v4972_v56 = vpop.f32.mrf.mxu1  ;;  %v4579_v58 = vadd.f32 %v4526_v63, %v4242_v22  ;;  %v7591_v46 = vld [vmem:[#allocation2 + $0x141] sm:$0xff]  ;;  %v4978_v30 = vadd.f32 %v12565_v32, %v10286_v7  ;;  %v5061_v54 = vld [vmem:[#allocation3] sm:$0xff] }
 0x2c6   : > { %5019 = vst.msk [vmem:[#allocation3 + $0x90] sm:$0xff] %vm272_vm2, %v4943_v60  ;;  %8881 = vst.msk [vmem:[%s12573_s9 + $0x70] sm:$0xff] %vm272_vm2, %v4650_v15  ;;  %v10242_v18 = vpop.f32.mrf.mxu0  ;;  %10581 = vmatmul.mubr.msk.f32.gmra.mxu0 %vm272_vm2, %v7590_v21  ;;  %v4973_v6 = vadd.f32 %v12565_v32, %v4972_v56  ;;  %v7595_v5 = vld [vmem:[#allocation2 + $0x161] sm:$0xff]  ;;  %v7596_v22 = vld [vmem:[#allocation2 + $0x169] sm:$0xff] }
 0x2c7   : > { %5022 = vst.msk [vmem:[#allocation3 + $0xa8] sm:$0xff] %vm272_vm2, %v4958_v53  ;;  %4610 = vst.msk [vmem:[#allocation3 + $0xc8] sm:$0xff] %vm272_vm2, %v4580_v19  ;;  %v10289_v31 = vpop.f32.mrf.mxu1  ;;  %10628 = vmatmul.mubr.msk.f32.gmra.mxu1 %vm272_vm2, %v12517_v14  ;;  %v4582_v12 = vadd.f32 %v10242_v18, %v4245_v36  ;;  %10583 = vmatprep.mubr.msk.f32.mxu0 %vm272_vm2, %v7591_v46  ;;  %v5062_v53 = vld [vmem:[#allocation3 + $0x8] sm:$0xff]  ;;  %v5064_v63 = vld [vmem:[#allocation3 + $0x18] sm:$0xff] }
 0x2c8   : > { %4609 = vst.msk [vmem:[#allocation3 + $0xc0] sm:$0xff] %vm272_vm2, %v4579_v58  ;;  %10630 = vmatprep.mubr.msk.f32.mxu1 %vm272_vm2, %v12529_v57  ;;  %v4536_v51 = vpop.f32.mrf.mxu0  ;;  %v7593_v57 = vld [vmem:[#allocation2 + $0x151] sm:$0xff]  ;;  %v4988_v55 = vadd.f32 %v12565_v32, %v10289_v31  ;;  %v7598_v18 = vld [vmem:[#allocation2 + $0x179] sm:$0xff]  ;;  %v5063_v31 = vld [vmem:[#allocation3 + $0x10] sm:$0xff] }
 0x2c9   : > { %v4982_v38 = vpop.f32.mrf.mxu1  ;;  %4612 = vst.msk [vmem:[#allocation3 + $0xd8] sm:$0xff] %vm272_vm2, %v4582_v12  ;;  %v4581_v45 = vadd.f32 %v4536_v51, %v4244_v16  ;;  %v7599_v12 = vld [vmem:[#allocation2 + $0x181] sm:$0xff] }
 0x2ca   : > { %v4983_v14 = vadd.f32 %v12565_v32, %v4982_v38  ;;  %v10245_v62 = vpop.f32.mrf.mxu0  ;;  %10584 = vmatmul.mubr.msk.f32.gmra.mxu0 %vm272_vm2, %v7592_v28  ;;  %v4651_v29 = vld [vmem:[#allocation3 + $0xb0] sm:$0x7f]  ;;  %v5066_v16 = vld [vmem:[#allocation3 + $0x28] sm:$0xff] }
 0x2cb   : > { %v10292_v10 = vpop.f32.mrf.mxu1  ;;  %10631 = vmatmul.mubr.msk.f32.gmra.mxu1 %vm272_vm2, %v12535_v49  ;;  %4611 = vst.msk [vmem:[#allocation3 + $0xd0] sm:$0xff] %vm272_vm2, %v4581_v45  ;;  %v4584_v60 = vadd.f32 %v10245_v62, %v4247_v4  ;;  %10586 = vmatprep.mubr.msk.f32.mxu0 %vm272_vm2, %v7593_v57  ;;  %5023 = vst.msk [vmem:[#allocation3 + $0xb0] sm:$0xff] %vm272_vm2, %v4963_v41  ;;  %v7601_v62 = vld [vmem:[#allocation2 + $0x191] sm:$0xff] }
 0x2cc   : > { %v4998_v47 = vadd.f32 %v12565_v32, %v10292_v10  ;;  %10633 = vmatprep.mubr.msk.f32.mxu1 %vm272_vm2, %v12545_v52  ;;  %8882 = vst.msk [vmem:[%s12573_s9 + $0x78] sm:$0x7f] %vm4618_vm3, %v4651_v29  ;;  %v4546_v13 = vpop.f32.mrf.mxu0  ;;  %v5068_v29 = vld [vmem:[#allocation3 + $0x38] sm:$0xff] }
 0x2cd   : > { %5027 = vst.msk [vmem:[#allocation3 + $0xd0] sm:$0xff] %vm272_vm2, %v4983_v14  ;;  %v4992_v0 = vpop.f32.mrf.mxu1  ;;  %4614 = vst.msk [vmem:[#allocation3 + $0xe8] sm:$0xff] %vm272_vm2, %v4584_v60  ;;  %v4583_v52 = vadd.f32 %v4546_v13, %v4246_v20  ;;  %v5065_v14 = vld [vmem:[#allocation3 + $0x20] sm:$0xff]  ;;  %v5067_v13 = vld [vmem:[#allocation3 + $0x30] sm:$0xff] }
 0x2ce   : > { %v4656_v49 = vld [vmem:[#allocation3 + $0xc8] sm:$0x7f]  ;;  %5030 = vst.msk [vmem:[#allocation3 + $0xe8] sm:$0xff] %vm272_vm2, %v4998_v47  ;;  %v10297_v24 = vpop.f32.mrf.mxu0  ;;  %10587 = vmatmul.mubr.msk.f32.gmra.mxu0 %vm272_vm2, %v7594_v61  ;;  %v4993_v21 = vadd.f32 %v12565_v32, %v4992_v0 }
 0x2cf   : > { %8884 = vst.msk [vmem:[%s12573_s9 + $0x88] sm:$0x7f] %vm4618_vm3, %v4656_v49  ;;  %v10344_v1 = vpop.f32.mrf.mxu1  ;;  %10634 = vmatmul.mubr.msk.f32.gmra.mxu1 %vm272_vm2, %v12552_v33  ;;  %v4655_v17 = vld [vmem:[#allocation3 + $0xc0] sm:$0xff]  ;;  %v5398_v7 = vadd.f32 %v10297_v24, %v5062_v53  ;;  %10589 = vmatprep.mubr.msk.f32.mxu0 %vm272_vm2, %v7595_v5  ;;  %v5070_v24 = vld [vmem:[#allocation3 + $0x48] sm:$0xff] }
 0x2d0   : > { %5026 = vst.msk [vmem:[#allocation3 + $0xc8] sm:$0xff] %vm272_vm2, %v4978_v30  ;;  %4613 = vst.msk [vmem:[#allocation3 + $0xe0] sm:$0xff] %vm272_vm2, %v4583_v52  ;;  %10636 = vmatprep.mubr.msk.f32.mxu1 %vm272_vm2, %v12568_v37  ;;  %v4660_v9 = vld [vmem:[#allocation3 + $0xd8] sm:$0xff]  ;;  %v5248_v19 = vpop.f32.mrf.mxu0  ;;  %v7602_v49 = vld [vmem:[#allocation2 + $0x199] sm:$0xff] }
 0x2d1   : > { %8883 = vst.msk [vmem:[%s12573_s9 + $0x80] sm:$0xff] %vm272_vm2, %v4655_v17  ;;  %5025 = vst.msk [vmem:[#allocation3 + $0xc0] sm:$0xff] %vm272_vm2, %v4973_v6  ;;  %v5674_v15 = vpop.f32.mrf.mxu1  ;;  %v5397_v33 = vadd.f32 %v5248_v19, %v5061_v54  ;;  %v7597_v37 = vld [vmem:[#allocation2 + $0x171] sm:$0xff]  ;;  %v7600_v30 = vld [vmem:[#allocation2 + $0x189] sm:$0xff] }
 0x2d2   : > { %8885 = vst.msk [vmem:[%s12573_s9 + $0x90] sm:$0xff] %vm272_vm2, %v4660_v9  ;;  %5028 = vst.msk [vmem:[#allocation3 + $0xd8] sm:$0xff] %vm272_vm2, %v4988_v55  ;;  %v10300_v56 = vpop.f32.mrf.mxu0  ;;  %10590 = vmatmul.mubr.msk.f32.gmra.mxu0 %vm272_vm2, %v7596_v22  ;;  %v7603_v52 = vld [vmem:[#allocation2 + $0x1a1] sm:$0xff]  ;;  %v5069_v54 = vld [vmem:[#allocation3 + $0x40] sm:$0xff] }
 0x2d3   : > { %5428 = vst.msk [vmem:[#allocation3 + $0x8] sm:$0xff] %vm272_vm2, %v5398_v7  ;;  %v10347_v58 = vpop.f32.mrf.mxu1  ;;  %10637 = vmatmul.mubr.msk.f32.gmra.mxu1 %vm272_vm2, %v12580_v34  ;;  %5427 = vst.msk [vmem:[#allocation3] sm:$0xff] %vm272_vm2, %v5397_v33  ;;  %v5400_v36 = vadd.f32 %v10300_v56, %v5064_v63  ;;  %10592 = vmatprep.mubr.msk.f32.mxu0 %vm272_vm2, %v7597_v37  ;;  %v7604_v7 = vld [vmem:[#allocation2 + $0x1a9] sm:$0xff]  ;;  %v7605_v33 = vld [vmem:[#allocation2 + $0x1b1] sm:$0xff] }
 0x2d4   : > { %10639 = vmatprep.mubr.msk.f32.mxu1 %vm272_vm2, %v12599_v26  ;;  %v5258_v46 = vpop.f32.mrf.mxu0  ;;  %v5072_v56 = vld [vmem:[#allocation3 + $0x58] sm:$0xff] }
 0x2d5   : > { %v5684_v41 = vpop.f32.mrf.mxu1  ;;  %5430 = vst.msk [vmem:[#allocation3 + $0x18] sm:$0xff] %vm272_vm2, %v5400_v36  ;;  %v5399_v34 = vadd.f32 %v5258_v46, %v5063_v31  ;;  %v7606_v36 = vld [vmem:[#allocation2 + $0x1b9] sm:$0xff]  ;;  %v5071_v31 = vld [vmem:[#allocation3 + $0x50] sm:$0xff] }
 0x2d6   : > { %v10303_v51 = vpop.f32.mrf.mxu0  ;;  %10593 = vmatmul.mubr.msk.f32.gmra.mxu0 %vm272_vm2, %v7598_v18 }
 0x2d7   : > { %v10350_v32 = vpop.f32.mrf.mxu1  ;;  %10640 = vmatmul.mubr.msk.f32.gmra.mxu1 %vm272_vm2, %v12591_v2  ;;  %v4661_v38 = vld [vmem:[#allocation3 + $0xe0] sm:$0x7f]  ;;  %5429 = vst.msk [vmem:[#allocation3 + $0x10] sm:$0xff] %vm272_vm2, %v5399_v34  ;;  %v5402_v26 = vadd.f32 %v10303_v51, %v5066_v16  ;;  %10595 = vmatprep.mubr.msk.f32.mxu0 %vm272_vm2, %v7599_v12  ;;  %v7607_v12 = vld [vmem:[#allocation2 + $0x1c1] sm:$0xff] }
 0x2d8   : > { %10642 = vmatprep.mubr.msk.f32.mxu1 %vm272_vm2, %v12615_v8  ;;  %8886 = vst.msk [vmem:[%s12573_s9 + $0x98] sm:$0x7f] %vm4618_vm3, %v4661_v38  ;;  %v5268_v28 = vpop.f32.mrf.mxu0  ;;  %v5074_v51 = vld [vmem:[#allocation3 + $0x68] sm:$0xff] }
 0x2d9   : > { %5029 = vst.msk [vmem:[#allocation3 + $0xe0] sm:$0xff] %vm272_vm2, %v4993_v21  ;;  %v5694_v4 = vpop.f32.mrf.mxu1  ;;  %5432 = vst.msk [vmem:[#allocation3 + $0x28] sm:$0xff] %vm272_vm2, %v5402_v26  ;;  %v5401_v10 = vadd.f32 %v5268_v28, %v5065_v14  ;;  %v5073_v14 = vld [vmem:[#allocation3 + $0x60] sm:$0xff] }
 0x2da   : > { %v5488_v45 = vld [vmem:[#allocation3 + $0x8] sm:$0xff]  ;;  %v5487_v57 = vld [vmem:[#allocation3] sm:$0xff]  ;;  %v10306_v6 = vpop.f32.mrf.mxu0  ;;  %10596 = vmatmul.mubr.msk.f32.gmra.mxu0 %vm272_vm2, %v7600_v30  ;;  %v7608_v30 = vld [vmem:[#allocation2 + $0x1c9] sm:$0xff] }
 0x2db   : > { %v5824_v2 = vadd.f32 %v10344_v1, %v5488_v45  ;;  %v10353_v60 = vpop.f32.mrf.mxu1  ;;  %10643 = vmatmul.mubr.msk.f32.gmra.mxu1 %vm272_vm2, %v12617_v25  ;;  %v5823_v8 = vadd.f32 %v5674_v15, %v5487_v57  ;;  %5431 = vst.msk [vmem:[#allocation3 + $0x20] sm:$0xff] %vm272_vm2, %v5401_v10  ;;  %v5404_v47 = vadd.f32 %v10306_v6, %v5068_v29  ;;  %v5076_v57 = vld [vmem:[#allocation3 + $0x78] sm:$0xff] }
 0x2dc   : > { %10598 = vmatprep.mubr.msk.f32.mxu0 %vm272_vm2, %v7601_v62  ;;  %10645 = vmatprep.mubr.msk.f32.mxu1 %vm272_vm2, %v12633_v42  ;;  %v5490_v20 = vld [vmem:[#allocation3 + $0x18] sm:$0xff]  ;;  %v5278_v0 = vpop.f32.mrf.mxu0 }
 0x2dd   : > { %5854 = vst.msk [vmem:[#allocation3 + $0x8] sm:$0xff] %vm272_vm2, %v5824_v2  ;;  %v5704_v55 = vpop.f32.mrf.mxu1  ;;  %5853 = vst.msk [vmem:[#allocation3] sm:$0xff] %vm272_vm2, %v5823_v8  ;;  %v5826_v25 = vadd.f32 %v10347_v58, %v5490_v20  ;;  %v5403_v61 = vadd.f32 %v5278_v0, %v5067_v13  ;;  %v7609_v62 = vld [vmem:[#allocation2 + $0x1d1] sm:$0xff]  ;;  %v7610_v8 = vld [vmem:[#allocation2 + $0x1d9] sm:$0xff] }
 0x2de   : > { %5434 = vst.msk [vmem:[#allocation3 + $0x38] sm:$0xff] %vm272_vm2, %v5404_v47  ;;  %v5489_v53 = vld [vmem:[#allocation3 + $0x10] sm:$0xff]  ;;  %v10309_v1 = vpop.f32.mrf.mxu0  ;;  %10599 = vmatmul.mubr.msk.f32.gmra.mxu0 %vm272_vm2, %v7602_v49 }
 0x2df   : > { %v10356_v5 = vpop.f32.mrf.mxu1  ;;  %10646 = vmatmul.mubr.msk.f32.gmra.mxu1 %vm272_vm2, %v12635_v48  ;;  %5856 = vst.msk [vmem:[#allocation3 + $0x18] sm:$0xff] %vm272_vm2, %v5826_v25  ;;  %v5825_v42 = vadd.f32 %v5684_v41, %v5489_v53  ;;  %5433 = vst.msk [vmem:[#allocation3 + $0x30] sm:$0xff] %vm272_vm2, %v5403_v61  ;;  %v5406_v17 = vadd.f32 %v10309_v1, %v5070_v24  ;;  %10601 = vmatprep.mubr.msk.f32.mxu0 %vm272_vm2, %v7603_v52  ;;  %v5075_v49 = vld [vmem:[#allocation3 + $0x70] sm:$0xff]  ;;  %v5078_v25 = vld [vmem:[#allocation3 + $0x88] sm:$0xff] }
 0x2e0   : > { %10648 = vmatprep.mubr.msk.f32.mxu1 %vm272_vm2, %v12653_v11  ;;  %v5492_v9 = vld [vmem:[#allocation3 + $0x28] sm:$0xff]  ;;  %v5288_v19 = vpop.f32.mrf.mxu0  ;;  %v7612_v1 = vld [vmem:[#allocation2 + $0x1e9] sm:$0xff] }
 0x2e1   : > { %v5714_v15 = vpop.f32.mrf.mxu1  ;;  %5855 = vst.msk [vmem:[#allocation3 + $0x10] sm:$0xff] %vm272_vm2, %v5825_v42  ;;  %v5828_v48 = vadd.f32 %v10350_v32, %v5492_v9  ;;  %5436 = vst.msk [vmem:[#allocation3 + $0x48] sm:$0xff] %vm272_vm2, %v5406_v17  ;;  %v5405_v22 = vadd.f32 %v5288_v19, %v5069_v54  ;;  %v7611_v0 = vld [vmem:[#allocation2 + $0x1e1] sm:$0xff]  ;;  %v5077_v42 = vld [vmem:[#allocation3 + $0x80] sm:$0xff] }
 0x2e2   : > { %v5491_v63 = vld [vmem:[#allocation3 + $0x20] sm:$0xff]  ;;  %v10312_v58 = vpop.f32.mrf.mxu0  ;;  %10602 = vmatmul.mubr.msk.f32.gmra.mxu0 %vm272_vm2, %v7604_v7 }
 0x2e3   : > { %v10359_v37 = vpop.f32.mrf.mxu1  ;;  %10649 = vmatmul.mubr.msk.f32.gmra.mxu1 %vm272_vm2, %v12656_v59  ;;  %5858 = vst.msk [vmem:[#allocation3 + $0x28] sm:$0xff] %vm272_vm2, %v5828_v48  ;;  %v5827_v11 = vadd.f32 %v5694_v4, %v5491_v63  ;;  %5435 = vst.msk [vmem:[#allocation3 + $0x40] sm:$0xff] %vm272_vm2, %v5405_v22  ;;  %v5408_v21 = vadd.f32 %v10312_v58, %v5072_v56  ;;  %10604 = vmatprep.mubr.msk.f32.mxu0 %vm272_vm2, %v7605_v33  ;;  %v7613_v9 = vld [vmem:[#allocation2 + $0x1f1] sm:$0xff]  ;;  %v7614_v63 = vld [vmem:[#allocation2 + $0x1f9] sm:$0xff] }
 0x2e4   : > { %10651 = vmatprep.mubr.msk.f32.mxu1 %vm272_vm2, %v12677_v23  ;;  %v5298_v46 = vpop.f32.mrf.mxu0  ;;  %v7615_v56 = vld [vmem:[#allocation2 + $0x201] sm:$0xff] }
 0x2e5   : > { %v5494_v18 = vld [vmem:[#allocation3 + $0x38] sm:$0xff]  ;;  %v5724_v41 = vpop.f32.mrf.mxu1  ;;  %5857 = vst.msk [vmem:[#allocation3 + $0x20] sm:$0xff] %vm272_vm2, %v5827_v11  ;;  %5438 = vst.msk [vmem:[#allocation3 + $0x58] sm:$0xff] %vm272_vm2, %v5408_v21  ;;  %v5407_v34 = vadd.f32 %v5298_v46, %v5071_v31  ;;  %v8040_v58 = vld [vmem:[#allocation2 + $0x1fa] sm:$0xff] }
 0x2e6   : > { %v5830_v59 = vadd.f32 %v10353_v60, %v5494_v18  ;;  %v5493_v16 = vld [vmem:[#allocation3 + $0x30] sm:$0xff]  ;;  %v10315_v32 = vpop.f32.mrf.mxu0  ;;  %10605 = vmatmul.mubr.msk.f32.gmra.mxu0 %vm272_vm2, %v7606_v36 }
 0x2e7   : > { %v10362_v38 = vpop.f32.mrf.mxu1  ;;  %10652 = vmatmul.mubr.msk.f32.gmra.mxu1 %vm272_vm2, %v12679_v39  ;;  %v5829_v23 = vadd.f32 %v5704_v55, %v5493_v16  ;;  %5437 = vst.msk [vmem:[#allocation3 + $0x50] sm:$0xff] %vm272_vm2, %v5407_v34  ;;  %v5410_v26 = vadd.f32 %v10315_v32, %v5074_v51  ;;  %10607 = vmatprep.mubr.msk.f32.mxu0 %vm272_vm2, %v7607_v12  ;;  %v5079_v11 = vld [vmem:[#allocation3 + $0x90] sm:$0xff] }
 0x2e8   : > { %5860 = vst.msk [vmem:[#allocation3 + $0x38] sm:$0xff] %vm272_vm2, %v5830_v59  ;;  %10654 = vmatprep.mubr.msk.f32.mxu1 %vm272_vm2, %v12695_v40  ;;  %v5496_v45 = vld [vmem:[#allocation3 + $0x48] sm:$0xff]  ;;  %v5308_v28 = vpop.f32.mrf.mxu0  ;;  %v7616_v16 = vld [vmem:[#allocation2 + $0x209] sm:$0xff] }
 0x2e9   : > { %v5734_v4 = vpop.f32.mrf.mxu1  ;;  %5859 = vst.msk [vmem:[#allocation3 + $0x30] sm:$0xff] %vm272_vm2, %v5829_v23  ;;  %v5832_v39 = vadd.f32 %v10356_v5, %v5496_v45  ;;  %5440 = vst.msk [vmem:[#allocation3 + $0x68] sm:$0xff] %vm272_vm2, %v5410_v26  ;;  %v5409_v2 = vadd.f32 %v5308_v28, %v5073_v14  ;;  %v8041_v18 = vld [vmem:[#allocation2 + $0x202] sm:$0xff]  ;;  %v8042_v51 = vld [vmem:[#allocation2 + $0x20a] sm:$0xff] }
 0x2ea   : > { %v5495_v10 = vld [vmem:[#allocation3 + $0x40] sm:$0xff]  ;;  %v10318_v29 = vpop.f32.mrf.mxu0  ;;  %10608 = vmatmul.mubr.msk.f32.gmra.mxu0 %vm272_vm2, %v7608_v30  ;;  %v5084_v28 = vld [vmem:[#allocation3 + $0xb8] sm:$0xff] }
 0x2eb   : > { %v10365_v6 = vpop.f32.mrf.mxu1  ;;  %10655 = vmatmul.mubr.msk.f32.gmra.mxu1 %vm272_vm2, %v12697_v35  ;;  %5862 = vst.msk [vmem:[#allocation3 + $0x48] sm:$0xff] %vm272_vm2, %v5832_v39  ;;  %v5831_v40 = vadd.f32 %v5714_v15, %v5495_v10  ;;  %5439 = vst.msk [vmem:[#allocation3 + $0x60] sm:$0xff] %vm272_vm2, %v5409_v2  ;;  %v5412_v60 = vadd.f32 %v10318_v29, %v5076_v57  ;;  %10610 = vmatprep.mubr.msk.f32.mxu0 %vm272_vm2, %v7609_v62  ;;  %v5080_v15 = vld [vmem:[#allocation3 + $0x98] sm:$0xff]  ;;  %v5083_v57 = vld [vmem:[#allocation3 + $0xb0] sm:$0xff] }
 0x2ec   : > { %10657 = vmatprep.mubr.msk.f32.mxu1 %vm272_vm2, %v12712_v3  ;;  %v5498_v47 = vld [vmem:[#allocation3 + $0x58] sm:$0xff]  ;;  %v5318_v20 = vpop.f32.mrf.mxu0 }
 0x2ed   : > { %v5744_v13 = vpop.f32.mrf.mxu1  ;;  %5861 = vst.msk [vmem:[#allocation3 + $0x40] sm:$0xff] %vm272_vm2, %v5831_v40  ;;  %v5834_v35 = vadd.f32 %v10359_v37, %v5498_v47  ;;  %5442 = vst.msk [vmem:[#allocation3 + $0x78] sm:$0xff] %vm272_vm2, %v5412_v60  ;;  %v5411_v55 = vadd.f32 %v5318_v20, %v5075_v49  ;;  %v5086_v47 = vld [vmem:[#allocation3 + $0xc8] sm:$0xff] }
 0x2ee   : > { %v5497_v52 = vld [vmem:[#allocation3 + $0x50] sm:$0xff]  ;;  %v10321_v61 = vpop.f32.mrf.mxu0  ;;  %10611 = vmatmul.mubr.msk.f32.gmra.mxu0 %vm272_vm2, %v7610_v8 }
 0x2ef   : > { %v10368_v53 = vpop.f32.mrf.mxu1  ;;  %10658 = vmatmul.mubr.msk.f32.gmra.mxu1 %vm272_vm2, %v12718_v43  ;;  %5864 = vst.msk [vmem:[#allocation3 + $0x58] sm:$0xff] %vm272_vm2, %v5834_v35  ;;  %v5833_v3 = vadd.f32 %v5724_v41, %v5497_v52  ;;  %5441 = vst.msk [vmem:[#allocation3 + $0x70] sm:$0xff] %vm272_vm2, %v5411_v55  ;;  %v5414_v24 = vadd.f32 %v10321_v61, %v5078_v25  ;;  %10613 = vmatprep.mubr.msk.f32.mxu0 %vm272_vm2, %v7611_v0  ;;  %v5082_v41 = vld [vmem:[#allocation3 + $0xa8] sm:$0xff]  ;;  %v5085_v55 = vld [vmem:[#allocation3 + $0xc0] sm:$0xff] }
 0x2f0   : > { %10660 = vmatprep.mubr.msk.f32.mxu1 %vm272_vm2, %v12736_v50  ;;  %v5500_v5 = vld [vmem:[#allocation3 + $0x68] sm:$0xff]  ;;  %v5328_v17 = vpop.f32.mrf.mxu0 }
 0x2f1   : > { %v5754_v7 = vpop.f32.mrf.mxu1  ;;  %5863 = vst.msk [vmem:[#allocation3 + $0x50] sm:$0xff] %vm272_vm2, %v5833_v3  ;;  %v5836_v43 = vadd.f32 %v10362_v38, %v5500_v5  ;;  %5444 = vst.msk [vmem:[#allocation3 + $0x88] sm:$0xff] %vm272_vm2, %v5414_v24  ;;  %v5413_v54 = vadd.f32 %v5328_v17, %v5077_v42  ;;  %v5081_v38 = vld [vmem:[#allocation3 + $0xa0] sm:$0xff]  ;;  %v5088_v24 = vld [vmem:[#allocation3 + $0xd8] sm:$0xff] }
 0x2f2   : > { %v5499_v19 = vld [vmem:[#allocation3 + $0x60] sm:$0xff]  ;;  %v10324_v33 = vpop.f32.mrf.mxu0  ;;  %10614 = vmatmul.mubr.msk.f32.gmra.mxu0 %vm272_vm2, %v7612_v1 }
 0x2f3   : > { %v10371_v48 = vpop.f32.mrf.mxu1  ;;  %10661 = vmatmul.mubr.msk.f32.gmra.mxu1 %vm272_vm2, %v12738_v27  ;;  %5866 = vst.msk [vmem:[#allocation3 + $0x68] sm:$0xff] %vm272_vm2, %v5836_v43  ;;  %v5835_v50 = vadd.f32 %v5734_v4, %v5499_v19  ;;  %5443 = vst.msk [vmem:[#allocation3 + $0x80] sm:$0xff] %vm272_vm2, %v5413_v54  ;;  %v5416_v22 = vadd.f32 %v10324_v33, %v5080_v15  ;;  %10616 = vmatprep.mubr.msk.f32.mxu0 %vm272_vm2, %v7613_v9  ;;  %v5087_v9 = vld [vmem:[#allocation3 + $0xd0] sm:$0xff] }
 0x2f4   : > { %10663 = vmatprep.mubr.msk.f32.mxu1 %vm272_vm2, %v12755_v44  ;;  %v5502_v37 = vld [vmem:[#allocation3 + $0x78] sm:$0xff]  ;;  %v5338_v21 = vpop.f32.mrf.mxu0 }
 0x2f5   : > { %v5764_v36 = vpop.f32.mrf.mxu1  ;;  %5865 = vst.msk [vmem:[#allocation3 + $0x60] sm:$0xff] %vm272_vm2, %v5835_v50  ;;  %v5838_v27 = vadd.f32 %v10365_v6, %v5502_v37  ;;  %5446 = vst.msk [vmem:[#allocation3 + $0x98] sm:$0xff] %vm272_vm2, %v5416_v22  ;;  %v5415_v31 = vadd.f32 %v5338_v21, %v5079_v11  ;;  %v5089_v37 = vld [vmem:[#allocation3 + $0xe0] sm:$0xff] }
 0x2f6   : > { %v5501_v46 = vld [vmem:[#allocation3 + $0x70] sm:$0xff]  ;;  %v10327_v12 = vpop.f32.mrf.mxu0  ;;  %10617 = vmatmul.mubr.msk.f32.gmra.mxu0 %vm272_vm2, %v7614_v63 }
 0x2f7   : > { %v10374_v59 = vpop.f32.mrf.mxu1  ;;  %10664 = vmatmul.mubr.msk.f32.gmra.mxu1 %vm272_vm2, %v8040_v58  ;;  %5868 = vst.msk [vmem:[#allocation3 + $0x78] sm:$0xff] %vm272_vm2, %v5838_v27  ;;  %v5837_v44 = vadd.f32 %v5744_v13, %v5501_v46  ;;  %5445 = vst.msk [vmem:[#allocation3 + $0x90] sm:$0xff] %vm272_vm2, %v5415_v31  ;;  %v5418_v34 = vadd.f32 %v10327_v12, %v5082_v41  ;;  %10619 = vmatprep.mubr.msk.f32.mxu0 %vm272_vm2, %v7615_v56  ;;  %v5914_v31 = vld [vmem:[#allocation3 + $0x8] sm:$0xff] }
 0x2f8   : > { %10666 = vmatprep.mubr.msk.f32.mxu1 %vm272_vm2, %v8041_v18  ;;  %v5504_v32 = vld [vmem:[#allocation3 + $0x88] sm:$0xff]  ;;  %v5348_v23 = vpop.f32.mrf.mxu0 }
 0x2f9   : > { %v5774_v26 = vpop.f32.mrf.mxu1  ;;  %5867 = vst.msk [vmem:[#allocation3 + $0x70] sm:$0xff] %vm272_vm2, %v5837_v44  ;;  %v5840_v30 = vadd.f32 %v10368_v53, %v5504_v32  ;;  %5448 = vst.msk [vmem:[#allocation3 + $0xa8] sm:$0xff] %vm272_vm2, %v5418_v34  ;;  %v5417_v45 = vadd.f32 %v5348_v23, %v5081_v38  ;;  %v5913_v34 = vld [vmem:[#allocation3] sm:$0xff] }
 0x2fa   : > { %v5503_v14 = vld [vmem:[#allocation3 + $0x80] sm:$0xff]  ;;  %v10330_v4 = vpop.f32.mrf.mxu0  ;;  %10620 = vmatmul.mubr.msk.f32.gmra.mxu0 %vm272_vm2, %v7616_v16 }
 0x2fb   : > { %v10377_v62 = vpop.f32.mrf.mxu1  ;;  %10667 = vmatmul.mubr.msk.f32.gmra.mxu1 %vm272_vm2, %v8042_v51  ;;  %5870 = vst.msk [vmem:[#allocation3 + $0x88] sm:$0xff] %vm272_vm2, %v5840_v30  ;;  %v5839_v39 = vadd.f32 %v5754_v7, %v5503_v14  ;;  %5447 = vst.msk [vmem:[#allocation3 + $0xa0] sm:$0xff] %vm272_vm2, %v5417_v45  ;;  %v5420_v2 = vadd.f32 %v10330_v4, %v5084_v28 }
 0x2fc   : > { %v5506_v10 = vld [vmem:[#allocation3 + $0x98] sm:$0xff]  ;;  %v5358_v29 = vpop.f32.mrf.mxu0 }
 0x2fd   : > { %v5784_v6 = vpop.f32.mrf.mxu1  ;;  %5869 = vst.msk [vmem:[#allocation3 + $0x80] sm:$0xff] %vm272_vm2, %v5839_v39  ;;  %v5842_v40 = vadd.f32 %v10371_v48, %v5506_v10  ;;  %5450 = vst.msk [vmem:[#allocation3 + $0xb8] sm:$0xff] %vm272_vm2, %v5420_v2  ;;  %v5419_v60 = vadd.f32 %v5358_v29, %v5083_v57  ;;  %v5090_v48 = vld [vmem:[#allocation3 + $0xe8] sm:$0xff] }
 0x2fe   : > { %v5505_v8 = vld [vmem:[#allocation3 + $0x90] sm:$0xff]  ;;  %v10333_v49 = vpop.f32.mrf.mxu0 }
 0x2ff   : > { %v10380_v20 = vpop.f32.mrf.mxu1  ;;  %5872 = vst.msk [vmem:[#allocation3 + $0x98] sm:$0xff] %vm272_vm2, %v5842_v40  ;;  %v5841_v13 = vadd.f32 %v5764_v36, %v5505_v8  ;;  %5449 = vst.msk [vmem:[#allocation3 + $0xb0] sm:$0xff] %vm272_vm2, %v5419_v60  ;;  %v5422_v0 = vadd.f32 %v10333_v49, %v5086_v47 }
 0x300   : > { %v5508_v35 = vld [vmem:[#allocation3 + $0xa8] sm:$0xff]  ;;  %v5368_v52 = vpop.f32.mrf.mxu0 }
 0x301   : > { %v5794_v25 = vpop.f32.mrf.mxu1  ;;  %5871 = vst.msk [vmem:[#allocation3 + $0x90] sm:$0xff] %vm272_vm2, %v5841_v13  ;;  %v5844_v61 = vadd.f32 %v10374_v59, %v5508_v35  ;;  %5452 = vst.msk [vmem:[#allocation3 + $0xc8] sm:$0xff] %vm272_vm2, %v5422_v0  ;;  %v5421_v53 = vadd.f32 %v5368_v52, %v5085_v55 }
 0x302   : > { %v5507_v3 = vld [vmem:[#allocation3 + $0xa0] sm:$0xff]  ;;  %v10336_v1 = vpop.f32.mrf.mxu0 }
 0x303   : > { %v10383_v5 = vpop.f32.mrf.mxu1  ;;  %5874 = vst.msk [vmem:[#allocation3 + $0xa8] sm:$0xff] %vm272_vm2, %v5844_v61  ;;  %v5843_v42 = vadd.f32 %v5774_v26, %v5507_v3  ;;  %5451 = vst.msk [vmem:[#allocation3 + $0xc0] sm:$0xff] %vm272_vm2, %v5421_v53  ;;  %v5424_v17 = vadd.f32 %v10336_v1, %v5088_v24  ;;  %v5916_v26 = vld [vmem:[#allocation3 + $0x18] sm:$0xff] }
 0x304   : > { %v5510_v7 = vld [vmem:[#allocation3 + $0xb8] sm:$0xff]  ;;  %v5378_v43 = vpop.f32.mrf.mxu0 }
 0x305   : > { %v5804_v54 = vpop.f32.mrf.mxu1  ;;  %5873 = vst.msk [vmem:[#allocation3 + $0xa0] sm:$0xff] %vm272_vm2, %v5843_v42  ;;  %v5846_v19 = vadd.f32 %v10377_v62, %v5510_v7  ;;  %5454 = vst.msk [vmem:[#allocation3 + $0xd8] sm:$0xff] %vm272_vm2, %v5424_v17  ;;  %v5423_v15 = vadd.f32 %v5378_v43, %v5087_v9  ;;  %v5915_v62 = vld [vmem:[#allocation3 + $0x10] sm:$0xff] }
 0x306   : > { %v5509_v33 = vld [vmem:[#allocation3 + $0xb0] sm:$0xff]  ;;  %v10339_v50 = vpop.f32.mrf.mxu0 }
 0x307   : > { %v10386_v22 = vpop.f32.mrf.mxu1  ;;  %5876 = vst.msk [vmem:[#allocation3 + $0xb8] sm:$0xff] %vm272_vm2, %v5846_v19  ;;  %v5845_v63 = vadd.f32 %v5784_v6, %v5509_v33  ;;  %5453 = vst.msk [vmem:[#allocation3 + $0xd0] sm:$0xff] %vm272_vm2, %v5423_v15  ;;  %v5426_v56 = vadd.f32 %v10339_v50, %v5090_v48  ;;  %v5918_v6 = vld [vmem:[#allocation3 + $0x28] sm:$0xff] }
 0x308   : > { %v5512_v58 = vld [vmem:[#allocation3 + $0xc8] sm:$0xff]  ;;  %v5388_v11 = vpop.f32.mrf.mxu0 }
 0x309   : > { %v5814_v21 = vpop.f32.mrf.mxu1  ;;  %5875 = vst.msk [vmem:[#allocation3 + $0xb0] sm:$0xff] %vm272_vm2, %v5845_v63  ;;  %v5848_v36 = vadd.f32 %v10380_v20, %v5512_v58  ;;  %5456 = vst.msk [vmem:[#allocation3 + $0xe8] sm:$0xff] %vm272_vm2, %v5426_v56  ;;  %v5425_v18 = vadd.f32 %v5388_v11, %v5089_v37  ;;  %v5917_v20 = vld [vmem:[#allocation3 + $0x20] sm:$0xff] }
 0x30a   : > { %v5511_v27 = vld [vmem:[#allocation3 + $0xc0] sm:$0xff]  ;;  %v10391_v46 = vpop.f32.mrf.mxu0 }
 0x30b   : > { %v10438_v41 = vpop.f32.mrf.mxu1  ;;  %5878 = vst.msk [vmem:[#allocation3 + $0xc8] sm:$0xff] %vm272_vm2, %v5848_v36  ;;  %v5847_v12 = vadd.f32 %v5794_v25, %v5511_v27  ;;  %5455 = vst.msk [vmem:[#allocation3 + $0xe0] sm:$0xff] %vm272_vm2, %v5425_v18  ;;  %v6250_v59 = vadd.f32 %v10391_v46, %v5914_v31  ;;  %v5920_v25 = vld [vmem:[#allocation3 + $0x38] sm:$0xff] }
 0x30c   : > { %v5514_v44 = vld [vmem:[#allocation3 + $0xd8] sm:$0xff]  ;;  %v6100_v16 = vpop.f32.mrf.mxu0 }
 0x30d   : > { %v6526_v51 = vpop.f32.mrf.mxu1  ;;  %5877 = vst.msk [vmem:[#allocation3 + $0xc0] sm:$0xff] %vm272_vm2, %v5847_v12  ;;  %v5850_v32 = vadd.f32 %v10383_v5, %v5514_v44  ;;  %6280 = vst.msk [vmem:[#allocation3 + $0x8] sm:$0xff] %vm272_vm2, %v6250_v59  ;;  %v6249_v38 = vadd.f32 %v6100_v16, %v5913_v34  ;;  %v5919_v5 = vld [vmem:[#allocation3 + $0x30] sm:$0xff] }
 0x30e   : > { %v5513_v23 = vld [vmem:[#allocation3 + $0xd0] sm:$0xff]  ;;  %v10394_v30 = vpop.f32.mrf.mxu0 }
 0x30f   : > { %v10441_v45 = vpop.f32.mrf.mxu1  ;;  %5880 = vst.msk [vmem:[#allocation3 + $0xd8] sm:$0xff] %vm272_vm2, %v5850_v32  ;;  %v5849_v14 = vadd.f32 %v5804_v54, %v5513_v23  ;;  %6279 = vst.msk [vmem:[#allocation3] sm:$0xff] %vm272_vm2, %v6249_v38  ;;  %v6252_v28 = vadd.f32 %v10394_v30, %v5916_v26  ;;  %v5922_v54 = vld [vmem:[#allocation3 + $0x48] sm:$0xff] }
 0x310   : > { %v5516_v4 = vld [vmem:[#allocation3 + $0xe8] sm:$0xff]  ;;  %v6110_v39 = vpop.f32.mrf.mxu0 }
 0x311   : > { %v6536_v2 = vpop.f32.mrf.mxu1  ;;  %5879 = vst.msk [vmem:[#allocation3 + $0xd0] sm:$0xff] %vm272_vm2, %v5849_v14  ;;  %v5852_v10 = vadd.f32 %v10386_v22, %v5516_v4  ;;  %6282 = vst.msk [vmem:[#allocation3 + $0x18] sm:$0xff] %vm272_vm2, %v6252_v28  ;;  %v6251_v57 = vadd.f32 %v6110_v39, %v5915_v62  ;;  %v5921_v22 = vld [vmem:[#allocation3 + $0x40] sm:$0xff] }
 0x312   : > { %v5515_v29 = vld [vmem:[#allocation3 + $0xe0] sm:$0xff]  ;;  %v10397_v40 = vpop.f32.mrf.mxu0 }
 0x313   : > { %v10444_v60 = vpop.f32.mrf.mxu1  ;;  %5882 = vst.msk [vmem:[#allocation3 + $0xe8] sm:$0xff] %vm272_vm2, %v5852_v10  ;;  %v5851_v8 = vadd.f32 %v5814_v21, %v5515_v29  ;;  %6281 = vst.msk [vmem:[#allocation3 + $0x10] sm:$0xff] %vm272_vm2, %v6251_v57  ;;  %v6254_v47 = vadd.f32 %v10397_v40, %v5918_v6  ;;  %v5924_v21 = vld [vmem:[#allocation3 + $0x58] sm:$0xff] }
 0x314   : > { %v6340_v49 = vld [vmem:[#allocation3 + $0x8] sm:$0xff]  ;;  %v6120_v13 = vpop.f32.mrf.mxu0 }
 0x315   : > { %v6546_v0 = vpop.f32.mrf.mxu1  ;;  %5881 = vst.msk [vmem:[#allocation3 + $0xe0] sm:$0xff] %vm272_vm2, %v5851_v8  ;;  %v6676_v35 = vadd.f32 %v10438_v41, %v6340_v49  ;;  %6284 = vst.msk [vmem:[#allocation3 + $0x28] sm:$0xff] %vm272_vm2, %v6254_v47  ;;  %v6253_v55 = vadd.f32 %v6120_v13, %v5917_v20  ;;  %v5923_v41 = vld [vmem:[#allocation3 + $0x50] sm:$0xff] }
 0x316   : > { %v6339_v52 = vld [vmem:[#allocation3] sm:$0xff]  ;;  %v10400_v61 = vpop.f32.mrf.mxu0 }
 0x317   : > { %v10447_v53 = vpop.f32.mrf.mxu1  ;;  %6706 = vst.msk [vmem:[#allocation3 + $0x8] sm:$0xff] %vm272_vm2, %v6676_v35  ;;  %v6675_v3 = vadd.f32 %v6526_v51, %v6339_v52  ;;  %6283 = vst.msk [vmem:[#allocation3 + $0x20] sm:$0xff] %vm272_vm2, %v6253_v55  ;;  %v6256_v24 = vadd.f32 %v10400_v61, %v5920_v25  ;;  %v5926_v51 = vld [vmem:[#allocation3 + $0x68] sm:$0xff] }
 0x318   : > { %v6342_v1 = vld [vmem:[#allocation3 + $0x18] sm:$0xff]  ;;  %v6130_v42 = vpop.f32.mrf.mxu0 }
 0x319   : > { %v6556_v17 = vpop.f32.mrf.mxu1  ;;  %6705 = vst.msk [vmem:[#allocation3] sm:$0xff] %vm272_vm2, %v6675_v3  ;;  %v6678_v7 = vadd.f32 %v10441_v45, %v6342_v1  ;;  %6286 = vst.msk [vmem:[#allocation3 + $0x38] sm:$0xff] %vm272_vm2, %v6256_v24  ;;  %v6255_v9 = vadd.f32 %v6130_v42, %v5919_v5  ;;  %v5925_v45 = vld [vmem:[#allocation3 + $0x60] sm:$0xff] }
 0x31a   : > { %v6341_v43 = vld [vmem:[#allocation3 + $0x10] sm:$0xff]  ;;  %v10403_v19 = vpop.f32.mrf.mxu0 }
 0x31b   : > { %v10450_v15 = vpop.f32.mrf.mxu1  ;;  %6708 = vst.msk [vmem:[#allocation3 + $0x18] sm:$0xff] %vm272_vm2, %v6678_v7  ;;  %v6677_v33 = vadd.f32 %v6536_v2, %v6341_v43  ;;  %6285 = vst.msk [vmem:[#allocation3 + $0x30] sm:$0xff] %vm272_vm2, %v6255_v9  ;;  %v6258_v48 = vadd.f32 %v10403_v19, %v5922_v54  ;;  %v5928_v2 = vld [vmem:[#allocation3 + $0x78] sm:$0xff] }
 0x31c   : > { %v6344_v50 = vld [vmem:[#allocation3 + $0x28] sm:$0xff]  ;;  %v6140_v63 = vpop.f32.mrf.mxu0 }
 0x31d   : > { %v6566_v56 = vpop.f32.mrf.mxu1  ;;  %6707 = vst.msk [vmem:[#allocation3 + $0x10] sm:$0xff] %vm272_vm2, %v6677_v33  ;;  %v6680_v58 = vadd.f32 %v10444_v60, %v6344_v50  ;;  %6288 = vst.msk [vmem:[#allocation3 + $0x48] sm:$0xff] %vm272_vm2, %v6258_v48  ;;  %v6257_v37 = vadd.f32 %v6140_v63, %v5921_v22  ;;  %v5927_v60 = vld [vmem:[#allocation3 + $0x70] sm:$0xff] }
 0x31e   : > { %v6343_v11 = vld [vmem:[#allocation3 + $0x20] sm:$0xff]  ;;  %v10406_v36 = vpop.f32.mrf.mxu0 }
 0x31f   : > { %v10453_v18 = vpop.f32.mrf.mxu1  ;;  %6710 = vst.msk [vmem:[#allocation3 + $0x28] sm:$0xff] %vm272_vm2, %v6680_v58  ;;  %v6679_v27 = vadd.f32 %v6546_v0, %v6343_v11  ;;  %6287 = vst.msk [vmem:[#allocation3 + $0x40] sm:$0xff] %vm272_vm2, %v6257_v37  ;;  %v6260_v31 = vadd.f32 %v10406_v36, %v5924_v21  ;;  %v5930_v0 = vld [vmem:[#allocation3 + $0x88] sm:$0xff] }
 0x320   : > { %v6346_v46 = vld [vmem:[#allocation3 + $0x38] sm:$0xff]  ;;  %v6150_v12 = vpop.f32.mrf.mxu0 }
 0x321   : > { %v6576_v59 = vpop.f32.mrf.mxu1  ;;  %6709 = vst.msk [vmem:[#allocation3 + $0x20] sm:$0xff] %vm272_vm2, %v6679_v27  ;;  %v6682_v44 = vadd.f32 %v10447_v53, %v6346_v46  ;;  %6290 = vst.msk [vmem:[#allocation3 + $0x58] sm:$0xff] %vm272_vm2, %v6260_v31  ;;  %v6259_v34 = vadd.f32 %v6150_v12, %v5923_v41  ;;  %v5929_v53 = vld [vmem:[#allocation3 + $0x80] sm:$0xff] }
 0x322   : > { %v6345_v16 = vld [vmem:[#allocation3 + $0x30] sm:$0xff]  ;;  %v10409_v32 = vpop.f32.mrf.mxu0 }
 0x323   : > { %v10456_v38 = vpop.f32.mrf.mxu1  ;;  %6712 = vst.msk [vmem:[#allocation3 + $0x38] sm:$0xff] %vm272_vm2, %v6682_v44  ;;  %v6681_v23 = vadd.f32 %v6556_v17, %v6345_v16  ;;  %6289 = vst.msk [vmem:[#allocation3 + $0x50] sm:$0xff] %vm272_vm2, %v6259_v34  ;;  %v6262_v26 = vadd.f32 %v10409_v32, %v5926_v51  ;;  %v5932_v17 = vld [vmem:[#allocation3 + $0x98] sm:$0xff] }
 0x324   : > { %v6348_v30 = vld [vmem:[#allocation3 + $0x48] sm:$0xff]  ;;  %v6160_v14 = vpop.f32.mrf.mxu0 }
 0x325   : > { %v6586_v28 = vpop.f32.mrf.mxu1  ;;  %6711 = vst.msk [vmem:[#allocation3 + $0x30] sm:$0xff] %vm272_vm2, %v6681_v23  ;;  %v6684_v4 = vadd.f32 %v10450_v15, %v6348_v30  ;;  %6292 = vst.msk [vmem:[#allocation3 + $0x68] sm:$0xff] %vm272_vm2, %v6262_v26  ;;  %v6261_v62 = vadd.f32 %v6160_v14, %v5925_v45  ;;  %v5931_v15 = vld [vmem:[#allocation3 + $0x90] sm:$0xff] }
 0x326   : > { %v6347_v39 = vld [vmem:[#allocation3 + $0x40] sm:$0xff]  ;;  %v10412_v10 = vpop.f32.mrf.mxu0 }
 0x327   : > { %v10459_v57 = vpop.f32.mrf.mxu1  ;;  %6714 = vst.msk [vmem:[#allocation3 + $0x48] sm:$0xff] %vm272_vm2, %v6684_v4  ;;  %v6683_v29 = vadd.f32 %v6566_v56, %v6347_v39  ;;  %6291 = vst.msk [vmem:[#allocation3 + $0x60] sm:$0xff] %vm272_vm2, %v6261_v62  ;;  %v6264_v6 = vadd.f32 %v10412_v10, %v5928_v2  ;;  %v5934_v56 = vld [vmem:[#allocation3 + $0xa8] sm:$0xff] }
 0x328   : > { %v6350_v40 = vld [vmem:[#allocation3 + $0x58] sm:$0xff]  ;;  %v6170_v8 = vpop.f32.mrf.mxu0 }
 0x329   : > { %v6596_v47 = vpop.f32.mrf.mxu1  ;;  %6713 = vst.msk [vmem:[#allocation3 + $0x40] sm:$0xff] %vm272_vm2, %v6683_v29  ;;  %v6686_v49 = vadd.f32 %v10453_v18, %v6350_v40  ;;  %6294 = vst.msk [vmem:[#allocation3 + $0x78] sm:$0xff] %vm272_vm2, %v6264_v6  ;;  %v6263_v20 = vadd.f32 %v6170_v8, %v5927_v60  ;;  %v5933_v18 = vld [vmem:[#allocation3 + $0xa0] sm:$0xff] }
 0x32a   : > { %v6349_v13 = vld [vmem:[#allocation3 + $0x50] sm:$0xff]  ;;  %v10415_v35 = vpop.f32.mrf.mxu0 }
 0x32b   : > { %v10462_v55 = vpop.f32.mrf.mxu1  ;;  %6716 = vst.msk [vmem:[#allocation3 + $0x58] sm:$0xff] %vm272_vm2, %v6686_v49  ;;  %v6685_v52 = vadd.f32 %v6576_v59, %v6349_v13  ;;  %6293 = vst.msk [vmem:[#allocation3 + $0x70] sm:$0xff] %vm272_vm2, %v6263_v20  ;;  %v6266_v25 = vadd.f32 %v10415_v35, %v5930_v0  ;;  %v5936_v59 = vld [vmem:[#allocation3 + $0xb8] sm:$0xff] }
 0x32c   : > { %v6352_v61 = vld [vmem:[#allocation3 + $0x68] sm:$0xff]  ;;  %v6180_v3 = vpop.f32.mrf.mxu0 }
 0x32d   : > { %v6606_v24 = vpop.f32.mrf.mxu1  ;;  %6715 = vst.msk [vmem:[#allocation3 + $0x50] sm:$0xff] %vm272_vm2, %v6685_v52  ;;  %v6688_v1 = vadd.f32 %v10456_v38, %v6352_v61  ;;  %6296 = vst.msk [vmem:[#allocation3 + $0x88] sm:$0xff] %vm272_vm2, %v6266_v25  ;;  %v6265_v5 = vadd.f32 %v6180_v3, %v5929_v53  ;;  %v5935_v38 = vld [vmem:[#allocation3 + $0xb0] sm:$0xff] }
 0x32e   : > { %v6351_v42 = vld [vmem:[#allocation3 + $0x60] sm:$0xff]  ;;  %v10418_v7 = vpop.f32.mrf.mxu0 }
 0x32f   : > { %v10465_v9 = vpop.f32.mrf.mxu1  ;;  %6718 = vst.msk [vmem:[#allocation3 + $0x68] sm:$0xff] %vm272_vm2, %v6688_v1  ;;  %v6687_v43 = vadd.f32 %v6586_v28, %v6351_v42  ;;  %6295 = vst.msk [vmem:[#allocation3 + $0x80] sm:$0xff] %vm272_vm2, %v6265_v5  ;;  %v6268_v54 = vadd.f32 %v10418_v7, %v5932_v17  ;;  %v5938_v28 = vld [vmem:[#allocation3 + $0xc8] sm:$0xff] }
 0x330   : > { %v6354_v19 = vld [vmem:[#allocation3 + $0x78] sm:$0xff]  ;;  %v6190_v33 = vpop.f32.mrf.mxu0 }
 0x331   : > { %v6616_v48 = vpop.f32.mrf.mxu1  ;;  %6717 = vst.msk [vmem:[#allocation3 + $0x60] sm:$0xff] %vm272_vm2, %v6687_v43  ;;  %v6690_v50 = vadd.f32 %v10459_v57, %v6354_v19  ;;  %6298 = vst.msk [vmem:[#allocation3 + $0x98] sm:$0xff] %vm272_vm2, %v6268_v54  ;;  %v6267_v22 = vadd.f32 %v6190_v33, %v5931_v15  ;;  %v5937_v57 = vld [vmem:[#allocation3 + $0xc0] sm:$0xff] }
 0x332   : > { %v6353_v63 = vld [vmem:[#allocation3 + $0x70] sm:$0xff]  ;;  %v10421_v58 = vpop.f32.mrf.mxu0 }
 0x333   : > { %v10468_v37 = vpop.f32.mrf.mxu1  ;;  %6720 = vst.msk [vmem:[#allocation3 + $0x78] sm:$0xff] %vm272_vm2, %v6690_v50  ;;  %v6689_v11 = vadd.f32 %v6596_v47, %v6353_v63  ;;  %6297 = vst.msk [vmem:[#allocation3 + $0x90] sm:$0xff] %vm272_vm2, %v6267_v22  ;;  %v6270_v21 = vadd.f32 %v10421_v58, %v5934_v56  ;;  %v5940_v47 = vld [vmem:[#allocation3 + $0xd8] sm:$0xff] }
 0x334   : > { %v6356_v36 = vld [vmem:[#allocation3 + $0x88] sm:$0xff]  ;;  %v6200_v27 = vpop.f32.mrf.mxu0 }
 0x335   : > { %v6626_v31 = vpop.f32.mrf.mxu1  ;;  %6719 = vst.msk [vmem:[#allocation3 + $0x70] sm:$0xff] %vm272_vm2, %v6689_v11  ;;  %v6692_v46 = vadd.f32 %v10462_v55, %v6356_v36  ;;  %6300 = vst.msk [vmem:[#allocation3 + $0xa8] sm:$0xff] %vm272_vm2, %v6270_v21  ;;  %v6269_v41 = vadd.f32 %v6200_v27, %v5933_v18  ;;  %v5939_v55 = vld [vmem:[#allocation3 + $0xd0] sm:$0xff] }
 0x336   : > { %v6355_v12 = vld [vmem:[#allocation3 + $0x80] sm:$0xff]  ;;  %v10424_v44 = vpop.f32.mrf.mxu0 }
 0x337   : > { %v10471_v34 = vpop.f32.mrf.mxu1  ;;  %6722 = vst.msk [vmem:[#allocation3 + $0x88] sm:$0xff] %vm272_vm2, %v6692_v46  ;;  %v6691_v16 = vadd.f32 %v6606_v24, %v6355_v12  ;;  %6299 = vst.msk [vmem:[#allocation3 + $0xa0] sm:$0xff] %vm272_vm2, %v6269_v41  ;;  %v6272_v51 = vadd.f32 %v10424_v44, %v5936_v59  ;;  %v5942_v24 = vld [vmem:[#allocation3 + $0xe8] sm:$0xff] }
 0x338   : > { %v6358_v32 = vld [vmem:[#allocation3 + $0x98] sm:$0xff]  ;;  %v6210_v23 = vpop.f32.mrf.mxu0 }
 0x339   : > { %v6636_v26 = vpop.f32.mrf.mxu1  ;;  %6721 = vst.msk [vmem:[#allocation3 + $0x80] sm:$0xff] %vm272_vm2, %v6691_v16  ;;  %v6694_v30 = vadd.f32 %v10465_v9, %v6358_v32  ;;  %6302 = vst.msk [vmem:[#allocation3 + $0xb8] sm:$0xff] %vm272_vm2, %v6272_v51  ;;  %v6271_v45 = vadd.f32 %v6210_v23, %v5935_v38  ;;  %v5941_v9 = vld [vmem:[#allocation3 + $0xe0] sm:$0xff] }
 0x33a   : > { %v6357_v14 = vld [vmem:[#allocation3 + $0x90] sm:$0xff]  ;;  %v10427_v4 = vpop.f32.mrf.mxu0 }
 0x33b   : > { %v10474_v62 = vpop.f32.mrf.mxu1  ;;  %6724 = vst.msk [vmem:[#allocation3 + $0x98] sm:$0xff] %vm272_vm2, %v6694_v30  ;;  %v6693_v39 = vadd.f32 %v6616_v48, %v6357_v14  ;;  %6301 = vst.msk [vmem:[#allocation3 + $0xb0] sm:$0xff] %vm272_vm2, %v6271_v45  ;;  %v6274_v2 = vadd.f32 %v10427_v4, %v5938_v28  ;;  %v6766_v48 = vld [vmem:[#allocation3 + $0x8] sm:$0xff] }
 0x33c   : > { %v6360_v10 = vld [vmem:[#allocation3 + $0xa8] sm:$0xff]  ;;  %v6220_v29 = vpop.f32.mrf.mxu0 }
 0x33d   : > { %v6646_v6 = vpop.f32.mrf.mxu1  ;;  %6723 = vst.msk [vmem:[#allocation3 + $0x90] sm:$0xff] %vm272_vm2, %v6693_v39  ;;  %v6696_v40 = vadd.f32 %v10468_v37, %v6360_v10  ;;  %6304 = vst.msk [vmem:[#allocation3 + $0xc8] sm:$0xff] %vm272_vm2, %v6274_v2  ;;  %v6273_v60 = vadd.f32 %v6220_v29, %v5937_v57  ;;  %v6765_v37 = vld [vmem:[#allocation3] sm:$0xff] }
 0x33e   : > { %v6359_v8 = vld [vmem:[#allocation3 + $0xa0] sm:$0xff]  ;;  %v10430_v49 = vpop.f32.mrf.mxu0 }
 0x33f   : > { %v10477_v20 = vpop.f32.mrf.mxu1  ;;  %6726 = vst.msk [vmem:[#allocation3 + $0xa8] sm:$0xff] %vm272_vm2, %v6696_v40  ;;  %v6695_v13 = vadd.f32 %v6626_v31, %v6359_v8  ;;  %6303 = vst.msk [vmem:[#allocation3 + $0xc0] sm:$0xff] %vm272_vm2, %v6273_v60  ;;  %v6276_v0 = vadd.f32 %v10430_v49, %v5940_v47  ;;  %v6768_v31 = vld [vmem:[#allocation3 + $0x18] sm:$0xff] }
 0x340   : > { %v6362_v35 = vld [vmem:[#allocation3 + $0xb8] sm:$0xff]  ;;  %v6230_v52 = vpop.f32.mrf.mxu0 }
 0x341   : > { %v6656_v25 = vpop.f32.mrf.mxu1  ;;  %6725 = vst.msk [vmem:[#allocation3 + $0xa0] sm:$0xff] %vm272_vm2, %v6695_v13  ;;  %v6698_v61 = vadd.f32 %v10471_v34, %v6362_v35  ;;  %6306 = vst.msk [vmem:[#allocation3 + $0xd8] sm:$0xff] %vm272_vm2, %v6276_v0  ;;  %v6275_v53 = vadd.f32 %v6230_v52, %v5939_v55  ;;  %v6767_v34 = vld [vmem:[#allocation3 + $0x10] sm:$0xff] }
 0x342   : > { %v6361_v3 = vld [vmem:[#allocation3 + $0xb0] sm:$0xff]  ;;  %v10433_v1 = vpop.f32.mrf.mxu0 }
 0x343   : > { %v10480_v5 = vpop.f32.mrf.mxu1  ;;  %6728 = vst.msk [vmem:[#allocation3 + $0xb8] sm:$0xff] %vm272_vm2, %v6698_v61  ;;  %v6697_v42 = vadd.f32 %v6636_v26, %v6361_v3  ;;  %6305 = vst.msk [vmem:[#allocation3 + $0xd0] sm:$0xff] %vm272_vm2, %v6275_v53  ;;  %v6278_v17 = vadd.f32 %v10433_v1, %v5942_v24  ;;  %v6770_v26 = vld [vmem:[#allocation3 + $0x28] sm:$0xff] }
 0x344   : > { %v6364_v7 = vld [vmem:[#allocation3 + $0xc8] sm:$0xff]  ;;  %v6240_v43 = vpop.f32.mrf.mxu0 }
 0x345   : > { %v6666_v54 = vpop.f32.mrf.mxu1  ;;  %6727 = vst.msk [vmem:[#allocation3 + $0xb0] sm:$0xff] %vm272_vm2, %v6697_v42  ;;  %v6700_v19 = vadd.f32 %v10474_v62, %v6364_v7  ;;  %6308 = vst.msk [vmem:[#allocation3 + $0xe8] sm:$0xff] %vm272_vm2, %v6278_v17  ;;  %v6277_v15 = vadd.f32 %v6240_v43, %v5941_v9  ;;  %v6769_v62 = vld [vmem:[#allocation3 + $0x20] sm:$0xff] }
 0x346   : > { %v6363_v33 = vld [vmem:[#allocation3 + $0xc0] sm:$0xff]  ;;  %v10485_v50 = vpop.f32.mrf.mxu0 }
 0x347   : > { %v10532_v22 = vpop.f32.mrf.mxu1  ;;  %6730 = vst.msk [vmem:[#allocation3 + $0xc8] sm:$0xff] %vm272_vm2, %v6700_v19  ;;  %v6699_v63 = vadd.f32 %v6646_v6, %v6363_v33  ;;  %6307 = vst.msk [vmem:[#allocation3 + $0xe0] sm:$0xff] %vm272_vm2, %v6277_v15  ;;  %v7102_v56 = vadd.f32 %v10485_v50, %v6766_v48  ;;  %v6772_v6 = vld [vmem:[#allocation3 + $0x38] sm:$0xff] }
 0x348   : > { %v6366_v58 = vld [vmem:[#allocation3 + $0xd8] sm:$0xff]  ;;  %v6952_v11 = vpop.f32.mrf.mxu0 }
 0x349   : > { %v7378_v21 = vpop.f32.mrf.mxu1  ;;  %6729 = vst.msk [vmem:[#allocation3 + $0xc0] sm:$0xff] %vm272_vm2, %v6699_v63  ;;  %v6702_v36 = vadd.f32 %v10477_v20, %v6366_v58  ;;  %7132 = vst.msk [vmem:[#allocation3 + $0x8] sm:$0xff] %vm272_vm2, %v7102_v56  ;;  %v7101_v18 = vadd.f32 %v6952_v11, %v6765_v37  ;;  %v6771_v20 = vld [vmem:[#allocation3 + $0x30] sm:$0xff] }
 0x34a   : > { %v6365_v27 = vld [vmem:[#allocation3 + $0xd0] sm:$0xff]  ;;  %v10488_v46 = vpop.f32.mrf.mxu0 }
 0x34b   : > { %v10535_v41 = vpop.f32.mrf.mxu1  ;;  %6732 = vst.msk [vmem:[#allocation3 + $0xd8] sm:$0xff] %vm272_vm2, %v6702_v36  ;;  %v6701_v12 = vadd.f32 %v6656_v25, %v6365_v27  ;;  %7131 = vst.msk [vmem:[#allocation3] sm:$0xff] %vm272_vm2, %v7101_v18  ;;  %v7104_v59 = vadd.f32 %v10488_v46, %v6768_v31  ;;  %v6774_v25 = vld [vmem:[#allocation3 + $0x48] sm:$0xff] }
 0x34c   : > { %v6368_v44 = vld [vmem:[#allocation3 + $0xe8] sm:$0xff]  ;;  %v6962_v16 = vpop.f32.mrf.mxu0 }
 0x34d   : > { %v7388_v51 = vpop.f32.mrf.mxu1  ;;  %6731 = vst.msk [vmem:[#allocation3 + $0xd0] sm:$0xff] %vm272_vm2, %v6701_v12  ;;  %v6704_v32 = vadd.f32 %v10480_v5, %v6368_v44  ;;  %7134 = vst.msk [vmem:[#allocation3 + $0x18] sm:$0xff] %vm272_vm2, %v7104_v59  ;;  %v7103_v38 = vadd.f32 %v6962_v16, %v6767_v34  ;;  %v6773_v5 = vld [vmem:[#allocation3 + $0x40] sm:$0xff] }
 0x34e   : > { %v6367_v23 = vld [vmem:[#allocation3 + $0xe0] sm:$0xff]  ;;  %v10491_v30 = vpop.f32.mrf.mxu0 }
 0x34f   : > { %v10538_v45 = vpop.f32.mrf.mxu1  ;;  %6734 = vst.msk [vmem:[#allocation3 + $0xe8] sm:$0xff] %vm272_vm2, %v6704_v32  ;;  %v6703_v14 = vadd.f32 %v6666_v54, %v6367_v23  ;;  %7133 = vst.msk [vmem:[#allocation3 + $0x10] sm:$0xff] %vm272_vm2, %v7103_v38  ;;  %v7106_v28 = vadd.f32 %v10491_v30, %v6770_v26  ;;  %v6776_v54 = vld [vmem:[#allocation3 + $0x58] sm:$0xff] }
 0x350   : > { %v7192_v4 = vld [vmem:[#allocation3 + $0x8] sm:$0xff]  ;;  %v6972_v39 = vpop.f32.mrf.mxu0 }
 0x351   : > { %v7398_v2 = vpop.f32.mrf.mxu1  ;;  %6733 = vst.msk [vmem:[#allocation3 + $0xe0] sm:$0xff] %vm272_vm2, %v6703_v14  ;;  %v7528_v10 = vadd.f32 %v10532_v22, %v7192_v4  ;;  %7136 = vst.msk [vmem:[#allocation3 + $0x28] sm:$0xff] %vm272_vm2, %v7106_v28  ;;  %v7105_v57 = vadd.f32 %v6972_v39, %v6769_v62  ;;  %v6775_v22 = vld [vmem:[#allocation3 + $0x50] sm:$0xff] }
 0x352   : > { %v7191_v29 = vld [vmem:[#allocation3] sm:$0xff]  ;;  %v10494_v40 = vpop.f32.mrf.mxu0 }
 0x353   : > { %v10541_v60 = vpop.f32.mrf.mxu1  ;;  %7558 = vst.msk [vmem:[#allocation3 + $0x8] sm:$0xff] %vm272_vm2, %v7528_v10  ;;  %v7527_v8 = vadd.f32 %v7378_v21, %v7191_v29  ;;  %7135 = vst.msk [vmem:[#allocation3 + $0x20] sm:$0xff] %vm272_vm2, %v7105_v57  ;;  %v7108_v47 = vadd.f32 %v10494_v40, %v6772_v6  ;;  %v6778_v21 = vld [vmem:[#allocation3 + $0x68] sm:$0xff] }
 0x354   : > { %v7194_v49 = vld [vmem:[#allocation3 + $0x18] sm:$0xff]  ;;  %v6982_v13 = vpop.f32.mrf.mxu0 }
 0x355   : > { %v7408_v0 = vpop.f32.mrf.mxu1  ;;  %7557 = vst.msk [vmem:[#allocation3] sm:$0xff] %vm272_vm2, %v7527_v8  ;;  %v7530_v35 = vadd.f32 %v10535_v41, %v7194_v49  ;;  %7138 = vst.msk [vmem:[#allocation3 + $0x38] sm:$0xff] %vm272_vm2, %v7108_v47  ;;  %v7107_v55 = vadd.f32 %v6982_v13, %v6771_v20  ;;  %v6777_v41 = vld [vmem:[#allocation3 + $0x60] sm:$0xff] }
 0x356   : > { %v7193_v52 = vld [vmem:[#allocation3 + $0x10] sm:$0xff]  ;;  %v10497_v61 = vpop.f32.mrf.mxu0 }
 0x357   : > { %v10544_v53 = vpop.f32.mrf.mxu1  ;;  %7560 = vst.msk [vmem:[#allocation3 + $0x18] sm:$0xff] %vm272_vm2, %v7530_v35  ;;  %v7529_v3 = vadd.f32 %v7388_v51, %v7193_v52  ;;  %7137 = vst.msk [vmem:[#allocation3 + $0x30] sm:$0xff] %vm272_vm2, %v7107_v55  ;;  %v7110_v24 = vadd.f32 %v10497_v61, %v6774_v25  ;;  %v6780_v51 = vld [vmem:[#allocation3 + $0x78] sm:$0xff] }
 0x358   : > { %v7196_v1 = vld [vmem:[#allocation3 + $0x28] sm:$0xff]  ;;  %v6992_v42 = vpop.f32.mrf.mxu0 }
 0x359   : > { %v7418_v17 = vpop.f32.mrf.mxu1  ;;  %7559 = vst.msk [vmem:[#allocation3 + $0x10] sm:$0xff] %vm272_vm2, %v7529_v3  ;;  %v7532_v7 = vadd.f32 %v10538_v45, %v7196_v1  ;;  %7140 = vst.msk [vmem:[#allocation3 + $0x48] sm:$0xff] %vm272_vm2, %v7110_v24  ;;  %v7109_v9 = vadd.f32 %v6992_v42, %v6773_v5  ;;  %v6779_v45 = vld [vmem:[#allocation3 + $0x70] sm:$0xff] }
 0x35a   : > { %v7195_v43 = vld [vmem:[#allocation3 + $0x20] sm:$0xff]  ;;  %v10500_v19 = vpop.f32.mrf.mxu0 }
 0x35b   : > { %v10547_v15 = vpop.f32.mrf.mxu1  ;;  %7562 = vst.msk [vmem:[#allocation3 + $0x28] sm:$0xff] %vm272_vm2, %v7532_v7  ;;  %v7531_v33 = vadd.f32 %v7398_v2, %v7195_v43  ;;  %7139 = vst.msk [vmem:[#allocation3 + $0x40] sm:$0xff] %vm272_vm2, %v7109_v9  ;;  %v7112_v48 = vadd.f32 %v10500_v19, %v6776_v54  ;;  %v6782_v2 = vld [vmem:[#allocation3 + $0x88] sm:$0xff] }
 0x35c   : > { %v7198_v50 = vld [vmem:[#allocation3 + $0x38] sm:$0xff]  ;;  %v7002_v63 = vpop.f32.mrf.mxu0 }
 0x35d   : > { %v7428_v56 = vpop.f32.mrf.mxu1  ;;  %7561 = vst.msk [vmem:[#allocation3 + $0x20] sm:$0xff] %vm272_vm2, %v7531_v33  ;;  %v7534_v58 = vadd.f32 %v10541_v60, %v7198_v50  ;;  %7142 = vst.msk [vmem:[#allocation3 + $0x58] sm:$0xff] %vm272_vm2, %v7112_v48  ;;  %v7111_v37 = vadd.f32 %v7002_v63, %v6775_v22  ;;  %v6781_v60 = vld [vmem:[#allocation3 + $0x80] sm:$0xff] }
 0x35e   : > { %v7197_v11 = vld [vmem:[#allocation3 + $0x30] sm:$0xff]  ;;  %v10503_v36 = vpop.f32.mrf.mxu0 }
 0x35f   : > { %v10550_v18 = vpop.f32.mrf.mxu1  ;;  %7564 = vst.msk [vmem:[#allocation3 + $0x38] sm:$0xff] %vm272_vm2, %v7534_v58  ;;  %v7533_v27 = vadd.f32 %v7408_v0, %v7197_v11  ;;  %7141 = vst.msk [vmem:[#allocation3 + $0x50] sm:$0xff] %vm272_vm2, %v7111_v37  ;;  %v7114_v31 = vadd.f32 %v10503_v36, %v6778_v21  ;;  %v6784_v0 = vld [vmem:[#allocation3 + $0x98] sm:$0xff] }
 0x360   : > { %v7200_v46 = vld [vmem:[#allocation3 + $0x48] sm:$0xff]  ;;  %v7012_v12 = vpop.f32.mrf.mxu0 }
 0x361   : > { %v7438_v59 = vpop.f32.mrf.mxu1  ;;  %7563 = vst.msk [vmem:[#allocation3 + $0x30] sm:$0xff] %vm272_vm2, %v7533_v27  ;;  %v7536_v44 = vadd.f32 %v10544_v53, %v7200_v46  ;;  %7144 = vst.msk [vmem:[#allocation3 + $0x68] sm:$0xff] %vm272_vm2, %v7114_v31  ;;  %v7113_v34 = vadd.f32 %v7012_v12, %v6777_v41  ;;  %v6783_v53 = vld [vmem:[#allocation3 + $0x90] sm:$0xff] }
 0x362   : > { %v7199_v16 = vld [vmem:[#allocation3 + $0x40] sm:$0xff]  ;;  %v10506_v32 = vpop.f32.mrf.mxu0 }
 0x363   : > { %v10553_v38 = vpop.f32.mrf.mxu1  ;;  %7566 = vst.msk [vmem:[#allocation3 + $0x48] sm:$0xff] %vm272_vm2, %v7536_v44  ;;  %v7535_v23 = vadd.f32 %v7418_v17, %v7199_v16  ;;  %7143 = vst.msk [vmem:[#allocation3 + $0x60] sm:$0xff] %vm272_vm2, %v7113_v34  ;;  %v7116_v26 = vadd.f32 %v10506_v32, %v6780_v51  ;;  %v6786_v17 = vld [vmem:[#allocation3 + $0xa8] sm:$0xff] }
 0x364   : > { %v7202_v30 = vld [vmem:[#allocation3 + $0x58] sm:$0xff]  ;;  %v7022_v14 = vpop.f32.mrf.mxu0 }
 0x365   : > { %v7448_v28 = vpop.f32.mrf.mxu1  ;;  %7565 = vst.msk [vmem:[#allocation3 + $0x40] sm:$0xff] %vm272_vm2, %v7535_v23  ;;  %v7538_v4 = vadd.f32 %v10547_v15, %v7202_v30  ;;  %7146 = vst.msk [vmem:[#allocation3 + $0x78] sm:$0xff] %vm272_vm2, %v7116_v26  ;;  %v7115_v62 = vadd.f32 %v7022_v14, %v6779_v45  ;;  %v6785_v15 = vld [vmem:[#allocation3 + $0xa0] sm:$0xff] }
 0x366   : > { %v7201_v39 = vld [vmem:[#allocation3 + $0x50] sm:$0xff]  ;;  %v10509_v10 = vpop.f32.mrf.mxu0 }
 0x367   : > { %v10556_v57 = vpop.f32.mrf.mxu1  ;;  %7568 = vst.msk [vmem:[#allocation3 + $0x58] sm:$0xff] %vm272_vm2, %v7538_v4  ;;  %v7537_v29 = vadd.f32 %v7428_v56, %v7201_v39  ;;  %7145 = vst.msk [vmem:[#allocation3 + $0x70] sm:$0xff] %vm272_vm2, %v7115_v62  ;;  %v7118_v6 = vadd.f32 %v10509_v10, %v6782_v2  ;;  %v6788_v56 = vld [vmem:[#allocation3 + $0xb8] sm:$0xff] }
 0x368   : > { %v7204_v40 = vld [vmem:[#allocation3 + $0x68] sm:$0xff]  ;;  %v7032_v8 = vpop.f32.mrf.mxu0 }
 0x369   : > { %v7458_v47 = vpop.f32.mrf.mxu1  ;;  %7567 = vst.msk [vmem:[#allocation3 + $0x50] sm:$0xff] %vm272_vm2, %v7537_v29  ;;  %v7540_v49 = vadd.f32 %v10550_v18, %v7204_v40  ;;  %7148 = vst.msk [vmem:[#allocation3 + $0x88] sm:$0xff] %vm272_vm2, %v7118_v6  ;;  %v7117_v20 = vadd.f32 %v7032_v8, %v6781_v60  ;;  %v6787_v18 = vld [vmem:[#allocation3 + $0xb0] sm:$0xff] }
 0x36a   : > { %v7203_v13 = vld [vmem:[#allocation3 + $0x60] sm:$0xff]  ;;  %v10512_v35 = vpop.f32.mrf.mxu0 }
 0x36b   : > { %v10559_v55 = vpop.f32.mrf.mxu1  ;;  %7570 = vst.msk [vmem:[#allocation3 + $0x68] sm:$0xff] %vm272_vm2, %v7540_v49  ;;  %v7539_v52 = vadd.f32 %v7438_v59, %v7203_v13  ;;  %7147 = vst.msk [vmem:[#allocation3 + $0x80] sm:$0xff] %vm272_vm2, %v7117_v20  ;;  %v7120_v25 = vadd.f32 %v10512_v35, %v6784_v0  ;;  %v6790_v59 = vld [vmem:[#allocation3 + $0xc8] sm:$0xff] }
 0x36c   : > { %v7206_v61 = vld [vmem:[#allocation3 + $0x78] sm:$0xff]  ;;  %v7042_v3 = vpop.f32.mrf.mxu0 }
 0x36d   : > { %v7468_v24 = vpop.f32.mrf.mxu1  ;;  %7569 = vst.msk [vmem:[#allocation3 + $0x60] sm:$0xff] %vm272_vm2, %v7539_v52  ;;  %v7542_v1 = vadd.f32 %v10553_v38, %v7206_v61  ;;  %7150 = vst.msk [vmem:[#allocation3 + $0x98] sm:$0xff] %vm272_vm2, %v7120_v25  ;;  %v7119_v5 = vadd.f32 %v7042_v3, %v6783_v53  ;;  %v6789_v38 = vld [vmem:[#allocation3 + $0xc0] sm:$0xff] }
 0x36e   : > { %v7205_v42 = vld [vmem:[#allocation3 + $0x70] sm:$0xff]  ;;  %v10515_v7 = vpop.f32.mrf.mxu0 }
 0x36f   : > { %v10562_v9 = vpop.f32.mrf.mxu1  ;;  %7572 = vst.msk [vmem:[#allocation3 + $0x78] sm:$0xff] %vm272_vm2, %v7542_v1  ;;  %v7541_v43 = vadd.f32 %v7448_v28, %v7205_v42  ;;  %7149 = vst.msk [vmem:[#allocation3 + $0x90] sm:$0xff] %vm272_vm2, %v7119_v5  ;;  %v7122_v54 = vadd.f32 %v10515_v7, %v6786_v17  ;;  %v6792_v28 = vld [vmem:[#allocation3 + $0xd8] sm:$0xff] }
 0x370   : > { %v7208_v19 = vld [vmem:[#allocation3 + $0x88] sm:$0xff]  ;;  %v7052_v33 = vpop.f32.mrf.mxu0 }
 0x371   : > { %v7478_v48 = vpop.f32.mrf.mxu1  ;;  %7571 = vst.msk [vmem:[#allocation3 + $0x70] sm:$0xff] %vm272_vm2, %v7541_v43  ;;  %v7544_v50 = vadd.f32 %v10556_v57, %v7208_v19  ;;  %7152 = vst.msk [vmem:[#allocation3 + $0xa8] sm:$0xff] %vm272_vm2, %v7122_v54  ;;  %v7121_v22 = vadd.f32 %v7052_v33, %v6785_v15  ;;  %v6791_v57 = vld [vmem:[#allocation3 + $0xd0] sm:$0xff] }
 0x372   : > { %v7207_v63 = vld [vmem:[#allocation3 + $0x80] sm:$0xff]  ;;  %v10518_v58 = vpop.f32.mrf.mxu0 }
 0x373   : > { %v10565_v37 = vpop.f32.mrf.mxu1  ;;  %7574 = vst.msk [vmem:[#allocation3 + $0x88] sm:$0xff] %vm272_vm2, %v7544_v50  ;;  %v7543_v11 = vadd.f32 %v7458_v47, %v7207_v63  ;;  %7151 = vst.msk [vmem:[#allocation3 + $0xa0] sm:$0xff] %vm272_vm2, %v7121_v22  ;;  %v7124_v21 = vadd.f32 %v10518_v58, %v6788_v56  ;;  %v6794_v47 = vld [vmem:[#allocation3 + $0xe8] sm:$0xff] }
 0x374   : > { %v7210_v36 = vld [vmem:[#allocation3 + $0x98] sm:$0xff]  ;;  %v7062_v27 = vpop.f32.mrf.mxu0 }
 0x375   : > { %v7488_v31 = vpop.f32.mrf.mxu1  ;;  %7573 = vst.msk [vmem:[#allocation3 + $0x80] sm:$0xff] %vm272_vm2, %v7543_v11  ;;  %v7546_v46 = vadd.f32 %v10559_v55, %v7210_v36  ;;  %7154 = vst.msk [vmem:[#allocation3 + $0xb8] sm:$0xff] %vm272_vm2, %v7124_v21  ;;  %v7123_v41 = vadd.f32 %v7062_v27, %v6787_v18  ;;  %v6793_v55 = vld [vmem:[#allocation3 + $0xe0] sm:$0xff] }
 0x376   : > { %v7209_v12 = vld [vmem:[#allocation3 + $0x90] sm:$0xff]  ;;  %v10521_v44 = vpop.f32.mrf.mxu0 }
 0x377   : > { %v10568_v34 = vpop.f32.mrf.mxu1  ;;  %7576 = vst.msk [vmem:[#allocation3 + $0x98] sm:$0xff] %vm272_vm2, %v7546_v46  ;;  %v7545_v16 = vadd.f32 %v7468_v24, %v7209_v12  ;;  %7153 = vst.msk [vmem:[#allocation3 + $0xb0] sm:$0xff] %vm272_vm2, %v7123_v41  ;;  %v7126_v51 = vadd.f32 %v10521_v44, %v6790_v59  ;;  %v7618_v24 = vld [vmem:[#allocation3 + $0x8] sm:$0xff] }
 0x378   : > { %v7212_v32 = vld [vmem:[#allocation3 + $0xa8] sm:$0xff]  ;;  %v7072_v23 = vpop.f32.mrf.mxu0 }
 0x379   : > { %v7498_v26 = vpop.f32.mrf.mxu1  ;;  %7575 = vst.msk [vmem:[#allocation3 + $0x90] sm:$0xff] %vm272_vm2, %v7545_v16  ;;  %v7548_v30 = vadd.f32 %v10562_v9, %v7212_v32  ;;  %7156 = vst.msk [vmem:[#allocation3 + $0xc8] sm:$0xff] %vm272_vm2, %v7126_v51  ;;  %v7125_v45 = vadd.f32 %v7072_v23, %v6789_v38  ;;  %v7617_v9 = vld [vmem:[#allocation3] sm:$0xff] }
 0x37a   : > { %v7211_v14 = vld [vmem:[#allocation3 + $0xa0] sm:$0xff]  ;;  %v10524_v4 = vpop.f32.mrf.mxu0 }
 0x37b   : > { %v10571_v62 = vpop.f32.mrf.mxu1  ;;  %7578 = vst.msk [vmem:[#allocation3 + $0xa8] sm:$0xff] %vm272_vm2, %v7548_v30  ;;  %v7547_v39 = vadd.f32 %v7478_v48, %v7211_v14  ;;  %7155 = vst.msk [vmem:[#allocation3 + $0xc0] sm:$0xff] %vm272_vm2, %v7125_v45  ;;  %v7128_v2 = vadd.f32 %v10524_v4, %v6792_v28  ;;  %v7620_v48 = vld [vmem:[#allocation3 + $0x18] sm:$0xff] }
 0x37c   : > { %v7214_v10 = vld [vmem:[#allocation3 + $0xb8] sm:$0xff]  ;;  %v7082_v29 = vpop.f32.mrf.mxu0 }
 0x37d   : > { %v7508_v6 = vpop.f32.mrf.mxu1  ;;  %7577 = vst.msk [vmem:[#allocation3 + $0xa0] sm:$0xff] %vm272_vm2, %v7547_v39  ;;  %v7550_v40 = vadd.f32 %v10565_v37, %v7214_v10  ;;  %7158 = vst.msk [vmem:[#allocation3 + $0xd8] sm:$0xff] %vm272_vm2, %v7128_v2  ;;  %v7127_v60 = vadd.f32 %v7082_v29, %v6791_v57  ;;  %v7619_v37 = vld [vmem:[#allocation3 + $0x10] sm:$0xff] }
 0x37e   : > { %v7213_v8 = vld [vmem:[#allocation3 + $0xb0] sm:$0xff]  ;;  %v10527_v49 = vpop.f32.mrf.mxu0 }
 0x37f   : > { %v10574_v20 = vpop.f32.mrf.mxu1  ;;  %7580 = vst.msk [vmem:[#allocation3 + $0xb8] sm:$0xff] %vm272_vm2, %v7550_v40  ;;  %v7549_v13 = vadd.f32 %v7488_v31, %v7213_v8  ;;  %7157 = vst.msk [vmem:[#allocation3 + $0xd0] sm:$0xff] %vm272_vm2, %v7127_v60  ;;  %v7130_v0 = vadd.f32 %v10527_v49, %v6794_v47  ;;  %v7622_v31 = vld [vmem:[#allocation3 + $0x28] sm:$0xff] }
 0x380   : > { %v7216_v35 = vld [vmem:[#allocation3 + $0xc8] sm:$0xff]  ;;  %v7092_v52 = vpop.f32.mrf.mxu0 }
 0x381   : > { %v7518_v25 = vpop.f32.mrf.mxu1  ;;  %7579 = vst.msk [vmem:[#allocation3 + $0xb0] sm:$0xff] %vm272_vm2, %v7549_v13  ;;  %v7552_v61 = vadd.f32 %v10568_v34, %v7216_v35  ;;  %7160 = vst.msk [vmem:[#allocation3 + $0xe8] sm:$0xff] %vm272_vm2, %v7130_v0  ;;  %v7129_v53 = vadd.f32 %v7092_v52, %v6793_v55  ;;  %v7621_v34 = vld [vmem:[#allocation3 + $0x20] sm:$0xff] }
 0x382   : > { %v7215_v3 = vld [vmem:[#allocation3 + $0xc0] sm:$0xff]  ;;  %v10579_v1 = vpop.f32.mrf.mxu0 }
 0x383   : > { %v10626_v5 = vpop.f32.mrf.mxu1  ;;  %7582 = vst.msk [vmem:[#allocation3 + $0xc8] sm:$0xff] %vm272_vm2, %v7552_v61  ;;  %v7551_v42 = vadd.f32 %v7498_v26, %v7215_v3  ;;  %7159 = vst.msk [vmem:[#allocation3 + $0xe0] sm:$0xff] %vm272_vm2, %v7129_v53  ;;  %v7954_v17 = vadd.f32 %v10579_v1, %v7618_v24  ;;  %v7624_v26 = vld [vmem:[#allocation3 + $0x38] sm:$0xff] }
 0x384   : > { %v7218_v7 = vld [vmem:[#allocation3 + $0xd8] sm:$0xff]  ;;  %v7804_v43 = vpop.f32.mrf.mxu0 }
 0x385   : > { %v8230_v54 = vpop.f32.mrf.mxu1  ;;  %7581 = vst.msk [vmem:[#allocation3 + $0xc0] sm:$0xff] %vm272_vm2, %v7551_v42  ;;  %v7554_v19 = vadd.f32 %v10571_v62, %v7218_v7  ;;  %7984 = vst.msk [vmem:[#allocation3 + $0x8] sm:$0xff] %vm272_vm2, %v7954_v17  ;;  %v7953_v15 = vadd.f32 %v7804_v43, %v7617_v9  ;;  %v7623_v62 = vld [vmem:[#allocation3 + $0x30] sm:$0xff]  ;;  %v7628_v61 = vld [vmem:[#allocation3 + $0x58] sm:$0xff] }
 0x386   : > { %v7217_v33 = vld [vmem:[#allocation3 + $0xd0] sm:$0xff]  ;;  %v10582_v50 = vpop.f32.mrf.mxu0 }
 0x387   : > { %v10629_v22 = vpop.f32.mrf.mxu1  ;;  %7584 = vst.msk [vmem:[#allocation3 + $0xd8] sm:$0xff] %vm272_vm2, %v7554_v19  ;;  %v7553_v63 = vadd.f32 %v7508_v6, %v7217_v33  ;;  %7983 = vst.msk [vmem:[#allocation3] sm:$0xff] %vm272_vm2, %v7953_v15  ;;  %v7956_v56 = vadd.f32 %v10582_v50, %v7620_v48  ;;  %v7626_v6 = vld [vmem:[#allocation3 + $0x48] sm:$0xff]  ;;  %v7627_v17 = vld [vmem:[#allocation3 + $0x50] sm:$0xff] }
 0x388   : > { %v7220_v58 = vld [vmem:[#allocation3 + $0xe8] sm:$0xff]  ;;  %v7814_v11 = vpop.f32.mrf.mxu0 }
 0x389   : > { %v8240_v21 = vpop.f32.mrf.mxu1  ;;  %7583 = vst.msk [vmem:[#allocation3 + $0xd0] sm:$0xff] %vm272_vm2, %v7553_v63  ;;  %v7556_v36 = vadd.f32 %v10574_v20, %v7220_v58  ;;  %7986 = vst.msk [vmem:[#allocation3 + $0x18] sm:$0xff] %vm272_vm2, %v7956_v56  ;;  %v7955_v18 = vadd.f32 %v7814_v11, %v7619_v37  ;;  %v7625_v20 = vld [vmem:[#allocation3 + $0x40] sm:$0xff]  ;;  %v7630_v33 = vld [vmem:[#allocation3 + $0x68] sm:$0xff] }
 0x38a   : > { %v7219_v27 = vld [vmem:[#allocation3 + $0xe0] sm:$0xff]  ;;  %v10585_v46 = vpop.f32.mrf.mxu0 }
 0x38b   : > { %v10632_v41 = vpop.f32.mrf.mxu1  ;;  %7586 = vst.msk [vmem:[#allocation3 + $0xe8] sm:$0xff] %vm272_vm2, %v7556_v36  ;;  %v7555_v12 = vadd.f32 %v7518_v25, %v7219_v27  ;;  %7985 = vst.msk [vmem:[#allocation3 + $0x10] sm:$0xff] %vm272_vm2, %v7955_v18  ;;  %v7958_v59 = vadd.f32 %v10585_v46, %v7622_v31  ;;  %v7629_v58 = vld [vmem:[#allocation3 + $0x60] sm:$0xff]  ;;  %v7632_v27 = vld [vmem:[#allocation3 + $0x78] sm:$0xff] }
 0x38c   : > { %v8044_v44 = vld [vmem:[#allocation3 + $0x8] sm:$0xff]  ;;  %v7824_v16 = vpop.f32.mrf.mxu0 }
 0x38d   : > { %v8250_v51 = vpop.f32.mrf.mxu1  ;;  %7585 = vst.msk [vmem:[#allocation3 + $0xe0] sm:$0xff] %vm272_vm2, %v7555_v12  ;;  %v8380_v32 = vadd.f32 %v10626_v5, %v8044_v44  ;;  %7988 = vst.msk [vmem:[#allocation3 + $0x28] sm:$0xff] %vm272_vm2, %v7958_v59  ;;  %v7957_v38 = vadd.f32 %v7824_v16, %v7621_v34  ;;  %v7631_v34 = vld [vmem:[#allocation3 + $0x70] sm:$0xff] }
 0x38e   : > { %v8043_v23 = vld [vmem:[#allocation3] sm:$0xff]  ;;  %v10588_v30 = vpop.f32.mrf.mxu0 }
 0x38f   : > { %v10635_v45 = vpop.f32.mrf.mxu1  ;;  %8410 = vst.msk [vmem:[#allocation3 + $0x8] sm:$0xff] %vm272_vm2, %v8380_v32  ;;  %v8379_v14 = vadd.f32 %v8230_v54, %v8043_v23  ;;  %7987 = vst.msk [vmem:[#allocation3 + $0x20] sm:$0xff] %vm272_vm2, %v7957_v38  ;;  %v7960_v28 = vadd.f32 %v10588_v30, %v7624_v26  ;;  %v7634_v30 = vld [vmem:[#allocation3 + $0x88] sm:$0xff] }
 0x390   : > { %v8046_v4 = vld [vmem:[#allocation3 + $0x18] sm:$0xff]  ;;  %v7834_v39 = vpop.f32.mrf.mxu0 }
 0x391   : > { %v8260_v2 = vpop.f32.mrf.mxu1  ;;  %8409 = vst.msk [vmem:[#allocation3] sm:$0xff] %vm272_vm2, %v8379_v14  ;;  %v8382_v10 = vadd.f32 %v10629_v22, %v8046_v4  ;;  %7990 = vst.msk [vmem:[#allocation3 + $0x38] sm:$0xff] %vm272_vm2, %v7960_v28  ;;  %v7959_v57 = vadd.f32 %v7834_v39, %v7623_v62 }
 0x392   : > { %v8045_v29 = vld [vmem:[#allocation3 + $0x10] sm:$0xff]  ;;  %v10591_v40 = vpop.f32.mrf.mxu0 }
 0x393   : > { %v10638_v60 = vpop.f32.mrf.mxu1  ;;  %8412 = vst.msk [vmem:[#allocation3 + $0x18] sm:$0xff] %vm272_vm2, %v8382_v10  ;;  %v8381_v8 = vadd.f32 %v8240_v21, %v8045_v29  ;;  %7989 = vst.msk [vmem:[#allocation3 + $0x30] sm:$0xff] %vm272_vm2, %v7959_v57  ;;  %v7962_v47 = vadd.f32 %v10591_v40, %v7626_v6 }
 0x394   : > { %v8048_v49 = vld [vmem:[#allocation3 + $0x28] sm:$0xff]  ;;  %v7844_v13 = vpop.f32.mrf.mxu0 }
 0x395   : > { %v8270_v0 = vpop.f32.mrf.mxu1  ;;  %8411 = vst.msk [vmem:[#allocation3 + $0x10] sm:$0xff] %vm272_vm2, %v8381_v8  ;;  %v8384_v35 = vadd.f32 %v10632_v41, %v8048_v49  ;;  %7992 = vst.msk [vmem:[#allocation3 + $0x48] sm:$0xff] %vm272_vm2, %v7962_v47  ;;  %v7961_v55 = vadd.f32 %v7844_v13, %v7625_v20  ;;  %v7636_v8 = vld [vmem:[#allocation3 + $0x98] sm:$0xff] }
 0x396   : > { %v8440_v52 = vld [vmem:[#allocation3 + $0x8] sm:$0x7f]  ;;  %v8047_v25 = vld [vmem:[#allocation3 + $0x20] sm:$0xff]  ;;  %v10594_v53 = vpop.f32.mrf.mxu0 }
 0x397   : > { %v10641_v3 = vpop.f32.mrf.mxu1  ;;  %9166 = vst.msk [vmem:[%s12573_s9 + $0xa8] sm:$0x7f] %vm4618_vm3, %v8440_v52  ;;  %v8383_v24 = vadd.f32 %v8250_v51, %v8047_v25  ;;  %v7964_v1 = vadd.f32 %v10594_v53, %v7628_v61 }
 0x398   : > { %8414 = vst.msk [vmem:[#allocation3 + $0x28] sm:$0xff] %vm272_vm2, %v8384_v35  ;;  %7991 = vst.msk [vmem:[#allocation3 + $0x40] sm:$0xff] %vm272_vm2, %v7961_v55  ;;  %v8439_v5 = vld [vmem:[#allocation3] sm:$0xff]  ;;  %v8050_v42 = vld [vmem:[#allocation3 + $0x38] sm:$0xff]  ;;  %v7854_v7 = vpop.f32.mrf.mxu0 }
 0x399   : > { %v8280_v9 = vpop.f32.mrf.mxu1  ;;  %9165 = vst.msk [vmem:[%s12573_s9 + $0xa0] sm:$0xff] %vm272_vm2, %v8439_v5  ;;  %8413 = vst.msk [vmem:[#allocation3 + $0x20] sm:$0xff] %vm272_vm2, %v8383_v24  ;;  %v8386_v43 = vadd.f32 %v10635_v45, %v8050_v42  ;;  %v7963_v54 = vadd.f32 %v7854_v7, %v7627_v17  ;;  %v7635_v35 = vld [vmem:[#allocation3 + $0x90] sm:$0xff] }
 0x39a   : > { %7994 = vst.msk [vmem:[#allocation3 + $0x58] sm:$0xff] %vm272_vm2, %v7964_v1  ;;  %v8444_v19 = vld [vmem:[#allocation3 + $0x18] sm:$0xff]  ;;  %v8049_v15 = vld [vmem:[#allocation3 + $0x30] sm:$0xff]  ;;  %v10597_v48 = vpop.f32.mrf.mxu0 }
 0x39b   : > { %v10644_v50 = vpop.f32.mrf.mxu1  ;;  %9167 = vst.msk [vmem:[%s12573_s9 + $0xb0] sm:$0xff] %vm272_vm2, %v8444_v19  ;;  %8416 = vst.msk [vmem:[#allocation3 + $0x38] sm:$0xff] %vm272_vm2, %v8386_v43  ;;  %v8385_v22 = vadd.f32 %v8260_v2, %v8049_v15  ;;  %v7966_v63 = vadd.f32 %v10597_v48, %v7630_v33  ;;  %v7633_v2 = vld [vmem:[#allocation3 + $0x80] sm:$0xff] }
 0x39c   : > { %7993 = vst.msk [vmem:[#allocation3 + $0x50] sm:$0xff] %vm272_vm2, %v7963_v54  ;;  %v8052_v56 = vld [vmem:[#allocation3 + $0x48] sm:$0xff]  ;;  %v7864_v37 = vpop.f32.mrf.mxu0 }
 0x39d   : > { %v8290_v11 = vpop.f32.mrf.mxu1  ;;  %8415 = vst.msk [vmem:[#allocation3 + $0x30] sm:$0xff] %vm272_vm2, %v8385_v22  ;;  %v8388_v21 = vadd.f32 %v10638_v60, %v8052_v56  ;;  %7996 = vst.msk [vmem:[#allocation3 + $0x68] sm:$0xff] %vm272_vm2, %v7966_v63  ;;  %v7965_v36 = vadd.f32 %v7864_v37, %v7629_v58 }
 0x39e   : > { %v10600_v31 = vpop.f32.mrf.mxu0 }
 0x39f   : > { %v8051_v18 = vld [vmem:[#allocation3 + $0x40] sm:$0xff]  ;;  %v10647_v46 = vpop.f32.mrf.mxu1  ;;  %8418 = vst.msk [vmem:[#allocation3 + $0x48] sm:$0xff] %vm272_vm2, %v8388_v21  ;;  %7995 = vst.msk [vmem:[#allocation3 + $0x60] sm:$0xff] %vm272_vm2, %v7965_v36  ;;  %v7968_v12 = vadd.f32 %v10600_v31, %v7632_v27  ;;  %v7639_v21 = vld [vmem:[#allocation3 + $0xb0] sm:$0xff] }
 0x3a0   : > { %v8387_v41 = vadd.f32 %v8270_v0, %v8051_v18  ;;  %v8445_v59 = vld [vmem:[#allocation3 + $0x20] sm:$0x7f]  ;;  %v7874_v16 = vpop.f32.mrf.mxu0 }
 0x3a1   : > { %v8054_v44 = vld [vmem:[#allocation3 + $0x58] sm:$0xff]  ;;  %v8300_v51 = vpop.f32.mrf.mxu1  ;;  %9168 = vst.msk [vmem:[%s12573_s9 + $0xb8] sm:$0x7f] %vm4618_vm3, %v8445_v59  ;;  %v7967_v38 = vadd.f32 %v7874_v16, %v7631_v34 }
 0x3a2   : > { %8417 = vst.msk [vmem:[#allocation3 + $0x40] sm:$0xff] %vm272_vm2, %v8387_v41  ;;  %7998 = vst.msk [vmem:[#allocation3 + $0x78] sm:$0xff] %vm272_vm2, %v7968_v12  ;;  %v8390_v32 = vadd.f32 %v10641_v3, %v8054_v44  ;;  %v8450_v23 = vld [vmem:[#allocation3 + $0x38] sm:$0x7f]  ;;  %v10603_v45 = vpop.f32.mrf.mxu0  ;;  %v7638_v3 = vld [vmem:[#allocation3 + $0xa8] sm:$0xff] }
 0x3a3   : > { %v8053_v26 = vld [vmem:[#allocation3 + $0x50] sm:$0xff]  ;;  %v10650_v14 = vpop.f32.mrf.mxu1  ;;  %9170 = vst.msk [vmem:[%s12573_s9 + $0xc8] sm:$0x7f] %vm4618_vm3, %v8450_v23  ;;  %v7970_v4 = vadd.f32 %v10603_v45, %v7634_v30  ;;  %v7642_v41 = vld [vmem:[#allocation3 + $0xc8] sm:$0xff]  ;;  %v7644_v30 = vld [vmem:[#allocation3 + $0xd8] sm:$0xff] }
 0x3a4   : > { %8420 = vst.msk [vmem:[#allocation3 + $0x58] sm:$0xff] %vm272_vm2, %v8390_v32  ;;  %7997 = vst.msk [vmem:[#allocation3 + $0x70] sm:$0xff] %vm272_vm2, %v7967_v38  ;;  %v8389_v28 = vadd.f32 %v8280_v9, %v8053_v26  ;;  %v8449_v62 = vld [vmem:[#allocation3 + $0x30] sm:$0xff]  ;;  %v8056_v39 = vld [vmem:[#allocation3 + $0x68] sm:$0xff]  ;;  %v7884_v10 = vpop.f32.mrf.mxu0 }
 0x3a5   : > { %v8310_v57 = vpop.f32.mrf.mxu1  ;;  %9169 = vst.msk [vmem:[%s12573_s9 + $0xc0] sm:$0xff] %vm272_vm2, %v8449_v62  ;;  %8000 = vst.msk [vmem:[#allocation3 + $0x88] sm:$0xff] %vm272_vm2, %v7970_v4  ;;  %v8392_v29 = vadd.f32 %v10644_v50, %v8056_v39  ;;  %v7969_v6 = vadd.f32 %v7884_v10, %v7633_v2  ;;  %v7637_v9 = vld [vmem:[#allocation3 + $0xa0] sm:$0xff]  ;;  %v7640_v50 = vld [vmem:[#allocation3 + $0xb8] sm:$0xff] }
 0x3a6   : > { %8419 = vst.msk [vmem:[#allocation3 + $0x50] sm:$0xff] %vm272_vm2, %v8389_v28  ;;  %v8454_v40 = vld [vmem:[#allocation3 + $0x48] sm:$0xff]  ;;  %v8055_v60 = vld [vmem:[#allocation3 + $0x60] sm:$0xff]  ;;  %v10606_v47 = vpop.f32.mrf.mxu0  ;;  %v7643_v39 = vld [vmem:[#allocation3 + $0xd0] sm:$0xff] }
 0x3a7   : > { %v10653_v49 = vpop.f32.mrf.mxu1  ;;  %9171 = vst.msk [vmem:[%s12573_s9 + $0xd0] sm:$0xff] %vm272_vm2, %v8454_v40  ;;  %8422 = vst.msk [vmem:[#allocation3 + $0x68] sm:$0xff] %vm272_vm2, %v8392_v29  ;;  %v8391_v20 = vadd.f32 %v8290_v11, %v8055_v60  ;;  %v7972_v13 = vadd.f32 %v10606_v47, %v7636_v8 }
 0x3a8   : > { %7999 = vst.msk [vmem:[#allocation3 + $0x80] sm:$0xff] %vm272_vm2, %v7969_v6  ;;  %v7894_v55 = vpop.f32.mrf.mxu0  ;;  %v7646_v6 = vld [vmem:[#allocation3 + $0xe8] sm:$0xff] }
 0x3a9   : > { %v8058_v0 = vld [vmem:[#allocation3 + $0x78] sm:$0xff]  ;;  %v8320_v52 = vpop.f32.mrf.mxu1  ;;  %8421 = vst.msk [vmem:[#allocation3 + $0x60] sm:$0xff] %vm272_vm2, %v8391_v20  ;;  %8002 = vst.msk [vmem:[#allocation3 + $0x98] sm:$0xff] %vm272_vm2, %v7972_v13  ;;  %v7971_v61 = vadd.f32 %v7894_v55, %v7635_v35  ;;  %v7645_v20 = vld [vmem:[#allocation3 + $0xe0] sm:$0xff] }
 0x3aa   : > { %v8394_v25 = vadd.f32 %v10647_v46, %v8058_v0  ;;  %v10609_v24 = vpop.f32.mrf.mxu0 }
 0x3ab   : > { %v8057_v53 = vld [vmem:[#allocation3 + $0x70] sm:$0xff]  ;;  %v10656_v1 = vpop.f32.mrf.mxu1  ;;  %8001 = vst.msk [vmem:[#allocation3 + $0x90] sm:$0xff] %vm272_vm2, %v7971_v61  ;;  %v7974_v42 = vadd.f32 %v10609_v24, %v7638_v3 }
 0x3ac   : > { %8424 = vst.msk [vmem:[#allocation3 + $0x78] sm:$0xff] %vm272_vm2, %v8394_v25  ;;  %v8393_v5 = vadd.f32 %v8300_v51, %v8057_v53  ;;  %v8060_v7 = vld [vmem:[#allocation3 + $0x88] sm:$0xff]  ;;  %v7904_v43 = vpop.f32.mrf.mxu0  ;;  %v7641_v51 = vld [vmem:[#allocation3 + $0xc0] sm:$0xff] }
 0x3ad   : > { %v8455_v17 = vld [vmem:[#allocation3 + $0x50] sm:$0x7f]  ;;  %v8330_v54 = vpop.f32.mrf.mxu1  ;;  %8004 = vst.msk [vmem:[#allocation3 + $0xa8] sm:$0xff] %vm272_vm2, %v7974_v42  ;;  %v8396_v19 = vadd.f32 %v10650_v14, %v8060_v7  ;;  %v7973_v15 = vadd.f32 %v7904_v43, %v7637_v9 }
 0x3ae   : > { %9172 = vst.msk [vmem:[%s12573_s9 + $0xd8] sm:$0x7f] %vm4618_vm3, %v8455_v17  ;;  %v8460_v33 = vld [vmem:[#allocation3 + $0x68] sm:$0x7f]  ;;  %v10612_v22 = vpop.f32.mrf.mxu0 }
 0x3af   : > { %8423 = vst.msk [vmem:[#allocation3 + $0x70] sm:$0xff] %vm272_vm2, %v8393_v5  ;;  %v8059_v48 = vld [vmem:[#allocation3 + $0x80] sm:$0xff]  ;;  %v10659_v63 = vpop.f32.mrf.mxu1  ;;  %8426 = vst.msk [vmem:[#allocation3 + $0x88] sm:$0xff] %vm272_vm2, %v8396_v19  ;;  %v7976_v58 = vadd.f32 %v10612_v22, %v7640_v50 }
 0x3b0   : > { %9174 = vst.msk [vmem:[%s12573_s9 + $0xe8] sm:$0x7f] %vm4618_vm3, %v8460_v33  ;;  %v8395_v56 = vadd.f32 %v8310_v57, %v8059_v48  ;;  %v8459_v37 = vld [vmem:[#allocation3 + $0x60] sm:$0xff]  ;;  %v8062_v11 = vld [vmem:[#allocation3 + $0x98] sm:$0xff]  ;;  %v7914_v36 = vpop.f32.mrf.mxu0 }
 0x3b1   : > { %8003 = vst.msk [vmem:[#allocation3 + $0xa0] sm:$0xff] %vm272_vm2, %v7973_v15  ;;  %v8340_v18 = vpop.f32.mrf.mxu1  ;;  %9173 = vst.msk [vmem:[%s12573_s9 + $0xe0] sm:$0xff] %vm272_vm2, %v8459_v37  ;;  %v8398_v27 = vadd.f32 %v10653_v49, %v8062_v11  ;;  %v7975_v31 = vadd.f32 %v7914_v36, %v7639_v21 }
 0x3b2   : > { %8425 = vst.msk [vmem:[#allocation3 + $0x80] sm:$0xff] %vm272_vm2, %v8395_v56  ;;  %8006 = vst.msk [vmem:[#allocation3 + $0xb8] sm:$0xff] %vm272_vm2, %v7976_v58  ;;  %v8061_v46 = vld [vmem:[#allocation3 + $0x90] sm:$0xff]  ;;  %v10615_v12 = vpop.f32.mrf.mxu0 }
 0x3b3   : > { %v10662_v59 = vpop.f32.mrf.mxu1  ;;  %8428 = vst.msk [vmem:[#allocation3 + $0x98] sm:$0xff] %vm272_vm2, %v8398_v27  ;;  %8005 = vst.msk [vmem:[#allocation3 + $0xb0] sm:$0xff] %vm272_vm2, %v7975_v31  ;;  %v8397_v44 = vadd.f32 %v8320_v52, %v8061_v46  ;;  %v7978_v34 = vadd.f32 %v10615_v12, %v7642_v41 }
 0x3b4   : > { %v8064_v16 = vld [vmem:[#allocation3 + $0xa8] sm:$0xff]  ;;  %v7924_v32 = vpop.f32.mrf.mxu0 }
 0x3b5   : > { %8427 = vst.msk [vmem:[#allocation3 + $0x90] sm:$0xff] %vm272_vm2, %v8397_v44  ;;  %8008 = vst.msk [vmem:[#allocation3 + $0xc8] sm:$0xff] %vm272_vm2, %v7978_v34  ;;  %v8400_v38 = vadd.f32 %v10656_v1, %v8064_v16  ;;  %v7977_v23 = vadd.f32 %v7924_v32, %v7641_v51  ;;  %v8350_v14 = vpop.f32.mrf.mxu1 }
 0x3b6   : > { %v10618_v45 = vpop.f32.mrf.mxu0 }
 0x3b7   : > { %8430 = vst.msk [vmem:[#allocation3 + $0xa8] sm:$0xff] %vm272_vm2, %v8400_v38  ;;  %8007 = vst.msk [vmem:[#allocation3 + $0xc0] sm:$0xff] %vm272_vm2, %v7977_v23  ;;  %v7980_v4 = vadd.f32 %v10618_v45, %v7644_v30  ;;  %v10665_v60 = vpop.f32.mrf.mxu1 }
 0x3b8   : > { %v8063_v26 = vld [vmem:[#allocation3 + $0xa0] sm:$0xff]  ;;  %v7934_v2 = vpop.f32.mrf.mxu0 }
 0x3b9   : > { %v8399_v28 = vadd.f32 %v8330_v54, %v8063_v26  ;;  %v8066_v62 = vld [vmem:[#allocation3 + $0xb8] sm:$0xff]  ;;  %8010 = vst.msk [vmem:[#allocation3 + $0xd8] sm:$0xff] %vm272_vm2, %v7980_v4  ;;  %v7979_v57 = vadd.f32 %v7934_v2, %v7643_v39  ;;  %v8360_v52 = vpop.f32.mrf.mxu1 }
 0x3ba   : > { %v8402_v10 = vadd.f32 %v10659_v63, %v8066_v62  ;;  %v8065_v29 = vld [vmem:[#allocation3 + $0xb0] sm:$0xff]  ;;  %v10621_v40 = vpop.f32.mrf.mxu0 }
 0x3bb   : > { %8429 = vst.msk [vmem:[#allocation3 + $0xa0] sm:$0xff] %vm272_vm2, %v8399_v28  ;;  %8009 = vst.msk [vmem:[#allocation3 + $0xd0] sm:$0xff] %vm272_vm2, %v7979_v57  ;;  %v8401_v8 = vadd.f32 %v8340_v18, %v8065_v29  ;;  %v7982_v47 = vadd.f32 %v10621_v40, %v7646_v6  ;;  %v10668_v24 = vpop.f32.mrf.mxu1 }
 0x3bc   : > { %8432 = vst.msk [vmem:[#allocation3 + $0xb8] sm:$0xff] %vm272_vm2, %v8402_v10  ;;  %v8068_v49 = vld [vmem:[#allocation3 + $0xc8] sm:$0xff]  ;;  %v7944_v13 = vpop.f32.mrf.mxu0 }
 0x3bd   : > { %8431 = vst.msk [vmem:[#allocation3 + $0xb0] sm:$0xff] %vm272_vm2, %v8401_v8  ;;  %8012 = vst.msk [vmem:[#allocation3 + $0xe8] sm:$0xff] %vm272_vm2, %v7982_v47  ;;  %v8404_v0 = vadd.f32 %v10662_v59, %v8068_v49  ;;  %v7981_v35 = vadd.f32 %v7944_v13, %v7645_v20  ;;  %v8370_v7 = vpop.f32.mrf.mxu1 }
 0x3be   : > { %v8067_v55 = vld [vmem:[#allocation3 + $0xc0] sm:$0xff] }
 0x3bf   : > { %8434 = vst.msk [vmem:[#allocation3 + $0xc8] sm:$0xff] %vm272_vm2, %v8404_v0  ;;  %8011 = vst.msk [vmem:[#allocation3 + $0xe0] sm:$0xff] %vm272_vm2, %v7981_v35  ;;  %v8403_v25 = vadd.f32 %v8350_v14, %v8067_v55 }
 0x3c0   : > { %v8070_v61 = vld [vmem:[#allocation3 + $0xd8] sm:$0xff] }
 0x3c1   : > { %8433 = vst.msk [vmem:[#allocation3 + $0xc0] sm:$0xff] %vm272_vm2, %v8403_v25  ;;  %v8406_v53 = vadd.f32 %v10665_v60, %v8070_v61 }
 0x3c2   : > { %v8069_v3 = vld [vmem:[#allocation3 + $0xd0] sm:$0xff] }
 0x3c3   : > { %8436 = vst.msk [vmem:[#allocation3 + $0xd8] sm:$0xff] %vm272_vm2, %v8406_v53  ;;  %v8405_v1 = vadd.f32 %v8360_v52, %v8069_v3 }
 0x3c4   : > { %v8072_v5 = vld [vmem:[#allocation3 + $0xe8] sm:$0xff] }
 0x3c5   : > { %8435 = vst.msk [vmem:[#allocation3 + $0xd0] sm:$0xff] %vm272_vm2, %v8405_v1  ;;  %v8408_v42 = vadd.f32 %v10668_v24, %v8072_v5 }
 0x3c6   : > { %v8071_v17 = vld [vmem:[#allocation3 + $0xe0] sm:$0xff] }
 0x3c7   : > { %8438 = vst.msk [vmem:[#allocation3 + $0xe8] sm:$0xff] %vm272_vm2, %v8408_v42  ;;  %v8407_v9 = vadd.f32 %v8370_v7, %v8071_v17 }
 0x3c9   : > { %8437 = vst.msk [vmem:[#allocation3 + $0xe0] sm:$0xff] %vm272_vm2, %v8407_v9 }
 0x3ca PF: > { %s16_s21 = sadd.s32 1, %s10686_s21  }
 0x3cb   : > { %p13_p4 = scmp.ge.s32.totalorder %s16_s21, 4  }
 0x3cd   :  { %15 = sbr.rel (!%p13_p4) target bundleno = 1 (0x1), region = 106 }

</bundles_post_ra>
